<compile_context>
chip_gen: v6e
topology: v6e:2x2x1
jax: 0.10.0
libtpu: 0.0.40
codegen_flags: <defaults>
</compile_context>

<pallas_src>
import functools
import math

import jax
import jax.numpy as jnp
from jax.experimental import pallas as pl
from jax.experimental.pallas import tpu as pltpu


_VMEM_LIMIT = 32 * 1024 * 1024  # fits v7x (64 MiB physical) with headroom


def _round_up(v, m):
    return ((v + m - 1) // m) * m


# ---------------------------------------------------------------------------
# Pallas kernels
# ---------------------------------------------------------------------------
def _mm_bias_act_kernel(a_ref, w_ref, b_ref, o_ref, *, relu):
    """One (tm, K) x (K, N) tile: bf16 matmul + f32 bias (+ ReLU)."""
    acc = jnp.dot(a_ref[...], w_ref[...], preferred_element_type=jnp.float32)
    acc = acc + b_ref[...]  # (tm, N) + (1, N)
    if relu:
        acc = jnp.maximum(acc, 0.0)
    o_ref[...] = acc.astype(o_ref.dtype)


def _pick_tm(M):
    """Row tile: big tiles for the big conv1 GEMM, exactly 2 grid steps for the
    small layers (keeps v7x's second TensorCore busy without padding M)."""
    if M >= 8192:
        return 2048
    if M >= 2048:
        return 1024
    half = (M + 1) // 2
    return max(8, _round_up(half, 8))


def matmul_bias_act(a, w, b, *, relu, out_dtype=jnp.float32):
    """y = act(a @ w + b); a: (M, K) bf16, w: (K, N) bf16, b: (N,) f32.

    No M padding / output slicing: the grid is pl.cdiv(M, tm) and Pallas masks
    the ragged last block (its garbage rows are never written to the exact
    (M, N) output)."""
    M, K = a.shape
    Kw, N = w.shape
    assert K == Kw, (K, Kw)
    tm = min(_pick_tm(M), _round_up(M, 8))
    out = pl.pallas_call(
        functools.partial(_mm_bias_act_kernel, relu=relu),
        out_shape=jax.ShapeDtypeStruct((M, N), out_dtype),
        grid=(pl.cdiv(M, tm),),
        in_specs=[
            pl.BlockSpec((tm, K), lambda i: (i, 0)),
            pl.BlockSpec((K, N), lambda i: (0, 0)),
            pl.BlockSpec((1, N), lambda i: (0, 0)),
        ],
        out_specs=pl.BlockSpec((tm, N), lambda i: (i, 0)),
        compiler_params=pltpu.CompilerParams(
            dimension_semantics=("parallel",),
            vmem_limit_bytes=_VMEM_LIMIT,
        ),
    )(a, w, b.reshape(1, N))
    return out


def _pool_kernel(x_ref, o_ref):
    """MaxPool2d(2,2) on a (tr, 2, W2, 2*C) view: the h-pair lives on dim 1 and
    the w-pair is the two contiguous C-wide halves of the last dim."""
    C = o_ref.shape[-1]
    top = x_ref[:, 0, :, :]            # (tr, W2, 2*C)
    bot = x_ref[:, 1, :, :]
    v = jnp.maximum(top, bot)          # vertical max
    o_ref[...] = jnp.maximum(v[:, :, :C], v[:, :, C:])  # horizontal max


def maxpool2x2(x):
    """MaxPool2d(kernel=2, stride=2), floor mode. x: (B, H, W, C) NHWC.

    Single-input kernel: x is viewed (free contiguous reshape) as
    (B*H2, 2, W2, 2*C); the four taps are extracted in-kernel."""
    B, H, W, C = x.shape
    H2, W2 = H // 2, W // 2
    if H % 2 or W % 2:
        x = x[:, : H2 * 2, : W2 * 2, :]
    R = B * H2
    x4 = x.reshape(R, 2, W2, 2 * C)
    tr = max(1, (R + 1) // 2)  # 2 grid steps -> work for v7x's 2nd core
    out = pl.pallas_call(
        _pool_kernel,
        out_shape=jax.ShapeDtypeStruct((R, W2, C), x.dtype),
        grid=(pl.cdiv(R, tr),),
        in_specs=[pl.BlockSpec((tr, 2, W2, 2 * C), lambda i: (i, 0, 0, 0))],
        out_specs=pl.BlockSpec((tr, W2, C), lambda i: (i, 0, 0)),
        compiler_params=pltpu.CompilerParams(
            dimension_semantics=("parallel",),
            vmem_limit_bytes=_VMEM_LIMIT,
        ),
    )(x4)
    return out.reshape(B, H2, W2, C)


def _fc_head_kernel(x_ref, w1_ref, b1_ref, w2_ref, b2_ref, w3_ref, b3_ref,
                    o_ref, acc_ref):
    """Fused fc1 -> relu -> fc2 -> relu -> fc3.

    fc1's K reduction is split over the grid (axis 0, 'arbitrary') with an f32
    accumulator so the 1.5 MB fc1-weight DMA is pipelined; fc2/fc3 weights stay
    VMEM-resident (constant block index) and run on the last step."""
    k = pl.program_id(0)

    @pl.when(k == 0)
    def _():
        acc_ref[...] = jnp.zeros_like(acc_ref)

    acc_ref[...] += jnp.dot(x_ref[...], w1_ref[...],
                            preferred_element_type=jnp.float32)

    @pl.when(k == pl.num_programs(0) - 1)
    def _():
        h = jnp.maximum(acc_ref[...] + b1_ref[...], 0.0)
        h = jnp.dot(h.astype(jnp.bfloat16), w2_ref[...],
                    preferred_element_type=jnp.float32)
        h = jnp.maximum(h + b2_ref[...], 0.0)
        y = jnp.dot(h.astype(jnp.bfloat16), w3_ref[...],
                    preferred_element_type=jnp.float32)
        o_ref[...] = y + b3_ref[...]


def fc_head(feat, params):
    """feat: (B, 6144) bf16 -> (B, 2) f32. fc3 is N-padded to 128 (lane-dense)."""
    B, K = feat.shape
    Mp = max(8, _round_up(B, 8))
    x = feat
    if Mp != B:
        x = jnp.pad(feat, ((0, Mp - B), (0, 0)))
    x = x.astype(jnp.bfloat16)

    kt = 4 if K % 4 == 0 else 1   # K=6144 -> 4 chunks of 1536
    kc = K // kt

    out = pl.pallas_call(
        _fc_head_kernel,
        out_shape=jax.ShapeDtypeStruct((Mp, 128), jnp.float32),
        grid=(kt,),
        in_specs=[
            pl.BlockSpec((Mp, kc), lambda k: (0, k)),
            pl.BlockSpec((kc, 128), lambda k: (k, 0)),
            pl.BlockSpec((1, 128), lambda k: (0, 0)),
            pl.BlockSpec((128, 128), lambda k: (0, 0)),
            pl.BlockSpec((1, 128), lambda k: (0, 0)),
            pl.BlockSpec((128, 128), lambda k: (0, 0)),
            pl.BlockSpec((1, 128), lambda k: (0, 0)),
        ],
        out_specs=pl.BlockSpec((Mp, 128), lambda k: (0, 0)),
        scratch_shapes=[pltpu.VMEM((Mp, 128), jnp.float32)],
        compiler_params=pltpu.CompilerParams(
            dimension_semantics=("arbitrary",),
            vmem_limit_bytes=_VMEM_LIMIT,
        ),
    )(
        x,
        params["f1w"], params["f1b"].reshape(1, 128),
        params["f2w"], params["f2b"].reshape(1, 128),
        params["f3w"], params["f3b"].reshape(1, 128),
    )
    return out[:B, :2]


# ---------------------------------------------------------------------------
# Conv = im2col (XLA glue, bf16, fused under jit) + Pallas fused matmul kernel
# ---------------------------------------------------------------------------
def _im2col(x, kh, kw, sh, sw):
    """x: (B, H, W, C) -> (B*OH*OW, kh*kw*C), patch order (kh, kw, cin)."""
    B, H, W, C = x.shape
    OH = (H - kh) // sh + 1
    OW = (W - kw) // sw + 1
    cols = []
    for i in range(kh):
        for j in range(kw):
            cols.append(
                jax.lax.slice(
                    x,
                    (0, i, j, 0),
                    (B, i + sh * (OH - 1) + 1, j + sw * (OW - 1) + 1, C),
                    (1, sh, sw, 1),
                )
            )
    patches = jnp.stack(cols, axis=3)  # (B, OH, OW, kh*kw, C)
    return patches.reshape(B * OH * OW, kh * kw * C), (OH, OW)


def conv2d_relu(x, wmat, b, *, kh, kw, stride, cout):
    """x: (B,H,W,C) NHWC bf16; wmat: (kh*kw*cin, cout) bf16 in (kh,kw,cin)
    row order; valid padding, fused bias + ReLU."""
    B = x.shape[0]
    cols, (OH, OW) = _im2col(x, kh, kw, stride, stride)
    y = matmul_bias_act(cols, wmat, b, relu=True, out_dtype=jnp.bfloat16)
    return y.reshape(B, OH, OW, cout)


# ---------------------------------------------------------------------------
# Parameters: PyTorch-default-style uniform init, pre-laid-out for the kernels
# ---------------------------------------------------------------------------
def init_params(key):
    keys = iter(jax.random.split(key, 16))

    def conv_p(cout, cin, kh, kw):
        bound = 1.0 / math.sqrt(cin * kh * kw)
        w = jax.random.uniform(next(keys), (cout, cin, kh, kw), jnp.float32, -bound, bound)
        b = jax.random.uniform(next(keys), (cout,), jnp.float32, -bound, bound)
        # reorder to (kh, kw, cin, cout) -> (K, cout), matching im2col patch order
        wm = jnp.transpose(w, (2, 3, 1, 0)).reshape(kh * kw * cin, cout)
        return wm.astype(jnp.bfloat16), b

    def fc_p(out_f, in_f, n_pad=None, hwc_from=None):
        bound = 1.0 / math.sqrt(in_f)
        w = jax.random.uniform(next(keys), (out_f, in_f), jnp.float32, -bound, bound)
        b = jax.random.uniform(next(keys), (out_f,), jnp.float32, -bound, bound)
        if hwc_from is not None:
            # re-permute input features from torch's NCHW flatten (c*H*W+h*W+w)
            # to the NHWC flatten ((h*W+w)*C+c) so the flatten is a free reshape.
            C, H, W = hwc_from
            wm = w.reshape(out_f, C, H, W).transpose(2, 3, 1, 0).reshape(H * W * C, out_f)
        else:
            wm = w.T  # (in, out)
        if n_pad is not None and n_pad > out_f:
            wm = jnp.pad(wm, ((0, 0), (0, n_pad - out_f)))
            b = jnp.pad(b, (0, n_pad - out_f))
        return wm.astype(jnp.bfloat16), b

    p = {}
    p["c1w"], p["c1b"] = conv_p(32, 3, 5, 5)
    p["c2w"], p["c2b"] = conv_p(64, 32, 5, 5)
    p["c3w"], p["c3b"] = conv_p(128, 64, 3, 3)
    p["c4w"], p["c4b"] = conv_p(128, 128, 3, 3)
    p["f1w"], p["f1b"] = fc_p(128, 128 * 6 * 8, hwc_from=(128, 6, 8))
    p["f2w"], p["f2b"] = fc_p(128, 128)
    p["f3w"], p["f3b"] = fc_p(2, 128, n_pad=128)  # lane-dense fc3 output
    return p


# ---------------------------------------------------------------------------
# Forward pass (AutopilotNet.forward), fully jitted
# ---------------------------------------------------------------------------
@jax.jit
def autopilot_forward(params, x_nchw):
    # PyTorch NCHW input -> NHWC bf16 for the kernels (f32 accumulation inside)
    x = jnp.transpose(x_nchw, (0, 2, 3, 1)).astype(jnp.bfloat16)

    x = conv2d_relu(x, params["c1w"], params["c1b"], kh=5, kw=5, stride=2, cout=32)
    x = maxpool2x2(x)
    x = conv2d_relu(x, params["c2w"], params["c2b"], kh=5, kw=5, stride=2, cout=64)
    x = maxpool2x2(x)
    x = conv2d_relu(x, params["c3w"], params["c3b"], kh=3, kw=3, stride=1, cout=128)
    x = conv2d_relu(x, params["c4w"], params["c4b"], kh=3, kw=3, stride=1, cout=128)

    B = x.shape[0]
    # fc1 weights are pre-permuted to (H, W, C) row order, so this NHWC flatten
    # is a free contiguous reshape (reproduces torch's x.view(-1, 128*6*8)).
    feat = x.reshape(B, 128 * 6 * 8)

    # fused fc1 -> fc2 -> fc3 in one Pallas kernel (fc1 K-split over the grid)
    return fc_head(feat, params)


if __name__ == "__main__":
    key = jax.random.PRNGKey(0)
    k_params, k_x = jax.random.split(key)

    params = init_params(k_params)
    # (176, 208) is the spatial size that makes the flatten exactly 128*6*8.
    x = jax.random.normal(k_x, (2, 3, 176, 208), dtype=jnp.float32)

    y = autopilot_forward(params, x)
    y = jax.block_until_ready(y)

    assert y.shape == (2, 2), y.shape
    assert y.dtype == jnp.float32
    print("KERNEL_OK")
</pallas_src>

<mosaic_0001>
module attributes {stable_mosaic.version = 11 : i64} {
  func.func @_mm_bias_act_kernel(%arg0: i32, %arg1: memref<2048x75xbf16, #tpu.memory_space<vmem>>, %arg2: memref<75x32xbf16, #tpu.memory_space<vmem>>, %arg3: memref<1x32xf32, #tpu.memory_space<vmem>>, %arg4: memref<2048x32xbf16, #tpu.memory_space<vmem>>) attributes {dimension_semantics = [#tpu.dimension_semantics<parallel>], iteration_bounds = array<i64: 9>, scalar_prefetch = 0 : i64, scratch_operands = 0 : i64, tpu.core_type = #tpu.core_type<tc>, window_params = [{transform_indices = @transform_0, window_bounds = array<i64: 2048, 75>}, {pipeline_mode = #tpu.pipeline_mode<synchronous>, transform_indices = @transform_1, window_bounds = array<i64: 75, 32>}, {pipeline_mode = #tpu.pipeline_mode<synchronous>, transform_indices = @transform_2, window_bounds = array<i64: 1, 32>}, {transform_indices = @transform_3, window_bounds = array<i64: 2048, 32>}]} {
    %c0 = arith.constant 0 : index
    %c0_0 = arith.constant 0 : index
    %0 = vector.load %arg1[%c0, %c0_0] : memref<2048x75xbf16, #tpu.memory_space<vmem>>, vector<2048x75xbf16>
    %c0_1 = arith.constant 0 : index
    %c0_2 = arith.constant 0 : index
    %1 = vector.load %arg2[%c0_1, %c0_2] : memref<75x32xbf16, #tpu.memory_space<vmem>>, vector<75x32xbf16>
    %cst = arith.constant dense<0.000000e+00> : vector<2048x32xf32>
    %2 = tpu.matmul %0, %1, %cst {dimension_numbers = #tpu.dot_dimension_numbers<[1], [0], [0], [1], [0, 0, 1, 1], [], []>} : vector<2048x75xbf16>, vector<75x32xbf16>, vector<2048x32xf32> -> vector<2048x32xf32>
    %c0_3 = arith.constant 0 : index
    %c0_4 = arith.constant 0 : index
    %3 = vector.load %arg3[%c0_3, %c0_4] : memref<1x32xf32, #tpu.memory_space<vmem>>, vector<1x32xf32>
    %4 = vector.broadcast %3 : vector<1x32xf32> to vector<2048x32xf32>
    %5 = arith.addf %2, %4 : vector<2048x32xf32>
    %cst_5 = arith.constant 0.000000e+00 : f32
    %6 = vector.broadcast %cst_5 : f32 to vector<2048x32xf32>
    %7 = arith.maximumf %5, %6 : vector<2048x32xf32>
    %8 = arith.truncf %7 : vector<2048x32xf32> to vector<2048x32xbf16>
    %c0_6 = arith.constant 0 : index
    %c0_7 = arith.constant 0 : index
    %9 = vector.load %arg4[%c0_6, %c0_7] : memref<2048x32xbf16, #tpu.memory_space<vmem>>, vector<2048x32xbf16>
    tpu.vector_store %arg4[%c0_6, %c0_7], %8 {strides = array<i32>} : memref<2048x32xbf16, #tpu.memory_space<vmem>>, vector<2048x32xbf16>,
    return
  }
  func.func @transform_0(%arg0: i32) -> (i32, i32) {
    %c0_i32 = arith.constant 0 : i32
    %c0_i32_0 = arith.constant 0 : i32
    return %arg0, %c0_i32 : i32, i32
  }
  func.func @transform_1(%arg0: i32) -> (i32, i32) {
    %c0_i32 = arith.constant 0 : i32
    %c0_i32_0 = arith.constant 0 : i32
    %c0_i32_1 = arith.constant 0 : i32
    return %c0_i32, %c0_i32_0 : i32, i32
  }
  func.func @transform_2(%arg0: i32) -> (i32, i32) {
    %c0_i32 = arith.constant 0 : i32
    %c0_i32_0 = arith.constant 0 : i32
    %c0_i32_1 = arith.constant 0 : i32
    return %c0_i32, %c0_i32_0 : i32, i32
  }
  func.func @transform_3(%arg0: i32) -> (i32, i32) {
    %c0_i32 = arith.constant 0 : i32
    %c0_i32_0 = arith.constant 0 : i32
    return %arg0, %c0_i32 : i32, i32
  }
}

module attributes {stable_mosaic.version = 11 : i64} {
  func.func @_pool_kernel(%arg0: i32, %arg1: memref<43x2x51x64xbf16, #tpu.memory_space<vmem>>, %arg2: memref<43x51x32xbf16, #tpu.memory_space<vmem>>) attributes {dimension_semantics = [#tpu.dimension_semantics<parallel>], iteration_bounds = array<i64: 2>, scalar_prefetch = 0 : i64, scratch_operands = 0 : i64, tpu.core_type = #tpu.core_type<tc>, window_params = [{transform_indices = @transform_0, window_bounds = array<i64: 43, 2, 51, 64>}, {transform_indices = @transform_1, window_bounds = array<i64: 43, 51, 32>}]} {
    %c0 = arith.constant 0 : index
    %c0_0 = arith.constant 0 : index
    %c0_1 = arith.constant 0 : index
    %c0_2 = arith.constant 0 : index
    %0 = vector.load %arg1[%c0, %c0_0, %c0_1, %c0_2] : memref<43x2x51x64xbf16, #tpu.memory_space<vmem>>, vector<43x1x51x64xbf16>
    %1 = vector.shape_cast %0 : vector<43x1x51x64xbf16> to vector<43x51x64xbf16>
    %c0_3 = arith.constant 0 : index
    %c1 = arith.constant 1 : index
    %c0_4 = arith.constant 0 : index
    %c0_5 = arith.constant 0 : index
    %2 = vector.load %arg1[%c0_3, %c1, %c0_4, %c0_5] : memref<43x2x51x64xbf16, #tpu.memory_space<vmem>>, vector<43x1x51x64xbf16>
    %3 = vector.shape_cast %2 : vector<43x1x51x64xbf16> to vector<43x51x64xbf16>
    %4 = arith.maximumf %1, %3 : vector<43x51x64xbf16>
    %5 = vector.extract_strided_slice %4 {offsets = [0, 0, 0], sizes = [43, 51, 32], strides = [1, 1, 1]} : vector<43x51x64xbf16> to vector<43x51x32xbf16>
    %6 = vector.extract_strided_slice %4 {offsets = [0, 0, 32], sizes = [43, 51, 32], strides = [1, 1, 1]} : vector<43x51x64xbf16> to vector<43x51x32xbf16>
    %7 = arith.maximumf %5, %6 : vector<43x51x32xbf16>
    %c0_6 = arith.constant 0 : index
    %c0_7 = arith.constant 0 : index
    %c0_8 = arith.constant 0 : index
    %8 = vector.load %arg2[%c0_6, %c0_7, %c0_8] : memref<43x51x32xbf16, #tpu.memory_space<vmem>>, vector<43x51x32xbf16>
    tpu.vector_store %arg2[%c0_6, %c0_7, %c0_8], %7 {strides = array<i32>} : memref<43x51x32xbf16, #tpu.memory_space<vmem>>, vector<43x51x32xbf16>,
    return
  }
  func.func @transform_0(%arg0: i32) -> (i32, i32, i32, i32) {
    %c0_i32 = arith.constant 0 : i32
    %c0_i32_0 = arith.constant 0 : i32
    %c0_i32_1 = arith.constant 0 : i32
    %c0_i32_2 = arith.constant 0 : i32
    return %arg0, %c0_i32, %c0_i32_0, %c0_i32_1 : i32, i32, i32, i32
  }
  func.func @transform_1(%arg0: i32) -> (i32, i32, i32) {
    %c0_i32 = arith.constant 0 : i32
    %c0_i32_0 = arith.constant 0 : i32
    %c0_i32_1 = arith.constant 0 : i32
    return %arg0, %c0_i32, %c0_i32_0 : i32, i32, i32
  }
}

module attributes {stable_mosaic.version = 11 : i64} {
  func.func @_mm_bias_act_kernel(%arg0: i32, %arg1: memref<480x800xbf16, #tpu.memory_space<vmem>>, %arg2: memref<800x64xbf16, #tpu.memory_space<vmem>>, %arg3: memref<1x64xf32, #tpu.memory_space<vmem>>, %arg4: memref<480x64xbf16, #tpu.memory_space<vmem>>) attributes {dimension_semantics = [#tpu.dimension_semantics<parallel>], iteration_bounds = array<i64: 2>, scalar_prefetch = 0 : i64, scratch_operands = 0 : i64, tpu.core_type = #tpu.core_type<tc>, window_params = [{transform_indices = @transform_0, window_bounds = array<i64: 480, 800>}, {pipeline_mode = #tpu.pipeline_mode<synchronous>, transform_indices = @transform_1, window_bounds = array<i64: 800, 64>}, {pipeline_mode = #tpu.pipeline_mode<synchronous>, transform_indices = @transform_2, window_bounds = array<i64: 1, 64>}, {transform_indices = @transform_3, window_bounds = array<i64: 480, 64>}]} {
    %c0 = arith.constant 0 : index
    %c0_0 = arith.constant 0 : index
    %0 = vector.load %arg1[%c0, %c0_0] : memref<480x800xbf16, #tpu.memory_space<vmem>>, vector<480x800xbf16>
    %c0_1 = arith.constant 0 : index
    %c0_2 = arith.constant 0 : index
    %1 = vector.load %arg2[%c0_1, %c0_2] : memref<800x64xbf16, #tpu.memory_space<vmem>>, vector<800x64xbf16>
    %cst = arith.constant dense<0.000000e+00> : vector<480x64xf32>
    %2 = tpu.matmul %0, %1, %cst {dimension_numbers = #tpu.dot_dimension_numbers<[1], [0], [0], [1], [0, 0, 1, 1], [], []>} : vector<480x800xbf16>, vector<800x64xbf16>, vector<480x64xf32> -> vector<480x64xf32>
    %c0_3 = arith.constant 0 : index
    %c0_4 = arith.constant 0 : index
    %3 = vector.load %arg3[%c0_3, %c0_4] : memref<1x64xf32, #tpu.memory_space<vmem>>, vector<1x64xf32>
    %4 = vector.broadcast %3 : vector<1x64xf32> to vector<480x64xf32>
    %5 = arith.addf %2, %4 : vector<480x64xf32>
    %cst_5 = arith.constant 0.000000e+00 : f32
    %6 = vector.broadcast %cst_5 : f32 to vector<480x64xf32>
    %7 = arith.maximumf %5, %6 : vector<480x64xf32>
    %8 = arith.truncf %7 : vector<480x64xf32> to vector<480x64xbf16>
    %c0_6 = arith.constant 0 : index
    %c0_7 = arith.constant 0 : index
    %9 = vector.load %arg4[%c0_6, %c0_7] : memref<480x64xbf16, #tpu.memory_space<vmem>>, vector<480x64xbf16>
    tpu.vector_store %arg4[%c0_6, %c0_7], %8 {strides = array<i32>} : memref<480x64xbf16, #tpu.memory_space<vmem>>, vector<480x64xbf16>,
    return
  }
  func.func @transform_0(%arg0: i32) -> (i32, i32) {
    %c0_i32 = arith.constant 0 : i32
    %c0_i32_0 = arith.constant 0 : i32
    return %arg0, %c0_i32 : i32, i32
  }
  func.func @transform_1(%arg0: i32) -> (i32, i32) {
    %c0_i32 = arith.constant 0 : i32
    %c0_i32_0 = arith.constant 0 : i32
    %c0_i32_1 = arith.constant 0 : i32
    return %c0_i32, %c0_i32_0 : i32, i32
  }
  func.func @transform_2(%arg0: i32) -> (i32, i32) {
    %c0_i32 = arith.constant 0 : i32
    %c0_i32_0 = arith.constant 0 : i32
    %c0_i32_1 = arith.constant 0 : i32
    return %c0_i32, %c0_i32_0 : i32, i32
  }
  func.func @transform_3(%arg0: i32) -> (i32, i32) {
    %c0_i32 = arith.constant 0 : i32
    %c0_i32_0 = arith.constant 0 : i32
    return %arg0, %c0_i32 : i32, i32
  }
}

module attributes {stable_mosaic.version = 11 : i64} {
  func.func @_pool_kernel(%arg0: i32, %arg1: memref<10x2x12x128xbf16, #tpu.memory_space<vmem>>, %arg2: memref<10x12x64xbf16, #tpu.memory_space<vmem>>) attributes {dimension_semantics = [#tpu.dimension_semantics<parallel>], iteration_bounds = array<i64: 2>, scalar_prefetch = 0 : i64, scratch_operands = 0 : i64, tpu.core_type = #tpu.core_type<tc>, window_params = [{transform_indices = @transform_0, window_bounds = array<i64: 10, 2, 12, 128>}, {transform_indices = @transform_1, window_bounds = array<i64: 10, 12, 64>}]} {
    %c0 = arith.constant 0 : index
    %c0_0 = arith.constant 0 : index
    %c0_1 = arith.constant 0 : index
    %c0_2 = arith.constant 0 : index
    %0 = vector.load %arg1[%c0, %c0_0, %c0_1, %c0_2] : memref<10x2x12x128xbf16, #tpu.memory_space<vmem>>, vector<10x1x12x128xbf16>
    %1 = vector.shape_cast %0 : vector<10x1x12x128xbf16> to vector<10x12x128xbf16>
    %c0_3 = arith.constant 0 : index
    %c1 = arith.constant 1 : index
    %c0_4 = arith.constant 0 : index
    %c0_5 = arith.constant 0 : index
    %2 = vector.load %arg1[%c0_3, %c1, %c0_4, %c0_5] : memref<10x2x12x128xbf16, #tpu.memory_space<vmem>>, vector<10x1x12x128xbf16>
    %3 = vector.shape_cast %2 : vector<10x1x12x128xbf16> to vector<10x12x128xbf16>
    %4 = arith.maximumf %1, %3 : vector<10x12x128xbf16>
    %5 = vector.extract_strided_slice %4 {offsets = [0, 0, 0], sizes = [10, 12, 64], strides = [1, 1, 1]} : vector<10x12x128xbf16> to vector<10x12x64xbf16>
    %6 = vector.extract_strided_slice %4 {offsets = [0, 0, 64], sizes = [10, 12, 64], strides = [1, 1, 1]} : vector<10x12x128xbf16> to vector<10x12x64xbf16>
    %7 = arith.maximumf %5, %6 : vector<10x12x64xbf16>
    %c0_6 = arith.constant 0 : index
    %c0_7 = arith.constant 0 : index
    %c0_8 = arith.constant 0 : index
    %8 = vector.load %arg2[%c0_6, %c0_7, %c0_8] : memref<10x12x64xbf16, #tpu.memory_space<vmem>>, vector<10x12x64xbf16>
    tpu.vector_store %arg2[%c0_6, %c0_7, %c0_8], %7 {strides = array<i32>} : memref<10x12x64xbf16, #tpu.memory_space<vmem>>, vector<10x12x64xbf16>,
    return
  }
  func.func @transform_0(%arg0: i32) -> (i32, i32, i32, i32) {
    %c0_i32 = arith.constant 0 : i32
    %c0_i32_0 = arith.constant 0 : i32
    %c0_i32_1 = arith.constant 0 : i32
    %c0_i32_2 = arith.constant 0 : i32
    return %arg0, %c0_i32, %c0_i32_0, %c0_i32_1 : i32, i32, i32, i32
  }
  func.func @transform_1(%arg0: i32) -> (i32, i32, i32) {
    %c0_i32 = arith.constant 0 : i32
    %c0_i32_0 = arith.constant 0 : i32
    %c0_i32_1 = arith.constant 0 : i32
    return %arg0, %c0_i32, %c0_i32_0 : i32, i32, i32
  }
}

module attributes {stable_mosaic.version = 11 : i64} {
  func.func @_mm_bias_act_kernel(%arg0: i32, %arg1: memref<80x576xbf16, #tpu.memory_space<vmem>>, %arg2: memref<576x128xbf16, #tpu.memory_space<vmem>>, %arg3: memref<1x128xf32, #tpu.memory_space<vmem>>, %arg4: memref<80x128xbf16, #tpu.memory_space<vmem>>) attributes {dimension_semantics = [#tpu.dimension_semantics<parallel>], iteration_bounds = array<i64: 2>, scalar_prefetch = 0 : i64, scratch_operands = 0 : i64, tpu.core_type = #tpu.core_type<tc>, window_params = [{transform_indices = @transform_0, window_bounds = array<i64: 80, 576>}, {pipeline_mode = #tpu.pipeline_mode<synchronous>, transform_indices = @transform_1, window_bounds = array<i64: 576, 128>}, {pipeline_mode = #tpu.pipeline_mode<synchronous>, transform_indices = @transform_2, window_bounds = array<i64: 1, 128>}, {transform_indices = @transform_3, window_bounds = array<i64: 80, 128>}]} {
    %c0 = arith.constant 0 : index
    %c0_0 = arith.constant 0 : index
    %0 = vector.load %arg1[%c0, %c0_0] : memref<80x576xbf16, #tpu.memory_space<vmem>>, vector<80x576xbf16>
    %c0_1 = arith.constant 0 : index
    %c0_2 = arith.constant 0 : index
    %1 = vector.load %arg2[%c0_1, %c0_2] : memref<576x128xbf16, #tpu.memory_space<vmem>>, vector<576x128xbf16>
    %cst = arith.constant dense<0.000000e+00> : vector<80x128xf32>
    %2 = tpu.matmul %0, %1, %cst {dimension_numbers = #tpu.dot_dimension_numbers<[1], [0], [0], [1], [0, 0, 1, 1], [], []>} : vector<80x576xbf16>, vector<576x128xbf16>, vector<80x128xf32> -> vector<80x128xf32>
    %c0_3 = arith.constant 0 : index
    %c0_4 = arith.constant 0 : index
    %3 = vector.load %arg3[%c0_3, %c0_4] : memref<1x128xf32, #tpu.memory_space<vmem>>, vector<1x128xf32>
    %4 = vector.broadcast %3 : vector<1x128xf32> to vector<80x128xf32>
    %5 = arith.addf %2, %4 : vector<80x128xf32>
    %cst_5 = arith.constant 0.000000e+00 : f32
    %6 = vector.broadcast %cst_5 : f32 to vector<80x128xf32>
    %7 = arith.maximumf %5, %6 : vector<80x128xf32>
    %8 = arith.truncf %7 : vector<80x128xf32> to vector<80x128xbf16>
    %c0_6 = arith.constant 0 : index
    %c0_7 = arith.constant 0 : index
    %9 = vector.load %arg4[%c0_6, %c0_7] : memref<80x128xbf16, #tpu.memory_space<vmem>>, vector<80x128xbf16>
    tpu.vector_store %arg4[%c0_6, %c0_7], %8 {strides = array<i32>} : memref<80x128xbf16, #tpu.memory_space<vmem>>, vector<80x128xbf16>,
    return
  }
  func.func @transform_0(%arg0: i32) -> (i32, i32) {
    %c0_i32 = arith.constant 0 : i32
    %c0_i32_0 = arith.constant 0 : i32
    return %arg0, %c0_i32 : i32, i32
  }
  func.func @transform_1(%arg0: i32) -> (i32, i32) {
    %c0_i32 = arith.constant 0 : i32
    %c0_i32_0 = arith.constant 0 : i32
    %c0_i32_1 = arith.constant 0 : i32
    return %c0_i32, %c0_i32_0 : i32, i32
  }
  func.func @transform_2(%arg0: i32) -> (i32, i32) {
    %c0_i32 = arith.constant 0 : i32
    %c0_i32_0 = arith.constant 0 : i32
    %c0_i32_1 = arith.constant 0 : i32
    return %c0_i32, %c0_i32_0 : i32, i32
  }
  func.func @transform_3(%arg0: i32) -> (i32, i32) {
    %c0_i32 = arith.constant 0 : i32
    %c0_i32_0 = arith.constant 0 : i32
    return %arg0, %c0_i32 : i32, i32
  }
}

module attributes {stable_mosaic.version = 11 : i64} {
  func.func @_mm_bias_act_kernel(%arg0: i32, %arg1: memref<48x1152xbf16, #tpu.memory_space<vmem>>, %arg2: memref<1152x128xbf16, #tpu.memory_space<vmem>>, %arg3: memref<1x128xf32, #tpu.memory_space<vmem>>, %arg4: memref<48x128xbf16, #tpu.memory_space<vmem>>) attributes {dimension_semantics = [#tpu.dimension_semantics<parallel>], iteration_bounds = array<i64: 2>, scalar_prefetch = 0 : i64, scratch_operands = 0 : i64, tpu.core_type = #tpu.core_type<tc>, window_params = [{transform_indices = @transform_0, window_bounds = array<i64: 48, 1152>}, {pipeline_mode = #tpu.pipeline_mode<synchronous>, transform_indices = @transform_1, window_bounds = array<i64: 1152, 128>}, {pipeline_mode = #tpu.pipeline_mode<synchronous>, transform_indices = @transform_2, window_bounds = array<i64: 1, 128>}, {transform_indices = @transform_3, window_bounds = array<i64: 48, 128>}]} {
    %c0 = arith.constant 0 : index
    %c0_0 = arith.constant 0 : index
    %0 = vector.load %arg1[%c0, %c0_0] : memref<48x1152xbf16, #tpu.memory_space<vmem>>, vector<48x1152xbf16>
    %c0_1 = arith.constant 0 : index
    %c0_2 = arith.constant 0 : index
    %1 = vector.load %arg2[%c0_1, %c0_2] : memref<1152x128xbf16, #tpu.memory_space<vmem>>, vector<1152x128xbf16>
    %cst = arith.constant dense<0.000000e+00> : vector<48x128xf32>
    %2 = tpu.matmul %0, %1, %cst {dimension_numbers = #tpu.dot_dimension_numbers<[1], [0], [0], [1], [0, 0, 1, 1], [], []>} : vector<48x1152xbf16>, vector<1152x128xbf16>, vector<48x128xf32> -> vector<48x128xf32>
    %c0_3 = arith.constant 0 : index
    %c0_4 = arith.constant 0 : index
    %3 = vector.load %arg3[%c0_3, %c0_4] : memref<1x128xf32, #tpu.memory_space<vmem>>, vector<1x128xf32>
    %4 = vector.broadcast %3 : vector<1x128xf32> to vector<48x128xf32>
    %5 = arith.addf %2, %4 : vector<48x128xf32>
    %cst_5 = arith.constant 0.000000e+00 : f32
    %6 = vector.broadcast %cst_5 : f32 to vector<48x128xf32>
    %7 = arith.maximumf %5, %6 : vector<48x128xf32>
    %8 = arith.truncf %7 : vector<48x128xf32> to vector<48x128xbf16>
    %c0_6 = arith.constant 0 : index
    %c0_7 = arith.constant 0 : index
    %9 = vector.load %arg4[%c0_6, %c0_7] : memref<48x128xbf16, #tpu.memory_space<vmem>>, vector<48x128xbf16>
    tpu.vector_store %arg4[%c0_6, %c0_7], %8 {strides = array<i32>} : memref<48x128xbf16, #tpu.memory_space<vmem>>, vector<48x128xbf16>,
    return
  }
  func.func @transform_0(%arg0: i32) -> (i32, i32) {
    %c0_i32 = arith.constant 0 : i32
    %c0_i32_0 = arith.constant 0 : i32
    return %arg0, %c0_i32 : i32, i32
  }
  func.func @transform_1(%arg0: i32) -> (i32, i32) {
    %c0_i32 = arith.constant 0 : i32
    %c0_i32_0 = arith.constant 0 : i32
    %c0_i32_1 = arith.constant 0 : i32
    return %c0_i32, %c0_i32_0 : i32, i32
  }
  func.func @transform_2(%arg0: i32) -> (i32, i32) {
    %c0_i32 = arith.constant 0 : i32
    %c0_i32_0 = arith.constant 0 : i32
    %c0_i32_1 = arith.constant 0 : i32
    return %c0_i32, %c0_i32_0 : i32, i32
  }
  func.func @transform_3(%arg0: i32) -> (i32, i32) {
    %c0_i32 = arith.constant 0 : i32
    %c0_i32_0 = arith.constant 0 : i32
    return %arg0, %c0_i32 : i32, i32
  }
}

module attributes {stable_mosaic.version = 11 : i64} {
  func.func @_fc_head_kernel(%arg0: i32, %arg1: memref<8x1536xbf16, #tpu.memory_space<vmem>>, %arg2: memref<1536x128xbf16, #tpu.memory_space<vmem>>, %arg3: memref<1x128xf32, #tpu.memory_space<vmem>>, %arg4: memref<128x128xbf16, #tpu.memory_space<vmem>>, %arg5: memref<1x128xf32, #tpu.memory_space<vmem>>, %arg6: memref<128x128xbf16, #tpu.memory_space<vmem>>, %arg7: memref<1x128xf32, #tpu.memory_space<vmem>>, %arg8: memref<8x128xf32, #tpu.memory_space<vmem>>, %arg9: memref<8x128xf32, #tpu.memory_space<vmem>>) attributes {dimension_semantics = [#tpu.dimension_semantics<arbitrary>], iteration_bounds = array<i64: 4>, scalar_prefetch = 0 : i64, scratch_operands = 1 : i64, tpu.core_type = #tpu.core_type<tc>, window_params = [{transform_indices = @transform_0, window_bounds = array<i64: 8, 1536>}, {transform_indices = @transform_1, window_bounds = array<i64: 1536, 128>}, {pipeline_mode = #tpu.pipeline_mode<synchronous>, transform_indices = @transform_2, window_bounds = array<i64: 1, 128>}, {pipeline_mode = #tpu.pipeline_mode<synchronous>, transform_indices = @transform_3, window_bounds = array<i64: 128, 128>}, {pipeline_mode = #tpu.pipeline_mode<synchronous>, transform_indices = @transform_4, window_bounds = array<i64: 1, 128>}, {pipeline_mode = #tpu.pipeline_mode<synchronous>, transform_indices = @transform_5, window_bounds = array<i64: 128, 128>}, {pipeline_mode = #tpu.pipeline_mode<synchronous>, transform_indices = @transform_6, window_bounds = array<i64: 1, 128>}, {pipeline_mode = #tpu.pipeline_mode<synchronous>, transform_indices = @transform_7, window_bounds = array<i64: 8, 128>}]} {
    %c0_i32 = arith.constant 0 : i32
    %0 = arith.cmpi eq, %arg0, %c0_i32 : i32
    %1 = arith.extui %0 : i1 to i32
    %c0_i32_0 = arith.constant 0 : i32
    %2 = arith.cmpi ne, %1, %c0_i32_0 : i32
    scf.if %2 {
      %cst_9 = arith.constant 0.000000e+00 : f32
      %12 = vector.broadcast %cst_9 : f32 to vector<8x128xf32>
      %c0_10 = arith.constant 0 : index
      %c0_11 = arith.constant 0 : index
      %13 = vector.load %arg9[%c0_10, %c0_11] : memref<8x128xf32, #tpu.memory_space<vmem>>, vector<8x128xf32>
      tpu.vector_store %arg9[%c0_10, %c0_11], %12 {strides = array<i32>} : memref<8x128xf32, #tpu.memory_space<vmem>>, vector<8x128xf32>,
    } else {
    }
    %c0 = arith.constant 0 : index
    %c0_1 = arith.constant 0 : index
    %3 = vector.load %arg9[%c0, %c0_1] : memref<8x128xf32, #tpu.memory_space<vmem>>, vector<8x128xf32>
    %c0_2 = arith.constant 0 : index
    %c0_3 = arith.constant 0 : index
    %4 = vector.load %arg1[%c0_2, %c0_3] : memref<8x1536xbf16, #tpu.memory_space<vmem>>, vector<8x1536xbf16>
    %c0_4 = arith.constant 0 : index
    %c0_5 = arith.constant 0 : index
    %5 = vector.load %arg2[%c0_4, %c0_5] : memref<1536x128xbf16, #tpu.memory_space<vmem>>, vector<1536x128xbf16>
    %cst = arith.constant dense<0.000000e+00> : vector<8x128xf32>
    %6 = tpu.matmul %4, %5, %cst {dimension_numbers = #tpu.dot_dimension_numbers<[1], [0], [0], [1], [0, 0, 1, 1], [], []>} : vector<8x1536xbf16>, vector<1536x128xbf16>, vector<8x128xf32> -> vector<8x128xf32>
    %7 = arith.addf %3, %6 : vector<8x128xf32>
    %c0_6 = arith.constant 0 : index
    %c0_7 = arith.constant 0 : index
    %8 = vector.load %arg9[%c0_6, %c0_7] : memref<8x128xf32, #tpu.memory_space<vmem>>, vector<8x128xf32>
    tpu.vector_store %arg9[%c0_6, %c0_7], %7 {strides = array<i32>} : memref<8x128xf32, #tpu.memory_space<vmem>>, vector<8x128xf32>,
    %c3_i32 = arith.constant 3 : i32
    %9 = arith.cmpi eq, %arg0, %c3_i32 : i32
    %10 = arith.extui %9 : i1 to i32
    %c0_i32_8 = arith.constant 0 : i32
    %11 = arith.cmpi ne, %10, %c0_i32_8 : i32
    scf.if %11 {
      %c0_9 = arith.constant 0 : index
      %c0_10 = arith.constant 0 : index
      %12 = vector.load %arg9[%c0_9, %c0_10] : memref<8x128xf32, #tpu.memory_space<vmem>>, vector<8x128xf32>
      %c0_11 = arith.constant 0 : index
      %c0_12 = arith.constant 0 : index
      %13 = vector.load %arg3[%c0_11, %c0_12] : memref<1x128xf32, #tpu.memory_space<vmem>>, vector<1x128xf32>
      %14 = vector.broadcast %13 : vector<1x128xf32> to vector<8x128xf32>
      %15 = arith.addf %12, %14 : vector<8x128xf32>
      %cst_13 = arith.constant 0.000000e+00 : f32
      %16 = vector.broadcast %cst_13 : f32 to vector<8x128xf32>
      %17 = arith.maximumf %15, %16 : vector<8x128xf32>
      %18 = arith.truncf %17 : vector<8x128xf32> to vector<8x128xbf16>
      %c0_14 = arith.constant 0 : index
      %c0_15 = arith.constant 0 : index
      %19 = vector.load %arg4[%c0_14, %c0_15] : memref<128x128xbf16, #tpu.memory_space<vmem>>, vector<128x128xbf16>
      %cst_16 = arith.constant dense<0.000000e+00> : vector<8x128xf32>
      %20 = tpu.matmul %18, %19, %cst_16 {dimension_numbers = #tpu.dot_dimension_numbers<[1], [0], [0], [1], [0, 0, 1, 1], [], []>} : vector<8x128xbf16>, vector<128x128xbf16>, vector<8x128xf32> -> vector<8x128xf32>
      %c0_17 = arith.constant 0 : index
      %c0_18 = arith.constant 0 : index
      %21 = vector.load %arg5[%c0_17, %c0_18] : memref<1x128xf32, #tpu.memory_space<vmem>>, vector<1x128xf32>
      %22 = vector.broadcast %21 : vector<1x128xf32> to vector<8x128xf32>
      %23 = arith.addf %20, %22 : vector<8x128xf32>
      %cst_19 = arith.constant 0.000000e+00 : f32
      %24 = vector.broadcast %cst_19 : f32 to vector<8x128xf32>
      %25 = arith.maximumf %23, %24 : vector<8x128xf32>
      %26 = arith.truncf %25 : vector<8x128xf32> to vector<8x128xbf16>
      %c0_20 = arith.constant 0 : index
      %c0_21 = arith.constant 0 : index
      %27 = vector.load %arg6[%c0_20, %c0_21] : memref<128x128xbf16, #tpu.memory_space<vmem>>, vector<128x128xbf16>
      %cst_22 = arith.constant dense<0.000000e+00> : vector<8x128xf32>
      %28 = tpu.matmul %26, %27, %cst_22 {dimension_numbers = #tpu.dot_dimension_numbers<[1], [0], [0], [1], [0, 0, 1, 1], [], []>} : vector<8x128xbf16>, vector<128x128xbf16>, vector<8x128xf32> -> vector<8x128xf32>
      %c0_23 = arith.constant 0 : index
      %c0_24 = arith.constant 0 : index
      %29 = vector.load %arg7[%c0_23, %c0_24] : memref<1x128xf32, #tpu.memory_space<vmem>>, vector<1x128xf32>
      %30 = vector.broadcast %29 : vector<1x128xf32> to vector<8x128xf32>
      %31 = arith.addf %28, %30 : vector<8x128xf32>
      %c0_25 = arith.constant 0 : index
      %c0_26 = arith.constant 0 : index
      %32 = vector.load %arg8[%c0_25, %c0_26] : memref<8x128xf32, #tpu.memory_space<vmem>>, vector<8x128xf32>
      tpu.vector_store %arg8[%c0_25, %c0_26], %31 {strides = array<i32>} : memref<8x128xf32, #tpu.memory_space<vmem>>, vector<8x128xf32>,
    } else {
    }
    return
  }
  func.func @transform_0(%arg0: i32) -> (i32, i32) {
    %c0_i32 = arith.constant 0 : i32
    %c0_i32_0 = arith.constant 0 : i32
    return %c0_i32, %arg0 : i32, i32
  }
  func.func @transform_1(%arg0: i32) -> (i32, i32) {
    %c0_i32 = arith.constant 0 : i32
    %c0_i32_0 = arith.constant 0 : i32
    return %arg0, %c0_i32 : i32, i32
  }
  func.func @transform_2(%arg0: i32) -> (i32, i32) {
    %c0_i32 = arith.constant 0 : i32
    %c0_i32_0 = arith.constant 0 : i32
    %c0_i32_1 = arith.constant 0 : i32
    return %c0_i32, %c0_i32_0 : i32, i32
  }
  func.func @transform_3(%arg0: i32) -> (i32, i32) {
    %c0_i32 = arith.constant 0 : i32
    %c0_i32_0 = arith.constant 0 : i32
    %c0_i32_1 = arith.constant 0 : i32
    return %c0_i32, %c0_i32_0 : i32, i32
  }
  func.func @transform_4(%arg0: i32) -> (i32, i32) {
    %c0_i32 = arith.constant 0 : i32
    %c0_i32_0 = arith.constant 0 : i32
    %c0_i32_1 = arith.constant 0 : i32
    return %c0_i32, %c0_i32_0 : i32, i32
  }
  func.func @transform_5(%arg0: i32) -> (i32, i32) {
    %c0_i32 = arith.constant 0 : i32
    %c0_i32_0 = arith.constant 0 : i32
    %c0_i32_1 = arith.constant 0 : i32
    return %c0_i32, %c0_i32_0 : i32, i32
  }
  func.func @transform_6(%arg0: i32) -> (i32, i32) {
    %c0_i32 = arith.constant 0 : i32
    %c0_i32_0 = arith.constant 0 : i32
    %c0_i32_1 = arith.constant 0 : i32
    return %c0_i32, %c0_i32_0 : i32, i32
  }
  func.func @transform_7(%arg0: i32) -> (i32, i32) {
    %c0_i32 = arith.constant 0 : i32
    %c0_i32_0 = arith.constant 0 : i32
    %c0_i32_1 = arith.constant 0 : i32
    return %c0_i32, %c0_i32_0 : i32, i32
  }
}

</mosaic_0001>

<bundles_post_ra>
// kernel: autopilot_forward.7
= control target key start
LH: loop header
LB: loop body
LE: loop exit
PB: predicated region body
PF: predicated region fallthrough
CT: control target
= control target key end

     0   :  { %s6132_s12 = smov 0   ;;  %s6134_s13 = smov 0   ;;  %s7427_s0 = inlined_call_operand.vmem [shape: bf16[17544,75], index: 0, kind: input, shape index: {}]   ;;  %s7428_s1 = inlined_call_operand.vmem [shape: bf16[75,32], index: 1, kind: input, shape index: {}]   ;;  %s7429_s2 = inlined_call_operand.vmem [shape: f32[1,32], index: 2, kind: input, shape index: {}]   ;;  %s7430_s3 = inlined_call_operand.vmem [shape: bf16[17544,32], index: 3, kind: output, shape index: {}]  }
   0x1   :  { %s6136_s14 = smov 0  }
   0x2 LB: > { %s6145_s15 = sadd.s32 4294967295, %s6077_s14   ;;  %s6147_s16 = sadd.s32 1, %s6077_s14   ;;  %s6077_s14 = sphi %s6136_s14, %s7437_s14   ;;  %s6073_s13 = sphi %s6134_s13, %s7436_s13   ;;  %s6069_s12 = sphi %s6132_s12, %s7435_s12  }
   0x3   : > { %s85_s17 = ssub.s32 %s6077_s14, %s6147_s16  ;;  %s88_s18 = sadd.s32 1, %s6073_s13 }
   0x4   : > { %p86_p0 = scmp.eq.s32.totalorder %s85_s17, 0  ;;  %p98_p1 = scmp.ne.s32.totalorder %s6073_s13, %s6069_s12 }
   0x5   : > { %p99_p2 = scmp.eq.s32.totalorder %s6145_s15, 8  ;;  %p4592_p3 = scmp.ge.s32.totalorder %s6077_s14, 1 }
   0x6   : > { %s6155_s19 = scalar_select %p86_p0, %s6073_s13, %s88_s18  }
   0x7   : > { %p6157_p4 = por %p99_p2, %p98_p1  ;;  %p146_p5 = scmp.lt.s32.totalorder %s6077_s14, 10 }
   0x9   : > { %p147_p6 = pnand %p4592_p3, %p146_p5 }
   0xa   : > { %s6168_s25 = sshll.u32 (!%p147_p6), %s6145_s15, 8  ;;  %s170_s10 = sand.u32 (!%p147_p6), 1, %s6069_s12  }
   0xb   : > { %150 = sbr.rel (%p147_p6) target bundleno = 576 (0x240), region = 32  ;;  %p178_p7 = scmp.lt.s32.totalorder (!%p147_p6), %s6168_s25, 2192 }
   0xc   : > { %s4593_s17 = sshll.u32 (!%p147_p6), %s170_s10, 10 }
   0xd   : > { %s6406_s12 = scalar_lea.vmem (!%p147_p6), [#allocation2], %s4593_s17  }
  0x10   : > { %v5888_v0 = vld [vmem:[%s7428_s1 + $0x20] sm:$0x3f]   ;;  %vm1520_vm0 = vcmask 1044480   ;;  %vm1521_vm1 = vcmask 1045504   ;;  %v6111_v1 = vmov 65535   ;;  %v5889_v4 = vld [vmem:[%s7428_s1 + $0x18] sm:$0xff]  }
  0x11   : > { %v1522_v2 = vsel %vm1520_vm0, 4294967295, %v6111_v1  ;;  %v5890_v6 = vld [vmem:[%s7428_s1 + $0x10] sm:$0xff]   ;;  %s179_s28 = scalar_select %p178_p7, %s6168_s25, 2192  ;;  %v5891_v7 = vld [vmem:[%s7428_s1 + $0x8] sm:$0xff]   ;;  %vm1135_vm2 = vcmask 613376   ;;  %v5892_v10 = vld [vmem:[%s7428_s1] sm:$0xff]  }
  0x12   : > { %v1523_v3 = vsel %vm1521_vm1, %v1522_v2, 0  ;;  %vm3864_vm3 = vcmask 257024   ;;  %s4129_s24 = ssub.s32 (%p6157_p4), 2193, %s6168_s25  ;;  %s5387_s26 = sshll.u32 (%p6157_p4), %s6145_s15, 10 }
  0x13   : > { %v1525_v5 = vand.u32 %v5888_v0, %v1523_v3  ;;  %s4595_s29 = sshll.u32 %s179_s28, 2  ;;  %p4130_p8 = scmp.lt.s32.totalorder (%p6157_p4), %s4129_s24, 256 }
  0x14   : > { %s6181_s7 = scalar_lea.vmem %s7427_s0, %s4595_s29  ;;  %s7235_s29 = scalar_lea.vmem (%p6157_p4), %s7430_s3, %s5387_s26  }
  0x15   : > { %5523 = vmatprep.subr.bf16.mxu0 %v1525_v5  ;;  %5789 = vmatprep.subr.bf16.mxu1 %v1525_v5  ;;  %v5893_v8 = vld [vmem:[%s6181_s7] sm:$0xff]   ;;  %v5895_v11 = vld [vmem:[%s6181_s7 + $0x8] sm:$0xff]   ;;  %v5897_v13 = vld [vmem:[%s6181_s7 + $0x10] sm:$0xff]  }
  0x16   : > { %5524 = vmatpush3.bf16.msra.mxu0 %v1525_v5  ;;  %5794 = vmatpush3.bf16.msra.mxu1 %v1525_v5  ;;  %v5894_v9 = vld [vmem:[%s6181_s7 + $0x200] sm:$0xff]   ;;  %v5896_v12 = vld [vmem:[%s6181_s7 + $0x208] sm:$0xff]   ;;  %v5898_v14 = vld [vmem:[%s6181_s7 + $0x210] sm:$0xff]  }
  0x17   : > { %5525 = vmatprep.subr.bf16.mxu0 %v5889_v4  ;;  %5790 = vmatprep.subr.bf16.mxu1 %v5889_v4  ;;  %v5899_v15 = vld [vmem:[%s6181_s7 + $0x18] sm:$0xff]   ;;  %v5901_v17 = vld [vmem:[%s6181_s7 + $0x20] sm:$0xff]   ;;  %v5903_v19 = vld [vmem:[%s6181_s7 + $0x28] sm:$0xff]  }
  0x18   : > { %5533 = vmatprep.mubr.msk.bf16.mxu0 %vm1135_vm2, %v5893_v8  ;;  %5661 = vmatprep.mubr.msk.bf16.mxu1 %vm1135_vm2, %v5894_v9  ;;  %v5900_v16 = vld [vmem:[%s6181_s7 + $0x218] sm:$0xff]   ;;  %v5902_v18 = vld [vmem:[%s6181_s7 + $0x220] sm:$0xff]   ;;  %v5904_v20 = vld [vmem:[%s6181_s7 + $0x228] sm:$0xff]  }
  0x19   : > { %v5905_v21 = vld [vmem:[%s6181_s7 + $0x30] sm:$0xff]   ;;  %v5907_v23 = vld [vmem:[%s6181_s7 + $0x38] sm:$0xff]   ;;  %v5909_v25 = vld [vmem:[%s6181_s7 + $0x40] sm:$0xff]  }
  0x1a   : > { %5526 = vmatpush3.bf16.msra.mxu0 %v5889_v4  ;;  %5795 = vmatpush3.bf16.msra.mxu1 %v5889_v4  ;;  %v5906_v22 = vld [vmem:[%s6181_s7 + $0x230] sm:$0xff]   ;;  %v5908_v24 = vld [vmem:[%s6181_s7 + $0x238] sm:$0xff]   ;;  %v5910_v26 = vld [vmem:[%s6181_s7 + $0x240] sm:$0xff]  }
  0x1b   : > { %5527 = vmatprep.subr.bf16.mxu0 %v5890_v6  ;;  %5791 = vmatprep.subr.bf16.mxu1 %v5890_v6  ;;  %v5911_v27 = vld [vmem:[%s6181_s7 + $0x48] sm:$0xff]   ;;  %v5913_v29 = vld [vmem:[%s6181_s7 + $0x50] sm:$0xff]   ;;  %v5915_v31 = vld [vmem:[%s6181_s7 + $0x58] sm:$0xff]  }
  0x1c   : > { %v5912_v28 = vld [vmem:[%s6181_s7 + $0x248] sm:$0xff]   ;;  %v5914_v30 = vld [vmem:[%s6181_s7 + $0x250] sm:$0xff]   ;;  %v5916_v32 = vld [vmem:[%s6181_s7 + $0x258] sm:$0xff]  }
  0x1d   : > { %v5917_v33 = vld [vmem:[%s6181_s7 + $0x60] sm:$0xff]   ;;  %v5919_v35 = vld [vmem:[%s6181_s7 + $0x68] sm:$0xff]   ;;  %v5921_v37 = vld [vmem:[%s6181_s7 + $0x70] sm:$0xff]  }
  0x1e   : > { %5528 = vmatpush3.bf16.msra.mxu0 %v5890_v6  ;;  %5796 = vmatpush3.bf16.msra.mxu1 %v5890_v6  ;;  %v5918_v34 = vld [vmem:[%s6181_s7 + $0x260] sm:$0xff]   ;;  %v5920_v36 = vld [vmem:[%s6181_s7 + $0x268] sm:$0xff]   ;;  %v5922_v38 = vld [vmem:[%s6181_s7 + $0x270] sm:$0xff]  }
  0x1f   : > { %5529 = vmatprep.subr.bf16.mxu0 %v5891_v7  ;;  %5792 = vmatprep.subr.bf16.mxu1 %v5891_v7  ;;  %v5923_v39 = vld [vmem:[%s6181_s7 + $0x78] sm:$0xff]   ;;  %v5925_v41 = vld [vmem:[%s6181_s7 + $0x80] sm:$0xff]   ;;  %v5927_v43 = vld [vmem:[%s6181_s7 + $0x88] sm:$0xff]  }
  0x20   : > { %v5924_v40 = vld [vmem:[%s6181_s7 + $0x278] sm:$0xff]   ;;  %v5926_v42 = vld [vmem:[%s6181_s7 + $0x280] sm:$0xff]   ;;  %v5928_v44 = vld [vmem:[%s6181_s7 + $0x288] sm:$0xff]  }
  0x21   : > { %v5929_v45 = vld [vmem:[%s6181_s7 + $0x90] sm:$0xff]   ;;  %v5931_v47 = vld [vmem:[%s6181_s7 + $0x98] sm:$0xff]   ;;  %v5933_v49 = vld [vmem:[%s6181_s7 + $0xa0] sm:$0xff]  }
  0x22   : > { %5530 = vmatpush3.bf16.msra.mxu0 %v5891_v7  ;;  %5797 = vmatpush3.bf16.msra.mxu1 %v5891_v7  ;;  %v5930_v46 = vld [vmem:[%s6181_s7 + $0x290] sm:$0xff]   ;;  %v5932_v48 = vld [vmem:[%s6181_s7 + $0x298] sm:$0xff]   ;;  %v5934_v50 = vld [vmem:[%s6181_s7 + $0x2a0] sm:$0xff]  }
  0x23   : > { %5531 = vmatprep.subr.bf16.mxu0 %v5892_v10  ;;  %5793 = vmatprep.subr.bf16.mxu1 %v5892_v10  ;;  %v5935_v51 = vld [vmem:[%s6181_s7 + $0xa8] sm:$0xff]   ;;  %v5937_v53 = vld [vmem:[%s6181_s7 + $0xb0] sm:$0xff]   ;;  %v5939_v55 = vld [vmem:[%s6181_s7 + $0xb8] sm:$0xff]  }
  0x24   : > { %v5936_v52 = vld [vmem:[%s6181_s7 + $0x2a8] sm:$0xff]   ;;  %v5938_v54 = vld [vmem:[%s6181_s7 + $0x2b0] sm:$0xff]   ;;  %v5940_v56 = vld [vmem:[%s6181_s7 + $0x2b8] sm:$0xff]  }
  0x25   : > { %v5941_v57 = vld [vmem:[%s6181_s7 + $0xc0] sm:$0xff]   ;;  %v5943_v59 = vld [vmem:[%s6181_s7 + $0xc8] sm:$0xff]   ;;  %v5945_v61 = vld [vmem:[%s6181_s7 + $0xd0] sm:$0xff]  }
  0x26   : > { %5532 = vmatpush3.bf16.msra.mxu0 %v5892_v10  ;;  %5798 = vmatpush3.bf16.msra.mxu1 %v5892_v10  ;;  %v5942_v58 = vld [vmem:[%s6181_s7 + $0x2c0] sm:$0xff]   ;;  %v5944_v60 = vld [vmem:[%s6181_s7 + $0x2c8] sm:$0xff]   ;;  %v5946_v62 = vld [vmem:[%s6181_s7 + $0x2d0] sm:$0xff]  }
  0x27   : > { %v5947_v63 = vld [vmem:[%s6181_s7 + $0xd8] sm:$0xff]   ;;  %v5949_v1 = vld [vmem:[%s6181_s7 + $0xe0] sm:$0xff]   ;;  %v5951_v3 = vld [vmem:[%s6181_s7 + $0xe8] sm:$0xff]  }
  0x28   : > { %v5948_v0 = vld [vmem:[%s6181_s7 + $0x2d8] sm:$0xff]   ;;  %v5950_v2 = vld [vmem:[%s6181_s7 + $0x2e0] sm:$0xff]   ;;  %v5952_v4 = vld [vmem:[%s6181_s7 + $0x2e8] sm:$0xff]  }
  0x29   : > { %5534 = vmatmul.mubr.msk.bf16.vlgmr.msra.gmra.mxu0 %vm1135_vm2, %v5895_v11  ;;  %5662 = vmatmul.mubr.msk.bf16.vlgmr.msra.gmra.mxu1 %vm1135_vm2, %v5896_v12  ;;  %v5953_v5 = vld [vmem:[%s6181_s7 + $0xf0] sm:$0xff]   ;;  %v5955_v7 = vld [vmem:[%s6181_s7 + $0xf8] sm:$0xff]   ;;  %v5957_v9 = vld [vmem:[%s6181_s7 + $0x100] sm:$0xff]  }
  0x2a   : > { %5537 = vmatprep.mubr.msk.bf16.mxu0 %vm1135_vm2, %v5897_v13  ;;  %5665 = vmatprep.mubr.msk.bf16.mxu1 %vm1135_vm2, %v5898_v14  ;;  %v5954_v6 = vld [vmem:[%s6181_s7 + $0x2f0] sm:$0xff]   ;;  %v5956_v8 = vld [vmem:[%s6181_s7 + $0x2f8] sm:$0xff]   ;;  %v5958_v10 = vld [vmem:[%s6181_s7 + $0x300] sm:$0xff]  }
  0x2b   : > { %v5959_v11 = vld [vmem:[%s6181_s7 + $0x108] sm:$0xff]   ;;  %v5961_v13 = vld [vmem:[%s6181_s7 + $0x110] sm:$0xff]  }
  0x2c   : > { %v5960_v12 = vld [vmem:[%s6181_s7 + $0x308] sm:$0xff]   ;;  %v5962_v14 = vld [vmem:[%s6181_s7 + $0x310] sm:$0xff]  }
  0x31   : > { %5538 = vmatmul.mubr.msk.bf16.gmra.mxu0 %vm1135_vm2, %v5899_v15  ;;  %5666 = vmatmul.mubr.msk.bf16.gmra.mxu1 %vm1135_vm2, %v5900_v16  ;;  %v5963_v15 = vld [vmem:[%s6181_s7 + $0x118] sm:$0xff]  }
  0x32   : > { %5541 = vmatprep.mubr.msk.bf16.mxu0 %vm1135_vm2, %v5901_v17  ;;  %5669 = vmatprep.mubr.msk.bf16.mxu1 %vm1135_vm2, %v5902_v18  ;;  %v5964_v16 = vld [vmem:[%s6181_s7 + $0x318] sm:$0xff]   ;;  %v5965_v17 = vld [vmem:[%s6181_s7 + $0x120] sm:$0xff]  }
  0x33   : > { %v5966_v18 = vld [vmem:[%s6181_s7 + $0x320] sm:$0xff]  }
  0x39   : > { %5542 = vmatmul.mubr.msk.bf16.gmra.mxu0 %vm1135_vm2, %v5903_v19  ;;  %5670 = vmatmul.mubr.msk.bf16.gmra.mxu1 %vm1135_vm2, %v5904_v20  ;;  %v5967_v19 = vld [vmem:[%s6181_s7 + $0x128] sm:$0xff]  }
  0x3a   : > { %5545 = vmatprep.mubr.msk.bf16.mxu0 %vm1135_vm2, %v5905_v21  ;;  %5673 = vmatprep.mubr.msk.bf16.mxu1 %vm1135_vm2, %v5906_v22  ;;  %v5968_v20 = vld [vmem:[%s6181_s7 + $0x328] sm:$0xff]   ;;  %v5969_v21 = vld [vmem:[%s6181_s7 + $0x130] sm:$0xff]  }
  0x3b   : > { %v5970_v22 = vld [vmem:[%s6181_s7 + $0x330] sm:$0xff]  }
  0x41   : > { %5546 = vmatmul.mubr.msk.bf16.gmra.mxu0 %vm1135_vm2, %v5907_v23  ;;  %5674 = vmatmul.mubr.msk.bf16.gmra.mxu1 %vm1135_vm2, %v5908_v24  ;;  %v5971_v23 = vld [vmem:[%s6181_s7 + $0x138] sm:$0xff]  }
  0x42   : > { %5549 = vmatprep.mubr.msk.bf16.mxu0 %vm1135_vm2, %v5909_v25  ;;  %5677 = vmatprep.mubr.msk.bf16.mxu1 %vm1135_vm2, %v5910_v26  ;;  %v5972_v24 = vld [vmem:[%s6181_s7 + $0x338] sm:$0xff]   ;;  %v5973_v25 = vld [vmem:[%s6181_s7 + $0x140] sm:$0xff]  }
  0x43   : > { %v5974_v26 = vld [vmem:[%s6181_s7 + $0x340] sm:$0xff]  }
  0x49   : > { %5550 = vmatmul.mubr.msk.bf16.gmra.mxu0 %vm1135_vm2, %v5911_v27  ;;  %5678 = vmatmul.mubr.msk.bf16.gmra.mxu1 %vm1135_vm2, %v5912_v28  ;;  %v5975_v27 = vld [vmem:[%s6181_s7 + $0x148] sm:$0xff]  }
  0x4a   : > { %5553 = vmatprep.mubr.msk.bf16.mxu0 %vm1135_vm2, %v5913_v29  ;;  %5681 = vmatprep.mubr.msk.bf16.mxu1 %vm1135_vm2, %v5914_v30  ;;  %v5976_v28 = vld [vmem:[%s6181_s7 + $0x348] sm:$0xff]   ;;  %v5977_v29 = vld [vmem:[%s6181_s7 + $0x150] sm:$0xff]  }
  0x4b   : > { %v5978_v30 = vld [vmem:[%s6181_s7 + $0x350] sm:$0xff]  }
  0x51   : > { %5554 = vmatmul.mubr.msk.bf16.gmra.mxu0 %vm1135_vm2, %v5915_v31  ;;  %5682 = vmatmul.mubr.msk.bf16.gmra.mxu1 %vm1135_vm2, %v5916_v32  ;;  %v5979_v31 = vld [vmem:[%s6181_s7 + $0x158] sm:$0xff]  }
  0x52   : > { %5557 = vmatprep.mubr.msk.bf16.mxu0 %vm1135_vm2, %v5917_v33  ;;  %5685 = vmatprep.mubr.msk.bf16.mxu1 %vm1135_vm2, %v5918_v34  ;;  %v5980_v32 = vld [vmem:[%s6181_s7 + $0x358] sm:$0xff]   ;;  %v5981_v33 = vld [vmem:[%s6181_s7 + $0x160] sm:$0xff]  }
  0x53   : > { %v5982_v34 = vld [vmem:[%s6181_s7 + $0x360] sm:$0xff]  }
  0x59   : > { %5558 = vmatmul.mubr.msk.bf16.gmra.mxu0 %vm1135_vm2, %v5919_v35  ;;  %5686 = vmatmul.mubr.msk.bf16.gmra.mxu1 %vm1135_vm2, %v5920_v36  ;;  %v5983_v35 = vld [vmem:[%s6181_s7 + $0x168] sm:$0xff]  }
  0x5a   : > { %5561 = vmatprep.mubr.msk.bf16.mxu0 %vm1135_vm2, %v5921_v37  ;;  %5689 = vmatprep.mubr.msk.bf16.mxu1 %vm1135_vm2, %v5922_v38  ;;  %v5984_v36 = vld [vmem:[%s6181_s7 + $0x368] sm:$0xff]   ;;  %v5985_v37 = vld [vmem:[%s6181_s7 + $0x170] sm:$0xff]  }
  0x5b   : > { %v5986_v38 = vld [vmem:[%s6181_s7 + $0x370] sm:$0xff]  }
  0x61   : > { %5562 = vmatmul.mubr.msk.bf16.gmra.mxu0 %vm1135_vm2, %v5923_v39  ;;  %5690 = vmatmul.mubr.msk.bf16.gmra.mxu1 %vm1135_vm2, %v5924_v40  ;;  %v5987_v39 = vld [vmem:[%s6181_s7 + $0x178] sm:$0xff]  }
  0x62   : > { %5565 = vmatprep.mubr.msk.bf16.mxu0 %vm1135_vm2, %v5925_v41  ;;  %5693 = vmatprep.mubr.msk.bf16.mxu1 %vm1135_vm2, %v5926_v42  ;;  %v5988_v40 = vld [vmem:[%s6181_s7 + $0x378] sm:$0xff]   ;;  %v5989_v41 = vld [vmem:[%s6181_s7 + $0x180] sm:$0xff]  }
  0x63   : > { %v5990_v42 = vld [vmem:[%s6181_s7 + $0x380] sm:$0xff]  }
  0x69   : > { %5566 = vmatmul.mubr.msk.bf16.gmra.mxu0 %vm1135_vm2, %v5927_v43  ;;  %5694 = vmatmul.mubr.msk.bf16.gmra.mxu1 %vm1135_vm2, %v5928_v44  ;;  %v5991_v43 = vld [vmem:[%s6181_s7 + $0x188] sm:$0xff]  }
  0x6a   : > { %5569 = vmatprep.mubr.msk.bf16.mxu0 %vm1135_vm2, %v5929_v45  ;;  %5697 = vmatprep.mubr.msk.bf16.mxu1 %vm1135_vm2, %v5930_v46  ;;  %v5992_v44 = vld [vmem:[%s6181_s7 + $0x388] sm:$0xff]   ;;  %v5993_v45 = vld [vmem:[%s6181_s7 + $0x190] sm:$0xff]  }
  0x6b   : > { %v5994_v46 = vld [vmem:[%s6181_s7 + $0x390] sm:$0xff]  }
  0x71   : > { %5570 = vmatmul.mubr.msk.bf16.gmra.mxu0 %vm1135_vm2, %v5931_v47  ;;  %5698 = vmatmul.mubr.msk.bf16.gmra.mxu1 %vm1135_vm2, %v5932_v48  ;;  %v6390_v47 = vld [vmem:[%s7429_s2] ss:$0 sm:$0xff] }
  0x72   : > { %5573 = vmatprep.mubr.msk.bf16.mxu0 %vm1135_vm2, %v5933_v49  ;;  %5701 = vmatprep.mubr.msk.bf16.mxu1 %vm1135_vm2, %v5934_v50 }
  0x79   : > { %5574 = vmatmul.mubr.msk.bf16.gmra.mxu0 %vm1135_vm2, %v5935_v51  ;;  %5702 = vmatmul.mubr.msk.bf16.gmra.mxu1 %vm1135_vm2, %v5936_v52 }
  0x7a   : > { %5577 = vmatprep.mubr.msk.bf16.mxu0 %vm1135_vm2, %v5937_v53  ;;  %5705 = vmatprep.mubr.msk.bf16.mxu1 %vm1135_vm2, %v5938_v54 }
  0x81   : > { %5578 = vmatmul.mubr.msk.bf16.gmra.mxu0 %vm1135_vm2, %v5939_v55  ;;  %5706 = vmatmul.mubr.msk.bf16.gmra.mxu1 %vm1135_vm2, %v5940_v56 }
  0x82   : > { %5581 = vmatprep.mubr.msk.bf16.mxu0 %vm1135_vm2, %v5941_v57  ;;  %5709 = vmatprep.mubr.msk.bf16.mxu1 %vm1135_vm2, %v5942_v58 }
  0x89   : > { %5582 = vmatmul.mubr.msk.bf16.gmra.mxu0 %vm1135_vm2, %v5943_v59  ;;  %5710 = vmatmul.mubr.msk.bf16.gmra.mxu1 %vm1135_vm2, %v5944_v60  ;;  %v5995_v60 = vld [vmem:[%s6181_s7 + $0x198] sm:$0xff]  }
  0x8a   : > { %5585 = vmatprep.mubr.msk.bf16.mxu0 %vm1135_vm2, %v5945_v61  ;;  %5713 = vmatprep.mubr.msk.bf16.mxu1 %vm1135_vm2, %v5946_v62  ;;  %v5996_v61 = vld [vmem:[%s6181_s7 + $0x398] sm:$0xff]  }
  0x91   : > { %5586 = vmatmul.mubr.msk.bf16.gmra.mxu0 %vm1135_vm2, %v5947_v63  ;;  %5714 = vmatmul.mubr.msk.bf16.gmra.mxu1 %vm1135_vm2, %v5948_v0 }
  0x92   : > { %5589 = vmatprep.mubr.msk.bf16.mxu0 %vm1135_vm2, %v5949_v1  ;;  %5717 = vmatprep.mubr.msk.bf16.mxu1 %vm1135_vm2, %v5950_v2  ;;  %v5997_v2 = vld [vmem:[%s6181_s7 + $0x1a0] sm:$0xff]  }
  0x99   : > { %5590 = vmatmul.mubr.msk.bf16.gmra.mxu0 %vm1135_vm2, %v5951_v3  ;;  %5718 = vmatmul.mubr.msk.bf16.gmra.mxu1 %vm1135_vm2, %v5952_v4  ;;  %v5998_v3 = vld [vmem:[%s6181_s7 + $0x3a0] sm:$0xff]  }
  0x9a   : > { %5593 = vmatprep.mubr.msk.bf16.mxu0 %vm1135_vm2, %v5953_v5  ;;  %5721 = vmatprep.mubr.msk.bf16.mxu1 %vm1135_vm2, %v5954_v6 }
  0xa1   : > { %5594 = vmatmul.mubr.msk.bf16.gmra.mxu0 %vm1135_vm2, %v5955_v7  ;;  %5722 = vmatmul.mubr.msk.bf16.gmra.mxu1 %vm1135_vm2, %v5956_v8 }
  0xa2   : > { %5597 = vmatprep.mubr.msk.bf16.mxu0 %vm1135_vm2, %v5957_v9  ;;  %5725 = vmatprep.mubr.msk.bf16.mxu1 %vm1135_vm2, %v5958_v10 }
  0xa9   : > { %5598 = vmatmul.mubr.msk.bf16.gmra.mxu0 %vm1135_vm2, %v5959_v11  ;;  %5726 = vmatmul.mubr.msk.bf16.gmra.mxu1 %vm1135_vm2, %v5960_v12 }
  0xaa   : > { %5601 = vmatprep.mubr.msk.bf16.mxu0 %vm1135_vm2, %v5961_v13  ;;  %5729 = vmatprep.mubr.msk.bf16.mxu1 %vm1135_vm2, %v5962_v14 }
  0xb1   : > { %5602 = vmatmul.mubr.msk.bf16.gmra.mxu0 %vm1135_vm2, %v5963_v15  ;;  %5730 = vmatmul.mubr.msk.bf16.gmra.mxu1 %vm1135_vm2, %v5964_v16 }
  0xb2   : > { %5605 = vmatprep.mubr.msk.bf16.mxu0 %vm1135_vm2, %v5965_v17  ;;  %5733 = vmatprep.mubr.msk.bf16.mxu1 %vm1135_vm2, %v5966_v18 }
  0xb9   : > { %5606 = vmatmul.mubr.msk.bf16.gmra.mxu0 %vm1135_vm2, %v5967_v19  ;;  %5734 = vmatmul.mubr.msk.bf16.gmra.mxu1 %vm1135_vm2, %v5968_v20 }
  0xba   : > { %5609 = vmatprep.mubr.msk.bf16.mxu0 %vm1135_vm2, %v5969_v21  ;;  %5737 = vmatprep.mubr.msk.bf16.mxu1 %vm1135_vm2, %v5970_v22 }
  0xc1   : > { %5610 = vmatmul.mubr.msk.bf16.gmra.mxu0 %vm1135_vm2, %v5971_v23  ;;  %5738 = vmatmul.mubr.msk.bf16.gmra.mxu1 %vm1135_vm2, %v5972_v24 }
  0xc2   : > { %5613 = vmatprep.mubr.msk.bf16.mxu0 %vm1135_vm2, %v5973_v25  ;;  %5741 = vmatprep.mubr.msk.bf16.mxu1 %vm1135_vm2, %v5974_v26 }
  0xc9   : > { %5614 = vmatmul.mubr.msk.bf16.gmra.mxu0 %vm1135_vm2, %v5975_v27  ;;  %5742 = vmatmul.mubr.msk.bf16.gmra.mxu1 %vm1135_vm2, %v5976_v28 }
  0xca   : > { %5617 = vmatprep.mubr.msk.bf16.mxu0 %vm1135_vm2, %v5977_v29  ;;  %5745 = vmatprep.mubr.msk.bf16.mxu1 %vm1135_vm2, %v5978_v30 }
  0xd1   : > { %5618 = vmatmul.mubr.msk.bf16.gmra.mxu0 %vm1135_vm2, %v5979_v31  ;;  %5746 = vmatmul.mubr.msk.bf16.gmra.mxu1 %vm1135_vm2, %v5980_v32  ;;  %v5999_v32 = vld [vmem:[%s6181_s7 + $0x1a8] sm:$0xff]  }
  0xd2   : > { %5621 = vmatprep.mubr.msk.bf16.mxu0 %vm1135_vm2, %v5981_v33  ;;  %5749 = vmatprep.mubr.msk.bf16.mxu1 %vm1135_vm2, %v5982_v34  ;;  %v6000_v33 = vld [vmem:[%s6181_s7 + $0x3a8] sm:$0xff]  }
  0xd9   : > { %5622 = vmatmul.mubr.msk.bf16.gmra.mxu0 %vm1135_vm2, %v5983_v35  ;;  %5750 = vmatmul.mubr.msk.bf16.gmra.mxu1 %vm1135_vm2, %v5984_v36 }
  0xda   : > { %5625 = vmatprep.mubr.msk.bf16.mxu0 %vm1135_vm2, %v5985_v37  ;;  %5753 = vmatprep.mubr.msk.bf16.mxu1 %vm1135_vm2, %v5986_v38  ;;  %v6001_v38 = vld [vmem:[%s6181_s7 + $0x1b0] sm:$0xff]  }
  0xe1   : > { %5626 = vmatmul.mubr.msk.bf16.gmra.mxu0 %vm1135_vm2, %v5987_v39  ;;  %5754 = vmatmul.mubr.msk.bf16.gmra.mxu1 %vm1135_vm2, %v5988_v40  ;;  %v6002_v39 = vld [vmem:[%s6181_s7 + $0x3b0] sm:$0xff]  }
  0xe2   : > { %5629 = vmatprep.mubr.msk.bf16.mxu0 %vm1135_vm2, %v5989_v41  ;;  %5757 = vmatprep.mubr.msk.bf16.mxu1 %vm1135_vm2, %v5990_v42 }
  0xe9   : > { %v5535_v48 = vpop.f32.mrf.mxu0  ;;  %5630 = vmatmul.mubr.msk.bf16.gmra.mxu0 %vm1135_vm2, %v5991_v43  ;;  %v5663_v49 = vpop.f32.mrf.mxu1  ;;  %5758 = vmatmul.mubr.msk.bf16.gmra.mxu1 %vm1135_vm2, %v5992_v44 }
  0xea   : > { %v1570_v50 = vadd.f32 %v5535_v48, %v6390_v47  ;;  %v2082_v51 = vadd.f32 %v5663_v49, %v6390_v47  ;;  %5633 = vmatprep.mubr.msk.bf16.mxu0 %vm1135_vm2, %v5993_v45  ;;  %5761 = vmatprep.mubr.msk.bf16.mxu1 %vm1135_vm2, %v5994_v46 }
  0xeb   : > { %v1561_v52 = vpop.f32.mrf.mxu0  ;;  %v2073_v53 = vpop.f32.mrf.mxu1 }
  0xec   : > { %v2586_v54 = vmax.f32 %v1570_v50, 0.0  ;;  %v2714_v55 = vmax.f32 %v2082_v51, 0.0  ;;  %v1562_v56 = vadd.f32 %v6390_v47, %v1561_v52  ;;  %v2074_v57 = vadd.f32 %v6390_v47, %v2073_v53 }
  0xed   : > { %v5536_v58 = vpop.f32.mrf.mxu0  ;;  %v5664_v59 = vpop.f32.mrf.mxu1 }
  0xee   : > { %v5133_v62 = vpack.c.bf16 %v2586_v54, %v2586_v54  ;;  %v5261_v63 = vpack.c.bf16 %v2714_v55, %v2714_v55  ;;  %v2584_v0 = vmax.f32 %v1562_v56, 0.0  ;;  %v2712_v1 = vmax.f32 %v2074_v57, 0.0 }
  0xef   : > { %v1573_v4 = vadd.f32 %v5536_v58, %v6390_v47  ;;  %v2085_v5 = vadd.f32 %v5664_v59, %v6390_v47  ;;  %v1564_v6 = vpop.f32.mrf.mxu0  ;;  %v2076_v7 = vpop.f32.mrf.mxu1 }
  0xf0   : > { %3867 = vst.msk [vmem:[%s6406_s12 + $0x8] sm:$0xf] %vm3864_vm3, %v5133_v62  ;;  %3995 = vst.msk [vmem:[%s6406_s12 + $0x208] sm:$0xf] %vm3864_vm3, %v5261_v63  ;;  %v5131_v8 = vpack.c.bf16 %v2584_v0, %v2584_v0  ;;  %v5259_v9 = vpack.c.bf16 %v2712_v1, %v2712_v1  ;;  %v1565_v10 = vadd.f32 %v6390_v47, %v1564_v6  ;;  %v6004_v6 = vld [vmem:[%s6181_s7 + $0x3b8] sm:$0xff]  }
  0xf1   : > { %v2077_v11 = vadd.f32 %v6390_v47, %v2076_v7  ;;  %v2587_v12 = vmax.f32 %v1573_v4, 0.0  ;;  %v2715_v13 = vmax.f32 %v2085_v5, 0.0  ;;  %v5539_v14 = vpop.f32.mrf.mxu0  ;;  %5634 = vmatmul.mubr.msk.bf16.gmra.mxu0 %vm1135_vm2, %v5995_v60  ;;  %v5667_v15 = vpop.f32.mrf.mxu1  ;;  %5762 = vmatmul.mubr.msk.bf16.gmra.mxu1 %vm1135_vm2, %v5996_v61  ;;  %v6003_v5 = vld [vmem:[%s6181_s7 + $0x1b8] sm:$0xff]  }
  0xf2   : > { %3865 = vst.msk [vmem:[%s6406_s12] sm:$0xf] %vm3864_vm3, %v5131_v8  ;;  %3993 = vst.msk [vmem:[%s6406_s12 + $0x200] sm:$0xf] %vm3864_vm3, %v5259_v9  ;;  %v2585_v16 = vmax.f32 %v1565_v10, 0.0  ;;  %v1586_v18 = vadd.f32 %v5539_v14, %v6390_v47  ;;  %v2098_v19 = vadd.f32 %v5667_v15, %v6390_v47  ;;  %5637 = vmatprep.mubr.msk.bf16.mxu0 %vm1135_vm2, %v5997_v2  ;;  %5765 = vmatprep.mubr.msk.bf16.mxu1 %vm1135_vm2, %v5998_v3 }
  0xf3   : > { %v2713_v17 = vmax.f32 %v2077_v11, 0.0  ;;  %v5134_v20 = vpack.c.bf16 %v2587_v12, %v2587_v12  ;;  %v5262_v21 = vpack.c.bf16 %v2715_v13, %v2715_v13  ;;  %v1577_v22 = vpop.f32.mrf.mxu0  ;;  %v2089_v23 = vpop.f32.mrf.mxu1  ;;  %v6005_v11 = vld [vmem:[%s6181_s7 + $0x1c0] sm:$0xff]  }
  0xf4   : > { %v5132_v24 = vpack.c.bf16 %v2585_v16, %v2585_v16  ;;  %v2590_v26 = vmax.f32 %v1586_v18, 0.0  ;;  %v2718_v27 = vmax.f32 %v2098_v19, 0.0  ;;  %v1578_v28 = vadd.f32 %v6390_v47, %v1577_v22  ;;  %v6006_v16 = vld [vmem:[%s6181_s7 + $0x3c0] sm:$0xff]  }
  0xf5   : > { %v5260_v25 = vpack.c.bf16 %v2713_v17, %v2713_v17  ;;  %3868 = vst.msk [vmem:[%s6406_s12 + $0xc] sm:$0xf] %vm3864_vm3, %v5134_v20  ;;  %3996 = vst.msk [vmem:[%s6406_s12 + $0x20c] sm:$0xf] %vm3864_vm3, %v5262_v21  ;;  %v2090_v29 = vadd.f32 %v6390_v47, %v2089_v23  ;;  %v5540_v30 = vpop.f32.mrf.mxu0  ;;  %v5668_v31 = vpop.f32.mrf.mxu1 }
  0xf6   : > { %3866 = vst.msk [vmem:[%s6406_s12 + $0x4] sm:$0xf] %vm3864_vm3, %v5132_v24  ;;  %v5137_v34 = vpack.c.bf16 %v2590_v26, %v2590_v26  ;;  %v5265_v35 = vpack.c.bf16 %v2718_v27, %v2718_v27  ;;  %v1589_v36 = vadd.f32 %v5540_v30, %v6390_v47  ;;  %v2101_v37 = vadd.f32 %v5668_v31, %v6390_v47 }
  0xf7   : > { %3994 = vst.msk [vmem:[%s6406_s12 + $0x204] sm:$0xf] %vm3864_vm3, %v5260_v25  ;;  %v2588_v40 = vmax.f32 %v1578_v28, 0.0  ;;  %v2716_v41 = vmax.f32 %v2090_v29, 0.0  ;;  %v1580_v42 = vpop.f32.mrf.mxu0  ;;  %v2092_v43 = vpop.f32.mrf.mxu1 }
  0xf8   : > { %3871 = vst.msk [vmem:[%s6406_s12 + $0x18] sm:$0xf] %vm3864_vm3, %v5137_v34  ;;  %3999 = vst.msk [vmem:[%s6406_s12 + $0x218] sm:$0xf] %vm3864_vm3, %v5265_v35  ;;  %v2591_v44 = vmax.f32 %v1589_v36, 0.0  ;;  %v2719_v45 = vmax.f32 %v2101_v37, 0.0  ;;  %v1581_v46 = vadd.f32 %v6390_v47, %v1580_v42  ;;  %v2093_v48 = vadd.f32 %v6390_v47, %v2092_v43 }
  0xf9   : > { %v5135_v49 = vpack.c.bf16 %v2588_v40, %v2588_v40  ;;  %v5263_v50 = vpack.c.bf16 %v2716_v41, %v2716_v41  ;;  %v5543_v51 = vpop.f32.mrf.mxu0  ;;  %5638 = vmatmul.mubr.msk.bf16.gmra.mxu0 %vm1135_vm2, %v5999_v32  ;;  %v5671_v52 = vpop.f32.mrf.mxu1  ;;  %5766 = vmatmul.mubr.msk.bf16.gmra.mxu1 %vm1135_vm2, %v6000_v33  ;;  %v6007_v41 = vld [vmem:[%s6181_s7 + $0x1c8] sm:$0xff]  }
  0xfa   : > { %v5138_v53 = vpack.c.bf16 %v2591_v44, %v2591_v44  ;;  %v5266_v54 = vpack.c.bf16 %v2719_v45, %v2719_v45  ;;  %v2589_v55 = vmax.f32 %v1581_v46, 0.0  ;;  %v2717_v56 = vmax.f32 %v2093_v48, 0.0  ;;  %5641 = vmatprep.mubr.msk.bf16.mxu0 %vm1135_vm2, %v6001_v38  ;;  %5769 = vmatprep.mubr.msk.bf16.mxu1 %vm1135_vm2, %v6002_v39  ;;  %v6008_v42 = vld [vmem:[%s6181_s7 + $0x3c8] sm:$0xff]   ;;  %v6009_v48 = vld [vmem:[%s6181_s7 + $0x1d0] sm:$0xff]  }
  0xfb   : > { %3869 = vst.msk [vmem:[%s6406_s12 + $0x10] sm:$0xf] %vm3864_vm3, %v5135_v49  ;;  %3997 = vst.msk [vmem:[%s6406_s12 + $0x210] sm:$0xf] %vm3864_vm3, %v5263_v50  ;;  %v1602_v57 = vadd.f32 %v5543_v51, %v6390_v47  ;;  %v2114_v58 = vadd.f32 %v5671_v52, %v6390_v47  ;;  %v1593_v59 = vpop.f32.mrf.mxu0  ;;  %v2105_v60 = vpop.f32.mrf.mxu1  ;;  %v6010_v49 = vld [vmem:[%s6181_s7 + $0x3d0] sm:$0xff]  }
  0xfc   : > { %3872 = vst.msk [vmem:[%s6406_s12 + $0x1c] sm:$0xf] %vm3864_vm3, %v5138_v53  ;;  %4000 = vst.msk [vmem:[%s6406_s12 + $0x21c] sm:$0xf] %vm3864_vm3, %v5266_v54  ;;  %v5136_v61 = vpack.c.bf16 %v2589_v55, %v2589_v55  ;;  %v5264_v62 = vpack.c.bf16 %v2717_v56, %v2717_v56  ;;  %v1594_v63 = vadd.f32 %v6390_v47, %v1593_v59 }
  0xfd   : > { %v2106_v0 = vadd.f32 %v6390_v47, %v2105_v60  ;;  %v2594_v1 = vmax.f32 %v1602_v57, 0.0  ;;  %v2722_v2 = vmax.f32 %v2114_v58, 0.0  ;;  %v5544_v3 = vpop.f32.mrf.mxu0  ;;  %v5672_v4 = vpop.f32.mrf.mxu1 }
  0xfe   : > { %3870 = vst.msk [vmem:[%s6406_s12 + $0x14] sm:$0xf] %vm3864_vm3, %v5136_v61  ;;  %3998 = vst.msk [vmem:[%s6406_s12 + $0x214] sm:$0xf] %vm3864_vm3, %v5264_v62  ;;  %v2592_v7 = vmax.f32 %v1594_v63, 0.0  ;;  %v1605_v9 = vadd.f32 %v5544_v3, %v6390_v47  ;;  %v2117_v10 = vadd.f32 %v5672_v4, %v6390_v47 }
  0xff   : > { %v2720_v8 = vmax.f32 %v2106_v0, 0.0  ;;  %v5141_v12 = vpack.c.bf16 %v2594_v1, %v2594_v1  ;;  %v5269_v13 = vpack.c.bf16 %v2722_v2, %v2722_v2  ;;  %v1596_v14 = vpop.f32.mrf.mxu0  ;;  %v2108_v15 = vpop.f32.mrf.mxu1 }
 0x100   : > { %v5139_v17 = vpack.c.bf16 %v2592_v7, %v2592_v7  ;;  %v2595_v19 = vmax.f32 %v1605_v9, 0.0  ;;  %v2723_v20 = vmax.f32 %v2117_v10, 0.0  ;;  %v1597_v21 = vadd.f32 %v6390_v47, %v1596_v14  ;;  %v6011_v14 = vld [vmem:[%s6181_s7 + $0x1d8] sm:$0xff]  }
 0x101   : > { %v5267_v18 = vpack.c.bf16 %v2720_v8, %v2720_v8  ;;  %3875 = vst.msk [vmem:[%s6406_s12 + $0x28] sm:$0xf] %vm3864_vm3, %v5141_v12  ;;  %4003 = vst.msk [vmem:[%s6406_s12 + $0x228] sm:$0xf] %vm3864_vm3, %v5269_v13  ;;  %v2109_v22 = vadd.f32 %v6390_v47, %v2108_v15  ;;  %v5547_v23 = vpop.f32.mrf.mxu0  ;;  %5642 = vmatmul.mubr.msk.bf16.gmra.mxu0 %vm1135_vm2, %v6003_v5  ;;  %v5675_v24 = vpop.f32.mrf.mxu1  ;;  %5770 = vmatmul.mubr.msk.bf16.gmra.mxu1 %vm1135_vm2, %v6004_v6  ;;  %v6012_v15 = vld [vmem:[%s6181_s7 + $0x3d8] sm:$0xff]  }
 0x102   : > { %3873 = vst.msk [vmem:[%s6406_s12 + $0x20] sm:$0xf] %vm3864_vm3, %v5139_v17  ;;  %v5142_v25 = vpack.c.bf16 %v2595_v19, %v2595_v19  ;;  %v5270_v26 = vpack.c.bf16 %v2723_v20, %v2723_v20  ;;  %v1618_v27 = vadd.f32 %v5547_v23, %v6390_v47  ;;  %v2130_v28 = vadd.f32 %v5675_v24, %v6390_v47  ;;  %v6013_v20 = vld [vmem:[%s6181_s7 + $0x1e0] sm:$0xff]  }
 0x103   : > { %4001 = vst.msk [vmem:[%s6406_s12 + $0x220] sm:$0xf] %vm3864_vm3, %v5267_v18  ;;  %5645 = vmatprep.mubr.msk.bf16.mxu0 %vm1135_vm2, %v6005_v11  ;;  %v2593_v29 = vmax.f32 %v1597_v21, 0.0  ;;  %v2721_v30 = vmax.f32 %v2109_v22, 0.0  ;;  %v1609_v31 = vpop.f32.mrf.mxu0  ;;  %v2121_v32 = vpop.f32.mrf.mxu1  ;;  %5773 = vmatprep.mubr.msk.bf16.mxu1 %vm1135_vm2, %v6006_v16  ;;  %v6014_v21 = vld [vmem:[%s6181_s7 + $0x3e0] sm:$0xff]  }
 0x104   : > { %3876 = vst.msk [vmem:[%s6406_s12 + $0x2c] sm:$0xf] %vm3864_vm3, %v5142_v25  ;;  %4004 = vst.msk [vmem:[%s6406_s12 + $0x22c] sm:$0xf] %vm3864_vm3, %v5270_v26  ;;  %v2598_v33 = vmax.f32 %v1618_v27, 0.0  ;;  %v2726_v34 = vmax.f32 %v2130_v28, 0.0  ;;  %v1610_v35 = vadd.f32 %v6390_v47, %v1609_v31  ;;  %v2122_v36 = vadd.f32 %v6390_v47, %v2121_v32 }
 0x105   : > { %v5140_v37 = vpack.c.bf16 %v2593_v29, %v2593_v29  ;;  %v5268_v38 = vpack.c.bf16 %v2721_v30, %v2721_v30  ;;  %v5548_v39 = vpop.f32.mrf.mxu0  ;;  %v5676_v40 = vpop.f32.mrf.mxu1 }
 0x106   : > { %v5145_v43 = vpack.c.bf16 %v2598_v33, %v2598_v33  ;;  %v5273_v44 = vpack.c.bf16 %v2726_v34, %v2726_v34  ;;  %v2596_v45 = vmax.f32 %v1610_v35, 0.0  ;;  %v2724_v46 = vmax.f32 %v2122_v36, 0.0 }
 0x107   : > { %3874 = vst.msk [vmem:[%s6406_s12 + $0x24] sm:$0xf] %vm3864_vm3, %v5140_v37  ;;  %4002 = vst.msk [vmem:[%s6406_s12 + $0x224] sm:$0xf] %vm3864_vm3, %v5268_v38  ;;  %v1621_v50 = vadd.f32 %v5548_v39, %v6390_v47  ;;  %v2133_v51 = vadd.f32 %v5676_v40, %v6390_v47  ;;  %v1612_v52 = vpop.f32.mrf.mxu0  ;;  %v2124_v53 = vpop.f32.mrf.mxu1 }
 0x108   : > { %3879 = vst.msk [vmem:[%s6406_s12 + $0x38] sm:$0xf] %vm3864_vm3, %v5145_v43  ;;  %4007 = vst.msk [vmem:[%s6406_s12 + $0x238] sm:$0xf] %vm3864_vm3, %v5273_v44  ;;  %v5143_v54 = vpack.c.bf16 %v2596_v45, %v2596_v45  ;;  %v5271_v55 = vpack.c.bf16 %v2724_v46, %v2724_v46  ;;  %v1613_v56 = vadd.f32 %v6390_v47, %v1612_v52  ;;  %v6016_v52 = vld [vmem:[%s6181_s7 + $0x3e8] sm:$0xff]  }
 0x109   : > { %v2125_v57 = vadd.f32 %v6390_v47, %v2124_v53  ;;  %v2599_v58 = vmax.f32 %v1621_v50, 0.0  ;;  %v2727_v59 = vmax.f32 %v2133_v51, 0.0  ;;  %v5551_v60 = vpop.f32.mrf.mxu0  ;;  %5646 = vmatmul.mubr.msk.bf16.gmra.mxu0 %vm1135_vm2, %v6007_v41  ;;  %v5679_v61 = vpop.f32.mrf.mxu1  ;;  %5774 = vmatmul.mubr.msk.bf16.gmra.mxu1 %vm1135_vm2, %v6008_v42  ;;  %v6015_v51 = vld [vmem:[%s6181_s7 + $0x1e8] sm:$0xff]  }
 0x10a   : > { %3877 = vst.msk [vmem:[%s6406_s12 + $0x30] sm:$0xf] %vm3864_vm3, %v5143_v54  ;;  %4005 = vst.msk [vmem:[%s6406_s12 + $0x230] sm:$0xf] %vm3864_vm3, %v5271_v55  ;;  %v2597_v62 = vmax.f32 %v1613_v56, 0.0  ;;  %v1634_v0 = vadd.f32 %v5551_v60, %v6390_v47  ;;  %v2146_v1 = vadd.f32 %v5679_v61, %v6390_v47  ;;  %5649 = vmatprep.mubr.msk.bf16.mxu0 %vm1135_vm2, %v6009_v48  ;;  %5777 = vmatprep.mubr.msk.bf16.mxu1 %vm1135_vm2, %v6010_v49 }
 0x10b   : > { %v2725_v63 = vmax.f32 %v2125_v57, 0.0  ;;  %v5146_v2 = vpack.c.bf16 %v2599_v58, %v2599_v58  ;;  %v5274_v3 = vpack.c.bf16 %v2727_v59, %v2727_v59  ;;  %v1625_v4 = vpop.f32.mrf.mxu0  ;;  %v2137_v5 = vpop.f32.mrf.mxu1  ;;  %v6017_v57 = vld [vmem:[%s6181_s7 + $0x1f0] sm:$0xff]  }
 0x10c   : > { %v5144_v6 = vpack.c.bf16 %v2597_v62, %v2597_v62  ;;  %v2602_v8 = vmax.f32 %v1634_v0, 0.0  ;;  %v2730_v9 = vmax.f32 %v2146_v1, 0.0  ;;  %v1626_v10 = vadd.f32 %v6390_v47, %v1625_v4  ;;  %v6018_v62 = vld [vmem:[%s6181_s7 + $0x3f0] sm:$0xff]  }
 0x10d   : > { %v5272_v7 = vpack.c.bf16 %v2725_v63, %v2725_v63  ;;  %3880 = vst.msk [vmem:[%s6406_s12 + $0x3c] sm:$0xf] %vm3864_vm3, %v5146_v2  ;;  %4008 = vst.msk [vmem:[%s6406_s12 + $0x23c] sm:$0xf] %vm3864_vm3, %v5274_v3  ;;  %v2138_v11 = vadd.f32 %v6390_v47, %v2137_v5  ;;  %v5552_v12 = vpop.f32.mrf.mxu0  ;;  %v5680_v13 = vpop.f32.mrf.mxu1 }
 0x10e   : > { %3878 = vst.msk [vmem:[%s6406_s12 + $0x34] sm:$0xf] %vm3864_vm3, %v5144_v6  ;;  %v5149_v16 = vpack.c.bf16 %v2602_v8, %v2602_v8  ;;  %v5277_v17 = vpack.c.bf16 %v2730_v9, %v2730_v9  ;;  %v1637_v18 = vadd.f32 %v5552_v12, %v6390_v47  ;;  %v2149_v19 = vadd.f32 %v5680_v13, %v6390_v47 }
 0x10f   : > { %4006 = vst.msk [vmem:[%s6406_s12 + $0x234] sm:$0xf] %vm3864_vm3, %v5272_v7  ;;  %v2600_v22 = vmax.f32 %v1626_v10, 0.0  ;;  %v2728_v23 = vmax.f32 %v2138_v11, 0.0  ;;  %v1628_v24 = vpop.f32.mrf.mxu0  ;;  %v2140_v25 = vpop.f32.mrf.mxu1 }
 0x110   : > { %3883 = vst.msk [vmem:[%s6406_s12 + $0x48] sm:$0xf] %vm3864_vm3, %v5149_v16  ;;  %4011 = vst.msk [vmem:[%s6406_s12 + $0x248] sm:$0xf] %vm3864_vm3, %v5277_v17  ;;  %v2603_v26 = vmax.f32 %v1637_v18, 0.0  ;;  %v2731_v27 = vmax.f32 %v2149_v19, 0.0  ;;  %v1629_v28 = vadd.f32 %v6390_v47, %v1628_v24  ;;  %v2141_v29 = vadd.f32 %v6390_v47, %v2140_v25 }
 0x111   : > { %v5147_v30 = vpack.c.bf16 %v2600_v22, %v2600_v22  ;;  %v5275_v31 = vpack.c.bf16 %v2728_v23, %v2728_v23  ;;  %v5555_v32 = vpop.f32.mrf.mxu0  ;;  %5650 = vmatmul.mubr.msk.bf16.gmra.mxu0 %vm1135_vm2, %v6011_v14  ;;  %v5683_v33 = vpop.f32.mrf.mxu1  ;;  %5778 = vmatmul.mubr.msk.bf16.gmra.mxu1 %vm1135_vm2, %v6012_v15  ;;  %v6019_v23 = vld [vmem:[%s6181_s7 + $0x1f8] sm:$0xff]  }
 0x112   : > { %v5150_v34 = vpack.c.bf16 %v2603_v26, %v2603_v26  ;;  %v5278_v35 = vpack.c.bf16 %v2731_v27, %v2731_v27  ;;  %v2601_v36 = vmax.f32 %v1629_v28, 0.0  ;;  %v2729_v37 = vmax.f32 %v2141_v29, 0.0  ;;  %5653 = vmatprep.mubr.msk.bf16.mxu0 %vm1135_vm2, %v6013_v20  ;;  %5781 = vmatprep.mubr.msk.bf16.mxu1 %vm1135_vm2, %v6014_v21  ;;  %v6020_v24 = vld [vmem:[%s6181_s7 + $0x3f8] sm:$0xff]  }
 0x113   : > { %3881 = vst.msk [vmem:[%s6406_s12 + $0x40] sm:$0xf] %vm3864_vm3, %v5147_v30  ;;  %4009 = vst.msk [vmem:[%s6406_s12 + $0x240] sm:$0xf] %vm3864_vm3, %v5275_v31  ;;  %v1650_v38 = vadd.f32 %v5555_v32, %v6390_v47  ;;  %v2162_v39 = vadd.f32 %v5683_v33, %v6390_v47  ;;  %v1641_v40 = vpop.f32.mrf.mxu0  ;;  %v2153_v41 = vpop.f32.mrf.mxu1 }
 0x114   : > { %3884 = vst.msk [vmem:[%s6406_s12 + $0x4c] sm:$0xf] %vm3864_vm3, %v5150_v34  ;;  %4012 = vst.msk [vmem:[%s6406_s12 + $0x24c] sm:$0xf] %vm3864_vm3, %v5278_v35  ;;  %v5148_v42 = vpack.c.bf16 %v2601_v36, %v2601_v36  ;;  %v5276_v43 = vpack.c.bf16 %v2729_v37, %v2729_v37  ;;  %v1642_v44 = vadd.f32 %v6390_v47, %v1641_v40 }
 0x115   : > { %v2154_v45 = vadd.f32 %v6390_v47, %v2153_v41  ;;  %v2606_v46 = vmax.f32 %v1650_v38, 0.0  ;;  %v2734_v48 = vmax.f32 %v2162_v39, 0.0  ;;  %v5556_v49 = vpop.f32.mrf.mxu0  ;;  %v5684_v50 = vpop.f32.mrf.mxu1 }
 0x116   : > { %3882 = vst.msk [vmem:[%s6406_s12 + $0x44] sm:$0xf] %vm3864_vm3, %v5148_v42  ;;  %4010 = vst.msk [vmem:[%s6406_s12 + $0x244] sm:$0xf] %vm3864_vm3, %v5276_v43  ;;  %v2604_v53 = vmax.f32 %v1642_v44, 0.0  ;;  %v1653_v55 = vadd.f32 %v5556_v49, %v6390_v47  ;;  %v2165_v56 = vadd.f32 %v5684_v50, %v6390_v47 }
 0x117   : > { %v2732_v54 = vmax.f32 %v2154_v45, 0.0  ;;  %v5153_v58 = vpack.c.bf16 %v2606_v46, %v2606_v46  ;;  %v5281_v59 = vpack.c.bf16 %v2734_v48, %v2734_v48  ;;  %v1644_v60 = vpop.f32.mrf.mxu0  ;;  %v2156_v61 = vpop.f32.mrf.mxu1 }
 0x118   : > { %v5151_v63 = vpack.c.bf16 %v2604_v53, %v2604_v53  ;;  %v2607_v1 = vmax.f32 %v1653_v55, 0.0  ;;  %v2735_v2 = vmax.f32 %v2165_v56, 0.0  ;;  %v1645_v3 = vadd.f32 %v6390_v47, %v1644_v60 }
 0x119   : > { %v5279_v0 = vpack.c.bf16 %v2732_v54, %v2732_v54  ;;  %3887 = vst.msk [vmem:[%s6406_s12 + $0x58] sm:$0xf] %vm3864_vm3, %v5153_v58  ;;  %4015 = vst.msk [vmem:[%s6406_s12 + $0x258] sm:$0xf] %vm3864_vm3, %v5281_v59  ;;  %v2157_v4 = vadd.f32 %v6390_v47, %v2156_v61  ;;  %v5559_v5 = vpop.f32.mrf.mxu0  ;;  %5654 = vmatmul.mubr.msk.bf16.gmra.mxu0 %vm1135_vm2, %v6015_v51  ;;  %v5687_v6 = vpop.f32.mrf.mxu1  ;;  %5782 = vmatmul.mubr.msk.bf16.gmra.mxu1 %vm1135_vm2, %v6016_v52 }
 0x11a   : > { %3885 = vst.msk [vmem:[%s6406_s12 + $0x50] sm:$0xf] %vm3864_vm3, %v5151_v63  ;;  %v5154_v7 = vpack.c.bf16 %v2607_v1, %v2607_v1  ;;  %v5282_v8 = vpack.c.bf16 %v2735_v2, %v2735_v2  ;;  %v1666_v9 = vadd.f32 %v5559_v5, %v6390_v47  ;;  %v2178_v10 = vadd.f32 %v5687_v6, %v6390_v47 }
 0x11b   : > { %4013 = vst.msk [vmem:[%s6406_s12 + $0x250] sm:$0xf] %vm3864_vm3, %v5279_v0  ;;  %5657 = vmatprep.mubr.msk.bf16.mxu0 %vm1135_vm2, %v6017_v57  ;;  %v2605_v11 = vmax.f32 %v1645_v3, 0.0  ;;  %v2733_v12 = vmax.f32 %v2157_v4, 0.0  ;;  %v1657_v13 = vpop.f32.mrf.mxu0  ;;  %v2169_v14 = vpop.f32.mrf.mxu1  ;;  %5785 = vmatprep.mubr.msk.bf16.mxu1 %vm1135_vm2, %v6018_v62 }
 0x11c   : > { %3888 = vst.msk [vmem:[%s6406_s12 + $0x5c] sm:$0xf] %vm3864_vm3, %v5154_v7  ;;  %4016 = vst.msk [vmem:[%s6406_s12 + $0x25c] sm:$0xf] %vm3864_vm3, %v5282_v8  ;;  %v2610_v15 = vmax.f32 %v1666_v9, 0.0  ;;  %v2738_v16 = vmax.f32 %v2178_v10, 0.0  ;;  %v1658_v17 = vadd.f32 %v6390_v47, %v1657_v13  ;;  %v2170_v18 = vadd.f32 %v6390_v47, %v2169_v14 }
 0x11d   : > { %v5152_v19 = vpack.c.bf16 %v2605_v11, %v2605_v11  ;;  %v5280_v20 = vpack.c.bf16 %v2733_v12, %v2733_v12  ;;  %v5560_v21 = vpop.f32.mrf.mxu0  ;;  %v5688_v22 = vpop.f32.mrf.mxu1 }
 0x11e   : > { %v5157_v25 = vpack.c.bf16 %v2610_v15, %v2610_v15  ;;  %v5285_v26 = vpack.c.bf16 %v2738_v16, %v2738_v16  ;;  %v2608_v27 = vmax.f32 %v1658_v17, 0.0  ;;  %v2736_v28 = vmax.f32 %v2170_v18, 0.0 }
 0x11f   : > { %3886 = vst.msk [vmem:[%s6406_s12 + $0x54] sm:$0xf] %vm3864_vm3, %v5152_v19  ;;  %4014 = vst.msk [vmem:[%s6406_s12 + $0x254] sm:$0xf] %vm3864_vm3, %v5280_v20  ;;  %v1669_v29 = vadd.f32 %v5560_v21, %v6390_v47  ;;  %v2181_v30 = vadd.f32 %v5688_v22, %v6390_v47  ;;  %v1660_v31 = vpop.f32.mrf.mxu0  ;;  %v2172_v32 = vpop.f32.mrf.mxu1 }
 0x120   : > { %3891 = vst.msk [vmem:[%s6406_s12 + $0x68] sm:$0xf] %vm3864_vm3, %v5157_v25  ;;  %4019 = vst.msk [vmem:[%s6406_s12 + $0x268] sm:$0xf] %vm3864_vm3, %v5285_v26  ;;  %v5155_v33 = vpack.c.bf16 %v2608_v27, %v2608_v27  ;;  %v5283_v34 = vpack.c.bf16 %v2736_v28, %v2736_v28  ;;  %v1661_v35 = vadd.f32 %v6390_v47, %v1660_v31 }
 0x121   : > { %v2173_v36 = vadd.f32 %v6390_v47, %v2172_v32  ;;  %v2611_v37 = vmax.f32 %v1669_v29, 0.0  ;;  %v2739_v38 = vmax.f32 %v2181_v30, 0.0  ;;  %v5563_v39 = vpop.f32.mrf.mxu0  ;;  %5658 = vmatmul.mubr.msk.bf16.gmra.mxu0 %vm1135_vm2, %v6019_v23  ;;  %v5691_v40 = vpop.f32.mrf.mxu1  ;;  %5786 = vmatmul.mubr.msk.bf16.gmra.mxu1 %vm1135_vm2, %v6020_v24 }
 0x122   : > { %3889 = vst.msk [vmem:[%s6406_s12 + $0x60] sm:$0xf] %vm3864_vm3, %v5155_v33  ;;  %4017 = vst.msk [vmem:[%s6406_s12 + $0x260] sm:$0xf] %vm3864_vm3, %v5283_v34  ;;  %v2609_v41 = vmax.f32 %v1661_v35, 0.0  ;;  %v1682_v43 = vadd.f32 %v5563_v39, %v6390_v47  ;;  %v2194_v44 = vadd.f32 %v5691_v40, %v6390_v47 }
 0x123   : > { %v2737_v42 = vmax.f32 %v2173_v36, 0.0  ;;  %v5158_v45 = vpack.c.bf16 %v2611_v37, %v2611_v37  ;;  %v5286_v46 = vpack.c.bf16 %v2739_v38, %v2739_v38  ;;  %v1673_v48 = vpop.f32.mrf.mxu0  ;;  %v2185_v49 = vpop.f32.mrf.mxu1 }
 0x124   : > { %v5156_v50 = vpack.c.bf16 %v2609_v41, %v2609_v41  ;;  %v2614_v52 = vmax.f32 %v1682_v43, 0.0  ;;  %v2742_v53 = vmax.f32 %v2194_v44, 0.0  ;;  %v1674_v54 = vadd.f32 %v6390_v47, %v1673_v48 }
 0x125   : > { %v5284_v51 = vpack.c.bf16 %v2737_v42, %v2737_v42  ;;  %3892 = vst.msk [vmem:[%s6406_s12 + $0x6c] sm:$0xf] %vm3864_vm3, %v5158_v45  ;;  %4020 = vst.msk [vmem:[%s6406_s12 + $0x26c] sm:$0xf] %vm3864_vm3, %v5286_v46  ;;  %v2186_v55 = vadd.f32 %v6390_v47, %v2185_v49  ;;  %v5564_v56 = vpop.f32.mrf.mxu0  ;;  %v5692_v57 = vpop.f32.mrf.mxu1 }
 0x126   : > { %3890 = vst.msk [vmem:[%s6406_s12 + $0x64] sm:$0xf] %vm3864_vm3, %v5156_v50  ;;  %v5161_v58 = vpack.c.bf16 %v2614_v52, %v2614_v52  ;;  %v5289_v59 = vpack.c.bf16 %v2742_v53, %v2742_v53  ;;  %v1685_v60 = vadd.f32 %v5564_v56, %v6390_v47  ;;  %v2197_v61 = vadd.f32 %v5692_v57, %v6390_v47 }
 0x127   : > { %4018 = vst.msk [vmem:[%s6406_s12 + $0x264] sm:$0xf] %vm3864_vm3, %v5284_v51  ;;  %v2612_v62 = vmax.f32 %v1674_v54, 0.0  ;;  %v2740_v63 = vmax.f32 %v2186_v55, 0.0  ;;  %v1676_v0 = vpop.f32.mrf.mxu0  ;;  %v2188_v1 = vpop.f32.mrf.mxu1 }
 0x128   : > { %3895 = vst.msk [vmem:[%s6406_s12 + $0x78] sm:$0xf] %vm3864_vm3, %v5161_v58  ;;  %4023 = vst.msk [vmem:[%s6406_s12 + $0x278] sm:$0xf] %vm3864_vm3, %v5289_v59  ;;  %v2615_v2 = vmax.f32 %v1685_v60, 0.0  ;;  %v2743_v3 = vmax.f32 %v2197_v61, 0.0  ;;  %v1677_v4 = vadd.f32 %v6390_v47, %v1676_v0  ;;  %v2189_v5 = vadd.f32 %v6390_v47, %v2188_v1 }
 0x129   : > { %v5159_v6 = vpack.c.bf16 %v2612_v62, %v2612_v62  ;;  %v5287_v7 = vpack.c.bf16 %v2740_v63, %v2740_v63  ;;  %v5567_v8 = vpop.f32.mrf.mxu0  ;;  %v5695_v9 = vpop.f32.mrf.mxu1 }
 0x12a   : > { %v5162_v10 = vpack.c.bf16 %v2615_v2, %v2615_v2  ;;  %v5290_v11 = vpack.c.bf16 %v2743_v3, %v2743_v3  ;;  %v2613_v12 = vmax.f32 %v1677_v4, 0.0  ;;  %v2741_v13 = vmax.f32 %v2189_v5, 0.0 }
 0x12b   : > { %3893 = vst.msk [vmem:[%s6406_s12 + $0x70] sm:$0xf] %vm3864_vm3, %v5159_v6  ;;  %4021 = vst.msk [vmem:[%s6406_s12 + $0x270] sm:$0xf] %vm3864_vm3, %v5287_v7  ;;  %v1698_v14 = vadd.f32 %v5567_v8, %v6390_v47  ;;  %v2210_v15 = vadd.f32 %v5695_v9, %v6390_v47  ;;  %v1689_v16 = vpop.f32.mrf.mxu0  ;;  %v2201_v17 = vpop.f32.mrf.mxu1 }
 0x12c   : > { %3896 = vst.msk [vmem:[%s6406_s12 + $0x7c] sm:$0xf] %vm3864_vm3, %v5162_v10  ;;  %4024 = vst.msk [vmem:[%s6406_s12 + $0x27c] sm:$0xf] %vm3864_vm3, %v5290_v11  ;;  %v5160_v18 = vpack.c.bf16 %v2613_v12, %v2613_v12  ;;  %v5288_v19 = vpack.c.bf16 %v2741_v13, %v2741_v13  ;;  %v1690_v20 = vadd.f32 %v6390_v47, %v1689_v16 }
 0x12d   : > { %v2202_v21 = vadd.f32 %v6390_v47, %v2201_v17  ;;  %v2618_v22 = vmax.f32 %v1698_v14, 0.0  ;;  %v2746_v23 = vmax.f32 %v2210_v15, 0.0  ;;  %v5568_v24 = vpop.f32.mrf.mxu0  ;;  %v5696_v25 = vpop.f32.mrf.mxu1 }
 0x12e   : > { %3894 = vst.msk [vmem:[%s6406_s12 + $0x74] sm:$0xf] %vm3864_vm3, %v5160_v18  ;;  %4022 = vst.msk [vmem:[%s6406_s12 + $0x274] sm:$0xf] %vm3864_vm3, %v5288_v19  ;;  %v2616_v26 = vmax.f32 %v1690_v20, 0.0  ;;  %v1701_v28 = vadd.f32 %v5568_v24, %v6390_v47  ;;  %v2213_v29 = vadd.f32 %v5696_v25, %v6390_v47 }
 0x12f   : > { %v2744_v27 = vmax.f32 %v2202_v21, 0.0  ;;  %v5165_v30 = vpack.c.bf16 %v2618_v22, %v2618_v22  ;;  %v5293_v31 = vpack.c.bf16 %v2746_v23, %v2746_v23  ;;  %v1692_v32 = vpop.f32.mrf.mxu0  ;;  %v2204_v33 = vpop.f32.mrf.mxu1 }
 0x130   : > { %v5163_v34 = vpack.c.bf16 %v2616_v26, %v2616_v26  ;;  %v2619_v36 = vmax.f32 %v1701_v28, 0.0  ;;  %v2747_v37 = vmax.f32 %v2213_v29, 0.0  ;;  %v1693_v38 = vadd.f32 %v6390_v47, %v1692_v32 }
 0x131   : > { %v5291_v35 = vpack.c.bf16 %v2744_v27, %v2744_v27  ;;  %3899 = vst.msk [vmem:[%s6406_s12 + $0x88] sm:$0xf] %vm3864_vm3, %v5165_v30  ;;  %4027 = vst.msk [vmem:[%s6406_s12 + $0x288] sm:$0xf] %vm3864_vm3, %v5293_v31  ;;  %v2205_v39 = vadd.f32 %v6390_v47, %v2204_v33  ;;  %v5571_v40 = vpop.f32.mrf.mxu0  ;;  %v5699_v41 = vpop.f32.mrf.mxu1 }
 0x132   : > { %3897 = vst.msk [vmem:[%s6406_s12 + $0x80] sm:$0xf] %vm3864_vm3, %v5163_v34  ;;  %v5166_v42 = vpack.c.bf16 %v2619_v36, %v2619_v36  ;;  %v5294_v43 = vpack.c.bf16 %v2747_v37, %v2747_v37  ;;  %v1714_v44 = vadd.f32 %v5571_v40, %v6390_v47  ;;  %v2226_v45 = vadd.f32 %v5699_v41, %v6390_v47 }
 0x133   : > { %4025 = vst.msk [vmem:[%s6406_s12 + $0x280] sm:$0xf] %vm3864_vm3, %v5291_v35  ;;  %v2617_v46 = vmax.f32 %v1693_v38, 0.0  ;;  %v2745_v48 = vmax.f32 %v2205_v39, 0.0  ;;  %v1705_v49 = vpop.f32.mrf.mxu0  ;;  %v2217_v50 = vpop.f32.mrf.mxu1 }
 0x134   : > { %3900 = vst.msk [vmem:[%s6406_s12 + $0x8c] sm:$0xf] %vm3864_vm3, %v5166_v42  ;;  %4028 = vst.msk [vmem:[%s6406_s12 + $0x28c] sm:$0xf] %vm3864_vm3, %v5294_v43  ;;  %v2622_v51 = vmax.f32 %v1714_v44, 0.0  ;;  %v2750_v52 = vmax.f32 %v2226_v45, 0.0  ;;  %v1706_v53 = vadd.f32 %v6390_v47, %v1705_v49  ;;  %v2218_v54 = vadd.f32 %v6390_v47, %v2217_v50 }
 0x135   : > { %v5164_v55 = vpack.c.bf16 %v2617_v46, %v2617_v46  ;;  %v5292_v56 = vpack.c.bf16 %v2745_v48, %v2745_v48  ;;  %v5572_v57 = vpop.f32.mrf.mxu0  ;;  %v5700_v58 = vpop.f32.mrf.mxu1 }
 0x136   : > { %v5169_v59 = vpack.c.bf16 %v2622_v51, %v2622_v51  ;;  %v5297_v60 = vpack.c.bf16 %v2750_v52, %v2750_v52  ;;  %v2620_v61 = vmax.f32 %v1706_v53, 0.0  ;;  %v2748_v62 = vmax.f32 %v2218_v54, 0.0 }
 0x137   : > { %3898 = vst.msk [vmem:[%s6406_s12 + $0x84] sm:$0xf] %vm3864_vm3, %v5164_v55  ;;  %4026 = vst.msk [vmem:[%s6406_s12 + $0x284] sm:$0xf] %vm3864_vm3, %v5292_v56  ;;  %v1717_v63 = vadd.f32 %v5572_v57, %v6390_v47  ;;  %v2229_v0 = vadd.f32 %v5700_v58, %v6390_v47  ;;  %v1708_v1 = vpop.f32.mrf.mxu0  ;;  %v2220_v2 = vpop.f32.mrf.mxu1 }
 0x138   : > { %3903 = vst.msk [vmem:[%s6406_s12 + $0x98] sm:$0xf] %vm3864_vm3, %v5169_v59  ;;  %4031 = vst.msk [vmem:[%s6406_s12 + $0x298] sm:$0xf] %vm3864_vm3, %v5297_v60  ;;  %v5167_v3 = vpack.c.bf16 %v2620_v61, %v2620_v61  ;;  %v5295_v4 = vpack.c.bf16 %v2748_v62, %v2748_v62  ;;  %v1709_v5 = vadd.f32 %v6390_v47, %v1708_v1  ;;  %v6721_v62 = vld [vmem:[%s7429_s2] ss:$0 sm:$0xff] }
 0x139   : > { %v2221_v6 = vadd.f32 %v6390_v47, %v2220_v2  ;;  %v2623_v7 = vmax.f32 %v1717_v63, 0.0  ;;  %v2751_v8 = vmax.f32 %v2229_v0, 0.0  ;;  %v5575_v9 = vpop.f32.mrf.mxu0  ;;  %v5703_v10 = vpop.f32.mrf.mxu1 }
 0x13a   : > { %3901 = vst.msk [vmem:[%s6406_s12 + $0x90] sm:$0xf] %vm3864_vm3, %v5167_v3  ;;  %4029 = vst.msk [vmem:[%s6406_s12 + $0x290] sm:$0xf] %vm3864_vm3, %v5295_v4  ;;  %v2621_v11 = vmax.f32 %v1709_v5, 0.0  ;;  %v1730_v13 = vadd.f32 %v5575_v9, %v6390_v47  ;;  %v2242_v14 = vadd.f32 %v5703_v10, %v6390_v47 }
 0x13b   : > { %v2749_v12 = vmax.f32 %v2221_v6, 0.0  ;;  %v5170_v15 = vpack.c.bf16 %v2623_v7, %v2623_v7  ;;  %v5298_v16 = vpack.c.bf16 %v2751_v8, %v2751_v8  ;;  %v1721_v17 = vpop.f32.mrf.mxu0  ;;  %v2233_v18 = vpop.f32.mrf.mxu1 }
 0x13c   : > { %v5168_v19 = vpack.c.bf16 %v2621_v11, %v2621_v11  ;;  %v2626_v21 = vmax.f32 %v1730_v13, 0.0  ;;  %v2754_v22 = vmax.f32 %v2242_v14, 0.0  ;;  %v1722_v23 = vadd.f32 %v6390_v47, %v1721_v17 }
 0x13d   : > { %v5296_v20 = vpack.c.bf16 %v2749_v12, %v2749_v12  ;;  %3904 = vst.msk [vmem:[%s6406_s12 + $0x9c] sm:$0xf] %vm3864_vm3, %v5170_v15  ;;  %4032 = vst.msk [vmem:[%s6406_s12 + $0x29c] sm:$0xf] %vm3864_vm3, %v5298_v16  ;;  %v2234_v24 = vadd.f32 %v6390_v47, %v2233_v18  ;;  %v5576_v25 = vpop.f32.mrf.mxu0  ;;  %v5704_v26 = vpop.f32.mrf.mxu1 }
 0x13e   : > { %3902 = vst.msk [vmem:[%s6406_s12 + $0x94] sm:$0xf] %vm3864_vm3, %v5168_v19  ;;  %v5173_v27 = vpack.c.bf16 %v2626_v21, %v2626_v21  ;;  %v5301_v28 = vpack.c.bf16 %v2754_v22, %v2754_v22  ;;  %v1733_v29 = vadd.f32 %v5576_v25, %v6390_v47  ;;  %v2245_v30 = vadd.f32 %v5704_v26, %v6390_v47 }
 0x13f   : > { %4030 = vst.msk [vmem:[%s6406_s12 + $0x294] sm:$0xf] %vm3864_vm3, %v5296_v20  ;;  %v2624_v31 = vmax.f32 %v1722_v23, 0.0  ;;  %v2752_v32 = vmax.f32 %v2234_v24, 0.0  ;;  %v1724_v33 = vpop.f32.mrf.mxu0  ;;  %v2236_v34 = vpop.f32.mrf.mxu1 }
 0x140   : > { %3907 = vst.msk [vmem:[%s6406_s12 + $0xa8] sm:$0xf] %vm3864_vm3, %v5173_v27  ;;  %4035 = vst.msk [vmem:[%s6406_s12 + $0x2a8] sm:$0xf] %vm3864_vm3, %v5301_v28  ;;  %v2627_v35 = vmax.f32 %v1733_v29, 0.0  ;;  %v2755_v36 = vmax.f32 %v2245_v30, 0.0  ;;  %v1725_v37 = vadd.f32 %v6390_v47, %v1724_v33  ;;  %v2237_v38 = vadd.f32 %v6390_v47, %v2236_v34 }
 0x141   : > { %v5171_v39 = vpack.c.bf16 %v2624_v31, %v2624_v31  ;;  %v5299_v40 = vpack.c.bf16 %v2752_v32, %v2752_v32  ;;  %v5579_v41 = vpop.f32.mrf.mxu0  ;;  %v5707_v42 = vpop.f32.mrf.mxu1 }
 0x142   : > { %v5174_v43 = vpack.c.bf16 %v2627_v35, %v2627_v35  ;;  %v5302_v44 = vpack.c.bf16 %v2755_v36, %v2755_v36  ;;  %v2625_v45 = vmax.f32 %v1725_v37, 0.0  ;;  %v2753_v46 = vmax.f32 %v2237_v38, 0.0 }
 0x143   : > { %3905 = vst.msk [vmem:[%s6406_s12 + $0xa0] sm:$0xf] %vm3864_vm3, %v5171_v39  ;;  %4033 = vst.msk [vmem:[%s6406_s12 + $0x2a0] sm:$0xf] %vm3864_vm3, %v5299_v40  ;;  %v1746_v48 = vadd.f32 %v5579_v41, %v6390_v47  ;;  %v2258_v49 = vadd.f32 %v5707_v42, %v6390_v47  ;;  %v1737_v50 = vpop.f32.mrf.mxu0  ;;  %v2249_v51 = vpop.f32.mrf.mxu1 }
 0x144   : > { %3908 = vst.msk [vmem:[%s6406_s12 + $0xac] sm:$0xf] %vm3864_vm3, %v5174_v43  ;;  %4036 = vst.msk [vmem:[%s6406_s12 + $0x2ac] sm:$0xf] %vm3864_vm3, %v5302_v44  ;;  %v5172_v52 = vpack.c.bf16 %v2625_v45, %v2625_v45  ;;  %v5300_v53 = vpack.c.bf16 %v2753_v46, %v2753_v46  ;;  %v1738_v54 = vadd.f32 %v6390_v47, %v1737_v50 }
 0x145   : > { %v2250_v55 = vadd.f32 %v6390_v47, %v2249_v51  ;;  %v2630_v56 = vmax.f32 %v1746_v48, 0.0  ;;  %v2758_v57 = vmax.f32 %v2258_v49, 0.0  ;;  %v5580_v58 = vpop.f32.mrf.mxu0  ;;  %v5708_v59 = vpop.f32.mrf.mxu1 }
 0x146   : > { %3906 = vst.msk [vmem:[%s6406_s12 + $0xa4] sm:$0xf] %vm3864_vm3, %v5172_v52  ;;  %4034 = vst.msk [vmem:[%s6406_s12 + $0x2a4] sm:$0xf] %vm3864_vm3, %v5300_v53  ;;  %v2628_v60 = vmax.f32 %v1738_v54, 0.0  ;;  %v1749_v63 = vadd.f32 %v6721_v62, %v5580_v58  ;;  %v2261_v47 = vadd.f32 %v6721_v62, %v5708_v59 }
 0x147   : > { %v2756_v61 = vmax.f32 %v2250_v55, 0.0  ;;  %v5177_v0 = vpack.c.bf16 %v2630_v56, %v2630_v56  ;;  %v5305_v1 = vpack.c.bf16 %v2758_v57, %v2758_v57  ;;  %v1740_v2 = vpop.f32.mrf.mxu0  ;;  %v2252_v3 = vpop.f32.mrf.mxu1 }
 0x148   : > { %v5175_v4 = vpack.c.bf16 %v2628_v60, %v2628_v60  ;;  %v2631_v6 = vmax.f32 %v1749_v63, 0.0  ;;  %v2759_v7 = vmax.f32 %v2261_v47, 0.0  ;;  %v1741_v8 = vadd.f32 %v6721_v62, %v1740_v2 }
 0x149   : > { %v5303_v5 = vpack.c.bf16 %v2756_v61, %v2756_v61  ;;  %3911 = vst.msk [vmem:[%s6406_s12 + $0xb8] sm:$0xf] %vm3864_vm3, %v5177_v0  ;;  %4039 = vst.msk [vmem:[%s6406_s12 + $0x2b8] sm:$0xf] %vm3864_vm3, %v5305_v1  ;;  %v2253_v9 = vadd.f32 %v6721_v62, %v2252_v3  ;;  %v5583_v10 = vpop.f32.mrf.mxu0  ;;  %v5711_v11 = vpop.f32.mrf.mxu1 }
 0x14a   : > { %3909 = vst.msk [vmem:[%s6406_s12 + $0xb0] sm:$0xf] %vm3864_vm3, %v5175_v4  ;;  %v5178_v12 = vpack.c.bf16 %v2631_v6, %v2631_v6  ;;  %v5306_v13 = vpack.c.bf16 %v2759_v7, %v2759_v7  ;;  %v1762_v14 = vadd.f32 %v6721_v62, %v5583_v10  ;;  %v2274_v15 = vadd.f32 %v6721_v62, %v5711_v11 }
 0x14b   : > { %4037 = vst.msk [vmem:[%s6406_s12 + $0x2b0] sm:$0xf] %vm3864_vm3, %v5303_v5  ;;  %v2629_v16 = vmax.f32 %v1741_v8, 0.0  ;;  %v2757_v17 = vmax.f32 %v2253_v9, 0.0  ;;  %v1753_v18 = vpop.f32.mrf.mxu0  ;;  %v2265_v19 = vpop.f32.mrf.mxu1 }
 0x14c   : > { %3912 = vst.msk [vmem:[%s6406_s12 + $0xbc] sm:$0xf] %vm3864_vm3, %v5178_v12  ;;  %4040 = vst.msk [vmem:[%s6406_s12 + $0x2bc] sm:$0xf] %vm3864_vm3, %v5306_v13  ;;  %v2634_v20 = vmax.f32 %v1762_v14, 0.0  ;;  %v2762_v21 = vmax.f32 %v2274_v15, 0.0  ;;  %v1754_v22 = vadd.f32 %v6721_v62, %v1753_v18  ;;  %v2266_v23 = vadd.f32 %v6721_v62, %v2265_v19 }
 0x14d   : > { %v5176_v24 = vpack.c.bf16 %v2629_v16, %v2629_v16  ;;  %v5304_v25 = vpack.c.bf16 %v2757_v17, %v2757_v17  ;;  %v5584_v26 = vpop.f32.mrf.mxu0  ;;  %v5712_v27 = vpop.f32.mrf.mxu1 }
 0x14e   : > { %v5181_v28 = vpack.c.bf16 %v2634_v20, %v2634_v20  ;;  %v5309_v29 = vpack.c.bf16 %v2762_v21, %v2762_v21  ;;  %v2632_v30 = vmax.f32 %v1754_v22, 0.0  ;;  %v2760_v31 = vmax.f32 %v2266_v23, 0.0 }
 0x14f   : > { %3910 = vst.msk [vmem:[%s6406_s12 + $0xb4] sm:$0xf] %vm3864_vm3, %v5176_v24  ;;  %4038 = vst.msk [vmem:[%s6406_s12 + $0x2b4] sm:$0xf] %vm3864_vm3, %v5304_v25  ;;  %v1765_v32 = vadd.f32 %v6721_v62, %v5584_v26  ;;  %v2277_v33 = vadd.f32 %v6721_v62, %v5712_v27  ;;  %v1756_v34 = vpop.f32.mrf.mxu0  ;;  %v2268_v35 = vpop.f32.mrf.mxu1 }
 0x150   : > { %3915 = vst.msk [vmem:[%s6406_s12 + $0xc8] sm:$0xf] %vm3864_vm3, %v5181_v28  ;;  %4043 = vst.msk [vmem:[%s6406_s12 + $0x2c8] sm:$0xf] %vm3864_vm3, %v5309_v29  ;;  %v5179_v36 = vpack.c.bf16 %v2632_v30, %v2632_v30  ;;  %v5307_v37 = vpack.c.bf16 %v2760_v31, %v2760_v31  ;;  %v1757_v38 = vadd.f32 %v6721_v62, %v1756_v34 }
 0x151   : > { %v2269_v39 = vadd.f32 %v6721_v62, %v2268_v35  ;;  %v2635_v40 = vmax.f32 %v1765_v32, 0.0  ;;  %v2763_v41 = vmax.f32 %v2277_v33, 0.0  ;;  %v5587_v42 = vpop.f32.mrf.mxu0  ;;  %v5715_v43 = vpop.f32.mrf.mxu1 }
 0x152   : > { %3913 = vst.msk [vmem:[%s6406_s12 + $0xc0] sm:$0xf] %vm3864_vm3, %v5179_v36  ;;  %4041 = vst.msk [vmem:[%s6406_s12 + $0x2c0] sm:$0xf] %vm3864_vm3, %v5307_v37  ;;  %v2633_v44 = vmax.f32 %v1757_v38, 0.0  ;;  %v1778_v46 = vadd.f32 %v6721_v62, %v5587_v42  ;;  %v2290_v48 = vadd.f32 %v6721_v62, %v5715_v43 }
 0x153   : > { %v2761_v45 = vmax.f32 %v2269_v39, 0.0  ;;  %v5182_v49 = vpack.c.bf16 %v2635_v40, %v2635_v40  ;;  %v5310_v50 = vpack.c.bf16 %v2763_v41, %v2763_v41  ;;  %v1769_v51 = vpop.f32.mrf.mxu0  ;;  %v2281_v52 = vpop.f32.mrf.mxu1 }
 0x154   : > { %v5180_v53 = vpack.c.bf16 %v2633_v44, %v2633_v44  ;;  %v2638_v55 = vmax.f32 %v1778_v46, 0.0  ;;  %v2766_v56 = vmax.f32 %v2290_v48, 0.0  ;;  %v1770_v57 = vadd.f32 %v6721_v62, %v1769_v51 }
 0x155   : > { %v5308_v54 = vpack.c.bf16 %v2761_v45, %v2761_v45  ;;  %3916 = vst.msk [vmem:[%s6406_s12 + $0xcc] sm:$0xf] %vm3864_vm3, %v5182_v49  ;;  %4044 = vst.msk [vmem:[%s6406_s12 + $0x2cc] sm:$0xf] %vm3864_vm3, %v5310_v50  ;;  %v2282_v58 = vadd.f32 %v6721_v62, %v2281_v52  ;;  %v5588_v59 = vpop.f32.mrf.mxu0  ;;  %v5716_v60 = vpop.f32.mrf.mxu1 }
 0x156   : > { %3914 = vst.msk [vmem:[%s6406_s12 + $0xc4] sm:$0xf] %vm3864_vm3, %v5180_v53  ;;  %v5185_v61 = vpack.c.bf16 %v2638_v55, %v2638_v55  ;;  %v5313_v63 = vpack.c.bf16 %v2766_v56, %v2766_v56  ;;  %v1781_v47 = vadd.f32 %v6721_v62, %v5588_v59  ;;  %v2293_v0 = vadd.f32 %v6721_v62, %v5716_v60 }
 0x157   : > { %4042 = vst.msk [vmem:[%s6406_s12 + $0x2c4] sm:$0xf] %vm3864_vm3, %v5308_v54  ;;  %v2636_v1 = vmax.f32 %v1770_v57, 0.0  ;;  %v2764_v2 = vmax.f32 %v2282_v58, 0.0  ;;  %v1772_v3 = vpop.f32.mrf.mxu0  ;;  %v2284_v4 = vpop.f32.mrf.mxu1 }
 0x158   : > { %3919 = vst.msk [vmem:[%s6406_s12 + $0xd8] sm:$0xf] %vm3864_vm3, %v5185_v61  ;;  %4047 = vst.msk [vmem:[%s6406_s12 + $0x2d8] sm:$0xf] %vm3864_vm3, %v5313_v63  ;;  %v2639_v5 = vmax.f32 %v1781_v47, 0.0  ;;  %v2767_v6 = vmax.f32 %v2293_v0, 0.0  ;;  %v1773_v7 = vadd.f32 %v6721_v62, %v1772_v3  ;;  %v2285_v8 = vadd.f32 %v6721_v62, %v2284_v4 }
 0x159   : > { %v5183_v9 = vpack.c.bf16 %v2636_v1, %v2636_v1  ;;  %v5311_v10 = vpack.c.bf16 %v2764_v2, %v2764_v2  ;;  %v5591_v11 = vpop.f32.mrf.mxu0  ;;  %v5719_v12 = vpop.f32.mrf.mxu1 }
 0x15a   : > { %v5186_v13 = vpack.c.bf16 %v2639_v5, %v2639_v5  ;;  %v5314_v14 = vpack.c.bf16 %v2767_v6, %v2767_v6  ;;  %v2637_v15 = vmax.f32 %v1773_v7, 0.0  ;;  %v2765_v16 = vmax.f32 %v2285_v8, 0.0 }
 0x15b   : > { %3917 = vst.msk [vmem:[%s6406_s12 + $0xd0] sm:$0xf] %vm3864_vm3, %v5183_v9  ;;  %4045 = vst.msk [vmem:[%s6406_s12 + $0x2d0] sm:$0xf] %vm3864_vm3, %v5311_v10  ;;  %v1794_v17 = vadd.f32 %v6721_v62, %v5591_v11  ;;  %v2306_v18 = vadd.f32 %v6721_v62, %v5719_v12  ;;  %v1785_v19 = vpop.f32.mrf.mxu0  ;;  %v2297_v20 = vpop.f32.mrf.mxu1 }
 0x15c   : > { %3920 = vst.msk [vmem:[%s6406_s12 + $0xdc] sm:$0xf] %vm3864_vm3, %v5186_v13  ;;  %4048 = vst.msk [vmem:[%s6406_s12 + $0x2dc] sm:$0xf] %vm3864_vm3, %v5314_v14  ;;  %v5184_v21 = vpack.c.bf16 %v2637_v15, %v2637_v15  ;;  %v5312_v22 = vpack.c.bf16 %v2765_v16, %v2765_v16  ;;  %v1786_v23 = vadd.f32 %v6721_v62, %v1785_v19 }
 0x15d   : > { %v2298_v24 = vadd.f32 %v6721_v62, %v2297_v20  ;;  %v2642_v25 = vmax.f32 %v1794_v17, 0.0  ;;  %v2770_v26 = vmax.f32 %v2306_v18, 0.0  ;;  %v5592_v27 = vpop.f32.mrf.mxu0  ;;  %v5720_v28 = vpop.f32.mrf.mxu1 }
 0x15e   : > { %3918 = vst.msk [vmem:[%s6406_s12 + $0xd4] sm:$0xf] %vm3864_vm3, %v5184_v21  ;;  %4046 = vst.msk [vmem:[%s6406_s12 + $0x2d4] sm:$0xf] %vm3864_vm3, %v5312_v22  ;;  %v2640_v29 = vmax.f32 %v1786_v23, 0.0  ;;  %v1797_v31 = vadd.f32 %v6721_v62, %v5592_v27  ;;  %v2309_v32 = vadd.f32 %v6721_v62, %v5720_v28 }
 0x15f   : > { %v2768_v30 = vmax.f32 %v2298_v24, 0.0  ;;  %v5189_v33 = vpack.c.bf16 %v2642_v25, %v2642_v25  ;;  %v5317_v34 = vpack.c.bf16 %v2770_v26, %v2770_v26  ;;  %v1788_v35 = vpop.f32.mrf.mxu0  ;;  %v2300_v36 = vpop.f32.mrf.mxu1 }
 0x160   : > { %v5187_v37 = vpack.c.bf16 %v2640_v29, %v2640_v29  ;;  %v2643_v39 = vmax.f32 %v1797_v31, 0.0  ;;  %v2771_v40 = vmax.f32 %v2309_v32, 0.0  ;;  %v1789_v41 = vadd.f32 %v6721_v62, %v1788_v35 }
 0x161   : > { %v5315_v38 = vpack.c.bf16 %v2768_v30, %v2768_v30  ;;  %3923 = vst.msk [vmem:[%s6406_s12 + $0xe8] sm:$0xf] %vm3864_vm3, %v5189_v33  ;;  %4051 = vst.msk [vmem:[%s6406_s12 + $0x2e8] sm:$0xf] %vm3864_vm3, %v5317_v34  ;;  %v2301_v42 = vadd.f32 %v6721_v62, %v2300_v36  ;;  %v5595_v43 = vpop.f32.mrf.mxu0  ;;  %v5723_v44 = vpop.f32.mrf.mxu1 }
 0x162   : > { %3921 = vst.msk [vmem:[%s6406_s12 + $0xe0] sm:$0xf] %vm3864_vm3, %v5187_v37  ;;  %v5190_v45 = vpack.c.bf16 %v2643_v39, %v2643_v39  ;;  %v5318_v46 = vpack.c.bf16 %v2771_v40, %v2771_v40  ;;  %v1810_v48 = vadd.f32 %v6721_v62, %v5595_v43  ;;  %v2322_v49 = vadd.f32 %v6721_v62, %v5723_v44 }
 0x163   : > { %4049 = vst.msk [vmem:[%s6406_s12 + $0x2e0] sm:$0xf] %vm3864_vm3, %v5315_v38  ;;  %v2641_v50 = vmax.f32 %v1789_v41, 0.0  ;;  %v2769_v51 = vmax.f32 %v2301_v42, 0.0  ;;  %v1801_v52 = vpop.f32.mrf.mxu0  ;;  %v2313_v53 = vpop.f32.mrf.mxu1 }
 0x164   : > { %3924 = vst.msk [vmem:[%s6406_s12 + $0xec] sm:$0xf] %vm3864_vm3, %v5190_v45  ;;  %4052 = vst.msk [vmem:[%s6406_s12 + $0x2ec] sm:$0xf] %vm3864_vm3, %v5318_v46  ;;  %v2646_v54 = vmax.f32 %v1810_v48, 0.0  ;;  %v2774_v55 = vmax.f32 %v2322_v49, 0.0  ;;  %v1802_v56 = vadd.f32 %v6721_v62, %v1801_v52  ;;  %v2314_v57 = vadd.f32 %v6721_v62, %v2313_v53 }
 0x165   : > { %v5188_v58 = vpack.c.bf16 %v2641_v50, %v2641_v50  ;;  %v5316_v59 = vpack.c.bf16 %v2769_v51, %v2769_v51  ;;  %v5596_v60 = vpop.f32.mrf.mxu0  ;;  %v5724_v61 = vpop.f32.mrf.mxu1 }
 0x166   : > { %v5193_v63 = vpack.c.bf16 %v2646_v54, %v2646_v54  ;;  %v5321_v47 = vpack.c.bf16 %v2774_v55, %v2774_v55  ;;  %v2644_v0 = vmax.f32 %v1802_v56, 0.0  ;;  %v2772_v1 = vmax.f32 %v2314_v57, 0.0 }
 0x167   : > { %3922 = vst.msk [vmem:[%s6406_s12 + $0xe4] sm:$0xf] %vm3864_vm3, %v5188_v58  ;;  %4050 = vst.msk [vmem:[%s6406_s12 + $0x2e4] sm:$0xf] %vm3864_vm3, %v5316_v59  ;;  %v1813_v2 = vadd.f32 %v6721_v62, %v5596_v60  ;;  %v2325_v3 = vadd.f32 %v6721_v62, %v5724_v61  ;;  %v1804_v4 = vpop.f32.mrf.mxu0  ;;  %v2316_v5 = vpop.f32.mrf.mxu1 }
 0x168   : > { %3927 = vst.msk [vmem:[%s6406_s12 + $0xf8] sm:$0xf] %vm3864_vm3, %v5193_v63  ;;  %4055 = vst.msk [vmem:[%s6406_s12 + $0x2f8] sm:$0xf] %vm3864_vm3, %v5321_v47  ;;  %v5191_v6 = vpack.c.bf16 %v2644_v0, %v2644_v0  ;;  %v5319_v7 = vpack.c.bf16 %v2772_v1, %v2772_v1  ;;  %v1805_v8 = vadd.f32 %v6721_v62, %v1804_v4 }
 0x169   : > { %v2317_v9 = vadd.f32 %v6721_v62, %v2316_v5  ;;  %v2647_v10 = vmax.f32 %v1813_v2, 0.0  ;;  %v2775_v11 = vmax.f32 %v2325_v3, 0.0  ;;  %v5599_v12 = vpop.f32.mrf.mxu0  ;;  %v5727_v13 = vpop.f32.mrf.mxu1 }
 0x16a   : > { %3925 = vst.msk [vmem:[%s6406_s12 + $0xf0] sm:$0xf] %vm3864_vm3, %v5191_v6  ;;  %4053 = vst.msk [vmem:[%s6406_s12 + $0x2f0] sm:$0xf] %vm3864_vm3, %v5319_v7  ;;  %v2645_v14 = vmax.f32 %v1805_v8, 0.0  ;;  %v1826_v16 = vadd.f32 %v6721_v62, %v5599_v12  ;;  %v2338_v17 = vadd.f32 %v6721_v62, %v5727_v13 }
 0x16b   : > { %v2773_v15 = vmax.f32 %v2317_v9, 0.0  ;;  %v5194_v18 = vpack.c.bf16 %v2647_v10, %v2647_v10  ;;  %v5322_v19 = vpack.c.bf16 %v2775_v11, %v2775_v11  ;;  %v1817_v20 = vpop.f32.mrf.mxu0  ;;  %v2329_v21 = vpop.f32.mrf.mxu1 }
 0x16c   : > { %v5192_v22 = vpack.c.bf16 %v2645_v14, %v2645_v14  ;;  %v2650_v24 = vmax.f32 %v1826_v16, 0.0  ;;  %v2778_v25 = vmax.f32 %v2338_v17, 0.0  ;;  %v1818_v26 = vadd.f32 %v6721_v62, %v1817_v20 }
 0x16d   : > { %v5320_v23 = vpack.c.bf16 %v2773_v15, %v2773_v15  ;;  %3928 = vst.msk [vmem:[%s6406_s12 + $0xfc] sm:$0xf] %vm3864_vm3, %v5194_v18  ;;  %4056 = vst.msk [vmem:[%s6406_s12 + $0x2fc] sm:$0xf] %vm3864_vm3, %v5322_v19  ;;  %v2330_v27 = vadd.f32 %v6721_v62, %v2329_v21  ;;  %v5600_v28 = vpop.f32.mrf.mxu0  ;;  %v5728_v29 = vpop.f32.mrf.mxu1 }
 0x16e   : > { %3926 = vst.msk [vmem:[%s6406_s12 + $0xf4] sm:$0xf] %vm3864_vm3, %v5192_v22  ;;  %v5197_v30 = vpack.c.bf16 %v2650_v24, %v2650_v24  ;;  %v5325_v31 = vpack.c.bf16 %v2778_v25, %v2778_v25  ;;  %v1829_v32 = vadd.f32 %v6721_v62, %v5600_v28  ;;  %v2341_v33 = vadd.f32 %v6721_v62, %v5728_v29 }
 0x16f   : > { %4054 = vst.msk [vmem:[%s6406_s12 + $0x2f4] sm:$0xf] %vm3864_vm3, %v5320_v23  ;;  %v2648_v34 = vmax.f32 %v1818_v26, 0.0  ;;  %v2776_v35 = vmax.f32 %v2330_v27, 0.0  ;;  %v1820_v36 = vpop.f32.mrf.mxu0  ;;  %v2332_v37 = vpop.f32.mrf.mxu1 }
 0x170   : > { %3931 = vst.msk [vmem:[%s6406_s12 + $0x108] sm:$0xf] %vm3864_vm3, %v5197_v30  ;;  %4059 = vst.msk [vmem:[%s6406_s12 + $0x308] sm:$0xf] %vm3864_vm3, %v5325_v31  ;;  %v2651_v38 = vmax.f32 %v1829_v32, 0.0  ;;  %v2779_v39 = vmax.f32 %v2341_v33, 0.0  ;;  %v1821_v40 = vadd.f32 %v6721_v62, %v1820_v36  ;;  %v2333_v41 = vadd.f32 %v6721_v62, %v2332_v37 }
 0x171   : > { %v5195_v42 = vpack.c.bf16 %v2648_v34, %v2648_v34  ;;  %v5323_v43 = vpack.c.bf16 %v2776_v35, %v2776_v35  ;;  %v5603_v44 = vpop.f32.mrf.mxu0  ;;  %v5731_v45 = vpop.f32.mrf.mxu1 }
 0x172   : > { %v5198_v46 = vpack.c.bf16 %v2651_v38, %v2651_v38  ;;  %v5326_v48 = vpack.c.bf16 %v2779_v39, %v2779_v39  ;;  %v2649_v49 = vmax.f32 %v1821_v40, 0.0  ;;  %v2777_v50 = vmax.f32 %v2333_v41, 0.0 }
 0x173   : > { %3929 = vst.msk [vmem:[%s6406_s12 + $0x100] sm:$0xf] %vm3864_vm3, %v5195_v42  ;;  %4057 = vst.msk [vmem:[%s6406_s12 + $0x300] sm:$0xf] %vm3864_vm3, %v5323_v43  ;;  %v1842_v51 = vadd.f32 %v6721_v62, %v5603_v44  ;;  %v2354_v52 = vadd.f32 %v6721_v62, %v5731_v45  ;;  %v1833_v53 = vpop.f32.mrf.mxu0  ;;  %v2345_v54 = vpop.f32.mrf.mxu1 }
 0x174   : > { %3932 = vst.msk [vmem:[%s6406_s12 + $0x10c] sm:$0xf] %vm3864_vm3, %v5198_v46  ;;  %4060 = vst.msk [vmem:[%s6406_s12 + $0x30c] sm:$0xf] %vm3864_vm3, %v5326_v48  ;;  %v5196_v55 = vpack.c.bf16 %v2649_v49, %v2649_v49  ;;  %v5324_v56 = vpack.c.bf16 %v2777_v50, %v2777_v50  ;;  %v1834_v57 = vadd.f32 %v6721_v62, %v1833_v53 }
 0x175   : > { %v2346_v58 = vadd.f32 %v6721_v62, %v2345_v54  ;;  %v2654_v59 = vmax.f32 %v1842_v51, 0.0  ;;  %v2782_v60 = vmax.f32 %v2354_v52, 0.0  ;;  %v5604_v61 = vpop.f32.mrf.mxu0  ;;  %v5732_v63 = vpop.f32.mrf.mxu1 }
 0x176   : > { %3930 = vst.msk [vmem:[%s6406_s12 + $0x104] sm:$0xf] %vm3864_vm3, %v5196_v55  ;;  %4058 = vst.msk [vmem:[%s6406_s12 + $0x304] sm:$0xf] %vm3864_vm3, %v5324_v56  ;;  %v2652_v47 = vmax.f32 %v1834_v57, 0.0  ;;  %v1845_v1 = vadd.f32 %v6721_v62, %v5604_v61  ;;  %v2357_v2 = vadd.f32 %v6721_v62, %v5732_v63 }
 0x177   : > { %v2780_v0 = vmax.f32 %v2346_v58, 0.0  ;;  %v5201_v3 = vpack.c.bf16 %v2654_v59, %v2654_v59  ;;  %v5329_v4 = vpack.c.bf16 %v2782_v60, %v2782_v60  ;;  %v1836_v5 = vpop.f32.mrf.mxu0  ;;  %v2348_v6 = vpop.f32.mrf.mxu1 }
 0x178   : > { %v5199_v7 = vpack.c.bf16 %v2652_v47, %v2652_v47  ;;  %v2655_v9 = vmax.f32 %v1845_v1, 0.0  ;;  %v2783_v10 = vmax.f32 %v2357_v2, 0.0  ;;  %v1837_v11 = vadd.f32 %v6721_v62, %v1836_v5 }
 0x179   : > { %v5327_v8 = vpack.c.bf16 %v2780_v0, %v2780_v0  ;;  %3935 = vst.msk [vmem:[%s6406_s12 + $0x118] sm:$0xf] %vm3864_vm3, %v5201_v3  ;;  %4063 = vst.msk [vmem:[%s6406_s12 + $0x318] sm:$0xf] %vm3864_vm3, %v5329_v4  ;;  %v2349_v12 = vadd.f32 %v6721_v62, %v2348_v6  ;;  %v5607_v13 = vpop.f32.mrf.mxu0  ;;  %v5735_v14 = vpop.f32.mrf.mxu1 }
 0x17a   : > { %3933 = vst.msk [vmem:[%s6406_s12 + $0x110] sm:$0xf] %vm3864_vm3, %v5199_v7  ;;  %v5202_v15 = vpack.c.bf16 %v2655_v9, %v2655_v9  ;;  %v5330_v16 = vpack.c.bf16 %v2783_v10, %v2783_v10  ;;  %v1858_v17 = vadd.f32 %v6721_v62, %v5607_v13  ;;  %v2370_v18 = vadd.f32 %v6721_v62, %v5735_v14 }
 0x17b   : > { %4061 = vst.msk [vmem:[%s6406_s12 + $0x310] sm:$0xf] %vm3864_vm3, %v5327_v8  ;;  %v2653_v19 = vmax.f32 %v1837_v11, 0.0  ;;  %v2781_v20 = vmax.f32 %v2349_v12, 0.0  ;;  %v1849_v21 = vpop.f32.mrf.mxu0  ;;  %v2361_v22 = vpop.f32.mrf.mxu1 }
 0x17c   : > { %3936 = vst.msk [vmem:[%s6406_s12 + $0x11c] sm:$0xf] %vm3864_vm3, %v5202_v15  ;;  %4064 = vst.msk [vmem:[%s6406_s12 + $0x31c] sm:$0xf] %vm3864_vm3, %v5330_v16  ;;  %v2658_v23 = vmax.f32 %v1858_v17, 0.0  ;;  %v2786_v24 = vmax.f32 %v2370_v18, 0.0  ;;  %v1850_v25 = vadd.f32 %v6721_v62, %v1849_v21  ;;  %v2362_v26 = vadd.f32 %v6721_v62, %v2361_v22 }
 0x17d   : > { %v5200_v27 = vpack.c.bf16 %v2653_v19, %v2653_v19  ;;  %v5328_v28 = vpack.c.bf16 %v2781_v20, %v2781_v20  ;;  %v5608_v29 = vpop.f32.mrf.mxu0  ;;  %v5736_v30 = vpop.f32.mrf.mxu1 }
 0x17e   : > { %v5205_v31 = vpack.c.bf16 %v2658_v23, %v2658_v23  ;;  %v5333_v32 = vpack.c.bf16 %v2786_v24, %v2786_v24  ;;  %v2656_v33 = vmax.f32 %v1850_v25, 0.0  ;;  %v2784_v34 = vmax.f32 %v2362_v26, 0.0 }
 0x17f   : > { %3934 = vst.msk [vmem:[%s6406_s12 + $0x114] sm:$0xf] %vm3864_vm3, %v5200_v27  ;;  %4062 = vst.msk [vmem:[%s6406_s12 + $0x314] sm:$0xf] %vm3864_vm3, %v5328_v28  ;;  %v1861_v35 = vadd.f32 %v6721_v62, %v5608_v29  ;;  %v2373_v36 = vadd.f32 %v6721_v62, %v5736_v30  ;;  %v1852_v37 = vpop.f32.mrf.mxu0  ;;  %v2364_v38 = vpop.f32.mrf.mxu1 }
 0x180   : > { %3939 = vst.msk [vmem:[%s6406_s12 + $0x128] sm:$0xf] %vm3864_vm3, %v5205_v31  ;;  %4067 = vst.msk [vmem:[%s6406_s12 + $0x328] sm:$0xf] %vm3864_vm3, %v5333_v32  ;;  %v5203_v39 = vpack.c.bf16 %v2656_v33, %v2656_v33  ;;  %v5331_v40 = vpack.c.bf16 %v2784_v34, %v2784_v34  ;;  %v1853_v41 = vadd.f32 %v6721_v62, %v1852_v37 }
 0x181   : > { %v2365_v42 = vadd.f32 %v6721_v62, %v2364_v38  ;;  %v2659_v43 = vmax.f32 %v1861_v35, 0.0  ;;  %v2787_v44 = vmax.f32 %v2373_v36, 0.0  ;;  %v5611_v45 = vpop.f32.mrf.mxu0  ;;  %v5739_v46 = vpop.f32.mrf.mxu1 }
 0x182   : > { %3937 = vst.msk [vmem:[%s6406_s12 + $0x120] sm:$0xf] %vm3864_vm3, %v5203_v39  ;;  %4065 = vst.msk [vmem:[%s6406_s12 + $0x320] sm:$0xf] %vm3864_vm3, %v5331_v40  ;;  %v2657_v48 = vmax.f32 %v1853_v41, 0.0  ;;  %v1874_v50 = vadd.f32 %v6721_v62, %v5611_v45  ;;  %v2386_v51 = vadd.f32 %v6721_v62, %v5739_v46 }
 0x183   : > { %v2785_v49 = vmax.f32 %v2365_v42, 0.0  ;;  %v5206_v52 = vpack.c.bf16 %v2659_v43, %v2659_v43  ;;  %v5334_v53 = vpack.c.bf16 %v2787_v44, %v2787_v44  ;;  %v1865_v54 = vpop.f32.mrf.mxu0  ;;  %v2377_v55 = vpop.f32.mrf.mxu1 }
 0x184   : > { %v5204_v56 = vpack.c.bf16 %v2657_v48, %v2657_v48  ;;  %v2662_v58 = vmax.f32 %v1874_v50, 0.0  ;;  %v2790_v59 = vmax.f32 %v2386_v51, 0.0  ;;  %v1866_v60 = vadd.f32 %v6721_v62, %v1865_v54 }
 0x185   : > { %v5332_v57 = vpack.c.bf16 %v2785_v49, %v2785_v49  ;;  %3940 = vst.msk [vmem:[%s6406_s12 + $0x12c] sm:$0xf] %vm3864_vm3, %v5206_v52  ;;  %4068 = vst.msk [vmem:[%s6406_s12 + $0x32c] sm:$0xf] %vm3864_vm3, %v5334_v53  ;;  %v2378_v61 = vadd.f32 %v6721_v62, %v2377_v55  ;;  %v5612_v63 = vpop.f32.mrf.mxu0  ;;  %v5740_v47 = vpop.f32.mrf.mxu1 }
 0x186   : > { %3938 = vst.msk [vmem:[%s6406_s12 + $0x124] sm:$0xf] %vm3864_vm3, %v5204_v56  ;;  %v5209_v0 = vpack.c.bf16 %v2662_v58, %v2662_v58  ;;  %v5337_v1 = vpack.c.bf16 %v2790_v59, %v2790_v59  ;;  %v1877_v2 = vadd.f32 %v6721_v62, %v5612_v63  ;;  %v2389_v3 = vadd.f32 %v6721_v62, %v5740_v47 }
 0x187   : > { %4066 = vst.msk [vmem:[%s6406_s12 + $0x324] sm:$0xf] %vm3864_vm3, %v5332_v57  ;;  %v2660_v4 = vmax.f32 %v1866_v60, 0.0  ;;  %v2788_v5 = vmax.f32 %v2378_v61, 0.0  ;;  %v1868_v6 = vpop.f32.mrf.mxu0  ;;  %v2380_v7 = vpop.f32.mrf.mxu1 }
 0x188   : > { %3943 = vst.msk [vmem:[%s6406_s12 + $0x138] sm:$0xf] %vm3864_vm3, %v5209_v0  ;;  %4071 = vst.msk [vmem:[%s6406_s12 + $0x338] sm:$0xf] %vm3864_vm3, %v5337_v1  ;;  %v2663_v8 = vmax.f32 %v1877_v2, 0.0  ;;  %v2791_v9 = vmax.f32 %v2389_v3, 0.0  ;;  %v1869_v10 = vadd.f32 %v6721_v62, %v1868_v6  ;;  %v2381_v11 = vadd.f32 %v6721_v62, %v2380_v7 }
 0x189   : > { %v5207_v12 = vpack.c.bf16 %v2660_v4, %v2660_v4  ;;  %v5335_v13 = vpack.c.bf16 %v2788_v5, %v2788_v5  ;;  %v5615_v14 = vpop.f32.mrf.mxu0  ;;  %v5743_v15 = vpop.f32.mrf.mxu1 }
 0x18a   : > { %v5210_v16 = vpack.c.bf16 %v2663_v8, %v2663_v8  ;;  %v5338_v17 = vpack.c.bf16 %v2791_v9, %v2791_v9  ;;  %v2661_v18 = vmax.f32 %v1869_v10, 0.0  ;;  %v2789_v19 = vmax.f32 %v2381_v11, 0.0 }
 0x18b   : > { %3941 = vst.msk [vmem:[%s6406_s12 + $0x130] sm:$0xf] %vm3864_vm3, %v5207_v12  ;;  %4069 = vst.msk [vmem:[%s6406_s12 + $0x330] sm:$0xf] %vm3864_vm3, %v5335_v13  ;;  %v1890_v20 = vadd.f32 %v6721_v62, %v5615_v14  ;;  %v2402_v21 = vadd.f32 %v6721_v62, %v5743_v15  ;;  %v1881_v22 = vpop.f32.mrf.mxu0  ;;  %v2393_v23 = vpop.f32.mrf.mxu1 }
 0x18c   : > { %3944 = vst.msk [vmem:[%s6406_s12 + $0x13c] sm:$0xf] %vm3864_vm3, %v5210_v16  ;;  %4072 = vst.msk [vmem:[%s6406_s12 + $0x33c] sm:$0xf] %vm3864_vm3, %v5338_v17  ;;  %v5208_v24 = vpack.c.bf16 %v2661_v18, %v2661_v18  ;;  %v5336_v25 = vpack.c.bf16 %v2789_v19, %v2789_v19  ;;  %v1882_v26 = vadd.f32 %v6721_v62, %v1881_v22 }
 0x18d   : > { %v2394_v27 = vadd.f32 %v6721_v62, %v2393_v23  ;;  %v2666_v28 = vmax.f32 %v1890_v20, 0.0  ;;  %v2794_v29 = vmax.f32 %v2402_v21, 0.0  ;;  %v5616_v30 = vpop.f32.mrf.mxu0  ;;  %v5744_v31 = vpop.f32.mrf.mxu1 }
 0x18e   : > { %3942 = vst.msk [vmem:[%s6406_s12 + $0x134] sm:$0xf] %vm3864_vm3, %v5208_v24  ;;  %4070 = vst.msk [vmem:[%s6406_s12 + $0x334] sm:$0xf] %vm3864_vm3, %v5336_v25  ;;  %v2664_v32 = vmax.f32 %v1882_v26, 0.0  ;;  %v1893_v34 = vadd.f32 %v6721_v62, %v5616_v30  ;;  %v2405_v35 = vadd.f32 %v6721_v62, %v5744_v31 }
 0x18f   : > { %v2792_v33 = vmax.f32 %v2394_v27, 0.0  ;;  %v5213_v36 = vpack.c.bf16 %v2666_v28, %v2666_v28  ;;  %v5341_v37 = vpack.c.bf16 %v2794_v29, %v2794_v29  ;;  %v1884_v38 = vpop.f32.mrf.mxu0  ;;  %v2396_v39 = vpop.f32.mrf.mxu1 }
 0x190   : > { %v5211_v40 = vpack.c.bf16 %v2664_v32, %v2664_v32  ;;  %v2667_v42 = vmax.f32 %v1893_v34, 0.0  ;;  %v2795_v43 = vmax.f32 %v2405_v35, 0.0  ;;  %v1885_v44 = vadd.f32 %v6721_v62, %v1884_v38 }
 0x191   : > { %v5339_v41 = vpack.c.bf16 %v2792_v33, %v2792_v33  ;;  %3947 = vst.msk [vmem:[%s6406_s12 + $0x148] sm:$0xf] %vm3864_vm3, %v5213_v36  ;;  %4075 = vst.msk [vmem:[%s6406_s12 + $0x348] sm:$0xf] %vm3864_vm3, %v5341_v37  ;;  %v2397_v45 = vadd.f32 %v6721_v62, %v2396_v39  ;;  %v5619_v46 = vpop.f32.mrf.mxu0  ;;  %v5747_v48 = vpop.f32.mrf.mxu1 }
 0x192   : > { %3945 = vst.msk [vmem:[%s6406_s12 + $0x140] sm:$0xf] %vm3864_vm3, %v5211_v40  ;;  %v5214_v49 = vpack.c.bf16 %v2667_v42, %v2667_v42  ;;  %v5342_v50 = vpack.c.bf16 %v2795_v43, %v2795_v43  ;;  %v1906_v51 = vadd.f32 %v6721_v62, %v5619_v46  ;;  %v2418_v52 = vadd.f32 %v6721_v62, %v5747_v48 }
 0x193   : > { %4073 = vst.msk [vmem:[%s6406_s12 + $0x340] sm:$0xf] %vm3864_vm3, %v5339_v41  ;;  %v2665_v53 = vmax.f32 %v1885_v44, 0.0  ;;  %v2793_v54 = vmax.f32 %v2397_v45, 0.0  ;;  %v1897_v55 = vpop.f32.mrf.mxu0  ;;  %v2409_v56 = vpop.f32.mrf.mxu1 }
 0x194   : > { %3948 = vst.msk [vmem:[%s6406_s12 + $0x14c] sm:$0xf] %vm3864_vm3, %v5214_v49  ;;  %4076 = vst.msk [vmem:[%s6406_s12 + $0x34c] sm:$0xf] %vm3864_vm3, %v5342_v50  ;;  %v2670_v57 = vmax.f32 %v1906_v51, 0.0  ;;  %v2798_v58 = vmax.f32 %v2418_v52, 0.0  ;;  %v1898_v59 = vadd.f32 %v6721_v62, %v1897_v55  ;;  %v2410_v60 = vadd.f32 %v6721_v62, %v2409_v56 }
 0x195   : > { %v5212_v61 = vpack.c.bf16 %v2665_v53, %v2665_v53  ;;  %v5340_v63 = vpack.c.bf16 %v2793_v54, %v2793_v54  ;;  %v5620_v47 = vpop.f32.mrf.mxu0  ;;  %v5748_v0 = vpop.f32.mrf.mxu1 }
 0x196   : > { %v5217_v1 = vpack.c.bf16 %v2670_v57, %v2670_v57  ;;  %v5345_v2 = vpack.c.bf16 %v2798_v58, %v2798_v58  ;;  %v2668_v3 = vmax.f32 %v1898_v59, 0.0  ;;  %v2796_v4 = vmax.f32 %v2410_v60, 0.0 }
 0x197   : > { %3946 = vst.msk [vmem:[%s6406_s12 + $0x144] sm:$0xf] %vm3864_vm3, %v5212_v61  ;;  %4074 = vst.msk [vmem:[%s6406_s12 + $0x344] sm:$0xf] %vm3864_vm3, %v5340_v63  ;;  %v1909_v5 = vadd.f32 %v6721_v62, %v5620_v47  ;;  %v2421_v6 = vadd.f32 %v6721_v62, %v5748_v0  ;;  %v1900_v7 = vpop.f32.mrf.mxu0  ;;  %v2412_v8 = vpop.f32.mrf.mxu1 }
 0x198   : > { %3951 = vst.msk [vmem:[%s6406_s12 + $0x158] sm:$0xf] %vm3864_vm3, %v5217_v1  ;;  %4079 = vst.msk [vmem:[%s6406_s12 + $0x358] sm:$0xf] %vm3864_vm3, %v5345_v2  ;;  %v5215_v9 = vpack.c.bf16 %v2668_v3, %v2668_v3  ;;  %v5343_v10 = vpack.c.bf16 %v2796_v4, %v2796_v4  ;;  %v1901_v11 = vadd.f32 %v6721_v62, %v1900_v7 }
 0x199   : > { %v2413_v12 = vadd.f32 %v6721_v62, %v2412_v8  ;;  %v2671_v13 = vmax.f32 %v1909_v5, 0.0  ;;  %v2799_v14 = vmax.f32 %v2421_v6, 0.0  ;;  %v5623_v15 = vpop.f32.mrf.mxu0  ;;  %v5751_v16 = vpop.f32.mrf.mxu1 }
 0x19a   : > { %3949 = vst.msk [vmem:[%s6406_s12 + $0x150] sm:$0xf] %vm3864_vm3, %v5215_v9  ;;  %4077 = vst.msk [vmem:[%s6406_s12 + $0x350] sm:$0xf] %vm3864_vm3, %v5343_v10  ;;  %v2669_v17 = vmax.f32 %v1901_v11, 0.0  ;;  %v1922_v19 = vadd.f32 %v6721_v62, %v5623_v15  ;;  %v2434_v20 = vadd.f32 %v6721_v62, %v5751_v16 }
 0x19b   : > { %v2797_v18 = vmax.f32 %v2413_v12, 0.0  ;;  %v5218_v21 = vpack.c.bf16 %v2671_v13, %v2671_v13  ;;  %v5346_v22 = vpack.c.bf16 %v2799_v14, %v2799_v14  ;;  %v1913_v23 = vpop.f32.mrf.mxu0  ;;  %v2425_v24 = vpop.f32.mrf.mxu1 }
 0x19c   : > { %v5216_v25 = vpack.c.bf16 %v2669_v17, %v2669_v17  ;;  %v2674_v27 = vmax.f32 %v1922_v19, 0.0  ;;  %v2802_v28 = vmax.f32 %v2434_v20, 0.0  ;;  %v1914_v29 = vadd.f32 %v6721_v62, %v1913_v23 }
 0x19d   : > { %v5344_v26 = vpack.c.bf16 %v2797_v18, %v2797_v18  ;;  %3952 = vst.msk [vmem:[%s6406_s12 + $0x15c] sm:$0xf] %vm3864_vm3, %v5218_v21  ;;  %4080 = vst.msk [vmem:[%s6406_s12 + $0x35c] sm:$0xf] %vm3864_vm3, %v5346_v22  ;;  %v2426_v30 = vadd.f32 %v6721_v62, %v2425_v24  ;;  %v5624_v31 = vpop.f32.mrf.mxu0  ;;  %v5752_v32 = vpop.f32.mrf.mxu1 }
 0x19e   : > { %3950 = vst.msk [vmem:[%s6406_s12 + $0x154] sm:$0xf] %vm3864_vm3, %v5216_v25  ;;  %v5221_v33 = vpack.c.bf16 %v2674_v27, %v2674_v27  ;;  %v5349_v34 = vpack.c.bf16 %v2802_v28, %v2802_v28  ;;  %v1925_v35 = vadd.f32 %v6721_v62, %v5624_v31  ;;  %v2437_v36 = vadd.f32 %v6721_v62, %v5752_v32 }
 0x19f   : > { %4078 = vst.msk [vmem:[%s6406_s12 + $0x354] sm:$0xf] %vm3864_vm3, %v5344_v26  ;;  %v2672_v37 = vmax.f32 %v1914_v29, 0.0  ;;  %v2800_v38 = vmax.f32 %v2426_v30, 0.0  ;;  %v1916_v39 = vpop.f32.mrf.mxu0  ;;  %v2428_v40 = vpop.f32.mrf.mxu1 }
 0x1a0   : > { %3955 = vst.msk [vmem:[%s6406_s12 + $0x168] sm:$0xf] %vm3864_vm3, %v5221_v33  ;;  %4083 = vst.msk [vmem:[%s6406_s12 + $0x368] sm:$0xf] %vm3864_vm3, %v5349_v34  ;;  %v2675_v41 = vmax.f32 %v1925_v35, 0.0  ;;  %v2803_v42 = vmax.f32 %v2437_v36, 0.0  ;;  %v1917_v43 = vadd.f32 %v6721_v62, %v1916_v39  ;;  %v2429_v44 = vadd.f32 %v6721_v62, %v2428_v40 }
 0x1a1   : > { %v5219_v45 = vpack.c.bf16 %v2672_v37, %v2672_v37  ;;  %v5347_v46 = vpack.c.bf16 %v2800_v38, %v2800_v38  ;;  %v5627_v48 = vpop.f32.mrf.mxu0  ;;  %v5755_v49 = vpop.f32.mrf.mxu1  ;;  %v7038_v38 = vld [vmem:[%s7429_s2] ss:$0 sm:$0xff] }
 0x1a2   : > { %v5222_v50 = vpack.c.bf16 %v2675_v41, %v2675_v41  ;;  %v5350_v51 = vpack.c.bf16 %v2803_v42, %v2803_v42  ;;  %v2673_v52 = vmax.f32 %v1917_v43, 0.0  ;;  %v2801_v53 = vmax.f32 %v2429_v44, 0.0 }
 0x1a3   : > { %3953 = vst.msk [vmem:[%s6406_s12 + $0x160] sm:$0xf] %vm3864_vm3, %v5219_v45  ;;  %4081 = vst.msk [vmem:[%s6406_s12 + $0x360] sm:$0xf] %vm3864_vm3, %v5347_v46  ;;  %v1938_v54 = vadd.f32 %v6721_v62, %v5627_v48  ;;  %v2450_v55 = vadd.f32 %v6721_v62, %v5755_v49  ;;  %v1929_v56 = vpop.f32.mrf.mxu0  ;;  %v2441_v57 = vpop.f32.mrf.mxu1 }
 0x1a4   : > { %3956 = vst.msk [vmem:[%s6406_s12 + $0x16c] sm:$0xf] %vm3864_vm3, %v5222_v50  ;;  %4084 = vst.msk [vmem:[%s6406_s12 + $0x36c] sm:$0xf] %vm3864_vm3, %v5350_v51  ;;  %v5220_v58 = vpack.c.bf16 %v2673_v52, %v2673_v52  ;;  %v5348_v59 = vpack.c.bf16 %v2801_v53, %v2801_v53  ;;  %v1930_v60 = vadd.f32 %v6721_v62, %v1929_v56 }
 0x1a5   : > { %v2442_v61 = vadd.f32 %v6721_v62, %v2441_v57  ;;  %v2678_v63 = vmax.f32 %v1938_v54, 0.0  ;;  %v2806_v47 = vmax.f32 %v2450_v55, 0.0  ;;  %v5628_v0 = vpop.f32.mrf.mxu0  ;;  %v5756_v1 = vpop.f32.mrf.mxu1 }
 0x1a6   : > { %3954 = vst.msk [vmem:[%s6406_s12 + $0x164] sm:$0xf] %vm3864_vm3, %v5220_v58  ;;  %4082 = vst.msk [vmem:[%s6406_s12 + $0x364] sm:$0xf] %vm3864_vm3, %v5348_v59  ;;  %v2676_v2 = vmax.f32 %v1930_v60, 0.0  ;;  %v1941_v4 = vadd.f32 %v6721_v62, %v5628_v0  ;;  %v2453_v5 = vadd.f32 %v6721_v62, %v5756_v1 }
 0x1a7   : > { %v2804_v3 = vmax.f32 %v2442_v61, 0.0  ;;  %v5225_v6 = vpack.c.bf16 %v2678_v63, %v2678_v63  ;;  %v5353_v7 = vpack.c.bf16 %v2806_v47, %v2806_v47  ;;  %v1932_v8 = vpop.f32.mrf.mxu0  ;;  %v2444_v9 = vpop.f32.mrf.mxu1 }
 0x1a8   : > { %v5223_v10 = vpack.c.bf16 %v2676_v2, %v2676_v2  ;;  %v2679_v12 = vmax.f32 %v1941_v4, 0.0  ;;  %v2807_v13 = vmax.f32 %v2453_v5, 0.0  ;;  %v1933_v14 = vadd.f32 %v6721_v62, %v1932_v8 }
 0x1a9   : > { %v5351_v11 = vpack.c.bf16 %v2804_v3, %v2804_v3  ;;  %3959 = vst.msk [vmem:[%s6406_s12 + $0x178] sm:$0xf] %vm3864_vm3, %v5225_v6  ;;  %4087 = vst.msk [vmem:[%s6406_s12 + $0x378] sm:$0xf] %vm3864_vm3, %v5353_v7  ;;  %v2445_v15 = vadd.f32 %v6721_v62, %v2444_v9  ;;  %v5631_v16 = vpop.f32.mrf.mxu0  ;;  %v5759_v17 = vpop.f32.mrf.mxu1 }
 0x1aa   : > { %3957 = vst.msk [vmem:[%s6406_s12 + $0x170] sm:$0xf] %vm3864_vm3, %v5223_v10  ;;  %v5226_v18 = vpack.c.bf16 %v2679_v12, %v2679_v12  ;;  %v5354_v19 = vpack.c.bf16 %v2807_v13, %v2807_v13  ;;  %v1954_v20 = vadd.f32 %v6721_v62, %v5631_v16  ;;  %v2466_v21 = vadd.f32 %v6721_v62, %v5759_v17 }
 0x1ab   : > { %4085 = vst.msk [vmem:[%s6406_s12 + $0x370] sm:$0xf] %vm3864_vm3, %v5351_v11  ;;  %v2677_v22 = vmax.f32 %v1933_v14, 0.0  ;;  %v2805_v23 = vmax.f32 %v2445_v15, 0.0  ;;  %v1945_v24 = vpop.f32.mrf.mxu0  ;;  %v2457_v25 = vpop.f32.mrf.mxu1 }
 0x1ac   : > { %3960 = vst.msk [vmem:[%s6406_s12 + $0x17c] sm:$0xf] %vm3864_vm3, %v5226_v18  ;;  %4088 = vst.msk [vmem:[%s6406_s12 + $0x37c] sm:$0xf] %vm3864_vm3, %v5354_v19  ;;  %v2682_v26 = vmax.f32 %v1954_v20, 0.0  ;;  %v2810_v27 = vmax.f32 %v2466_v21, 0.0  ;;  %v1946_v28 = vadd.f32 %v6721_v62, %v1945_v24  ;;  %v2458_v29 = vadd.f32 %v6721_v62, %v2457_v25 }
 0x1ad   : > { %v5224_v30 = vpack.c.bf16 %v2677_v22, %v2677_v22  ;;  %v5352_v31 = vpack.c.bf16 %v2805_v23, %v2805_v23  ;;  %v5632_v32 = vpop.f32.mrf.mxu0  ;;  %v5760_v33 = vpop.f32.mrf.mxu1 }
 0x1ae   : > { %v5229_v34 = vpack.c.bf16 %v2682_v26, %v2682_v26  ;;  %v5357_v35 = vpack.c.bf16 %v2810_v27, %v2810_v27  ;;  %v2680_v36 = vmax.f32 %v1946_v28, 0.0  ;;  %v2808_v37 = vmax.f32 %v2458_v29, 0.0 }
 0x1af   : > { %3958 = vst.msk [vmem:[%s6406_s12 + $0x174] sm:$0xf] %vm3864_vm3, %v5224_v30  ;;  %4086 = vst.msk [vmem:[%s6406_s12 + $0x374] sm:$0xf] %vm3864_vm3, %v5352_v31  ;;  %v1957_v62 = vadd.f32 %v7038_v38, %v5632_v32  ;;  %v2469_v39 = vadd.f32 %v7038_v38, %v5760_v33  ;;  %v1948_v40 = vpop.f32.mrf.mxu0  ;;  %v2460_v41 = vpop.f32.mrf.mxu1 }
 0x1b0   : > { %3963 = vst.msk [vmem:[%s6406_s12 + $0x188] sm:$0xf] %vm3864_vm3, %v5229_v34  ;;  %4091 = vst.msk [vmem:[%s6406_s12 + $0x388] sm:$0xf] %vm3864_vm3, %v5357_v35  ;;  %v5227_v42 = vpack.c.bf16 %v2680_v36, %v2680_v36  ;;  %v5355_v43 = vpack.c.bf16 %v2808_v37, %v2808_v37  ;;  %v1949_v44 = vadd.f32 %v7038_v38, %v1948_v40 }
 0x1b1   : > { %v2461_v45 = vadd.f32 %v7038_v38, %v2460_v41  ;;  %v2683_v46 = vmax.f32 %v1957_v62, 0.0  ;;  %v2811_v48 = vmax.f32 %v2469_v39, 0.0  ;;  %v5635_v49 = vpop.f32.mrf.mxu0  ;;  %v5763_v50 = vpop.f32.mrf.mxu1 }
 0x1b2   : > { %3961 = vst.msk [vmem:[%s6406_s12 + $0x180] sm:$0xf] %vm3864_vm3, %v5227_v42  ;;  %4089 = vst.msk [vmem:[%s6406_s12 + $0x380] sm:$0xf] %vm3864_vm3, %v5355_v43  ;;  %v2681_v51 = vmax.f32 %v1949_v44, 0.0  ;;  %v1970_v53 = vadd.f32 %v7038_v38, %v5635_v49  ;;  %v2482_v54 = vadd.f32 %v7038_v38, %v5763_v50 }
 0x1b3   : > { %v2809_v52 = vmax.f32 %v2461_v45, 0.0  ;;  %v5230_v55 = vpack.c.bf16 %v2683_v46, %v2683_v46  ;;  %v5358_v56 = vpack.c.bf16 %v2811_v48, %v2811_v48  ;;  %v1961_v57 = vpop.f32.mrf.mxu0  ;;  %v2473_v58 = vpop.f32.mrf.mxu1 }
 0x1b4   : > { %v5228_v59 = vpack.c.bf16 %v2681_v51, %v2681_v51  ;;  %v2686_v61 = vmax.f32 %v1970_v53, 0.0  ;;  %v2814_v63 = vmax.f32 %v2482_v54, 0.0  ;;  %v1962_v47 = vadd.f32 %v7038_v38, %v1961_v57 }
 0x1b5   : > { %v5356_v60 = vpack.c.bf16 %v2809_v52, %v2809_v52  ;;  %3964 = vst.msk [vmem:[%s6406_s12 + $0x18c] sm:$0xf] %vm3864_vm3, %v5230_v55  ;;  %4092 = vst.msk [vmem:[%s6406_s12 + $0x38c] sm:$0xf] %vm3864_vm3, %v5358_v56  ;;  %v2474_v0 = vadd.f32 %v7038_v38, %v2473_v58  ;;  %v5636_v1 = vpop.f32.mrf.mxu0  ;;  %v5764_v2 = vpop.f32.mrf.mxu1 }
 0x1b6   : > { %3962 = vst.msk [vmem:[%s6406_s12 + $0x184] sm:$0xf] %vm3864_vm3, %v5228_v59  ;;  %v5233_v3 = vpack.c.bf16 %v2686_v61, %v2686_v61  ;;  %v5361_v4 = vpack.c.bf16 %v2814_v63, %v2814_v63  ;;  %v1973_v5 = vadd.f32 %v7038_v38, %v5636_v1  ;;  %v2485_v6 = vadd.f32 %v7038_v38, %v5764_v2 }
 0x1b7   : > { %4090 = vst.msk [vmem:[%s6406_s12 + $0x384] sm:$0xf] %vm3864_vm3, %v5356_v60  ;;  %v2684_v7 = vmax.f32 %v1962_v47, 0.0  ;;  %v2812_v8 = vmax.f32 %v2474_v0, 0.0  ;;  %v1964_v9 = vpop.f32.mrf.mxu0  ;;  %v2476_v10 = vpop.f32.mrf.mxu1 }
 0x1b8   : > { %3967 = vst.msk [vmem:[%s6406_s12 + $0x198] sm:$0xf] %vm3864_vm3, %v5233_v3  ;;  %4095 = vst.msk [vmem:[%s6406_s12 + $0x398] sm:$0xf] %vm3864_vm3, %v5361_v4  ;;  %v2687_v11 = vmax.f32 %v1973_v5, 0.0  ;;  %v2815_v12 = vmax.f32 %v2485_v6, 0.0  ;;  %v1965_v13 = vadd.f32 %v7038_v38, %v1964_v9  ;;  %v2477_v14 = vadd.f32 %v7038_v38, %v2476_v10 }
 0x1b9   : > { %v5231_v15 = vpack.c.bf16 %v2684_v7, %v2684_v7  ;;  %v5359_v16 = vpack.c.bf16 %v2812_v8, %v2812_v8  ;;  %v5639_v17 = vpop.f32.mrf.mxu0  ;;  %v5767_v18 = vpop.f32.mrf.mxu1 }
 0x1ba   : > { %v5234_v19 = vpack.c.bf16 %v2687_v11, %v2687_v11  ;;  %v5362_v20 = vpack.c.bf16 %v2815_v12, %v2815_v12  ;;  %v2685_v21 = vmax.f32 %v1965_v13, 0.0  ;;  %v2813_v22 = vmax.f32 %v2477_v14, 0.0 }
 0x1bb   : > { %3965 = vst.msk [vmem:[%s6406_s12 + $0x190] sm:$0xf] %vm3864_vm3, %v5231_v15  ;;  %4093 = vst.msk [vmem:[%s6406_s12 + $0x390] sm:$0xf] %vm3864_vm3, %v5359_v16  ;;  %v1986_v23 = vadd.f32 %v7038_v38, %v5639_v17  ;;  %v2498_v24 = vadd.f32 %v7038_v38, %v5767_v18  ;;  %v1977_v25 = vpop.f32.mrf.mxu0  ;;  %v2489_v26 = vpop.f32.mrf.mxu1 }
 0x1bc   : > { %3968 = vst.msk [vmem:[%s6406_s12 + $0x19c] sm:$0xf] %vm3864_vm3, %v5234_v19  ;;  %4096 = vst.msk [vmem:[%s6406_s12 + $0x39c] sm:$0xf] %vm3864_vm3, %v5362_v20  ;;  %v5232_v27 = vpack.c.bf16 %v2685_v21, %v2685_v21  ;;  %v5360_v28 = vpack.c.bf16 %v2813_v22, %v2813_v22  ;;  %v1978_v29 = vadd.f32 %v7038_v38, %v1977_v25 }
 0x1bd   : > { %v2490_v30 = vadd.f32 %v7038_v38, %v2489_v26  ;;  %v2690_v31 = vmax.f32 %v1986_v23, 0.0  ;;  %v2818_v32 = vmax.f32 %v2498_v24, 0.0  ;;  %v5640_v33 = vpop.f32.mrf.mxu0  ;;  %v5768_v34 = vpop.f32.mrf.mxu1 }
 0x1be   : > { %3966 = vst.msk [vmem:[%s6406_s12 + $0x194] sm:$0xf] %vm3864_vm3, %v5232_v27  ;;  %4094 = vst.msk [vmem:[%s6406_s12 + $0x394] sm:$0xf] %vm3864_vm3, %v5360_v28  ;;  %v2688_v35 = vmax.f32 %v1978_v29, 0.0  ;;  %v1989_v37 = vadd.f32 %v7038_v38, %v5640_v33  ;;  %v2501_v62 = vadd.f32 %v7038_v38, %v5768_v34 }
 0x1bf   : > { %v2816_v36 = vmax.f32 %v2490_v30, 0.0  ;;  %v5237_v39 = vpack.c.bf16 %v2690_v31, %v2690_v31  ;;  %v5365_v40 = vpack.c.bf16 %v2818_v32, %v2818_v32  ;;  %v1980_v41 = vpop.f32.mrf.mxu0  ;;  %v2492_v42 = vpop.f32.mrf.mxu1 }
 0x1c0   : > { %v5235_v43 = vpack.c.bf16 %v2688_v35, %v2688_v35  ;;  %v2691_v45 = vmax.f32 %v1989_v37, 0.0  ;;  %v2819_v46 = vmax.f32 %v2501_v62, 0.0  ;;  %v1981_v48 = vadd.f32 %v7038_v38, %v1980_v41 }
 0x1c1   : > { %v5363_v44 = vpack.c.bf16 %v2816_v36, %v2816_v36  ;;  %3971 = vst.msk [vmem:[%s6406_s12 + $0x1a8] sm:$0xf] %vm3864_vm3, %v5237_v39  ;;  %4099 = vst.msk [vmem:[%s6406_s12 + $0x3a8] sm:$0xf] %vm3864_vm3, %v5365_v40  ;;  %v2493_v49 = vadd.f32 %v7038_v38, %v2492_v42  ;;  %v5643_v50 = vpop.f32.mrf.mxu0  ;;  %v5771_v51 = vpop.f32.mrf.mxu1 }
 0x1c2   : > { %3969 = vst.msk [vmem:[%s6406_s12 + $0x1a0] sm:$0xf] %vm3864_vm3, %v5235_v43  ;;  %v5238_v52 = vpack.c.bf16 %v2691_v45, %v2691_v45  ;;  %v5366_v53 = vpack.c.bf16 %v2819_v46, %v2819_v46  ;;  %v2002_v54 = vadd.f32 %v7038_v38, %v5643_v50  ;;  %v2514_v55 = vadd.f32 %v7038_v38, %v5771_v51 }
 0x1c3   : > { %4097 = vst.msk [vmem:[%s6406_s12 + $0x3a0] sm:$0xf] %vm3864_vm3, %v5363_v44  ;;  %v2689_v56 = vmax.f32 %v1981_v48, 0.0  ;;  %v2817_v57 = vmax.f32 %v2493_v49, 0.0  ;;  %v1993_v58 = vpop.f32.mrf.mxu0  ;;  %v2505_v59 = vpop.f32.mrf.mxu1 }
 0x1c4   : > { %3972 = vst.msk [vmem:[%s6406_s12 + $0x1ac] sm:$0xf] %vm3864_vm3, %v5238_v52  ;;  %4100 = vst.msk [vmem:[%s6406_s12 + $0x3ac] sm:$0xf] %vm3864_vm3, %v5366_v53  ;;  %v2694_v60 = vmax.f32 %v2002_v54, 0.0  ;;  %v2822_v61 = vmax.f32 %v2514_v55, 0.0  ;;  %v1994_v63 = vadd.f32 %v7038_v38, %v1993_v58  ;;  %v2506_v47 = vadd.f32 %v7038_v38, %v2505_v59 }
 0x1c5   : > { %v5236_v0 = vpack.c.bf16 %v2689_v56, %v2689_v56  ;;  %v5364_v1 = vpack.c.bf16 %v2817_v57, %v2817_v57  ;;  %v5644_v2 = vpop.f32.mrf.mxu0  ;;  %v5772_v3 = vpop.f32.mrf.mxu1 }
 0x1c6   : > { %v5241_v4 = vpack.c.bf16 %v2694_v60, %v2694_v60  ;;  %v5369_v5 = vpack.c.bf16 %v2822_v61, %v2822_v61  ;;  %v2692_v6 = vmax.f32 %v1994_v63, 0.0  ;;  %v2820_v7 = vmax.f32 %v2506_v47, 0.0 }
 0x1c7   : > { %3970 = vst.msk [vmem:[%s6406_s12 + $0x1a4] sm:$0xf] %vm3864_vm3, %v5236_v0  ;;  %4098 = vst.msk [vmem:[%s6406_s12 + $0x3a4] sm:$0xf] %vm3864_vm3, %v5364_v1  ;;  %v2005_v8 = vadd.f32 %v7038_v38, %v5644_v2  ;;  %v2517_v9 = vadd.f32 %v7038_v38, %v5772_v3  ;;  %v1996_v10 = vpop.f32.mrf.mxu0  ;;  %v2508_v11 = vpop.f32.mrf.mxu1 }
 0x1c8   : > { %3975 = vst.msk [vmem:[%s6406_s12 + $0x1b8] sm:$0xf] %vm3864_vm3, %v5241_v4  ;;  %4103 = vst.msk [vmem:[%s6406_s12 + $0x3b8] sm:$0xf] %vm3864_vm3, %v5369_v5  ;;  %v5239_v12 = vpack.c.bf16 %v2692_v6, %v2692_v6  ;;  %v5367_v13 = vpack.c.bf16 %v2820_v7, %v2820_v7  ;;  %v1997_v14 = vadd.f32 %v7038_v38, %v1996_v10 }
 0x1c9   : > { %v2509_v15 = vadd.f32 %v7038_v38, %v2508_v11  ;;  %v2695_v16 = vmax.f32 %v2005_v8, 0.0  ;;  %v2823_v17 = vmax.f32 %v2517_v9, 0.0  ;;  %v5647_v18 = vpop.f32.mrf.mxu0  ;;  %v5775_v19 = vpop.f32.mrf.mxu1 }
 0x1ca   : > { %3973 = vst.msk [vmem:[%s6406_s12 + $0x1b0] sm:$0xf] %vm3864_vm3, %v5239_v12  ;;  %4101 = vst.msk [vmem:[%s6406_s12 + $0x3b0] sm:$0xf] %vm3864_vm3, %v5367_v13  ;;  %v2693_v20 = vmax.f32 %v1997_v14, 0.0  ;;  %v2018_v22 = vadd.f32 %v7038_v38, %v5647_v18  ;;  %v2530_v23 = vadd.f32 %v7038_v38, %v5775_v19 }
 0x1cb   : > { %v2821_v21 = vmax.f32 %v2509_v15, 0.0  ;;  %v5242_v24 = vpack.c.bf16 %v2695_v16, %v2695_v16  ;;  %v5370_v25 = vpack.c.bf16 %v2823_v17, %v2823_v17  ;;  %v2009_v26 = vpop.f32.mrf.mxu0  ;;  %v2521_v27 = vpop.f32.mrf.mxu1 }
 0x1cc   : > { %v5240_v28 = vpack.c.bf16 %v2693_v20, %v2693_v20  ;;  %v2698_v30 = vmax.f32 %v2018_v22, 0.0  ;;  %v2826_v31 = vmax.f32 %v2530_v23, 0.0  ;;  %v2010_v32 = vadd.f32 %v7038_v38, %v2009_v26 }
 0x1cd   : > { %v5368_v29 = vpack.c.bf16 %v2821_v21, %v2821_v21  ;;  %3976 = vst.msk [vmem:[%s6406_s12 + $0x1bc] sm:$0xf] %vm3864_vm3, %v5242_v24  ;;  %4104 = vst.msk [vmem:[%s6406_s12 + $0x3bc] sm:$0xf] %vm3864_vm3, %v5370_v25  ;;  %v2522_v33 = vadd.f32 %v7038_v38, %v2521_v27  ;;  %v5648_v34 = vpop.f32.mrf.mxu0  ;;  %v5776_v35 = vpop.f32.mrf.mxu1 }
 0x1ce   : > { %3974 = vst.msk [vmem:[%s6406_s12 + $0x1b4] sm:$0xf] %vm3864_vm3, %v5240_v28  ;;  %v5245_v36 = vpack.c.bf16 %v2698_v30, %v2698_v30  ;;  %v5373_v37 = vpack.c.bf16 %v2826_v31, %v2826_v31  ;;  %v2021_v62 = vadd.f32 %v7038_v38, %v5648_v34  ;;  %v2533_v39 = vadd.f32 %v7038_v38, %v5776_v35 }
 0x1cf   : > { %4102 = vst.msk [vmem:[%s6406_s12 + $0x3b4] sm:$0xf] %vm3864_vm3, %v5368_v29  ;;  %v2696_v40 = vmax.f32 %v2010_v32, 0.0  ;;  %v2824_v41 = vmax.f32 %v2522_v33, 0.0  ;;  %v2012_v42 = vpop.f32.mrf.mxu0  ;;  %v2524_v43 = vpop.f32.mrf.mxu1 }
 0x1d0   : > { %3979 = vst.msk [vmem:[%s6406_s12 + $0x1c8] sm:$0xf] %vm3864_vm3, %v5245_v36  ;;  %4107 = vst.msk [vmem:[%s6406_s12 + $0x3c8] sm:$0xf] %vm3864_vm3, %v5373_v37  ;;  %v2699_v44 = vmax.f32 %v2021_v62, 0.0  ;;  %v2827_v45 = vmax.f32 %v2533_v39, 0.0  ;;  %v2013_v46 = vadd.f32 %v7038_v38, %v2012_v42  ;;  %v2525_v48 = vadd.f32 %v7038_v38, %v2524_v43 }
 0x1d1   : > { %v5243_v49 = vpack.c.bf16 %v2696_v40, %v2696_v40  ;;  %v5371_v50 = vpack.c.bf16 %v2824_v41, %v2824_v41  ;;  %v5651_v51 = vpop.f32.mrf.mxu0  ;;  %v5779_v52 = vpop.f32.mrf.mxu1 }
 0x1d2   : > { %v5246_v53 = vpack.c.bf16 %v2699_v44, %v2699_v44  ;;  %v5374_v54 = vpack.c.bf16 %v2827_v45, %v2827_v45  ;;  %v2697_v55 = vmax.f32 %v2013_v46, 0.0  ;;  %v2825_v56 = vmax.f32 %v2525_v48, 0.0 }
 0x1d3   : > { %3977 = vst.msk [vmem:[%s6406_s12 + $0x1c0] sm:$0xf] %vm3864_vm3, %v5243_v49  ;;  %4105 = vst.msk [vmem:[%s6406_s12 + $0x3c0] sm:$0xf] %vm3864_vm3, %v5371_v50  ;;  %v2034_v57 = vadd.f32 %v7038_v38, %v5651_v51  ;;  %v2546_v58 = vadd.f32 %v7038_v38, %v5779_v52  ;;  %v2025_v59 = vpop.f32.mrf.mxu0  ;;  %v2537_v60 = vpop.f32.mrf.mxu1 }
 0x1d4   : > { %3980 = vst.msk [vmem:[%s6406_s12 + $0x1cc] sm:$0xf] %vm3864_vm3, %v5246_v53  ;;  %4108 = vst.msk [vmem:[%s6406_s12 + $0x3cc] sm:$0xf] %vm3864_vm3, %v5374_v54  ;;  %v5244_v61 = vpack.c.bf16 %v2697_v55, %v2697_v55  ;;  %v5372_v63 = vpack.c.bf16 %v2825_v56, %v2825_v56  ;;  %v2026_v47 = vadd.f32 %v7038_v38, %v2025_v59 }
 0x1d5   : > { %v2538_v0 = vadd.f32 %v7038_v38, %v2537_v60  ;;  %v2702_v1 = vmax.f32 %v2034_v57, 0.0  ;;  %v2830_v2 = vmax.f32 %v2546_v58, 0.0  ;;  %v5652_v3 = vpop.f32.mrf.mxu0  ;;  %v5780_v4 = vpop.f32.mrf.mxu1 }
 0x1d6   : > { %3978 = vst.msk [vmem:[%s6406_s12 + $0x1c4] sm:$0xf] %vm3864_vm3, %v5244_v61  ;;  %4106 = vst.msk [vmem:[%s6406_s12 + $0x3c4] sm:$0xf] %vm3864_vm3, %v5372_v63  ;;  %v2700_v5 = vmax.f32 %v2026_v47, 0.0  ;;  %v2037_v7 = vadd.f32 %v7038_v38, %v5652_v3  ;;  %v2549_v8 = vadd.f32 %v7038_v38, %v5780_v4 }
 0x1d7   : > { %v2828_v6 = vmax.f32 %v2538_v0, 0.0  ;;  %v5249_v9 = vpack.c.bf16 %v2702_v1, %v2702_v1  ;;  %v5377_v10 = vpack.c.bf16 %v2830_v2, %v2830_v2  ;;  %v2028_v11 = vpop.f32.mrf.mxu0  ;;  %v2540_v12 = vpop.f32.mrf.mxu1 }
 0x1d8   : > { %v5247_v13 = vpack.c.bf16 %v2700_v5, %v2700_v5  ;;  %v2703_v15 = vmax.f32 %v2037_v7, 0.0  ;;  %v2831_v16 = vmax.f32 %v2549_v8, 0.0  ;;  %v2029_v17 = vadd.f32 %v7038_v38, %v2028_v11 }
 0x1d9   : > { %v5375_v14 = vpack.c.bf16 %v2828_v6, %v2828_v6  ;;  %3983 = vst.msk [vmem:[%s6406_s12 + $0x1d8] sm:$0xf] %vm3864_vm3, %v5249_v9  ;;  %4111 = vst.msk [vmem:[%s6406_s12 + $0x3d8] sm:$0xf] %vm3864_vm3, %v5377_v10  ;;  %v2541_v18 = vadd.f32 %v7038_v38, %v2540_v12  ;;  %v5655_v19 = vpop.f32.mrf.mxu0  ;;  %v5783_v20 = vpop.f32.mrf.mxu1 }
 0x1da   : > { %3981 = vst.msk [vmem:[%s6406_s12 + $0x1d0] sm:$0xf] %vm3864_vm3, %v5247_v13  ;;  %v5250_v21 = vpack.c.bf16 %v2703_v15, %v2703_v15  ;;  %v5378_v22 = vpack.c.bf16 %v2831_v16, %v2831_v16  ;;  %v2050_v23 = vadd.f32 %v7038_v38, %v5655_v19  ;;  %v2562_v24 = vadd.f32 %v7038_v38, %v5783_v20 }
 0x1db   : > { %4109 = vst.msk [vmem:[%s6406_s12 + $0x3d0] sm:$0xf] %vm3864_vm3, %v5375_v14  ;;  %v2701_v25 = vmax.f32 %v2029_v17, 0.0  ;;  %v2829_v26 = vmax.f32 %v2541_v18, 0.0  ;;  %v2041_v27 = vpop.f32.mrf.mxu0  ;;  %v2553_v28 = vpop.f32.mrf.mxu1 }
 0x1dc   : > { %3984 = vst.msk [vmem:[%s6406_s12 + $0x1dc] sm:$0xf] %vm3864_vm3, %v5250_v21  ;;  %4112 = vst.msk [vmem:[%s6406_s12 + $0x3dc] sm:$0xf] %vm3864_vm3, %v5378_v22  ;;  %v2706_v29 = vmax.f32 %v2050_v23, 0.0  ;;  %v2834_v30 = vmax.f32 %v2562_v24, 0.0  ;;  %v2042_v31 = vadd.f32 %v7038_v38, %v2041_v27  ;;  %v2554_v32 = vadd.f32 %v7038_v38, %v2553_v28 }
 0x1dd   : > { %v5248_v33 = vpack.c.bf16 %v2701_v25, %v2701_v25  ;;  %v5376_v34 = vpack.c.bf16 %v2829_v26, %v2829_v26  ;;  %v5656_v35 = vpop.f32.mrf.mxu0  ;;  %v5784_v36 = vpop.f32.mrf.mxu1 }
 0x1de   : > { %v5253_v37 = vpack.c.bf16 %v2706_v29, %v2706_v29  ;;  %v5381_v62 = vpack.c.bf16 %v2834_v30, %v2834_v30  ;;  %v2704_v39 = vmax.f32 %v2042_v31, 0.0  ;;  %v2832_v40 = vmax.f32 %v2554_v32, 0.0 }
 0x1df   : > { %3982 = vst.msk [vmem:[%s6406_s12 + $0x1d4] sm:$0xf] %vm3864_vm3, %v5248_v33  ;;  %4110 = vst.msk [vmem:[%s6406_s12 + $0x3d4] sm:$0xf] %vm3864_vm3, %v5376_v34  ;;  %v2053_v41 = vadd.f32 %v7038_v38, %v5656_v35  ;;  %v2565_v42 = vadd.f32 %v7038_v38, %v5784_v36  ;;  %v2044_v43 = vpop.f32.mrf.mxu0  ;;  %v2556_v44 = vpop.f32.mrf.mxu1 }
 0x1e0   : > { %3987 = vst.msk [vmem:[%s6406_s12 + $0x1e8] sm:$0xf] %vm3864_vm3, %v5253_v37  ;;  %4115 = vst.msk [vmem:[%s6406_s12 + $0x3e8] sm:$0xf] %vm3864_vm3, %v5381_v62  ;;  %v5251_v45 = vpack.c.bf16 %v2704_v39, %v2704_v39  ;;  %v5379_v46 = vpack.c.bf16 %v2832_v40, %v2832_v40  ;;  %v2045_v48 = vadd.f32 %v7038_v38, %v2044_v43 }
 0x1e1   : > { %v2557_v49 = vadd.f32 %v7038_v38, %v2556_v44  ;;  %v2707_v50 = vmax.f32 %v2053_v41, 0.0  ;;  %v2835_v51 = vmax.f32 %v2565_v42, 0.0  ;;  %v5659_v52 = vpop.f32.mrf.mxu0  ;;  %v5787_v53 = vpop.f32.mrf.mxu1 }
 0x1e2   : > { %3985 = vst.msk [vmem:[%s6406_s12 + $0x1e0] sm:$0xf] %vm3864_vm3, %v5251_v45  ;;  %4113 = vst.msk [vmem:[%s6406_s12 + $0x3e0] sm:$0xf] %vm3864_vm3, %v5379_v46  ;;  %v2705_v54 = vmax.f32 %v2045_v48, 0.0  ;;  %v2066_v56 = vadd.f32 %v7038_v38, %v5659_v52  ;;  %v2578_v57 = vadd.f32 %v7038_v38, %v5787_v53 }
 0x1e3   : > { %v2833_v55 = vmax.f32 %v2557_v49, 0.0  ;;  %v5254_v58 = vpack.c.bf16 %v2707_v50, %v2707_v50  ;;  %v5382_v59 = vpack.c.bf16 %v2835_v51, %v2835_v51  ;;  %v2057_v60 = vpop.f32.mrf.mxu0  ;;  %v2569_v61 = vpop.f32.mrf.mxu1 }
 0x1e4   : > { %v5252_v63 = vpack.c.bf16 %v2705_v54, %v2705_v54  ;;  %v2710_v0 = vmax.f32 %v2066_v56, 0.0  ;;  %v2838_v1 = vmax.f32 %v2578_v57, 0.0  ;;  %v2058_v2 = vadd.f32 %v7038_v38, %v2057_v60 }
 0x1e5   : > { %v5380_v47 = vpack.c.bf16 %v2833_v55, %v2833_v55  ;;  %3988 = vst.msk [vmem:[%s6406_s12 + $0x1ec] sm:$0xf] %vm3864_vm3, %v5254_v58  ;;  %4116 = vst.msk [vmem:[%s6406_s12 + $0x3ec] sm:$0xf] %vm3864_vm3, %v5382_v59  ;;  %v2570_v3 = vadd.f32 %v7038_v38, %v2569_v61  ;;  %v5660_v4 = vpop.f32.mrf.mxu0  ;;  %v5788_v5 = vpop.f32.mrf.mxu1 }
 0x1e6   : > { %3986 = vst.msk [vmem:[%s6406_s12 + $0x1e4] sm:$0xf] %vm3864_vm3, %v5252_v63  ;;  %v5257_v6 = vpack.c.bf16 %v2710_v0, %v2710_v0  ;;  %v5385_v7 = vpack.c.bf16 %v2838_v1, %v2838_v1  ;;  %v2069_v8 = vadd.f32 %v7038_v38, %v5660_v4  ;;  %v2581_v9 = vadd.f32 %v7038_v38, %v5788_v5 }
 0x1e7   : > { %4114 = vst.msk [vmem:[%s6406_s12 + $0x3e4] sm:$0xf] %vm3864_vm3, %v5380_v47  ;;  %v2708_v10 = vmax.f32 %v2058_v2, 0.0  ;;  %v2836_v11 = vmax.f32 %v2570_v3, 0.0  ;;  %v2060_v12 = vpop.f32.mrf.mxu0  ;;  %v2572_v13 = vpop.f32.mrf.mxu1 }
 0x1e8   : > { %3991 = vst.msk [vmem:[%s6406_s12 + $0x1f8] sm:$0xf] %vm3864_vm3, %v5257_v6  ;;  %4119 = vst.msk [vmem:[%s6406_s12 + $0x3f8] sm:$0xf] %vm3864_vm3, %v5385_v7  ;;  %v2711_v14 = vmax.f32 %v2069_v8, 0.0  ;;  %v2839_v15 = vmax.f32 %v2581_v9, 0.0  ;;  %v2061_v16 = vadd.f32 %v7038_v38, %v2060_v12  ;;  %v2573_v17 = vadd.f32 %v7038_v38, %v2572_v13 }
 0x1e9   : > { %v5255_v18 = vpack.c.bf16 %v2708_v10, %v2708_v10  ;;  %v5383_v19 = vpack.c.bf16 %v2836_v11, %v2836_v11 }
 0x1ea   : > { %v5258_v20 = vpack.c.bf16 %v2711_v14, %v2711_v14  ;;  %v5386_v21 = vpack.c.bf16 %v2839_v15, %v2839_v15  ;;  %v2709_v22 = vmax.f32 %v2061_v16, 0.0  ;;  %v2837_v23 = vmax.f32 %v2573_v17, 0.0  ;;  %4127 = sbr.rel (!%p6157_p4) target bundleno = 576 (0x240), region = 36 }
 0x1eb   : > { %3989 = vst.msk [vmem:[%s6406_s12 + $0x1f0] sm:$0xf] %vm3864_vm3, %v5255_v18  ;;  %4117 = vst.msk [vmem:[%s6406_s12 + $0x3f0] sm:$0xf] %vm3864_vm3, %v5383_v19 }
 0x1ec   : > { %3992 = vst.msk [vmem:[%s6406_s12 + $0x1fc] sm:$0xf] %vm3864_vm3, %v5258_v20  ;;  %4120 = vst.msk [vmem:[%s6406_s12 + $0x3fc] sm:$0xf] %vm3864_vm3, %v5386_v21  ;;  %v5256_v24 = vpack.c.bf16 %v2709_v22, %v2709_v22  ;;  %v5384_v25 = vpack.c.bf16 %v2837_v23, %v2837_v23 }
 0x1ee   : > { %3990 = vst.msk [vmem:[%s6406_s12 + $0x1f4] sm:$0xf] %vm3864_vm3, %v5256_v24  ;;  %4118 = vst.msk [vmem:[%s6406_s12 + $0x3f4] sm:$0xf] %vm3864_vm3, %v5384_v25 }
 0x1ef   : > { %s7439_s24 = smov (!%p4130_p8, %s4129_s24), 256 }
 0x1f0   : > { %s5116_s30 = sshll.u32 %s7439_s24, 6 }
 0x1f1   : > { %p5119_p9 = scmp.eq.s32.totalorder %s5116_s30, 0 }
 0x1f2   : > { %s7241_s4 = sshrl.u32 (!%p5119_p9), %s7439_s24, 6 }
 0x1f3   : > { %4138 = sbr.rel (%p5119_p9) target bundleno = 576 (0x240), region = 40  ;;  %p5120_p10 = scmp.le.s32.totalorder (!%p5119_p9), %s7241_s4, 0 }
 0x1f8   : > { %4545 = sbr.rel (%p5120_p10) target bundleno = 559 (0x22f), region = 112  ;;  %s7432_s15 = smov (!%p5120_p10), %s7235_s29 }
 0x1f9   : > { %s7433_s20 = smov (!%p5120_p10), %s6406_s12  ;;  %s7250_s25 = smov (!%p5120_p10), 0  }
 0x1fa   : > { %s7252_s5 = smov (!%p5120_p10), 0  }
 0x1fd LB: >> { %v4155_v38 = vld [vmem:[%s6085_s20] sm:$0xf]  ;;  %v4157_v26 = vld [vmem:[%s6085_s20 + $0x4] sm:$0xf]  ;;  %v4159_v27 = vld [vmem:[%s6085_s20 + $0x8] sm:$0xf]  ;;  %s6093_s5 = sphi %s7252_s5, %s4149_s5   ;;  %s6089_s25 = sphi %s7250_s25, %s7434_s25   ;;  %s6085_s20 = sphi %s7433_s20, %s4288_s20   ;;  %s6081_s15 = sphi %s7432_s15, %s4289_s15  }
 0x1fe   : >> { %4156 = vst [vmem:[%s6081_s15] sm:$0xf] %v4155_v38  ;;  %4158 = vst [vmem:[%s6081_s15 + $0x4] sm:$0xf] %v4157_v26  ;;  %v4161_v28 = vld [vmem:[%s6085_s20 + $0xc] sm:$0xf]  ;;  %s4283_s6 = sadd.s32 1, %s6089_s25 }
 0x1ff   : >> { %4160 = vst [vmem:[%s6081_s15 + $0x8] sm:$0xf] %v4159_v27  ;;  %v4163_v29 = vld [vmem:[%s6085_s20 + $0x10] sm:$0xf]  ;;  %v4165_v30 = vld [vmem:[%s6085_s20 + $0x14] sm:$0xf]  ;;  %p4284_p11 = scmp.ge.s32.totalorder %s4283_s6, %s7241_s4 }
 0x200   : >> { %4162 = vst [vmem:[%s6081_s15 + $0xc] sm:$0xf] %v4161_v28  ;;  %4164 = vst [vmem:[%s6081_s15 + $0x10] sm:$0xf] %v4163_v29  ;;  %v4167_v31 = vld [vmem:[%s6085_s20 + $0x18] sm:$0xf] }
 0x201   : >> { %4166 = vst [vmem:[%s6081_s15 + $0x14] sm:$0xf] %v4165_v30  ;;  %v4169_v32 = vld [vmem:[%s6085_s20 + $0x1c] sm:$0xf]  ;;  %v4171_v33 = vld [vmem:[%s6085_s20 + $0x20] sm:$0xf] }
 0x202   : >> { %4168 = vst [vmem:[%s6081_s15 + $0x18] sm:$0xf] %v4167_v31  ;;  %4170 = vst [vmem:[%s6081_s15 + $0x1c] sm:$0xf] %v4169_v32  ;;  %v4173_v34 = vld [vmem:[%s6085_s20 + $0x24] sm:$0xf] }
 0x203   : >> { %4172 = vst [vmem:[%s6081_s15 + $0x20] sm:$0xf] %v4171_v33  ;;  %v4175_v35 = vld [vmem:[%s6085_s20 + $0x28] sm:$0xf]  ;;  %v4177_v36 = vld [vmem:[%s6085_s20 + $0x2c] sm:$0xf] }
 0x204   : >> { %4174 = vst [vmem:[%s6081_s15 + $0x24] sm:$0xf] %v4173_v34  ;;  %4176 = vst [vmem:[%s6081_s15 + $0x28] sm:$0xf] %v4175_v35  ;;  %v4179_v37 = vld [vmem:[%s6085_s20 + $0x30] sm:$0xf] }
 0x205   : >> { %4178 = vst [vmem:[%s6081_s15 + $0x2c] sm:$0xf] %v4177_v36  ;;  %v4181_v62 = vld [vmem:[%s6085_s20 + $0x34] sm:$0xf]  ;;  %v4183_v39 = vld [vmem:[%s6085_s20 + $0x38] sm:$0xf] }
 0x206   : >> { %4180 = vst [vmem:[%s6081_s15 + $0x30] sm:$0xf] %v4179_v37  ;;  %4182 = vst [vmem:[%s6081_s15 + $0x34] sm:$0xf] %v4181_v62  ;;  %v4185_v40 = vld [vmem:[%s6085_s20 + $0x3c] sm:$0xf] }
 0x207   : >> { %4184 = vst [vmem:[%s6081_s15 + $0x38] sm:$0xf] %v4183_v39  ;;  %v4187_v41 = vld [vmem:[%s6085_s20 + $0x40] sm:$0xf]  ;;  %v4189_v42 = vld [vmem:[%s6085_s20 + $0x44] sm:$0xf] }
 0x208   : >> { %4186 = vst [vmem:[%s6081_s15 + $0x3c] sm:$0xf] %v4185_v40  ;;  %4188 = vst [vmem:[%s6081_s15 + $0x40] sm:$0xf] %v4187_v41  ;;  %v4191_v43 = vld [vmem:[%s6085_s20 + $0x48] sm:$0xf] }
 0x209   : >> { %4190 = vst [vmem:[%s6081_s15 + $0x44] sm:$0xf] %v4189_v42  ;;  %v4193_v44 = vld [vmem:[%s6085_s20 + $0x4c] sm:$0xf]  ;;  %v4195_v45 = vld [vmem:[%s6085_s20 + $0x50] sm:$0xf] }
 0x20a   : >> { %4192 = vst [vmem:[%s6081_s15 + $0x48] sm:$0xf] %v4191_v43  ;;  %4194 = vst [vmem:[%s6081_s15 + $0x4c] sm:$0xf] %v4193_v44  ;;  %v4197_v46 = vld [vmem:[%s6085_s20 + $0x54] sm:$0xf] }
 0x20b   : >> { %4196 = vst [vmem:[%s6081_s15 + $0x50] sm:$0xf] %v4195_v45  ;;  %v4199_v48 = vld [vmem:[%s6085_s20 + $0x58] sm:$0xf]  ;;  %v4201_v49 = vld [vmem:[%s6085_s20 + $0x5c] sm:$0xf] }
 0x20c   : >> { %4198 = vst [vmem:[%s6081_s15 + $0x54] sm:$0xf] %v4197_v46  ;;  %4200 = vst [vmem:[%s6081_s15 + $0x58] sm:$0xf] %v4199_v48  ;;  %v4203_v50 = vld [vmem:[%s6085_s20 + $0x60] sm:$0xf] }
 0x20d   : >> { %4202 = vst [vmem:[%s6081_s15 + $0x5c] sm:$0xf] %v4201_v49  ;;  %v4205_v51 = vld [vmem:[%s6085_s20 + $0x64] sm:$0xf]  ;;  %v4207_v52 = vld [vmem:[%s6085_s20 + $0x68] sm:$0xf] }
 0x20e   : >> { %4204 = vst [vmem:[%s6081_s15 + $0x60] sm:$0xf] %v4203_v50  ;;  %4206 = vst [vmem:[%s6081_s15 + $0x64] sm:$0xf] %v4205_v51  ;;  %v4209_v53 = vld [vmem:[%s6085_s20 + $0x6c] sm:$0xf] }
 0x20f   : >> { %4208 = vst [vmem:[%s6081_s15 + $0x68] sm:$0xf] %v4207_v52  ;;  %v4211_v54 = vld [vmem:[%s6085_s20 + $0x70] sm:$0xf]  ;;  %v4213_v55 = vld [vmem:[%s6085_s20 + $0x74] sm:$0xf] }
 0x210   : >> { %4210 = vst [vmem:[%s6081_s15 + $0x6c] sm:$0xf] %v4209_v53  ;;  %4212 = vst [vmem:[%s6081_s15 + $0x70] sm:$0xf] %v4211_v54  ;;  %v4215_v56 = vld [vmem:[%s6085_s20 + $0x78] sm:$0xf] }
 0x211   : >> { %4214 = vst [vmem:[%s6081_s15 + $0x74] sm:$0xf] %v4213_v55  ;;  %v4217_v57 = vld [vmem:[%s6085_s20 + $0x7c] sm:$0xf]  ;;  %v4219_v58 = vld [vmem:[%s6085_s20 + $0x80] sm:$0xf] }
 0x212   : >> { %4216 = vst [vmem:[%s6081_s15 + $0x78] sm:$0xf] %v4215_v56  ;;  %4218 = vst [vmem:[%s6081_s15 + $0x7c] sm:$0xf] %v4217_v57  ;;  %v4221_v59 = vld [vmem:[%s6085_s20 + $0x84] sm:$0xf] }
 0x213   : >> { %4220 = vst [vmem:[%s6081_s15 + $0x80] sm:$0xf] %v4219_v58  ;;  %v4223_v60 = vld [vmem:[%s6085_s20 + $0x88] sm:$0xf]  ;;  %v4225_v61 = vld [vmem:[%s6085_s20 + $0x8c] sm:$0xf] }
 0x214   : >> { %4222 = vst [vmem:[%s6081_s15 + $0x84] sm:$0xf] %v4221_v59  ;;  %4224 = vst [vmem:[%s6081_s15 + $0x88] sm:$0xf] %v4223_v60  ;;  %v4227_v63 = vld [vmem:[%s6085_s20 + $0x90] sm:$0xf] }
 0x215   : >> { %4226 = vst [vmem:[%s6081_s15 + $0x8c] sm:$0xf] %v4225_v61  ;;  %v4229_v47 = vld [vmem:[%s6085_s20 + $0x94] sm:$0xf]  ;;  %v4231_v0 = vld [vmem:[%s6085_s20 + $0x98] sm:$0xf] }
 0x216   : >> { %4228 = vst [vmem:[%s6081_s15 + $0x90] sm:$0xf] %v4227_v63  ;;  %4230 = vst [vmem:[%s6081_s15 + $0x94] sm:$0xf] %v4229_v47  ;;  %v4233_v1 = vld [vmem:[%s6085_s20 + $0x9c] sm:$0xf] }
 0x217   : >> { %4232 = vst [vmem:[%s6081_s15 + $0x98] sm:$0xf] %v4231_v0  ;;  %v4235_v2 = vld [vmem:[%s6085_s20 + $0xa0] sm:$0xf]  ;;  %v4237_v3 = vld [vmem:[%s6085_s20 + $0xa4] sm:$0xf] }
 0x218   : >> { %4234 = vst [vmem:[%s6081_s15 + $0x9c] sm:$0xf] %v4233_v1  ;;  %4236 = vst [vmem:[%s6081_s15 + $0xa0] sm:$0xf] %v4235_v2  ;;  %v4239_v4 = vld [vmem:[%s6085_s20 + $0xa8] sm:$0xf] }
 0x219   : >> { %4238 = vst [vmem:[%s6081_s15 + $0xa4] sm:$0xf] %v4237_v3  ;;  %v4241_v5 = vld [vmem:[%s6085_s20 + $0xac] sm:$0xf]  ;;  %v4243_v6 = vld [vmem:[%s6085_s20 + $0xb0] sm:$0xf] }
 0x21a   : >> { %4240 = vst [vmem:[%s6081_s15 + $0xa8] sm:$0xf] %v4239_v4  ;;  %4242 = vst [vmem:[%s6081_s15 + $0xac] sm:$0xf] %v4241_v5  ;;  %v4245_v7 = vld [vmem:[%s6085_s20 + $0xb4] sm:$0xf] }
 0x21b   : >> { %4244 = vst [vmem:[%s6081_s15 + $0xb0] sm:$0xf] %v4243_v6  ;;  %v4247_v8 = vld [vmem:[%s6085_s20 + $0xb8] sm:$0xf]  ;;  %v4249_v9 = vld [vmem:[%s6085_s20 + $0xbc] sm:$0xf] }
 0x21c   : >> { %4246 = vst [vmem:[%s6081_s15 + $0xb4] sm:$0xf] %v4245_v7  ;;  %4248 = vst [vmem:[%s6081_s15 + $0xb8] sm:$0xf] %v4247_v8  ;;  %v4251_v10 = vld [vmem:[%s6085_s20 + $0xc0] sm:$0xf] }
 0x21d   : >> { %4250 = vst [vmem:[%s6081_s15 + $0xbc] sm:$0xf] %v4249_v9  ;;  %v4253_v11 = vld [vmem:[%s6085_s20 + $0xc4] sm:$0xf]  ;;  %v4255_v12 = vld [vmem:[%s6085_s20 + $0xc8] sm:$0xf] }
 0x21e   : >> { %4252 = vst [vmem:[%s6081_s15 + $0xc0] sm:$0xf] %v4251_v10  ;;  %4254 = vst [vmem:[%s6081_s15 + $0xc4] sm:$0xf] %v4253_v11  ;;  %v4257_v13 = vld [vmem:[%s6085_s20 + $0xcc] sm:$0xf] }
 0x21f   : >> { %4256 = vst [vmem:[%s6081_s15 + $0xc8] sm:$0xf] %v4255_v12  ;;  %v4259_v14 = vld [vmem:[%s6085_s20 + $0xd0] sm:$0xf]  ;;  %v4261_v15 = vld [vmem:[%s6085_s20 + $0xd4] sm:$0xf] }
 0x220   : >> { %4258 = vst [vmem:[%s6081_s15 + $0xcc] sm:$0xf] %v4257_v13  ;;  %4260 = vst [vmem:[%s6081_s15 + $0xd0] sm:$0xf] %v4259_v14  ;;  %v4263_v16 = vld [vmem:[%s6085_s20 + $0xd8] sm:$0xf] }
 0x221   : >> { %4262 = vst [vmem:[%s6081_s15 + $0xd4] sm:$0xf] %v4261_v15  ;;  %v4265_v17 = vld [vmem:[%s6085_s20 + $0xdc] sm:$0xf]  ;;  %v4267_v18 = vld [vmem:[%s6085_s20 + $0xe0] sm:$0xf] }
 0x222   : >> { %4264 = vst [vmem:[%s6081_s15 + $0xd8] sm:$0xf] %v4263_v16  ;;  %4266 = vst [vmem:[%s6081_s15 + $0xdc] sm:$0xf] %v4265_v17  ;;  %v4269_v19 = vld [vmem:[%s6085_s20 + $0xe4] sm:$0xf] }
 0x223   : >> { %4268 = vst [vmem:[%s6081_s15 + $0xe0] sm:$0xf] %v4267_v18  ;;  %v4271_v20 = vld [vmem:[%s6085_s20 + $0xe8] sm:$0xf]  ;;  %v4273_v21 = vld [vmem:[%s6085_s20 + $0xec] sm:$0xf] }
 0x224   : >> { %4270 = vst [vmem:[%s6081_s15 + $0xe4] sm:$0xf] %v4269_v19  ;;  %4272 = vst [vmem:[%s6081_s15 + $0xe8] sm:$0xf] %v4271_v20  ;;  %v4275_v22 = vld [vmem:[%s6085_s20 + $0xf0] sm:$0xf] }
 0x225   : >> { %4274 = vst [vmem:[%s6081_s15 + $0xec] sm:$0xf] %v4273_v21  ;;  %v4277_v23 = vld [vmem:[%s6085_s20 + $0xf4] sm:$0xf]  ;;  %v4279_v24 = vld [vmem:[%s6085_s20 + $0xf8] sm:$0xf] }
 0x226   : >> { %4276 = vst [vmem:[%s6081_s15 + $0xf0] sm:$0xf] %v4275_v22  ;;  %4278 = vst [vmem:[%s6081_s15 + $0xf4] sm:$0xf] %v4277_v23  ;;  %v4281_v25 = vld [vmem:[%s6085_s20 + $0xfc] sm:$0xf] }
 0x227   : >> { %4280 = vst [vmem:[%s6081_s15 + $0xf8] sm:$0xf] %v4279_v24  ;;  %4282 = vst [vmem:[%s6081_s15 + $0xfc] sm:$0xf] %v4281_v25  ;;  %s7441_s6 = smov (%p4284_p11, %s4283_s6), 0  ;;  %s4149_s5 = sadd.s32 1, %s6093_s5  }
 0x228   : >> { %s5121_s7 = sshll.u32 %s7441_s6, 8  ;;  %p4148_p12 = scmp.ge.s32.totalorder %s4149_s5, %s7241_s4 }
 0x229   : >> { %s4288_s20 = scalar_lea.vmem %s6406_s12, %s5121_s7 [#allocation2]   ;;  %s4289_s15 = scalar_lea.vmem %s7235_s29, %s5121_s7  }
 0x22a   : >> { %s7434_s25 = smov %s7441_s6  ;;  %4151 = sbr.rel (!%p4148_p12) target bundleno = 509 (0x1fd), region = 118 }
 0x22f PF: > { %s7409_s8 = sand.u32 63, %s7439_s24   ;;  %s5388_s9 = sshll.u32 %s7241_s4, 8 }
 0x230   : > { %s4294_s10 = scalar_lea.vmem %s6406_s12, %s5388_s9 [#allocation2]   ;;  %s4296_s11 = scalar_lea.vmem %s7235_s29, %s5388_s9  }
 0x231   : > { %p5126_p13 = scmp.le.s32.totalorder %s7409_s8, 0 }
 0x232   : > { %s6095_s14 = smov (!%p5126_p13), %s4296_s11   ;;  %s6099_s17 = smov (!%p5126_p13), %s4294_s10  }
 0x233   : > { %4559 = sbr.rel (%p5126_p13) target bundleno = 576 (0x240), region = 123  ;;  %s6103_s18 = smov (!%p5126_p13), 0  }
 0x234   : > { %s6107_s21 = smov (!%p5126_p13), 0  }
 0x238 LB: >> { %v4306_v38 = vld [vmem:[%s6101_s17] sm:$0xf]  ;;  %s4308_s22 = sadd.s32 1, %s6105_s18  ;;  %s4300_s21 = sadd.s32 1, %s6109_s21   ;;  %s6109_s21 = sphi %s6107_s21, %s4300_s21   ;;  %s6105_s18 = sphi %s6103_s18, %s6104_s18   ;;  %s6101_s17 = sphi %s6099_s17, %s4313_s17   ;;  %s6097_s14 = sphi %s6095_s14, %s4314_s14  }
 0x239   : >> { %4307 = vst [vmem:[%s6097_s14] sm:$0xf] %v4306_v38  ;;  %p4309_p0 = scmp.ge.s32.totalorder %s4308_s22, %s7409_s8  ;;  %p4299_p1 = scmp.ge.s32.totalorder %s4300_s21, %s7409_s8 }
 0x23b   : >> { %s7443_s22 = smov (%p4309_p0, %s4308_s22), 0  ;;  %4302 = sbr.rel (!%p4299_p1) target bundleno = 568 (0x238), region = 129 }
 0x23c   : >> { %s5127_s12 = sshll.u32 %s7443_s22, 2  ;;  %s6104_s18 = smov %s7443_s22  }
 0x23d   : >> { %s4313_s17 = scalar_lea.vmem %s4294_s10, %s5127_s12 [#allocation2]   ;;  %s4314_s14 = scalar_lea.vmem %s4296_s11, %s5127_s12  }
 0x240 PF: > { %p10_p2 = scmp.ge.s32.totalorder %s6147_s16, 11   ;;  %s7435_s12 = smov %s6073_s13 }
 0x241   : > { %s7436_s13 = smov %s6155_s19  ;;  %s7437_s14 = smov %s6147_s16 }
 0x242   :  { %12 = sbr.rel (!%p10_p2) target bundleno = 2 (0x2), region = 140 }

// kernel: autopilot_forward.8
= control target key start
LH: loop header
LB: loop body
LE: loop exit
PB: predicated region body
PF: predicated region fallthrough
CT: control target
= control target key end

     0   :  { %s3323_s6 = smov 0   ;;  %s6147_s0 = inlined_call_operand.vmem [shape: bf16[86,2,51,64], index: 0, kind: input, shape index: {}]   ;;  %s6148_s1 = inlined_call_operand.vmem [shape: bf16[86,51,32], index: 1, kind: output, shape index: {}]  }
   0x1 LB: > { %s2983_s7 = sadd.s32 4294967295, %s3310_s6   ;;  %p2987_p0 = scmp.ge.s32.totalorder %s3310_s6, 1  ;;  %s3310_s6 = sphi %s3323_s6, %s11_s6  }
   0x2   : > { %p89_p1 = scmp.lt.s32.totalorder %s3310_s6, 3 }
   0x4   : > { %p90_p2 = pnand %p2987_p0, %p89_p1 }
   0x6   : > { %93 = sbr.rel (%p90_p2) target bundleno = 740 (0x2e4), region = 24 }
   0xb   : > { %s111_s8 = smul.u32 43, %s2983_s7  ;;  %s3312_s13 = smov 96   ;;  %vm2534_vm0 = vcmask 257024   ;;  %vm2541_vm1 = vcmask 254976   ;;  %vm2542_vm2 = vsmask.f32 1280 }
   0xc   : > { %vm3758_vm3 = vmand %vm2541_vm1, %vm2542_vm2 }
   0xd   : > { %p112_p3 = scmp.lt.s32.totalorder %s111_s8, 85 }
   0xf   : > { %s6302_s8 = smov (!%p112_p3, %s111_s8), 85 }
  0x10   : > { %s3293_s9 = smul.u32 56, %s6302_s8 }
  0x11   : > { %s3294_s14 = smul.u32 28, %s6302_s8 }
  0x12   : > { %s3337_s12 = scalar_lea.vmem %s6147_s0, %s3293_s9 }
  0x13   : > { %v125_v0 = vld [vmem:[%s3337_s12] sm:$0xf]  ;;  %v2990_v1 = vld [vmem:[%s3337_s12 + $0x1c] sm:$0xf]  ;;  %v127_v2 = vld [vmem:[%s3337_s12 + $0x8] sm:$0xf]  ;;  %s3701_s17 = scalar_lea.vmem %s6148_s1, %s3294_s14 }
  0x14   : > { %v3342_v3 = vmax.bf16 %v2990_v1, %v125_v0  ;;  %v2992_v4 = vld [vmem:[%s3337_s12 + $0x24] sm:$0xf]  ;;  %v2991_v6 = vld [vmem:[%s3337_s12 + $0x20] sm:$0xf]  ;;  %v128_v8 = vld [vmem:[%s3337_s12 + $0xc] sm:$0xf] }
  0x15   : > { %v126_v5 = vld [vmem:[%s3337_s12 + $0x4] sm:$0xf]  ;;  %v3347_v7 = vmax.bf16 %v2992_v4, %v127_v2  ;;  %v2993_v9 = vld [vmem:[%s3337_s12 + $0x28] sm:$0xf]  ;;  %v129_v12 = vld [vmem:[%s3337_s12 + $0x10] sm:$0xf] }
  0x16   : > { %1330 = vrot.lane.b32.xlu0 %v3342_v3, %s3312_s13  ;;  %v3353_v10 = vmax.bf16 %v2991_v6, %v126_v5  ;;  %v3357_v11 = vmax.bf16 %v2993_v9, %v128_v8  ;;  %v2994_v13 = vld [vmem:[%s3337_s12 + $0x2c] sm:$0xf]  ;;  %v130_v14 = vld [vmem:[%s3337_s12 + $0x14] sm:$0xf]  ;;  %v2995_v15 = vld [vmem:[%s3337_s12 + $0x30] sm:$0xf] }
  0x17   : > { %1334 = vrot.lane.b32.xlu1 %v3347_v7, %s3312_s13  ;;  %v3365_v16 = vmax.bf16 %v2994_v13, %v129_v12  ;;  %v3369_v17 = vmax.bf16 %v2995_v15, %v130_v14  ;;  %v131_v18 = vld [vmem:[%s3337_s12 + $0x18] sm:$0x3]  ;;  %v2996_v19 = vld [vmem:[%s3337_s12 + $0x34] sm:$0x3]  ;;  %v133_v24 = vld [vmem:[%s3337_s12 + $0x3c] sm:$0xf] }
  0x18   : > { %v132_v20 = vld [vmem:[%s3337_s12 + $0x38] sm:$0xf]  ;;  %v2997_v21 = vld [vmem:[%s3337_s12 + $0x54] sm:$0xf]  ;;  %v3377_v22 = vmax.bf16 %v2996_v19, %v131_v18  ;;  %v134_v26 = vld [vmem:[%s3337_s12 + $0x40] sm:$0xf] }
  0x19   : > { %v3381_v23 = vmax.bf16 %v2997_v21, %v132_v20  ;;  %v2998_v25 = vld [vmem:[%s3337_s12 + $0x58] sm:$0xf]  ;;  %v2999_v27 = vld [vmem:[%s3337_s12 + $0x5c] sm:$0xf]  ;;  %v135_v30 = vld [vmem:[%s3337_s12 + $0x44] sm:$0xf] }
  0x1a   : > { %1332 = vrot.lane.b32.xlu0 %v3353_v10, %s3312_s13  ;;  %v3389_v28 = vmax.bf16 %v2998_v25, %v133_v24  ;;  %v3393_v29 = vmax.bf16 %v2999_v27, %v134_v26  ;;  %v3000_v31 = vld [vmem:[%s3337_s12 + $0x60] sm:$0xf]  ;;  %v136_v32 = vld [vmem:[%s3337_s12 + $0x48] sm:$0xf]  ;;  %v3001_v33 = vld [vmem:[%s3337_s12 + $0x64] sm:$0xf] }
  0x1b   : > { %1336 = vrot.lane.b32.xlu1 %v3357_v11, %s3312_s13  ;;  %v3401_v34 = vmax.bf16 %v3000_v31, %v135_v30  ;;  %v3405_v35 = vmax.bf16 %v3001_v33, %v136_v32  ;;  %v137_v36 = vld [vmem:[%s3337_s12 + $0x4c] sm:$0xf]  ;;  %v3002_v37 = vld [vmem:[%s3337_s12 + $0x68] sm:$0xf]  ;;  %v138_v38 = vld [vmem:[%s3337_s12 + $0x50] sm:$0x3] }
  0x1c   : > { %v3003_v39 = vld [vmem:[%s3337_s12 + $0x6c] sm:$0x3]  ;;  %v3413_v40 = vmax.bf16 %v3002_v37, %v137_v36  ;;  %v139_v42 = vld [vmem:[%s3337_s12 + $0x70] sm:$0xf]  ;;  %v140_v44 = vld [vmem:[%s3337_s12 + $0x74] sm:$0xf] }
  0x1d   : > { %v3417_v41 = vmax.bf16 %v3003_v39, %v138_v38  ;;  %v3004_v43 = vld [vmem:[%s3337_s12 + $0x8c] sm:$0xf]  ;;  %v3005_v45 = vld [vmem:[%s3337_s12 + $0x90] sm:$0xf]  ;;  %v141_v48 = vld [vmem:[%s3337_s12 + $0x78] sm:$0xf] }
  0x1e   : > { %1338 = vrot.lane.b32.xlu0 %v3365_v16, %s3312_s13  ;;  %v3425_v46 = vmax.bf16 %v3004_v43, %v139_v42  ;;  %v3429_v47 = vmax.bf16 %v3005_v45, %v140_v44  ;;  %v3006_v49 = vld [vmem:[%s3337_s12 + $0x94] sm:$0xf]  ;;  %v142_v50 = vld [vmem:[%s3337_s12 + $0x7c] sm:$0xf]  ;;  %v3007_v51 = vld [vmem:[%s3337_s12 + $0x98] sm:$0xf] }
  0x1f   : > { %1340 = vrot.lane.b32.xlu1 %v3369_v17, %s3312_s13  ;;  %v3437_v52 = vmax.bf16 %v3006_v49, %v141_v48  ;;  %v3441_v53 = vmax.bf16 %v3007_v51, %v142_v50  ;;  %v143_v54 = vld [vmem:[%s3337_s12 + $0x80] sm:$0xf]  ;;  %v3008_v55 = vld [vmem:[%s3337_s12 + $0x9c] sm:$0xf]  ;;  %v144_v56 = vld [vmem:[%s3337_s12 + $0x84] sm:$0xf] }
  0x20   : > { %v3009_v57 = vld [vmem:[%s3337_s12 + $0xa0] sm:$0xf]  ;;  %v3449_v58 = vmax.bf16 %v3008_v55, %v143_v54  ;;  %v145_v60 = vld [vmem:[%s3337_s12 + $0x88] sm:$0x3]  ;;  %v3010_v61 = vld [vmem:[%s3337_s12 + $0xa4] sm:$0x3] }
  0x21   : > { %v3453_v59 = vmax.bf16 %v3009_v57, %v144_v56  ;;  %v146_v62 = vld [vmem:[%s3337_s12 + $0xa8] sm:$0xf]  ;;  %v3011_v63 = vld [vmem:[%s3337_s12 + $0xc4] sm:$0xf]  ;;  %v3461_v0 = vmax.bf16 %v3010_v61, %v145_v60  ;;  %v147_v2 = vld [vmem:[%s3337_s12 + $0xac] sm:$0xf] }
  0x22   : > { %1342 = vrot.lane.b32.xlu0 %v3377_v22, %s3312_s13  ;;  %v3465_v1 = vmax.bf16 %v3011_v63, %v146_v62  ;;  %v3012_v4 = vld [vmem:[%s3337_s12 + $0xc8] sm:$0xf]  ;;  %v148_v5 = vld [vmem:[%s3337_s12 + $0xb0] sm:$0xf]  ;;  %v3013_v6 = vld [vmem:[%s3337_s12 + $0xcc] sm:$0xf] }
  0x23   : > { %1344 = vrot.lane.b32.xlu1 %v3381_v23, %s3312_s13  ;;  %v3473_v8 = vmax.bf16 %v3012_v4, %v147_v2  ;;  %v3477_v9 = vmax.bf16 %v3013_v6, %v148_v5  ;;  %v149_v12 = vld [vmem:[%s3337_s12 + $0xb4] sm:$0xf]  ;;  %v3014_v13 = vld [vmem:[%s3337_s12 + $0xd0] sm:$0xf]  ;;  %v150_v14 = vld [vmem:[%s3337_s12 + $0xb8] sm:$0xf] }
  0x24   : > { %v3015_v15 = vld [vmem:[%s3337_s12 + $0xd4] sm:$0xf]  ;;  %v3485_v18 = vmax.bf16 %v3014_v13, %v149_v12  ;;  %v151_v20 = vld [vmem:[%s3337_s12 + $0xbc] sm:$0xf]  ;;  %v3016_v21 = vld [vmem:[%s3337_s12 + $0xd8] sm:$0xf] }
  0x25   : > { %v3489_v19 = vmax.bf16 %v3015_v15, %v150_v14  ;;  %v152_v24 = vld [vmem:[%s3337_s12 + $0xc0] sm:$0x3]  ;;  %v3017_v25 = vld [vmem:[%s3337_s12 + $0xdc] sm:$0x3]  ;;  %v3497_v26 = vmax.bf16 %v3016_v21, %v151_v20  ;;  %v154_v32 = vld [vmem:[%s3337_s12 + $0xe4] sm:$0xf] }
  0x26   : > { %1346 = vrot.lane.b32.xlu0 %v3389_v28, %s3312_s13  ;;  %v3501_v27 = vmax.bf16 %v3017_v25, %v152_v24  ;;  %v153_v30 = vld [vmem:[%s3337_s12 + $0xe0] sm:$0xf]  ;;  %v3018_v31 = vld [vmem:[%s3337_s12 + $0xfc] sm:$0xf]  ;;  %v155_v38 = vld [vmem:[%s3337_s12 + $0xe8] sm:$0xf] }
  0x27   : > { %1348 = vrot.lane.b32.xlu1 %v3393_v29, %s3312_s13  ;;  %v3019_v33 = vld [vmem:[%s3337_s12 + $0x100] sm:$0xf]  ;;  %v3509_v36 = vmax.bf16 %v3018_v31, %v153_v30  ;;  %v3020_v39 = vld [vmem:[%s3337_s12 + $0x104] sm:$0xf]  ;;  %v156_v42 = vld [vmem:[%s3337_s12 + $0xec] sm:$0xf] }
  0x28   : > { %v3513_v37 = vmax.bf16 %v3019_v33, %v154_v32  ;;  %v3021_v43 = vld [vmem:[%s3337_s12 + $0x108] sm:$0xf]  ;;  %v3521_v44 = vmax.bf16 %v3020_v39, %v155_v38  ;;  %v157_v48 = vld [vmem:[%s3337_s12 + $0xf0] sm:$0xf]  ;;  %v3022_v49 = vld [vmem:[%s3337_s12 + $0x10c] sm:$0xf] }
  0x29   : > { %v3525_v45 = vmax.bf16 %v3021_v43, %v156_v42  ;;  %v158_v50 = vld [vmem:[%s3337_s12 + $0xf4] sm:$0xf]  ;;  %v3023_v51 = vld [vmem:[%s3337_s12 + $0x110] sm:$0xf]  ;;  %v3533_v54 = vmax.bf16 %v3022_v49, %v157_v48  ;;  %v159_v56 = vld [vmem:[%s3337_s12 + $0xf8] sm:$0x3] }
  0x2a   : > { %1350 = vrot.lane.b32.xlu0 %v3401_v34, %s3312_s13  ;;  %v3537_v55 = vmax.bf16 %v3023_v51, %v158_v50  ;;  %v3024_v57 = vld [vmem:[%s3337_s12 + $0x114] sm:$0x3]  ;;  %v160_v60 = vld [vmem:[%s3337_s12 + $0x118] sm:$0xf]  ;;  %v161_v2 = vld [vmem:[%s3337_s12 + $0x11c] sm:$0xf] }
  0x2b   : > { %1352 = vrot.lane.b32.xlu1 %v3405_v35, %s3312_s13  ;;  %v3025_v61 = vld [vmem:[%s3337_s12 + $0x134] sm:$0xf]  ;;  %v3545_v62 = vmax.bf16 %v3024_v57, %v159_v56  ;;  %v3026_v4 = vld [vmem:[%s3337_s12 + $0x138] sm:$0xf]  ;;  %v162_v5 = vld [vmem:[%s3337_s12 + $0x120] sm:$0xf] }
  0x2c   : > { %v3549_v63 = vmax.bf16 %v3025_v61, %v160_v60  ;;  %v3027_v6 = vld [vmem:[%s3337_s12 + $0x13c] sm:$0xf]  ;;  %v3557_v12 = vmax.bf16 %v3026_v4, %v161_v2  ;;  %v163_v14 = vld [vmem:[%s3337_s12 + $0x124] sm:$0xf]  ;;  %v3028_v15 = vld [vmem:[%s3337_s12 + $0x140] sm:$0xf] }
  0x2d   : > { %v3561_v13 = vmax.bf16 %v3027_v6, %v162_v5  ;;  %v164_v20 = vld [vmem:[%s3337_s12 + $0x128] sm:$0xf]  ;;  %v3029_v21 = vld [vmem:[%s3337_s12 + $0x144] sm:$0xf]  ;;  %v3569_v24 = vmax.bf16 %v3028_v15, %v163_v14  ;;  %v165_v30 = vld [vmem:[%s3337_s12 + $0x12c] sm:$0xf] }
  0x2e   : > { %1354 = vrot.lane.b32.xlu0 %v3413_v40, %s3312_s13  ;;  %v3573_v25 = vmax.bf16 %v3029_v21, %v164_v20  ;;  %v3030_v31 = vld [vmem:[%s3337_s12 + $0x148] sm:$0xf]  ;;  %v166_v32 = vld [vmem:[%s3337_s12 + $0x130] sm:$0x3]  ;;  %v3031_v33 = vld [vmem:[%s3337_s12 + $0x14c] sm:$0x3] }
  0x2f   : > { %1356 = vrot.lane.b32.xlu1 %v3417_v41, %s3312_s13  ;;  %v3581_v38 = vmax.bf16 %v3030_v31, %v165_v30  ;;  %v3585_v39 = vmax.bf16 %v3031_v33, %v166_v32  ;;  %v167_v42 = vld [vmem:[%s3337_s12 + $0x150] sm:$0xf]  ;;  %v3032_v43 = vld [vmem:[%s3337_s12 + $0x16c] sm:$0xf]  ;;  %v168_v48 = vld [vmem:[%s3337_s12 + $0x154] sm:$0xf] }
  0x30   : > { %v3033_v49 = vld [vmem:[%s3337_s12 + $0x170] sm:$0xf]  ;;  %v3593_v50 = vmax.bf16 %v3032_v43, %v167_v42  ;;  %v169_v56 = vld [vmem:[%s3337_s12 + $0x158] sm:$0xf]  ;;  %v3034_v57 = vld [vmem:[%s3337_s12 + $0x174] sm:$0xf] }
  0x31   : > { %v3597_v51 = vmax.bf16 %v3033_v49, %v168_v48  ;;  %v170_v60 = vld [vmem:[%s3337_s12 + $0x15c] sm:$0xf]  ;;  %v3035_v61 = vld [vmem:[%s3337_s12 + $0x178] sm:$0xf]  ;;  %v3605_v2 = vmax.bf16 %v3034_v57, %v169_v56  ;;  %v171_v5 = vld [vmem:[%s3337_s12 + $0x160] sm:$0xf] }
  0x32   : > { %1358 = vrot.lane.b32.xlu0 %v3425_v46, %s3312_s13  ;;  %v3609_v4 = vmax.bf16 %v3035_v61, %v170_v60  ;;  %v3036_v6 = vld [vmem:[%s3337_s12 + $0x17c] sm:$0xf]  ;;  %v172_v14 = vld [vmem:[%s3337_s12 + $0x164] sm:$0xf]  ;;  %v3037_v15 = vld [vmem:[%s3337_s12 + $0x180] sm:$0xf] }
  0x33   : > { %1360 = vrot.lane.b32.xlu1 %v3429_v47, %s3312_s13  ;;  %v3617_v20 = vmax.bf16 %v3036_v6, %v171_v5  ;;  %v3621_v21 = vmax.bf16 %v3037_v15, %v172_v14  ;;  %v173_v30 = vld [vmem:[%s3337_s12 + $0x168] sm:$0x3]  ;;  %v3038_v31 = vld [vmem:[%s3337_s12 + $0x184] sm:$0x3]  ;;  %v175_v48 = vld [vmem:[%s3337_s12 + $0x18c] sm:$0xf] }
  0x34   : > { %v174_v32 = vld [vmem:[%s3337_s12 + $0x188] sm:$0xf]  ;;  %v3039_v33 = vld [vmem:[%s3337_s12 + $0x1a4] sm:$0xf]  ;;  %v3629_v42 = vmax.bf16 %v3038_v31, %v173_v30  ;;  %v176_v56 = vld [vmem:[%s3337_s12 + $0x190] sm:$0xf] }
  0x35   : > { %v3633_v43 = vmax.bf16 %v3039_v33, %v174_v32  ;;  %v3040_v49 = vld [vmem:[%s3337_s12 + $0x1a8] sm:$0xf]  ;;  %v3041_v57 = vld [vmem:[%s3337_s12 + $0x1ac] sm:$0xf]  ;;  %v177_v5 = vld [vmem:[%s3337_s12 + $0x194] sm:$0xf] }
  0x36   : > { %1362 = vrot.lane.b32.xlu0 %v3437_v52, %s3312_s13  ;;  %v3641_v60 = vmax.bf16 %v3040_v49, %v175_v48  ;;  %v3645_v61 = vmax.bf16 %v3041_v57, %v176_v56  ;;  %v3042_v6 = vld [vmem:[%s3337_s12 + $0x1b0] sm:$0xf]  ;;  %v178_v14 = vld [vmem:[%s3337_s12 + $0x198] sm:$0xf]  ;;  %v3043_v15 = vld [vmem:[%s3337_s12 + $0x1b4] sm:$0xf] }
  0x37   : > { %1364 = vrot.lane.b32.xlu1 %v3441_v53, %s3312_s13  ;;  %v3653_v30 = vmax.bf16 %v3042_v6, %v177_v5  ;;  %v3657_v31 = vmax.bf16 %v3043_v15, %v178_v14  ;;  %v179_v32 = vld [vmem:[%s3337_s12 + $0x19c] sm:$0xf]  ;;  %v3044_v33 = vld [vmem:[%s3337_s12 + $0x1b8] sm:$0xf]  ;;  %v180_v48 = vld [vmem:[%s3337_s12 + $0x1a0] sm:$0x3] }
  0x38   : > { %6199 = vst [vmem:[#allocation2_spill] sm:$0xff] %v3645_v61  ;;  %v3045_v49 = vld [vmem:[%s3337_s12 + $0x1bc] sm:$0x3]  ;;  %v3665_v56 = vmax.bf16 %v3044_v33, %v179_v32  ;;  %v181_v5 = vld [vmem:[%s3337_s12 + $0x1c0] sm:$0xf] }
  0x39   : > { %6200 = vst [vmem:[#allocation3_spill] sm:$0xff] %v3653_v30  ;;  %6201 = vst [vmem:[#allocation4_spill] sm:$0xff] %v3657_v31  ;;  %v3669_v57 = vmax.bf16 %v3045_v49, %v180_v48  ;;  %v3046_v6 = vld [vmem:[%s3337_s12 + $0x1dc] sm:$0xf]  ;;  %v182_v14 = vld [vmem:[%s3337_s12 + $0x1c4] sm:$0xf] }
  0x3a   : > { %1366 = vrot.lane.b32.xlu0 %v3449_v58, %s3312_s13  ;;  %6202 = vst [vmem:[#allocation5_spill] sm:$0xff] %v3665_v56  ;;  %v3047_v15 = vld [vmem:[%s3337_s12 + $0x1e0] sm:$0xf]  ;;  %v183_v33 = vld [vmem:[%s3337_s12 + $0x1c8] sm:$0xf] }
  0x3b   : > { %1368 = vrot.lane.b32.xlu1 %v3453_v59, %s3312_s13  ;;  %6203 = vst [vmem:[#allocation6_spill] sm:$0xff] %v3669_v57  ;;  %v3681_v32 = vmax.bf16 %v3047_v15, %v182_v14  ;;  %v3048_v48 = vld [vmem:[%s3337_s12 + $0x1e4] sm:$0xf]  ;;  %v184_v49 = vld [vmem:[%s3337_s12 + $0x1cc] sm:$0xf] }
  0x3c   : > { %v3050_v14 = vld [vmem:[%s3337_s12 + $0x1ec] sm:$0xf] }
  0x3d   : > { %6205 = vst [vmem:[#allocation8_spill] sm:$0xff] %v3681_v32 }
  0x3e   : > { %1370 = vrot.lane.b32.xlu0 %v3461_v0, %s3312_s13 }
  0x3f   : > { %1372 = vrot.lane.b32.xlu1 %v3465_v1, %s3312_s13 }
  0x42   : > { %1374 = vrot.lane.b32.xlu0 %v3473_v8, %s3312_s13 }
  0x43   : > { %1376 = vrot.lane.b32.xlu1 %v3477_v9, %s3312_s13 }
  0x46   : > { %1378 = vrot.lane.b32.xlu0 %v3485_v18, %s3312_s13 }
  0x47   : > { %1380 = vrot.lane.b32.xlu1 %v3489_v19, %s3312_s13 }
  0x4a   : > { %1382 = vrot.lane.b32.xlu0 %v3497_v26, %s3312_s13 }
  0x4b   : > { %1384 = vrot.lane.b32.xlu1 %v3501_v27, %s3312_s13 }
  0x4e   : > { %1386 = vrot.lane.b32.xlu0 %v3509_v36, %s3312_s13 }
  0x4f   : > { %1388 = vrot.lane.b32.xlu1 %v3513_v37, %s3312_s13 }
  0x52   : > { %1390 = vrot.lane.b32.xlu0 %v3521_v44, %s3312_s13 }
  0x53   : > { %1392 = vrot.lane.b32.xlu1 %v3525_v45, %s3312_s13 }
  0x56   : > { %1394 = vrot.lane.b32.xlu0 %v3533_v54, %s3312_s13 }
  0x57   : > { %1396 = vrot.lane.b32.xlu1 %v3537_v55, %s3312_s13 }
  0x5a   : > { %1398 = vrot.lane.b32.xlu0 %v3545_v62, %s3312_s13 }
  0x5b   : > { %1400 = vrot.lane.b32.xlu1 %v3549_v63, %s3312_s13 }
  0x5e   : > { %1402 = vrot.lane.b32.xlu0 %v3557_v12, %s3312_s13 }
  0x5f   : > { %1404 = vrot.lane.b32.xlu1 %v3561_v13, %s3312_s13 }
  0x62   : > { %1406 = vrot.lane.b32.xlu0 %v3569_v24, %s3312_s13 }
  0x63   : > { %1408 = vrot.lane.b32.xlu1 %v3573_v25, %s3312_s13 }
  0x66   : > { %1410 = vrot.lane.b32.xlu0 %v3581_v38, %s3312_s13 }
  0x67   : > { %1412 = vrot.lane.b32.xlu1 %v3585_v39, %s3312_s13 }
  0x6a   : > { %1414 = vrot.lane.b32.xlu0 %v3593_v50, %s3312_s13 }
  0x6b   : > { %1416 = vrot.lane.b32.xlu1 %v3597_v51, %s3312_s13 }
  0x6e   : > { %1418 = vrot.lane.b32.xlu0 %v3605_v2, %s3312_s13 }
  0x6f   : > { %1420 = vrot.lane.b32.xlu1 %v3609_v4, %s3312_s13 }
  0x72   : > { %1422 = vrot.lane.b32.xlu0 %v3617_v20, %s3312_s13 }
  0x73   : > { %1424 = vrot.lane.b32.xlu1 %v3621_v21, %s3312_s13 }
  0x76   : > { %1426 = vrot.lane.b32.xlu0 %v3629_v42, %s3312_s13 }
  0x77   : > { %1428 = vrot.lane.b32.xlu1 %v3633_v43, %s3312_s13 }
  0x7a   : > { %1430 = vrot.lane.b32.xlu0 %v3641_v60, %s3312_s13 }
  0x7b   : > { %1432 = vrot.lane.b32.xlu1 %v3645_v61, %s3312_s13  ;;  %v3677_v61 = vmax.bf16 %v3046_v6, %v181_v5  ;;  %v185_v6 = vld [vmem:[%s3337_s12 + $0x1d0] sm:$0xf] }
  0x7d   : > { %6204 = vst [vmem:[#allocation7_spill] sm:$0xff] %v3677_v61 }
  0x7e   : > { %1434 = vrot.lane.b32.xlu0 %v3653_v30, %s3312_s13  ;;  %v3690_v30 = vmax.bf16 %v3048_v48, %v183_v33  ;;  %v186_v33 = vld [vmem:[%s3337_s12 + $0x1d4] sm:$0xf]  ;;  %v3051_v48 = vld [vmem:[%s3337_s12 + $0x1f0] sm:$0xf] }
  0x7f   : > { %1436 = vrot.lane.b32.xlu1 %v3657_v31, %s3312_s13  ;;  %v3049_v31 = vld [vmem:[%s3337_s12 + $0x1e8] sm:$0xf] }
  0x80   : > { %v3694_v5 = vmax.bf16 %v3049_v31, %v184_v49 }
  0x82   : > { %1438 = vrot.lane.b32.xlu0 %v3665_v56, %s3312_s13  ;;  %6206 = vst [vmem:[#allocation9_spill] sm:$0xff] %v3694_v5  ;;  %v187_v56 = vld [vmem:[%s3337_s12 + $0x1d8] sm:$0x3] }
  0x83   : > { %1440 = vrot.lane.b32.xlu1 %v3669_v57, %s3312_s13  ;;  %v3715_v57 = vmax.bf16 %v3051_v48, %v186_v33 }
  0x86   : > { %1442 = vrot.lane.b32.xlu0 %v3677_v61, %s3312_s13  ;;  %v3709_v61 = vmax.bf16 %v3050_v14, %v185_v6  ;;  %v3053_v6 = vld [vmem:[%s3337_s12 + $0x214] sm:$0xf] }
  0x87   : > { %1444 = vrot.lane.b32.xlu1 %v3681_v32, %s3312_s13 }
  0x88   : > { %v1331_v15 = vpop.permute.xlu0 %1330 }
  0x89   : > { %v2233_v31 = vmax.bf16 %v1331_v15, %v3342_v3  ;;  %v1335_v49 = vpop.permute.xlu1 %1334  ;;  %v3052_v3 = vld [vmem:[%s3337_s12 + $0x1f4] sm:$0x3] }
  0x8a   : > { %1446 = vrot.lane.b32.xlu0 %v3690_v30, %s3312_s13  ;;  %v2235_v32 = vmax.bf16 %v1335_v49, %v3347_v7  ;;  %v188_v7 = vld [vmem:[%s3337_s12 + $0x1f8] sm:$0xf]  ;;  %v3727_v48 = vmax.bf16 %v3052_v3, %v187_v56  ;;  %v189_v49 = vld [vmem:[%s3337_s12 + $0x1fc] sm:$0xf] }
  0x8b   : > { %2535 = vst.msk [vmem:[%s3701_s17] sm:$0xf] %vm2534_vm0, %v2233_v31  ;;  %1448 = vrot.lane.b32.xlu1 %v3694_v5, %s3312_s13  ;;  %v3054_v5 = vld [vmem:[%s3337_s12 + $0x218] sm:$0xf]  ;;  %v3055_v56 = vld [vmem:[%s3337_s12 + $0x21c] sm:$0xf] }
  0x8c   : > { %2537 = vst.msk [vmem:[%s3701_s17 + $0x8] sm:$0xf] %vm2534_vm0, %v2235_v32  ;;  %v1333_v15 = vpop.permute.xlu0 %1332  ;;  %6207 = vst [vmem:[#allocation10_spill] sm:$0xff] %v3727_v48  ;;  %v3733_v32 = vmax.bf16 %v3053_v6, %v188_v7  ;;  %v3745_v6 = vmax.bf16 %v3054_v5, %v189_v49  ;;  %v192_v49 = vld [vmem:[%s3337_s12 + $0x208] sm:$0xf] }
  0x8d   : > { %v2234_v14 = vmax.bf16 %v1333_v15, %v3353_v10  ;;  %v1337_v31 = vpop.permute.xlu1 %1336 }
  0x8e   : > { %1450 = vrot.lane.b32.xlu0 %v3709_v61, %s3312_s13  ;;  %v2236_v33 = vmax.bf16 %v1337_v31, %v3357_v11  ;;  %6208 = vst [vmem:[#allocation11_spill] sm:$0xff] %v3733_v32  ;;  %v190_v11 = vld [vmem:[%s3337_s12 + $0x200] sm:$0xf] }
  0x8f   : > { %2536 = vst.msk [vmem:[%s3701_s17 + $0x4] sm:$0xf] %vm2534_vm0, %v2234_v14  ;;  %1452 = vrot.lane.b32.xlu1 %v3715_v57, %s3312_s13  ;;  %v2544_v14 = vld [vmem:[%s3701_s17 + $0x18] sm:$0x3]  ;;  %v3752_v31 = vmax.bf16 %v3055_v56, %v190_v11 }
  0x90   : > { %2538 = vst.msk [vmem:[%s3701_s17 + $0xc] sm:$0xf] %vm2534_vm0, %v2236_v33  ;;  %v1339_v10 = vpop.permute.xlu0 %1338  ;;  %v3056_v33 = vld [vmem:[%s3337_s12 + $0x220] sm:$0xf] }
  0x91   : > { %v2237_v3 = vmax.bf16 %v1339_v10, %v3365_v16  ;;  %v1341_v15 = vpop.permute.xlu1 %1340  ;;  %v191_v16 = vld [vmem:[%s3337_s12 + $0x204] sm:$0xf] }
  0x92   : > { %1454 = vrot.lane.b32.xlu0 %v3727_v48, %s3312_s13  ;;  %v2238_v7 = vmax.bf16 %v1341_v15, %v3369_v17  ;;  %v3057_v10 = vld [vmem:[%s3337_s12 + $0x224] sm:$0xf]  ;;  %v3768_v15 = vmax.bf16 %v3056_v33, %v191_v16  ;;  %v193_v48 = vld [vmem:[%s3337_s12 + $0x20c] sm:$0xf]  ;;  %v194_v16 = vld [vmem:[%s3337_s12 + $0x210] sm:$0x3] }
  0x93   : > { %2539 = vst.msk [vmem:[%s3701_s17 + $0x10] sm:$0xf] %vm2534_vm0, %v2237_v3  ;;  %1456 = vrot.lane.b32.xlu1 %v3733_v32, %s3312_s13  ;;  %v3774_v32 = vmax.bf16 %v3057_v10, %v192_v49  ;;  %v3059_v33 = vld [vmem:[%s3337_s12 + $0x22c] sm:$0x3] }
  0x94   : > { %2540 = vst.msk [vmem:[%s3701_s17 + $0x14] sm:$0xf] %vm2534_vm0, %v2238_v7  ;;  %v1343_v5 = vpop.permute.xlu0 %1342 }
  0x95   : > { %v2239_v11 = vmax.bf16 %v1343_v5, %v3377_v22  ;;  %v1345_v56 = vpop.permute.xlu1 %1344  ;;  %v3058_v22 = vld [vmem:[%s3337_s12 + $0x228] sm:$0xf] }
  0x96   : > { %1458 = vrot.lane.b32.xlu0 %v3745_v6, %s3312_s13  ;;  %v2240_v3 = vmax.bf16 %v1345_v56, %v3381_v23  ;;  %v3787_v10 = vmax.bf16 %v3058_v22, %v193_v48  ;;  %v195_v56 = vld [vmem:[%s3337_s12 + $0x230] sm:$0xf] }
  0x97   : > { %v2545_v7 = vsel %vm3758_vm3, %v2239_v11, %v2544_v14  ;;  %1460 = vrot.lane.b32.xlu1 %v3752_v31, %s3312_s13  ;;  %v3793_v11 = vmax.bf16 %v3059_v33, %v194_v16  ;;  %v3061_v48 = vld [vmem:[%s3337_s12 + $0x250] sm:$0xf] }
  0x98   : > { %2546 = vst [vmem:[%s3701_s17 + $0x18] sm:$0x3] %v2545_v7  ;;  %2547 = vst.msk [vmem:[%s3701_s17 + $0x1c] sm:$0xf] %vm2534_vm0, %v2240_v3  ;;  %v1347_v23 = vpop.permute.xlu0 %1346 }
  0x99   : > { %v2241_v14 = vmax.bf16 %v1347_v23, %v3389_v28  ;;  %v1349_v5 = vpop.permute.xlu1 %1348  ;;  %v3060_v28 = vld [vmem:[%s3337_s12 + $0x24c] sm:$0xf] }
  0x9a   : > { %1462 = vrot.lane.b32.xlu0 %v3768_v15, %s3312_s13  ;;  %v2242_v49 = vmax.bf16 %v1349_v5, %v3393_v29  ;;  %v196_v29 = vld [vmem:[%s3337_s12 + $0x234] sm:$0xf]  ;;  %v3805_v16 = vmax.bf16 %v3060_v28, %v195_v56 }
  0x9b   : > { %2548 = vst.msk [vmem:[%s3701_s17 + $0x20] sm:$0xf] %vm2534_vm0, %v2241_v14  ;;  %1464 = vrot.lane.b32.xlu1 %v3774_v32, %s3312_s13  ;;  %v3811_v33 = vmax.bf16 %v3061_v48, %v196_v29  ;;  %v197_v14 = vld [vmem:[%s3337_s12 + $0x238] sm:$0xf]  ;;  %v2553_v28 = vld [vmem:[%s3701_s17 + $0x34] sm:$0x3] }
  0x9c   : > { %2549 = vst.msk [vmem:[%s3701_s17 + $0x24] sm:$0xf] %vm2534_vm0, %v2242_v49  ;;  %v1351_v3 = vpop.permute.xlu0 %1350  ;;  %v198_v49 = vld [vmem:[%s3337_s12 + $0x23c] sm:$0xf] }
  0x9d   : > { %v2243_v7 = vmax.bf16 %v1351_v3, %v3401_v34  ;;  %v1353_v22 = vpop.permute.xlu1 %1352  ;;  %v3062_v34 = vld [vmem:[%s3337_s12 + $0x254] sm:$0xf] }
  0x9e   : > { %1466 = vrot.lane.b32.xlu0 %v3787_v10, %s3312_s13  ;;  %v2244_v23 = vmax.bf16 %v1353_v22, %v3405_v35  ;;  %v3063_v35 = vld [vmem:[%s3337_s12 + $0x258] sm:$0xf]  ;;  %v3824_v48 = vmax.bf16 %v3062_v34, %v197_v14  ;;  %v199_v22 = vld [vmem:[%s3337_s12 + $0x240] sm:$0xf] }
  0x9f   : > { %2550 = vst.msk [vmem:[%s3701_s17 + $0x28] sm:$0xf] %vm2534_vm0, %v2243_v7  ;;  %1468 = vrot.lane.b32.xlu1 %v3793_v11, %s3312_s13  ;;  %v3830_v7 = vmax.bf16 %v3063_v35, %v198_v49  ;;  %v3065_v14 = vld [vmem:[%s3337_s12 + $0x260] sm:$0xf] }
  0xa0   : > { %2551 = vst.msk [vmem:[%s3701_s17 + $0x2c] sm:$0xf] %vm2534_vm0, %v2244_v23  ;;  %v1355_v5 = vpop.permute.xlu0 %1354 }
  0xa1   : > { %v2245_v56 = vmax.bf16 %v1355_v5, %v3413_v40  ;;  %v1357_v3 = vpop.permute.xlu1 %1356  ;;  %v3064_v40 = vld [vmem:[%s3337_s12 + $0x25c] sm:$0xf] }
  0xa2   : > { %1470 = vrot.lane.b32.xlu0 %v3805_v16, %s3312_s13  ;;  %v2246_v29 = vmax.bf16 %v1357_v3, %v3417_v41  ;;  %v200_v41 = vld [vmem:[%s3337_s12 + $0x244] sm:$0xf]  ;;  %v3843_v35 = vmax.bf16 %v3064_v40, %v199_v22  ;;  %v201_v3 = vld [vmem:[%s3337_s12 + $0x248] sm:$0x3] }
  0xa3   : > { %2552 = vst.msk [vmem:[%s3701_s17 + $0x30] sm:$0xf] %vm2534_vm0, %v2245_v56  ;;  %1472 = vrot.lane.b32.xlu1 %v3811_v33, %s3312_s13  ;;  %v3067_v22 = vld [vmem:[%s3337_s12 + $0x284] sm:$0xf] }
  0xa4   : > { %v2554_v23 = vsel %vm3758_vm3, %v2246_v29, %v2553_v28  ;;  %v1359_v5 = vpop.permute.xlu0 %1358  ;;  %v3849_v28 = vmax.bf16 %v3065_v14, %v200_v41 }
  0xa5   : > { %2555 = vst [vmem:[%s3701_s17 + $0x34] sm:$0x3] %v2554_v23  ;;  %v2247_v34 = vmax.bf16 %v1359_v5, %v3425_v46  ;;  %v1361_v56 = vpop.permute.xlu1 %1360  ;;  %v3066_v46 = vld [vmem:[%s3337_s12 + $0x264] sm:$0x3] }
  0xa6   : > { %1474 = vrot.lane.b32.xlu0 %v3824_v48, %s3312_s13  ;;  %v2248_v49 = vmax.bf16 %v1361_v56, %v3429_v47  ;;  %v202_v47 = vld [vmem:[%s3337_s12 + $0x268] sm:$0xf]  ;;  %v3861_v41 = vmax.bf16 %v3066_v46, %v201_v3 }
  0xa7   : > { %2556 = vst.msk [vmem:[%s3701_s17 + $0x38] sm:$0xf] %vm2534_vm0, %v2247_v34  ;;  %1476 = vrot.lane.b32.xlu1 %v3830_v7, %s3312_s13  ;;  %v3867_v14 = vmax.bf16 %v3067_v22, %v202_v47  ;;  %v203_v34 = vld [vmem:[%s3337_s12 + $0x26c] sm:$0xf] }
  0xa8   : > { %2557 = vst.msk [vmem:[%s3701_s17 + $0x3c] sm:$0xf] %vm2534_vm0, %v2248_v49  ;;  %v1363_v29 = vpop.permute.xlu0 %1362  ;;  %v3069_v49 = vld [vmem:[%s3337_s12 + $0x28c] sm:$0xf] }
  0xa9   : > { %v2249_v40 = vmax.bf16 %v1363_v29, %v3437_v52  ;;  %v1365_v23 = vpop.permute.xlu1 %1364  ;;  %v3068_v52 = vld [vmem:[%s3337_s12 + $0x288] sm:$0xf] }
  0xaa   : > { %1478 = vrot.lane.b32.xlu0 %v3843_v35, %s3312_s13  ;;  %v2250_v5 = vmax.bf16 %v1365_v23, %v3441_v53  ;;  %v204_v53 = vld [vmem:[%s3337_s12 + $0x270] sm:$0xf]  ;;  %v3879_v47 = vmax.bf16 %v3068_v52, %v203_v34  ;;  %v3071_v34 = vld [vmem:[%s3337_s12 + $0x294] sm:$0xf] }
  0xab   : > { %2558 = vst.msk [vmem:[%s3701_s17 + $0x40] sm:$0xf] %vm2534_vm0, %v2249_v40  ;;  %1480 = vrot.lane.b32.xlu1 %v3849_v28, %s3312_s13  ;;  %v3885_v22 = vmax.bf16 %v3069_v49, %v204_v53  ;;  %v205_v40 = vld [vmem:[%s3337_s12 + $0x274] sm:$0xf]  ;;  %v3070_v23 = vld [vmem:[%s3337_s12 + $0x290] sm:$0xf] }
  0xac   : > { %2559 = vst.msk [vmem:[%s3701_s17 + $0x44] sm:$0xf] %vm2534_vm0, %v2250_v5  ;;  %v1367_v56 = vpop.permute.xlu0 %1366  ;;  %v3898_v49 = vmax.bf16 %v3070_v23, %v205_v40  ;;  %v208_v40 = vld [vmem:[%s3337_s12 + $0x280] sm:$0x3]  ;;  %v3073_v23 = vld [vmem:[%s3337_s12 + $0x29c] sm:$0x3] }
  0xad   : > { %v2251_v3 = vmax.bf16 %v1367_v56, %v3449_v58  ;;  %v1369_v46 = vpop.permute.xlu1 %1368  ;;  %v2562_v58 = vld [vmem:[%s3701_s17 + $0x50] sm:$0x3] }
  0xae   : > { %1482 = vrot.lane.b32.xlu0 %v3861_v41, %s3312_s13  ;;  %v2252_v29 = vmax.bf16 %v1369_v46, %v3453_v59  ;;  %v206_v59 = vld [vmem:[%s3337_s12 + $0x278] sm:$0xf] }
  0xaf   : > { %2560 = vst.msk [vmem:[%s3701_s17 + $0x48] sm:$0xf] %vm2534_vm0, %v2251_v3  ;;  %1484 = vrot.lane.b32.xlu1 %v3867_v14, %s3312_s13  ;;  %v3904_v46 = vmax.bf16 %v3071_v34, %v206_v59 }
  0xb0   : > { %2561 = vst.msk [vmem:[%s3701_s17 + $0x4c] sm:$0xf] %vm2534_vm0, %v2252_v29  ;;  %v1371_v5 = vpop.permute.xlu0 %1370  ;;  %v207_v29 = vld [vmem:[%s3337_s12 + $0x27c] sm:$0xf] }
  0xb1   : > { %v2253_v52 = vmax.bf16 %v1371_v5, %v3461_v0  ;;  %v1373_v56 = vpop.permute.xlu1 %1372  ;;  %v3072_v0 = vld [vmem:[%s3337_s12 + $0x298] sm:$0xf] }
  0xb2   : > { %1486 = vrot.lane.b32.xlu0 %v3879_v47, %s3312_s13  ;;  %v2254_v53 = vmax.bf16 %v1373_v56, %v3465_v1  ;;  %v3917_v34 = vmax.bf16 %v3072_v0, %v207_v29  ;;  %v209_v56 = vld [vmem:[%s3337_s12 + $0x2a0] sm:$0xf] }
  0xb3   : > { %v2563_v3 = vsel %vm3758_vm3, %v2253_v52, %v2562_v58  ;;  %1488 = vrot.lane.b32.xlu1 %v3885_v22, %s3312_s13  ;;  %v3923_v52 = vmax.bf16 %v3073_v23, %v208_v40 }
  0xb4   : > { %2564 = vst [vmem:[%s3701_s17 + $0x50] sm:$0x3] %v2563_v3  ;;  %2565 = vst.msk [vmem:[%s3701_s17 + $0x54] sm:$0xf] %vm2534_vm0, %v2254_v53  ;;  %v1375_v1 = vpop.permute.xlu0 %1374  ;;  %v3075_v3 = vld [vmem:[%s3337_s12 + $0x2c0] sm:$0xf] }
  0xb5   : > { %v2255_v58 = vmax.bf16 %v1375_v1, %v3473_v8  ;;  %v1377_v5 = vpop.permute.xlu1 %1376  ;;  %v3074_v8 = vld [vmem:[%s3337_s12 + $0x2bc] sm:$0xf] }
  0xb6   : > { %1490 = vrot.lane.b32.xlu0 %v3898_v49, %s3312_s13  ;;  %v2256_v59 = vmax.bf16 %v1377_v5, %v3477_v9  ;;  %v210_v9 = vld [vmem:[%s3337_s12 + $0x2a4] sm:$0xf]  ;;  %v3935_v40 = vmax.bf16 %v3074_v8, %v209_v56  ;;  %v2571_v8 = vld [vmem:[%s3701_s17 + $0x6c] sm:$0x3] }
  0xb7   : > { %2566 = vst.msk [vmem:[%s3701_s17 + $0x58] sm:$0xf] %vm2534_vm0, %v2255_v58  ;;  %1492 = vrot.lane.b32.xlu1 %v3904_v46, %s3312_s13  ;;  %v3941_v23 = vmax.bf16 %v3075_v3, %v210_v9  ;;  %v211_v58 = vld [vmem:[%s3337_s12 + $0x2a8] sm:$0xf] }
  0xb8   : > { %2567 = vst.msk [vmem:[%s3701_s17 + $0x5c] sm:$0xf] %vm2534_vm0, %v2256_v59  ;;  %v1379_v53 = vpop.permute.xlu0 %1378  ;;  %v212_v59 = vld [vmem:[%s3337_s12 + $0x2ac] sm:$0xf] }
  0xb9   : > { %v2257_v29 = vmax.bf16 %v1379_v53, %v3485_v18  ;;  %v1381_v0 = vpop.permute.xlu1 %1380  ;;  %v3076_v18 = vld [vmem:[%s3337_s12 + $0x2c4] sm:$0xf] }
  0xba   : > { %1494 = vrot.lane.b32.xlu0 %v3917_v34, %s3312_s13  ;;  %v2258_v1 = vmax.bf16 %v1381_v0, %v3489_v19  ;;  %v3077_v19 = vld [vmem:[%s3337_s12 + $0x2c8] sm:$0xf]  ;;  %v3954_v3 = vmax.bf16 %v3076_v18, %v211_v58  ;;  %v213_v0 = vld [vmem:[%s3337_s12 + $0x2b0] sm:$0xf] }
  0xbb   : > { %2568 = vst.msk [vmem:[%s3701_s17 + $0x60] sm:$0xf] %vm2534_vm0, %v2257_v29  ;;  %1496 = vrot.lane.b32.xlu1 %v3923_v52, %s3312_s13  ;;  %v3960_v29 = vmax.bf16 %v3077_v19, %v212_v59  ;;  %v3079_v58 = vld [vmem:[%s3337_s12 + $0x2d0] sm:$0xf] }
  0xbc   : > { %2569 = vst.msk [vmem:[%s3701_s17 + $0x64] sm:$0xf] %vm2534_vm0, %v2258_v1  ;;  %v1383_v5 = vpop.permute.xlu0 %1382 }
  0xbd   : > { %v2259_v56 = vmax.bf16 %v1383_v5, %v3497_v26  ;;  %v1385_v53 = vpop.permute.xlu1 %1384  ;;  %v3078_v26 = vld [vmem:[%s3337_s12 + $0x2cc] sm:$0xf] }
  0xbe   : > { %1498 = vrot.lane.b32.xlu0 %v3935_v40, %s3312_s13  ;;  %v2260_v9 = vmax.bf16 %v1385_v53, %v3501_v27  ;;  %v214_v27 = vld [vmem:[%s3337_s12 + $0x2b4] sm:$0xf]  ;;  %v3973_v19 = vmax.bf16 %v3078_v26, %v213_v0  ;;  %v215_v53 = vld [vmem:[%s3337_s12 + $0x2b8] sm:$0x3] }
  0xbf   : > { %2570 = vst.msk [vmem:[%s3701_s17 + $0x68] sm:$0xf] %vm2534_vm0, %v2259_v56  ;;  %1500 = vrot.lane.b32.xlu1 %v3941_v23, %s3312_s13  ;;  %v3081_v0 = vld [vmem:[%s3337_s12 + $0x2f4] sm:$0xf] }
  0xc0   : > { %v2572_v1 = vsel %vm3758_vm3, %v2260_v9, %v2571_v8  ;;  %v1387_v5 = vpop.permute.xlu0 %1386  ;;  %v3979_v8 = vmax.bf16 %v3079_v58, %v214_v27 }
  0xc1   : > { %2573 = vst [vmem:[%s3701_s17 + $0x6c] sm:$0x3] %v2572_v1  ;;  %v2261_v18 = vmax.bf16 %v1387_v5, %v3509_v36  ;;  %v1389_v56 = vpop.permute.xlu1 %1388  ;;  %v3080_v36 = vld [vmem:[%s3337_s12 + $0x2d4] sm:$0x3] }
  0xc2   : > { %1502 = vrot.lane.b32.xlu0 %v3954_v3, %s3312_s13  ;;  %v2262_v59 = vmax.bf16 %v1389_v56, %v3513_v37  ;;  %v216_v37 = vld [vmem:[%s3337_s12 + $0x2d8] sm:$0xf]  ;;  %v3991_v27 = vmax.bf16 %v3080_v36, %v215_v53 }
  0xc3   : > { %2574 = vst.msk [vmem:[%s3701_s17 + $0x70] sm:$0xf] %vm2534_vm0, %v2261_v18  ;;  %1504 = vrot.lane.b32.xlu1 %v3960_v29, %s3312_s13  ;;  %v3997_v58 = vmax.bf16 %v3081_v0, %v216_v37  ;;  %v217_v18 = vld [vmem:[%s3337_s12 + $0x2dc] sm:$0xf] }
  0xc4   : > { %2575 = vst.msk [vmem:[%s3701_s17 + $0x74] sm:$0xf] %vm2534_vm0, %v2262_v59  ;;  %v1391_v9 = vpop.permute.xlu0 %1390  ;;  %v3083_v59 = vld [vmem:[%s3337_s12 + $0x2fc] sm:$0xf] }
  0xc5   : > { %v2263_v26 = vmax.bf16 %v1391_v9, %v3521_v44  ;;  %v1393_v1 = vpop.permute.xlu1 %1392  ;;  %v3082_v44 = vld [vmem:[%s3337_s12 + $0x2f8] sm:$0xf] }
  0xc6   : > { %1506 = vrot.lane.b32.xlu0 %v3973_v19, %s3312_s13  ;;  %v2264_v5 = vmax.bf16 %v1393_v1, %v3525_v45  ;;  %v218_v45 = vld [vmem:[%s3337_s12 + $0x2e0] sm:$0xf]  ;;  %v4009_v37 = vmax.bf16 %v3082_v44, %v217_v18  ;;  %v3085_v18 = vld [vmem:[%s3337_s12 + $0x304] sm:$0xf] }
  0xc7   : > { %2576 = vst.msk [vmem:[%s3701_s17 + $0x78] sm:$0xf] %vm2534_vm0, %v2263_v26  ;;  %1508 = vrot.lane.b32.xlu1 %v3979_v8, %s3312_s13  ;;  %v4015_v0 = vmax.bf16 %v3083_v59, %v218_v45  ;;  %v219_v26 = vld [vmem:[%s3337_s12 + $0x2e4] sm:$0xf]  ;;  %v3084_v1 = vld [vmem:[%s3337_s12 + $0x300] sm:$0xf] }
  0xc8   : > { %2577 = vst.msk [vmem:[%s3701_s17 + $0x7c] sm:$0xf] %vm2534_vm0, %v2264_v5  ;;  %v1395_v56 = vpop.permute.xlu0 %1394  ;;  %v4028_v59 = vmax.bf16 %v3084_v1, %v219_v26  ;;  %v222_v26 = vld [vmem:[%s3337_s12 + $0x2f0] sm:$0x3]  ;;  %v3087_v1 = vld [vmem:[%s3337_s12 + $0x30c] sm:$0x3] }
  0xc9   : > { %v2265_v53 = vmax.bf16 %v1395_v56, %v3533_v54  ;;  %v1397_v36 = vpop.permute.xlu1 %1396  ;;  %v2580_v54 = vld [vmem:[%s3701_s17 + $0x88] sm:$0x3] }
  0xca   : > { %1510 = vrot.lane.b32.xlu0 %v3991_v27, %s3312_s13  ;;  %v2266_v9 = vmax.bf16 %v1397_v36, %v3537_v55  ;;  %v220_v55 = vld [vmem:[%s3337_s12 + $0x2e8] sm:$0xf] }
  0xcb   : > { %2578 = vst.msk [vmem:[%s3701_s17 + $0x80] sm:$0xf] %vm2534_vm0, %v2265_v53  ;;  %1512 = vrot.lane.b32.xlu1 %v3997_v58, %s3312_s13  ;;  %v4034_v36 = vmax.bf16 %v3085_v18, %v220_v55 }
  0xcc   : > { %2579 = vst.msk [vmem:[%s3701_s17 + $0x84] sm:$0xf] %vm2534_vm0, %v2266_v9  ;;  %v1399_v5 = vpop.permute.xlu0 %1398  ;;  %v221_v9 = vld [vmem:[%s3337_s12 + $0x2ec] sm:$0xf] }
  0xcd   : > { %v2267_v44 = vmax.bf16 %v1399_v5, %v3545_v62  ;;  %v1401_v56 = vpop.permute.xlu1 %1400  ;;  %v3086_v62 = vld [vmem:[%s3337_s12 + $0x308] sm:$0xf] }
  0xce   : > { %1514 = vrot.lane.b32.xlu0 %v4009_v37, %s3312_s13  ;;  %v2268_v45 = vmax.bf16 %v1401_v56, %v3549_v63  ;;  %v4047_v18 = vmax.bf16 %v3086_v62, %v221_v9  ;;  %v223_v56 = vld [vmem:[%s3337_s12 + $0x310] sm:$0xf] }
  0xcf   : > { %v2581_v53 = vsel %vm3758_vm3, %v2267_v44, %v2580_v54  ;;  %1516 = vrot.lane.b32.xlu1 %v4015_v0, %s3312_s13  ;;  %v4053_v44 = vmax.bf16 %v3087_v1, %v222_v26 }
  0xd0   : > { %2582 = vst [vmem:[%s3701_s17 + $0x88] sm:$0x3] %v2581_v53  ;;  %2583 = vst.msk [vmem:[%s3701_s17 + $0x8c] sm:$0xf] %vm2534_vm0, %v2268_v45  ;;  %v1403_v63 = vpop.permute.xlu0 %1402  ;;  %v3089_v53 = vld [vmem:[%s3337_s12 + $0x330] sm:$0xf] }
  0xd1   : > { %v2269_v54 = vmax.bf16 %v1403_v63, %v3557_v12  ;;  %v1405_v5 = vpop.permute.xlu1 %1404  ;;  %v3088_v12 = vld [vmem:[%s3337_s12 + $0x32c] sm:$0xf] }
  0xd2   : > { %1518 = vrot.lane.b32.xlu0 %v4028_v59, %s3312_s13  ;;  %v2270_v55 = vmax.bf16 %v1405_v5, %v3561_v13  ;;  %v224_v13 = vld [vmem:[%s3337_s12 + $0x314] sm:$0xf]  ;;  %v4065_v26 = vmax.bf16 %v3088_v12, %v223_v56  ;;  %v2589_v12 = vld [vmem:[%s3701_s17 + $0xa4] sm:$0x3] }
  0xd3   : > { %2584 = vst.msk [vmem:[%s3701_s17 + $0x90] sm:$0xf] %vm2534_vm0, %v2269_v54  ;;  %1520 = vrot.lane.b32.xlu1 %v4034_v36, %s3312_s13  ;;  %v4071_v1 = vmax.bf16 %v3089_v53, %v224_v13  ;;  %v225_v54 = vld [vmem:[%s3337_s12 + $0x318] sm:$0xf] }
  0xd4   : > { %2585 = vst.msk [vmem:[%s3701_s17 + $0x94] sm:$0xf] %vm2534_vm0, %v2270_v55  ;;  %v1407_v45 = vpop.permute.xlu0 %1406  ;;  %v226_v55 = vld [vmem:[%s3337_s12 + $0x31c] sm:$0xf] }
  0xd5   : > { %v2271_v9 = vmax.bf16 %v1407_v45, %v3569_v24  ;;  %v1409_v62 = vpop.permute.xlu1 %1408  ;;  %v3090_v24 = vld [vmem:[%s3337_s12 + $0x334] sm:$0xf] }
  0xd6   : > { %1522 = vrot.lane.b32.xlu0 %v4047_v18, %s3312_s13  ;;  %v2272_v63 = vmax.bf16 %v1409_v62, %v3573_v25  ;;  %v3091_v25 = vld [vmem:[%s3337_s12 + $0x338] sm:$0xf]  ;;  %v4084_v53 = vmax.bf16 %v3090_v24, %v225_v54  ;;  %v227_v62 = vld [vmem:[%s3337_s12 + $0x320] sm:$0xf] }
  0xd7   : > { %2586 = vst.msk [vmem:[%s3701_s17 + $0x98] sm:$0xf] %vm2534_vm0, %v2271_v9  ;;  %1524 = vrot.lane.b32.xlu1 %v4053_v44, %s3312_s13  ;;  %v4090_v9 = vmax.bf16 %v3091_v25, %v226_v55  ;;  %v3093_v54 = vld [vmem:[%s3337_s12 + $0x340] sm:$0xf] }
  0xd8   : > { %2587 = vst.msk [vmem:[%s3701_s17 + $0x9c] sm:$0xf] %vm2534_vm0, %v2272_v63  ;;  %v1411_v5 = vpop.permute.xlu0 %1410 }
  0xd9   : > { %v2273_v56 = vmax.bf16 %v1411_v5, %v3581_v38  ;;  %v1413_v45 = vpop.permute.xlu1 %1412  ;;  %v3092_v38 = vld [vmem:[%s3337_s12 + $0x33c] sm:$0xf] }
  0xda   : > { %1526 = vrot.lane.b32.xlu0 %v4065_v26, %s3312_s13  ;;  %v2274_v13 = vmax.bf16 %v1413_v45, %v3585_v39  ;;  %v228_v39 = vld [vmem:[%s3337_s12 + $0x324] sm:$0xf]  ;;  %v4103_v25 = vmax.bf16 %v3092_v38, %v227_v62  ;;  %v229_v45 = vld [vmem:[%s3337_s12 + $0x328] sm:$0x3] }
  0xdb   : > { %2588 = vst.msk [vmem:[%s3701_s17 + $0xa0] sm:$0xf] %vm2534_vm0, %v2273_v56  ;;  %1528 = vrot.lane.b32.xlu1 %v4071_v1, %s3312_s13  ;;  %v3095_v62 = vld [vmem:[%s3337_s12 + $0x364] sm:$0xf] }
  0xdc   : > { %v2590_v63 = vsel %vm3758_vm3, %v2274_v13, %v2589_v12  ;;  %v1415_v5 = vpop.permute.xlu0 %1414  ;;  %v4109_v12 = vmax.bf16 %v3093_v54, %v228_v39 }
  0xdd   : > { %2591 = vst [vmem:[%s3701_s17 + $0xa4] sm:$0x3] %v2590_v63  ;;  %v2275_v24 = vmax.bf16 %v1415_v5, %v3593_v50  ;;  %v1417_v56 = vpop.permute.xlu1 %1416  ;;  %v3094_v50 = vld [vmem:[%s3337_s12 + $0x344] sm:$0x3] }
  0xde   : > { %1530 = vrot.lane.b32.xlu0 %v4084_v53, %s3312_s13  ;;  %v2276_v55 = vmax.bf16 %v1417_v56, %v3597_v51  ;;  %v230_v51 = vld [vmem:[%s3337_s12 + $0x348] sm:$0xf]  ;;  %v4121_v39 = vmax.bf16 %v3094_v50, %v229_v45 }
  0xdf   : > { %2592 = vst.msk [vmem:[%s3701_s17 + $0xa8] sm:$0xf] %vm2534_vm0, %v2275_v24  ;;  %1532 = vrot.lane.b32.xlu1 %v4090_v9, %s3312_s13  ;;  %v4127_v54 = vmax.bf16 %v3095_v62, %v230_v51  ;;  %v231_v24 = vld [vmem:[%s3337_s12 + $0x34c] sm:$0xf] }
  0xe0   : > { %2593 = vst.msk [vmem:[%s3701_s17 + $0xac] sm:$0xf] %vm2534_vm0, %v2276_v55  ;;  %v1419_v13 = vpop.permute.xlu0 %1418  ;;  %v3097_v55 = vld [vmem:[%s3337_s12 + $0x36c] sm:$0xf] }
  0xe1   : > { %v2277_v38 = vmax.bf16 %v1419_v13, %v3605_v2  ;;  %v1421_v63 = vpop.permute.xlu1 %1420  ;;  %v3096_v2 = vld [vmem:[%s3337_s12 + $0x368] sm:$0xf] }
  0xe2   : > { %1534 = vrot.lane.b32.xlu0 %v4103_v25, %s3312_s13  ;;  %v2278_v5 = vmax.bf16 %v1421_v63, %v3609_v4  ;;  %v232_v4 = vld [vmem:[%s3337_s12 + $0x350] sm:$0xf]  ;;  %v4139_v51 = vmax.bf16 %v3096_v2, %v231_v24  ;;  %v3099_v24 = vld [vmem:[%s3337_s12 + $0x374] sm:$0xf] }
  0xe3   : > { %2594 = vst.msk [vmem:[%s3701_s17 + $0xb0] sm:$0xf] %vm2534_vm0, %v2277_v38  ;;  %1536 = vrot.lane.b32.xlu1 %v4109_v12, %s3312_s13  ;;  %v4145_v62 = vmax.bf16 %v3097_v55, %v232_v4  ;;  %v233_v38 = vld [vmem:[%s3337_s12 + $0x354] sm:$0xf]  ;;  %v3098_v63 = vld [vmem:[%s3337_s12 + $0x370] sm:$0xf] }
  0xe4   : > { %2595 = vst.msk [vmem:[%s3701_s17 + $0xb4] sm:$0xf] %vm2534_vm0, %v2278_v5  ;;  %v1423_v56 = vpop.permute.xlu0 %1422  ;;  %v4158_v55 = vmax.bf16 %v3098_v63, %v233_v38  ;;  %v236_v38 = vld [vmem:[%s3337_s12 + $0x360] sm:$0x3]  ;;  %v3101_v63 = vld [vmem:[%s3337_s12 + $0x37c] sm:$0x3] }
  0xe5   : > { %v2279_v45 = vmax.bf16 %v1423_v56, %v3617_v20  ;;  %v1425_v50 = vpop.permute.xlu1 %1424  ;;  %v2598_v20 = vld [vmem:[%s3701_s17 + $0xc0] sm:$0x3] }
  0xe6   : > { %1538 = vrot.lane.b32.xlu0 %v4121_v39, %s3312_s13  ;;  %v2280_v13 = vmax.bf16 %v1425_v50, %v3621_v21  ;;  %v234_v21 = vld [vmem:[%s3337_s12 + $0x358] sm:$0xf]  ;;  %6211 = vst [vmem:[#allocation12_spill] sm:$0xff] %v4158_v55 }
  0xe7   : > { %2596 = vst.msk [vmem:[%s3701_s17 + $0xb8] sm:$0xf] %vm2534_vm0, %v2279_v45  ;;  %1540 = vrot.lane.b32.xlu1 %v4127_v54, %s3312_s13  ;;  %v4164_v50 = vmax.bf16 %v3099_v24, %v234_v21  ;;  %v6213_v21 = vld [vmem:[#allocation2_spill] sm:$0xff] }
  0xe8   : > { %2597 = vst.msk [vmem:[%s3701_s17 + $0xbc] sm:$0xf] %vm2534_vm0, %v2280_v13  ;;  %v1427_v5 = vpop.permute.xlu0 %1426  ;;  %v235_v13 = vld [vmem:[%s3337_s12 + $0x35c] sm:$0xf] }
  0xe9   : > { %v2281_v2 = vmax.bf16 %v1427_v5, %v3629_v42  ;;  %v1429_v56 = vpop.permute.xlu1 %1428  ;;  %6212 = vst [vmem:[#allocation13_spill] sm:$0xff] %v4164_v50  ;;  %v3100_v42 = vld [vmem:[%s3337_s12 + $0x378] sm:$0xf] }
  0xea   : > { %1542 = vrot.lane.b32.xlu0 %v4139_v51, %s3312_s13  ;;  %v2282_v4 = vmax.bf16 %v1429_v56, %v3633_v43  ;;  %v4183_v56 = vmax.bf16 %v3101_v63, %v236_v38  ;;  %v6217_v38 = vld [vmem:[#allocation4_spill] sm:$0xff] }
  0xeb   : > { %v2599_v45 = vsel %vm3758_vm3, %v2281_v2, %v2598_v20  ;;  %1544 = vrot.lane.b32.xlu1 %v4145_v62, %s3312_s13  ;;  %v4177_v2 = vmax.bf16 %v3100_v42, %v235_v13  ;;  %v3103_v13 = vld [vmem:[%s3337_s12 + $0x3a0] sm:$0xf]  ;;  %v6216_v42 = vld [vmem:[#allocation3_spill] sm:$0xff] }
  0xec   : > { %2600 = vst [vmem:[%s3701_s17 + $0xc0] sm:$0x3] %v2599_v45  ;;  %2601 = vst.msk [vmem:[%s3701_s17 + $0xc4] sm:$0xf] %vm2534_vm0, %v2282_v4  ;;  %v1431_v43 = vpop.permute.xlu0 %1430  ;;  %v237_v4 = vld [vmem:[%s3337_s12 + $0x380] sm:$0xf] }
  0xed   : > { %v2283_v20 = vmax.bf16 %v1431_v43, %v3641_v60  ;;  %v1433_v5 = vpop.permute.xlu1 %1432  ;;  %6214 = vst [vmem:[#allocation2_spill] sm:$0xff] %v4177_v2  ;;  %6215 = vst [vmem:[#allocation14_spill] sm:$0xff] %v4183_v56  ;;  %v3102_v60 = vld [vmem:[%s3337_s12 + $0x39c] sm:$0xf]  ;;  %v238_v43 = vld [vmem:[%s3337_s12 + $0x384] sm:$0xf] }
  0xee   : > { %1546 = vrot.lane.b32.xlu0 %v4158_v55, %s3312_s13  ;;  %v2284_v24 = vmax.bf16 %v1433_v5, %v6213_v21  ;;  %v4195_v21 = vmax.bf16 %v3102_v60, %v237_v4  ;;  %v3105_v4 = vld [vmem:[%s3337_s12 + $0x3a8] sm:$0xf]  ;;  %v6220_v60 = vld [vmem:[#allocation5_spill] sm:$0xff]  ;;  %v241_v55 = vld [vmem:[%s3337_s12 + $0x390] sm:$0xf] }
  0xef   : > { %2602 = vst.msk [vmem:[%s3701_s17 + $0xc8] sm:$0xf] %vm2534_vm0, %v2283_v20  ;;  %1548 = vrot.lane.b32.xlu1 %v4164_v50, %s3312_s13  ;;  %v239_v50 = vld [vmem:[%s3337_s12 + $0x388] sm:$0xf] }
  0xf0   : > { %2603 = vst.msk [vmem:[%s3701_s17 + $0xcc] sm:$0xf] %vm2534_vm0, %v2284_v24  ;;  %v1435_v45 = vpop.permute.xlu0 %1434  ;;  %6218 = vst [vmem:[#allocation3_spill] sm:$0xff] %v4195_v21  ;;  %v4201_v24 = vmax.bf16 %v3103_v13, %v238_v43  ;;  %v6221_v43 = vld [vmem:[#allocation6_spill] sm:$0xff] }
  0xf1   : > { %v2285_v20 = vmax.bf16 %v1435_v45, %v6216_v42  ;;  %v1437_v5 = vpop.permute.xlu1 %1436  ;;  %v3104_v45 = vld [vmem:[%s3337_s12 + $0x3a4] sm:$0xf] }
  0xf2   : > { %1550 = vrot.lane.b32.xlu0 %v4177_v2, %s3312_s13  ;;  %v2286_v63 = vmax.bf16 %v1437_v5, %v6217_v38  ;;  %6219 = vst [vmem:[#allocation4_spill] sm:$0xff] %v4201_v24  ;;  %v240_v2 = vld [vmem:[%s3337_s12 + $0x38c] sm:$0xf] }
  0xf3   : > { %2604 = vst.msk [vmem:[%s3701_s17 + $0xd0] sm:$0xf] %vm2534_vm0, %v2285_v20  ;;  %1552 = vrot.lane.b32.xlu1 %v4183_v56, %s3312_s13  ;;  %v2607_v20 = vld [vmem:[%s3701_s17 + $0xdc] sm:$0x3]  ;;  %v4214_v56 = vmax.bf16 %v3104_v45, %v239_v50  ;;  %v242_v50 = vld [vmem:[%s3337_s12 + $0x394] sm:$0xf] }
  0xf4   : > { %2605 = vst.msk [vmem:[%s3701_s17 + $0xd4] sm:$0xf] %vm2534_vm0, %v2286_v63  ;;  %v1439_v42 = vpop.permute.xlu0 %1438  ;;  %v4220_v63 = vmax.bf16 %v3105_v4, %v240_v2  ;;  %v3107_v45 = vld [vmem:[%s3337_s12 + $0x3b0] sm:$0xf] }
  0xf5   : > { %v2287_v5 = vmax.bf16 %v1439_v42, %v6220_v60  ;;  %v1441_v38 = vpop.permute.xlu1 %1440  ;;  %v3106_v42 = vld [vmem:[%s3337_s12 + $0x3ac] sm:$0xf]  ;;  %v6223_v2 = vld [vmem:[#allocation8_spill] sm:$0xff] }
  0xf6   : > { %1554 = vrot.lane.b32.xlu0 %v4195_v21, %s3312_s13  ;;  %v2288_v13 = vmax.bf16 %v1441_v38, %v6221_v43 }
  0xf7   : > { %2606 = vst.msk [vmem:[%s3701_s17 + $0xd8] sm:$0xf] %vm2534_vm0, %v2287_v5  ;;  %1556 = vrot.lane.b32.xlu1 %v4201_v24, %s3312_s13  ;;  %v6222_v5 = vld [vmem:[#allocation7_spill] sm:$0xff]  ;;  %v4233_v24 = vmax.bf16 %v3106_v42, %v241_v55  ;;  %v3109_v55 = vld [vmem:[%s3337_s12 + $0x3d4] sm:$0xf] }
  0xf8   : > { %v2608_v60 = vsel %vm3758_vm3, %v2288_v13, %v2607_v20  ;;  %v1443_v21 = vpop.permute.xlu0 %1442  ;;  %v4239_v20 = vmax.bf16 %v3107_v45, %v242_v50  ;;  %v243_v13 = vld [vmem:[%s3337_s12 + $0x398] sm:$0x3] }
  0xf9   : > { %2609 = vst [vmem:[%s3701_s17 + $0xdc] sm:$0x3] %v2608_v60  ;;  %v2289_v38 = vmax.bf16 %v1443_v21, %v6222_v5  ;;  %v1445_v43 = vpop.permute.xlu1 %1444  ;;  %6224 = vst [vmem:[#allocation5_spill] sm:$0xff] %v4233_v24  ;;  %v3108_v21 = vld [vmem:[%s3337_s12 + $0x3b4] sm:$0x3] }
  0xfa   : > { %1558 = vrot.lane.b32.xlu0 %v4214_v56, %s3312_s13  ;;  %v2290_v4 = vmax.bf16 %v1445_v43, %v6223_v2  ;;  %6225 = vst [vmem:[#allocation6_spill] sm:$0xff] %v4239_v20  ;;  %v244_v5 = vld [vmem:[%s3337_s12 + $0x3b8] sm:$0xf]  ;;  %v4251_v45 = vmax.bf16 %v3108_v21, %v243_v13  ;;  %v3111_v13 = vld [vmem:[%s3337_s12 + $0x3dc] sm:$0xf] }
  0xfb   : > { %2610 = vst.msk [vmem:[%s3701_s17 + $0xe0] sm:$0xf] %vm2534_vm0, %v2289_v38  ;;  %1560 = vrot.lane.b32.xlu1 %v4220_v63, %s3312_s13  ;;  %v6226_v43 = vld [vmem:[#allocation9_spill] sm:$0xff]  ;;  %v4257_v2 = vmax.bf16 %v3109_v55, %v244_v5 }
  0xfc   : > { %2611 = vst.msk [vmem:[%s3701_s17 + $0xe4] sm:$0xf] %vm2534_vm0, %v2290_v4  ;;  %v1447_v60 = vpop.permute.xlu0 %1446  ;;  %6227 = vst [vmem:[#allocation7_spill] sm:$0xff] %v4251_v45  ;;  %v245_v4 = vld [vmem:[%s3337_s12 + $0x3bc] sm:$0xf] }
  0xfd   : > { %v2291_v42 = vmax.bf16 %v1447_v60, %v3690_v30  ;;  %v1449_v38 = vpop.permute.xlu1 %1448  ;;  %6228 = vst [vmem:[#allocation8_spill] sm:$0xff] %v4257_v2  ;;  %v3110_v30 = vld [vmem:[%s3337_s12 + $0x3d8] sm:$0xf] }
  0xfe   : > { %1562 = vrot.lane.b32.xlu0 %v4233_v24, %s3312_s13  ;;  %v2292_v50 = vmax.bf16 %v1449_v38, %v6226_v43  ;;  %v246_v38 = vld [vmem:[%s3337_s12 + $0x3c0] sm:$0xf]  ;;  %v4269_v55 = vmax.bf16 %v3110_v30, %v245_v4  ;;  %v3113_v4 = vld [vmem:[%s3337_s12 + $0x3e4] sm:$0xf]  ;;  %v249_v24 = vld [vmem:[%s3337_s12 + $0x3cc] sm:$0xf] }
  0xff   : > { %2612 = vst.msk [vmem:[%s3701_s17 + $0xe8] sm:$0xf] %vm2534_vm0, %v2291_v42  ;;  %1564 = vrot.lane.b32.xlu1 %v4239_v20, %s3312_s13  ;;  %v4275_v43 = vmax.bf16 %v3111_v13, %v246_v38  ;;  %v3112_v20 = vld [vmem:[%s3337_s12 + $0x3e0] sm:$0xf]  ;;  %v6230_v38 = vld [vmem:[#allocation11_spill] sm:$0xff] }
 0x100   : > { %2613 = vst.msk [vmem:[%s3701_s17 + $0xec] sm:$0xf] %vm2534_vm0, %v2292_v50  ;;  %v1451_v60 = vpop.permute.xlu0 %1450  ;;  %v247_v50 = vld [vmem:[%s3337_s12 + $0x3c4] sm:$0xf] }
 0x101   : > { %v2293_v21 = vmax.bf16 %v1451_v60, %v3709_v61  ;;  %v1453_v42 = vpop.permute.xlu1 %1452  ;;  %v2616_v61 = vld [vmem:[%s3701_s17 + $0xf8] sm:$0x3]  ;;  %v6229_v30 = vld [vmem:[#allocation10_spill] sm:$0xff] }
 0x102   : > { %1566 = vrot.lane.b32.xlu0 %v4251_v45, %s3312_s13  ;;  %v2294_v5 = vmax.bf16 %v1453_v42, %v3715_v57  ;;  %v248_v57 = vld [vmem:[%s3337_s12 + $0x3c8] sm:$0xf] }
 0x103   : > { %2614 = vst.msk [vmem:[%s3701_s17 + $0xf0] sm:$0xf] %vm2534_vm0, %v2293_v21  ;;  %1568 = vrot.lane.b32.xlu1 %v4257_v2, %s3312_s13  ;;  %v4288_v2 = vmax.bf16 %v3112_v20, %v247_v50  ;;  %v4294_v45 = vmax.bf16 %v3113_v4, %v248_v57  ;;  %v250_v50 = vld [vmem:[%s3337_s12 + $0x3d0] sm:$0x3] }
 0x104   : > { %2615 = vst.msk [vmem:[%s3701_s17 + $0xf4] sm:$0xf] %vm2534_vm0, %v2294_v5  ;;  %v1455_v60 = vpop.permute.xlu0 %1454 }
 0x105   : > { %v2295_v21 = vmax.bf16 %v1455_v60, %v6229_v30  ;;  %v1457_v42 = vpop.permute.xlu1 %1456  ;;  %v3114_v60 = vld [vmem:[%s3337_s12 + $0x3e8] sm:$0xf]  ;;  %v3115_v30 = vld [vmem:[%s3337_s12 + $0x3ec] sm:$0x3] }
 0x106   : > { %1570 = vrot.lane.b32.xlu0 %v4269_v55, %s3312_s13  ;;  %v2296_v13 = vmax.bf16 %v1457_v42, %v6230_v38  ;;  %v4307_v4 = vmax.bf16 %v3114_v60, %v249_v24  ;;  %v4313_v42 = vmax.bf16 %v3115_v30, %v250_v50  ;;  %v251_v38 = vld [vmem:[%s3337_s12 + $0x3f0] sm:$0xf] }
 0x107   : > { %v2617_v5 = vsel %vm3758_vm3, %v2295_v21, %v2616_v61  ;;  %1572 = vrot.lane.b32.xlu1 %v4275_v43, %s3312_s13  ;;  %v3117_v24 = vld [vmem:[%s3337_s12 + $0x410] sm:$0xf] }
 0x108   : > { %2618 = vst [vmem:[%s3701_s17 + $0xf8] sm:$0x3] %v2617_v5  ;;  %2619 = vst.msk [vmem:[%s3701_s17 + $0xfc] sm:$0xf] %vm2534_vm0, %v2296_v13  ;;  %v1459_v20 = vpop.permute.xlu0 %1458 }
 0x109   : > { %v2297_v61 = vmax.bf16 %v1459_v20, %v3745_v6  ;;  %v1461_v21 = vpop.permute.xlu1 %1460  ;;  %v3116_v6 = vld [vmem:[%s3337_s12 + $0x40c] sm:$0xf] }
 0x10a   : > { %1574 = vrot.lane.b32.xlu0 %v4288_v2, %s3312_s13  ;;  %v2298_v57 = vmax.bf16 %v1461_v21, %v3752_v31  ;;  %v252_v31 = vld [vmem:[%s3337_s12 + $0x3f4] sm:$0xf]  ;;  %v4325_v50 = vmax.bf16 %v3116_v6, %v251_v38 }
 0x10b   : > { %2620 = vst.msk [vmem:[%s3701_s17 + $0x100] sm:$0xf] %vm2534_vm0, %v2297_v61  ;;  %1576 = vrot.lane.b32.xlu1 %v4294_v45, %s3312_s13  ;;  %v4331_v30 = vmax.bf16 %v3117_v24, %v252_v31  ;;  %v253_v61 = vld [vmem:[%s3337_s12 + $0x3f8] sm:$0xf]  ;;  %v2625_v6 = vld [vmem:[%s3701_s17 + $0x114] sm:$0x3] }
 0x10c   : > { %2621 = vst.msk [vmem:[%s3701_s17 + $0x104] sm:$0xf] %vm2534_vm0, %v2298_v57  ;;  %v1463_v13 = vpop.permute.xlu0 %1462  ;;  %v254_v57 = vld [vmem:[%s3337_s12 + $0x3fc] sm:$0xf] }
 0x10d   : > { %v2299_v5 = vmax.bf16 %v1463_v13, %v3768_v15  ;;  %v1465_v60 = vpop.permute.xlu1 %1464  ;;  %v3118_v15 = vld [vmem:[%s3337_s12 + $0x414] sm:$0xf] }
 0x10e   : > { %1578 = vrot.lane.b32.xlu0 %v4307_v4, %s3312_s13  ;;  %v2300_v20 = vmax.bf16 %v1465_v60, %v3774_v32  ;;  %v3119_v32 = vld [vmem:[%s3337_s12 + $0x418] sm:$0xf]  ;;  %v4344_v24 = vmax.bf16 %v3118_v15, %v253_v61  ;;  %v255_v60 = vld [vmem:[%s3337_s12 + $0x400] sm:$0xf] }
 0x10f   : > { %2622 = vst.msk [vmem:[%s3701_s17 + $0x108] sm:$0xf] %vm2534_vm0, %v2299_v5  ;;  %1580 = vrot.lane.b32.xlu1 %v4313_v42, %s3312_s13  ;;  %v4350_v5 = vmax.bf16 %v3119_v32, %v254_v57  ;;  %v3121_v61 = vld [vmem:[%s3337_s12 + $0x420] sm:$0xf] }
 0x110   : > { %2623 = vst.msk [vmem:[%s3701_s17 + $0x10c] sm:$0xf] %vm2534_vm0, %v2300_v20  ;;  %v1467_v21 = vpop.permute.xlu0 %1466 }
 0x111   : > { %v2301_v38 = vmax.bf16 %v1467_v21, %v3787_v10  ;;  %v1469_v13 = vpop.permute.xlu1 %1468  ;;  %v3120_v10 = vld [vmem:[%s3337_s12 + $0x41c] sm:$0xf] }
 0x112   : > { %1582 = vrot.lane.b32.xlu0 %v4325_v50, %s3312_s13  ;;  %v2302_v31 = vmax.bf16 %v1469_v13, %v3793_v11  ;;  %v256_v11 = vld [vmem:[%s3337_s12 + $0x404] sm:$0xf]  ;;  %v4363_v32 = vmax.bf16 %v3120_v10, %v255_v60  ;;  %v257_v13 = vld [vmem:[%s3337_s12 + $0x408] sm:$0x3] }
 0x113   : > { %2624 = vst.msk [vmem:[%s3701_s17 + $0x110] sm:$0xf] %vm2534_vm0, %v2301_v38  ;;  %1584 = vrot.lane.b32.xlu1 %v4331_v30, %s3312_s13  ;;  %v3123_v60 = vld [vmem:[%s3337_s12 + $0x444] sm:$0xf] }
 0x114   : > { %v2626_v20 = vsel %vm3758_vm3, %v2302_v31, %v2625_v6  ;;  %v1471_v21 = vpop.permute.xlu0 %1470  ;;  %v4369_v6 = vmax.bf16 %v3121_v61, %v256_v11 }
 0x115   : > { %2627 = vst [vmem:[%s3701_s17 + $0x114] sm:$0x3] %v2626_v20  ;;  %v2303_v15 = vmax.bf16 %v1471_v21, %v3805_v16  ;;  %v1473_v38 = vpop.permute.xlu1 %1472  ;;  %v3122_v16 = vld [vmem:[%s3337_s12 + $0x424] sm:$0x3] }
 0x116   : > { %1586 = vrot.lane.b32.xlu0 %v4344_v24, %s3312_s13  ;;  %v2304_v57 = vmax.bf16 %v1473_v38, %v3811_v33  ;;  %v258_v33 = vld [vmem:[%s3337_s12 + $0x428] sm:$0xf]  ;;  %v4381_v11 = vmax.bf16 %v3122_v16, %v257_v13 }
 0x117   : > { %2628 = vst.msk [vmem:[%s3701_s17 + $0x118] sm:$0xf] %vm2534_vm0, %v2303_v15  ;;  %1588 = vrot.lane.b32.xlu1 %v4350_v5, %s3312_s13  ;;  %v4387_v61 = vmax.bf16 %v3123_v60, %v258_v33  ;;  %v259_v15 = vld [vmem:[%s3337_s12 + $0x42c] sm:$0xf] }
 0x118   : > { %2629 = vst.msk [vmem:[%s3701_s17 + $0x11c] sm:$0xf] %vm2534_vm0, %v2304_v57  ;;  %v1475_v31 = vpop.permute.xlu0 %1474  ;;  %v3125_v57 = vld [vmem:[%s3337_s12 + $0x44c] sm:$0xf] }
 0x119   : > { %v2305_v10 = vmax.bf16 %v1475_v31, %v3824_v48  ;;  %v1477_v20 = vpop.permute.xlu1 %1476  ;;  %v3124_v48 = vld [vmem:[%s3337_s12 + $0x448] sm:$0xf] }
 0x11a   : > { %1590 = vrot.lane.b32.xlu0 %v4363_v32, %s3312_s13  ;;  %v2306_v21 = vmax.bf16 %v1477_v20, %v3830_v7  ;;  %v260_v7 = vld [vmem:[%s3337_s12 + $0x430] sm:$0xf]  ;;  %v4399_v33 = vmax.bf16 %v3124_v48, %v259_v15  ;;  %v3127_v15 = vld [vmem:[%s3337_s12 + $0x454] sm:$0xf] }
 0x11b   : > { %2630 = vst.msk [vmem:[%s3701_s17 + $0x120] sm:$0xf] %vm2534_vm0, %v2305_v10  ;;  %1592 = vrot.lane.b32.xlu1 %v4369_v6, %s3312_s13  ;;  %v4405_v60 = vmax.bf16 %v3125_v57, %v260_v7  ;;  %v261_v10 = vld [vmem:[%s3337_s12 + $0x434] sm:$0xf]  ;;  %v3126_v20 = vld [vmem:[%s3337_s12 + $0x450] sm:$0xf] }
 0x11c   : > { %2631 = vst.msk [vmem:[%s3701_s17 + $0x124] sm:$0xf] %vm2534_vm0, %v2306_v21  ;;  %v1479_v38 = vpop.permute.xlu0 %1478  ;;  %v4418_v57 = vmax.bf16 %v3126_v20, %v261_v10  ;;  %v264_v10 = vld [vmem:[%s3337_s12 + $0x440] sm:$0x3]  ;;  %v3129_v20 = vld [vmem:[%s3337_s12 + $0x45c] sm:$0x3] }
 0x11d   : > { %v2307_v13 = vmax.bf16 %v1479_v38, %v3843_v35  ;;  %v1481_v16 = vpop.permute.xlu1 %1480  ;;  %v2634_v35 = vld [vmem:[%s3701_s17 + $0x130] sm:$0x3] }
 0x11e   : > { %1594 = vrot.lane.b32.xlu0 %v4381_v11, %s3312_s13  ;;  %v2308_v31 = vmax.bf16 %v1481_v16, %v3849_v28  ;;  %v262_v28 = vld [vmem:[%s3337_s12 + $0x438] sm:$0xf] }
 0x11f   : > { %2632 = vst.msk [vmem:[%s3701_s17 + $0x128] sm:$0xf] %vm2534_vm0, %v2307_v13  ;;  %1596 = vrot.lane.b32.xlu1 %v4387_v61, %s3312_s13  ;;  %v4424_v16 = vmax.bf16 %v3127_v15, %v262_v28 }
 0x120   : > { %2633 = vst.msk [vmem:[%s3701_s17 + $0x12c] sm:$0xf] %vm2534_vm0, %v2308_v31  ;;  %v1483_v21 = vpop.permute.xlu0 %1482  ;;  %v263_v31 = vld [vmem:[%s3337_s12 + $0x43c] sm:$0xf] }
 0x121   : > { %v2309_v48 = vmax.bf16 %v1483_v21, %v3861_v41  ;;  %v1485_v38 = vpop.permute.xlu1 %1484  ;;  %v3128_v41 = vld [vmem:[%s3337_s12 + $0x458] sm:$0xf] }
 0x122   : > { %1598 = vrot.lane.b32.xlu0 %v4399_v33, %s3312_s13  ;;  %v2310_v7 = vmax.bf16 %v1485_v38, %v3867_v14  ;;  %v4437_v15 = vmax.bf16 %v3128_v41, %v263_v31  ;;  %v265_v38 = vld [vmem:[%s3337_s12 + $0x460] sm:$0xf] }
 0x123   : > { %v2635_v13 = vsel %vm3758_vm3, %v2309_v48, %v2634_v35  ;;  %1600 = vrot.lane.b32.xlu1 %v4405_v60, %s3312_s13  ;;  %v4443_v48 = vmax.bf16 %v3129_v20, %v264_v10 }
 0x124   : > { %2636 = vst [vmem:[%s3701_s17 + $0x130] sm:$0x3] %v2635_v13  ;;  %2637 = vst.msk [vmem:[%s3701_s17 + $0x134] sm:$0xf] %vm2534_vm0, %v2310_v7  ;;  %v1487_v14 = vpop.permute.xlu0 %1486  ;;  %v3131_v13 = vld [vmem:[%s3337_s12 + $0x480] sm:$0xf] }
 0x125   : > { %v2311_v35 = vmax.bf16 %v1487_v14, %v3879_v47  ;;  %v1489_v21 = vpop.permute.xlu1 %1488  ;;  %v3130_v47 = vld [vmem:[%s3337_s12 + $0x47c] sm:$0xf] }
 0x126   : > { %1602 = vrot.lane.b32.xlu0 %v4418_v57, %s3312_s13  ;;  %v2312_v28 = vmax.bf16 %v1489_v21, %v3885_v22  ;;  %v266_v22 = vld [vmem:[%s3337_s12 + $0x464] sm:$0xf]  ;;  %v4455_v10 = vmax.bf16 %v3130_v47, %v265_v38  ;;  %v2643_v47 = vld [vmem:[%s3701_s17 + $0x14c] sm:$0x3] }
 0x127   : > { %2638 = vst.msk [vmem:[%s3701_s17 + $0x138] sm:$0xf] %vm2534_vm0, %v2311_v35  ;;  %1604 = vrot.lane.b32.xlu1 %v4424_v16, %s3312_s13  ;;  %v4461_v20 = vmax.bf16 %v3131_v13, %v266_v22  ;;  %v267_v35 = vld [vmem:[%s3337_s12 + $0x468] sm:$0xf] }
 0x128   : > { %2639 = vst.msk [vmem:[%s3701_s17 + $0x13c] sm:$0xf] %vm2534_vm0, %v2312_v28  ;;  %v1491_v7 = vpop.permute.xlu0 %1490  ;;  %v268_v28 = vld [vmem:[%s3337_s12 + $0x46c] sm:$0xf] }
 0x129   : > { %v2313_v31 = vmax.bf16 %v1491_v7, %v3898_v49  ;;  %v1493_v41 = vpop.permute.xlu1 %1492  ;;  %v3132_v49 = vld [vmem:[%s3337_s12 + $0x484] sm:$0xf] }
 0x12a   : > { %1606 = vrot.lane.b32.xlu0 %v4437_v15, %s3312_s13  ;;  %v2314_v14 = vmax.bf16 %v1493_v41, %v3904_v46  ;;  %v3133_v46 = vld [vmem:[%s3337_s12 + $0x488] sm:$0xf]  ;;  %v4474_v13 = vmax.bf16 %v3132_v49, %v267_v35  ;;  %v269_v41 = vld [vmem:[%s3337_s12 + $0x470] sm:$0xf] }
 0x12b   : > { %2640 = vst.msk [vmem:[%s3701_s17 + $0x140] sm:$0xf] %vm2534_vm0, %v2313_v31  ;;  %1608 = vrot.lane.b32.xlu1 %v4443_v48, %s3312_s13  ;;  %v4480_v31 = vmax.bf16 %v3133_v46, %v268_v28  ;;  %v3135_v35 = vld [vmem:[%s3337_s12 + $0x490] sm:$0xf] }
 0x12c   : > { %2641 = vst.msk [vmem:[%s3701_s17 + $0x144] sm:$0xf] %vm2534_vm0, %v2314_v14  ;;  %v1495_v21 = vpop.permute.xlu0 %1494 }
 0x12d   : > { %v2315_v38 = vmax.bf16 %v1495_v21, %v3917_v34  ;;  %v1497_v7 = vpop.permute.xlu1 %1496  ;;  %v3134_v34 = vld [vmem:[%s3337_s12 + $0x48c] sm:$0xf] }
 0x12e   : > { %1610 = vrot.lane.b32.xlu0 %v4455_v10, %s3312_s13  ;;  %v2316_v22 = vmax.bf16 %v1497_v7, %v3923_v52  ;;  %v270_v52 = vld [vmem:[%s3337_s12 + $0x474] sm:$0xf]  ;;  %v4493_v46 = vmax.bf16 %v3134_v34, %v269_v41  ;;  %v271_v7 = vld [vmem:[%s3337_s12 + $0x478] sm:$0x3] }
 0x12f   : > { %2642 = vst.msk [vmem:[%s3701_s17 + $0x148] sm:$0xf] %vm2534_vm0, %v2315_v38  ;;  %1612 = vrot.lane.b32.xlu1 %v4461_v20, %s3312_s13  ;;  %v3137_v41 = vld [vmem:[%s3337_s12 + $0x4b4] sm:$0xf] }
 0x130   : > { %v2644_v14 = vsel %vm3758_vm3, %v2316_v22, %v2643_v47  ;;  %v1499_v21 = vpop.permute.xlu0 %1498  ;;  %v4499_v47 = vmax.bf16 %v3135_v35, %v270_v52 }
 0x131   : > { %2645 = vst [vmem:[%s3701_s17 + $0x14c] sm:$0x3] %v2644_v14  ;;  %v2317_v49 = vmax.bf16 %v1499_v21, %v3935_v40  ;;  %v1501_v38 = vpop.permute.xlu1 %1500  ;;  %v3136_v40 = vld [vmem:[%s3337_s12 + $0x494] sm:$0x3] }
 0x132   : > { %1614 = vrot.lane.b32.xlu0 %v4474_v13, %s3312_s13  ;;  %v2318_v28 = vmax.bf16 %v1501_v38, %v3941_v23  ;;  %v272_v23 = vld [vmem:[%s3337_s12 + $0x498] sm:$0xf]  ;;  %v4511_v52 = vmax.bf16 %v3136_v40, %v271_v7 }
 0x133   : > { %2646 = vst.msk [vmem:[%s3701_s17 + $0x150] sm:$0xf] %vm2534_vm0, %v2317_v49  ;;  %1616 = vrot.lane.b32.xlu1 %v4480_v31, %s3312_s13  ;;  %v4517_v35 = vmax.bf16 %v3137_v41, %v272_v23  ;;  %v273_v49 = vld [vmem:[%s3337_s12 + $0x49c] sm:$0xf] }
 0x134   : > { %2647 = vst.msk [vmem:[%s3701_s17 + $0x154] sm:$0xf] %vm2534_vm0, %v2318_v28  ;;  %v1503_v22 = vpop.permute.xlu0 %1502  ;;  %v3139_v28 = vld [vmem:[%s3337_s12 + $0x4bc] sm:$0xf] }
 0x135   : > { %v2319_v34 = vmax.bf16 %v1503_v22, %v3954_v3  ;;  %v1505_v14 = vpop.permute.xlu1 %1504  ;;  %v3138_v3 = vld [vmem:[%s3337_s12 + $0x4b8] sm:$0xf] }
 0x136   : > { %1618 = vrot.lane.b32.xlu0 %v4493_v46, %s3312_s13  ;;  %v2320_v21 = vmax.bf16 %v1505_v14, %v3960_v29  ;;  %v274_v29 = vld [vmem:[%s3337_s12 + $0x4a0] sm:$0xf]  ;;  %v4529_v23 = vmax.bf16 %v3138_v3, %v273_v49  ;;  %v3141_v49 = vld [vmem:[%s3337_s12 + $0x4c4] sm:$0xf] }
 0x137   : > { %2648 = vst.msk [vmem:[%s3701_s17 + $0x158] sm:$0xf] %vm2534_vm0, %v2319_v34  ;;  %1620 = vrot.lane.b32.xlu1 %v4499_v47, %s3312_s13  ;;  %v4535_v41 = vmax.bf16 %v3139_v28, %v274_v29  ;;  %v275_v34 = vld [vmem:[%s3337_s12 + $0x4a4] sm:$0xf]  ;;  %v3140_v14 = vld [vmem:[%s3337_s12 + $0x4c0] sm:$0xf] }
 0x138   : > { %2649 = vst.msk [vmem:[%s3701_s17 + $0x15c] sm:$0xf] %vm2534_vm0, %v2320_v21  ;;  %v1507_v38 = vpop.permute.xlu0 %1506  ;;  %v4548_v28 = vmax.bf16 %v3140_v14, %v275_v34  ;;  %v278_v34 = vld [vmem:[%s3337_s12 + $0x4b0] sm:$0x3]  ;;  %v3143_v14 = vld [vmem:[%s3337_s12 + $0x4cc] sm:$0x3] }
 0x139   : > { %v2321_v7 = vmax.bf16 %v1507_v38, %v3973_v19  ;;  %v1509_v40 = vpop.permute.xlu1 %1508  ;;  %v2652_v19 = vld [vmem:[%s3701_s17 + $0x168] sm:$0x3] }
 0x13a   : > { %1622 = vrot.lane.b32.xlu0 %v4511_v52, %s3312_s13  ;;  %v2322_v22 = vmax.bf16 %v1509_v40, %v3979_v8  ;;  %v276_v8 = vld [vmem:[%s3337_s12 + $0x4a8] sm:$0xf] }
 0x13b   : > { %2650 = vst.msk [vmem:[%s3701_s17 + $0x160] sm:$0xf] %vm2534_vm0, %v2321_v7  ;;  %1624 = vrot.lane.b32.xlu1 %v4517_v35, %s3312_s13  ;;  %v4554_v40 = vmax.bf16 %v3141_v49, %v276_v8 }
 0x13c   : > { %2651 = vst.msk [vmem:[%s3701_s17 + $0x164] sm:$0xf] %vm2534_vm0, %v2322_v22  ;;  %v1511_v21 = vpop.permute.xlu0 %1510  ;;  %v277_v22 = vld [vmem:[%s3337_s12 + $0x4ac] sm:$0xf] }
 0x13d   : > { %v2323_v3 = vmax.bf16 %v1511_v21, %v3991_v27  ;;  %v1513_v38 = vpop.permute.xlu1 %1512  ;;  %v3142_v27 = vld [vmem:[%s3337_s12 + $0x4c8] sm:$0xf] }
 0x13e   : > { %1626 = vrot.lane.b32.xlu0 %v4529_v23, %s3312_s13  ;;  %v2324_v29 = vmax.bf16 %v1513_v38, %v3997_v58  ;;  %v4567_v49 = vmax.bf16 %v3142_v27, %v277_v22  ;;  %v279_v38 = vld [vmem:[%s3337_s12 + $0x4d0] sm:$0xf] }
 0x13f   : > { %v2653_v7 = vsel %vm3758_vm3, %v2323_v3, %v2652_v19  ;;  %1628 = vrot.lane.b32.xlu1 %v4535_v41, %s3312_s13  ;;  %v4573_v3 = vmax.bf16 %v3143_v14, %v278_v34 }
 0x140   : > { %2654 = vst [vmem:[%s3701_s17 + $0x168] sm:$0x3] %v2653_v7  ;;  %2655 = vst.msk [vmem:[%s3701_s17 + $0x16c] sm:$0xf] %vm2534_vm0, %v2324_v29  ;;  %v1515_v58 = vpop.permute.xlu0 %1514  ;;  %v3145_v7 = vld [vmem:[%s3337_s12 + $0x4f0] sm:$0xf] }
 0x141   : > { %v2325_v19 = vmax.bf16 %v1515_v58, %v4009_v37  ;;  %v1517_v21 = vpop.permute.xlu1 %1516  ;;  %v3144_v37 = vld [vmem:[%s3337_s12 + $0x4ec] sm:$0xf] }
 0x142   : > { %1630 = vrot.lane.b32.xlu0 %v4548_v28, %s3312_s13  ;;  %v2326_v8 = vmax.bf16 %v1517_v21, %v4015_v0  ;;  %v280_v0 = vld [vmem:[%s3337_s12 + $0x4d4] sm:$0xf]  ;;  %v4585_v34 = vmax.bf16 %v3144_v37, %v279_v38  ;;  %v2661_v37 = vld [vmem:[%s3701_s17 + $0x184] sm:$0x3] }
 0x143   : > { %2656 = vst.msk [vmem:[%s3701_s17 + $0x170] sm:$0xf] %vm2534_vm0, %v2325_v19  ;;  %1632 = vrot.lane.b32.xlu1 %v4554_v40, %s3312_s13  ;;  %v4591_v14 = vmax.bf16 %v3145_v7, %v280_v0  ;;  %v281_v19 = vld [vmem:[%s3337_s12 + $0x4d8] sm:$0xf] }
 0x144   : > { %2657 = vst.msk [vmem:[%s3701_s17 + $0x174] sm:$0xf] %vm2534_vm0, %v2326_v8  ;;  %v1519_v29 = vpop.permute.xlu0 %1518  ;;  %v282_v8 = vld [vmem:[%s3337_s12 + $0x4dc] sm:$0xf] }
 0x145   : > { %v2327_v22 = vmax.bf16 %v1519_v29, %v4028_v59  ;;  %v1521_v27 = vpop.permute.xlu1 %1520  ;;  %v3146_v59 = vld [vmem:[%s3337_s12 + $0x4f4] sm:$0xf] }
 0x146   : > { %1634 = vrot.lane.b32.xlu0 %v4567_v49, %s3312_s13  ;;  %v2328_v58 = vmax.bf16 %v1521_v27, %v4034_v36  ;;  %v3147_v36 = vld [vmem:[%s3337_s12 + $0x4f8] sm:$0xf]  ;;  %v4604_v7 = vmax.bf16 %v3146_v59, %v281_v19  ;;  %v283_v27 = vld [vmem:[%s3337_s12 + $0x4e0] sm:$0xf] }
 0x147   : > { %2658 = vst.msk [vmem:[%s3701_s17 + $0x178] sm:$0xf] %vm2534_vm0, %v2327_v22  ;;  %1636 = vrot.lane.b32.xlu1 %v4573_v3, %s3312_s13  ;;  %v4610_v22 = vmax.bf16 %v3147_v36, %v282_v8  ;;  %v3149_v19 = vld [vmem:[%s3337_s12 + $0x500] sm:$0xf] }
 0x148   : > { %2659 = vst.msk [vmem:[%s3701_s17 + $0x17c] sm:$0xf] %vm2534_vm0, %v2328_v58  ;;  %v1523_v21 = vpop.permute.xlu0 %1522 }
 0x149   : > { %v2329_v38 = vmax.bf16 %v1523_v21, %v4047_v18  ;;  %v1525_v29 = vpop.permute.xlu1 %1524  ;;  %v3148_v18 = vld [vmem:[%s3337_s12 + $0x4fc] sm:$0xf] }
 0x14a   : > { %1638 = vrot.lane.b32.xlu0 %v4585_v34, %s3312_s13  ;;  %v2330_v0 = vmax.bf16 %v1525_v29, %v4053_v44  ;;  %v284_v44 = vld [vmem:[%s3337_s12 + $0x4e4] sm:$0xf]  ;;  %v4623_v36 = vmax.bf16 %v3148_v18, %v283_v27  ;;  %v285_v29 = vld [vmem:[%s3337_s12 + $0x4e8] sm:$0x3] }
 0x14b   : > { %2660 = vst.msk [vmem:[%s3701_s17 + $0x180] sm:$0xf] %vm2534_vm0, %v2329_v38  ;;  %1640 = vrot.lane.b32.xlu1 %v4591_v14, %s3312_s13  ;;  %v3151_v27 = vld [vmem:[%s3337_s12 + $0x524] sm:$0xf] }
 0x14c   : > { %v2662_v58 = vsel %vm3758_vm3, %v2330_v0, %v2661_v37  ;;  %v1527_v21 = vpop.permute.xlu0 %1526  ;;  %v4629_v37 = vmax.bf16 %v3149_v19, %v284_v44 }
 0x14d   : > { %2663 = vst [vmem:[%s3701_s17 + $0x184] sm:$0x3] %v2662_v58  ;;  %v2331_v59 = vmax.bf16 %v1527_v21, %v4065_v26  ;;  %v1529_v38 = vpop.permute.xlu1 %1528  ;;  %v3150_v26 = vld [vmem:[%s3337_s12 + $0x504] sm:$0x3] }
 0x14e   : > { %1642 = vrot.lane.b32.xlu0 %v4604_v7, %s3312_s13  ;;  %v2332_v8 = vmax.bf16 %v1529_v38, %v4071_v1  ;;  %v286_v1 = vld [vmem:[%s3337_s12 + $0x508] sm:$0xf]  ;;  %v4641_v44 = vmax.bf16 %v3150_v26, %v285_v29 }
 0x14f   : > { %2664 = vst.msk [vmem:[%s3701_s17 + $0x188] sm:$0xf] %vm2534_vm0, %v2331_v59  ;;  %1644 = vrot.lane.b32.xlu1 %v4610_v22, %s3312_s13  ;;  %v4647_v19 = vmax.bf16 %v3151_v27, %v286_v1  ;;  %v287_v59 = vld [vmem:[%s3337_s12 + $0x50c] sm:$0xf] }
 0x150   : > { %2665 = vst.msk [vmem:[%s3701_s17 + $0x18c] sm:$0xf] %vm2534_vm0, %v2332_v8  ;;  %v1531_v0 = vpop.permute.xlu0 %1530  ;;  %v3153_v8 = vld [vmem:[%s3337_s12 + $0x52c] sm:$0xf] }
 0x151   : > { %v2333_v18 = vmax.bf16 %v1531_v0, %v4084_v53  ;;  %v1533_v58 = vpop.permute.xlu1 %1532  ;;  %v3152_v53 = vld [vmem:[%s3337_s12 + $0x528] sm:$0xf] }
 0x152   : > { %1646 = vrot.lane.b32.xlu0 %v4623_v36, %s3312_s13  ;;  %v2334_v21 = vmax.bf16 %v1533_v58, %v4090_v9  ;;  %v288_v9 = vld [vmem:[%s3337_s12 + $0x510] sm:$0xf]  ;;  %v4659_v1 = vmax.bf16 %v3152_v53, %v287_v59  ;;  %v3155_v59 = vld [vmem:[%s3337_s12 + $0x534] sm:$0xf] }
 0x153   : > { %2666 = vst.msk [vmem:[%s3701_s17 + $0x190] sm:$0xf] %vm2534_vm0, %v2333_v18  ;;  %1648 = vrot.lane.b32.xlu1 %v4629_v37, %s3312_s13  ;;  %v4665_v27 = vmax.bf16 %v3153_v8, %v288_v9  ;;  %v289_v18 = vld [vmem:[%s3337_s12 + $0x514] sm:$0xf]  ;;  %v3154_v58 = vld [vmem:[%s3337_s12 + $0x530] sm:$0xf] }
 0x154   : > { %2667 = vst.msk [vmem:[%s3701_s17 + $0x194] sm:$0xf] %vm2534_vm0, %v2334_v21  ;;  %v1535_v38 = vpop.permute.xlu0 %1534  ;;  %v4678_v8 = vmax.bf16 %v3154_v58, %v289_v18  ;;  %v292_v18 = vld [vmem:[%s3337_s12 + $0x520] sm:$0x3]  ;;  %v3157_v58 = vld [vmem:[%s3337_s12 + $0x53c] sm:$0x3] }
 0x155   : > { %v2335_v29 = vmax.bf16 %v1535_v38, %v4103_v25  ;;  %v1537_v26 = vpop.permute.xlu1 %1536  ;;  %v2670_v25 = vld [vmem:[%s3701_s17 + $0x1a0] sm:$0x3] }
 0x156   : > { %1650 = vrot.lane.b32.xlu0 %v4641_v44, %s3312_s13  ;;  %v2336_v0 = vmax.bf16 %v1537_v26, %v4109_v12  ;;  %v290_v12 = vld [vmem:[%s3337_s12 + $0x518] sm:$0xf] }
 0x157   : > { %2668 = vst.msk [vmem:[%s3701_s17 + $0x198] sm:$0xf] %vm2534_vm0, %v2335_v29  ;;  %1652 = vrot.lane.b32.xlu1 %v4647_v19, %s3312_s13  ;;  %v4684_v26 = vmax.bf16 %v3155_v59, %v290_v12 }
 0x158   : > { %2669 = vst.msk [vmem:[%s3701_s17 + $0x19c] sm:$0xf] %vm2534_vm0, %v2336_v0  ;;  %v1539_v21 = vpop.permute.xlu0 %1538  ;;  %v291_v0 = vld [vmem:[%s3337_s12 + $0x51c] sm:$0xf] }
 0x159   : > { %v2337_v53 = vmax.bf16 %v1539_v21, %v4121_v39  ;;  %v1541_v38 = vpop.permute.xlu1 %1540  ;;  %6231 = vst [vmem:[#allocation9_spill] sm:$0xff] %v4684_v26  ;;  %v3156_v39 = vld [vmem:[%s3337_s12 + $0x538] sm:$0xf] }
 0x15a   : > { %1654 = vrot.lane.b32.xlu0 %v4659_v1, %s3312_s13  ;;  %v2338_v9 = vmax.bf16 %v1541_v38, %v4127_v54  ;;  %v4697_v59 = vmax.bf16 %v3156_v39, %v291_v0  ;;  %v293_v38 = vld [vmem:[%s3337_s12 + $0x540] sm:$0xf]  ;;  %v6234_v0 = vld [vmem:[#allocation12_spill] sm:$0xff] }
 0x15b   : > { %v2671_v29 = vsel %vm3758_vm3, %v2337_v53, %v2670_v25  ;;  %1656 = vrot.lane.b32.xlu1 %v4665_v27, %s3312_s13  ;;  %v4703_v53 = vmax.bf16 %v3157_v58, %v292_v18  ;;  %v6235_v18 = vld [vmem:[#allocation13_spill] sm:$0xff] }
 0x15c   : > { %2672 = vst [vmem:[%s3701_s17 + $0x1a0] sm:$0x3] %v2671_v29  ;;  %2673 = vst.msk [vmem:[%s3701_s17 + $0x1a4] sm:$0xf] %vm2534_vm0, %v2338_v9  ;;  %v1543_v54 = vpop.permute.xlu0 %1542  ;;  %v3159_v29 = vld [vmem:[%s3337_s12 + $0x560] sm:$0xf] }
 0x15d   : > { %v2339_v25 = vmax.bf16 %v1543_v54, %v4139_v51  ;;  %v1545_v21 = vpop.permute.xlu1 %1544  ;;  %6232 = vst [vmem:[#allocation10_spill] sm:$0xff] %v4697_v59  ;;  %6233 = vst [vmem:[#allocation11_spill] sm:$0xff] %v4703_v53  ;;  %v3158_v51 = vld [vmem:[%s3337_s12 + $0x55c] sm:$0xf] }
 0x15e   : > { %1658 = vrot.lane.b32.xlu0 %v4678_v8, %s3312_s13  ;;  %v2340_v12 = vmax.bf16 %v1545_v21, %v4145_v62  ;;  %v294_v62 = vld [vmem:[%s3337_s12 + $0x544] sm:$0xf] }
 0x15f   : > { %2674 = vst.msk [vmem:[%s3701_s17 + $0x1a8] sm:$0xf] %vm2534_vm0, %v2339_v25  ;;  %1660 = vrot.lane.b32.xlu1 %v4684_v26, %s3312_s13  ;;  %v4715_v25 = vmax.bf16 %v3158_v51, %v293_v38  ;;  %v4721_v21 = vmax.bf16 %v3159_v29, %v294_v62  ;;  %v3161_v38 = vld [vmem:[%s3337_s12 + $0x568] sm:$0xf]  ;;  %v6238_v51 = vld [vmem:[#allocation2_spill] sm:$0xff] }
 0x160   : > { %2675 = vst.msk [vmem:[%s3701_s17 + $0x1ac] sm:$0xf] %vm2534_vm0, %v2340_v12  ;;  %v1547_v9 = vpop.permute.xlu0 %1546  ;;  %v295_v12 = vld [vmem:[%s3337_s12 + $0x548] sm:$0xf]  ;;  %v6239_v62 = vld [vmem:[#allocation14_spill] sm:$0xff] }
 0x161   : > { %v2341_v39 = vmax.bf16 %v1547_v9, %v6234_v0  ;;  %v1549_v54 = vpop.permute.xlu1 %1548  ;;  %6236 = vst [vmem:[#allocation12_spill] sm:$0xff] %v4715_v25  ;;  %6237 = vst [vmem:[#allocation13_spill] sm:$0xff] %v4721_v21  ;;  %v3160_v9 = vld [vmem:[%s3337_s12 + $0x564] sm:$0xf]  ;;  %v297_v26 = vld [vmem:[%s3337_s12 + $0x550] sm:$0xf] }
 0x162   : > { %1662 = vrot.lane.b32.xlu0 %v4697_v59, %s3312_s13  ;;  %v2342_v58 = vmax.bf16 %v1549_v54, %v6235_v18  ;;  %v296_v59 = vld [vmem:[%s3337_s12 + $0x54c] sm:$0xf] }
 0x163   : > { %2676 = vst.msk [vmem:[%s3701_s17 + $0x1b0] sm:$0xf] %vm2534_vm0, %v2341_v39  ;;  %1664 = vrot.lane.b32.xlu1 %v4703_v53, %s3312_s13  ;;  %v2679_v39 = vld [vmem:[%s3701_s17 + $0x1bc] sm:$0x3]  ;;  %v4734_v53 = vmax.bf16 %v3160_v9, %v295_v12  ;;  %v298_v12 = vld [vmem:[%s3337_s12 + $0x554] sm:$0xf] }
 0x164   : > { %2677 = vst.msk [vmem:[%s3701_s17 + $0x1b4] sm:$0xf] %vm2534_vm0, %v2342_v58  ;;  %v1551_v0 = vpop.permute.xlu0 %1550  ;;  %v4740_v58 = vmax.bf16 %v3161_v38, %v296_v59  ;;  %v3163_v9 = vld [vmem:[%s3337_s12 + $0x570] sm:$0xf] }
 0x165   : > { %v2343_v54 = vmax.bf16 %v1551_v0, %v6238_v51  ;;  %v1553_v18 = vpop.permute.xlu1 %1552  ;;  %v3162_v0 = vld [vmem:[%s3337_s12 + $0x56c] sm:$0xf]  ;;  %v6242_v59 = vld [vmem:[#allocation4_spill] sm:$0xff] }
 0x166   : > { %1666 = vrot.lane.b32.xlu0 %v4715_v25, %s3312_s13  ;;  %v2344_v29 = vmax.bf16 %v1553_v18, %v6239_v62  ;;  %6240 = vst [vmem:[#allocation2_spill] sm:$0xff] %v4740_v58 }
 0x167   : > { %2678 = vst.msk [vmem:[%s3701_s17 + $0x1b8] sm:$0xf] %vm2534_vm0, %v2343_v54  ;;  %1668 = vrot.lane.b32.xlu1 %v4721_v21, %s3312_s13  ;;  %v6241_v54 = vld [vmem:[#allocation3_spill] sm:$0xff]  ;;  %v4753_v21 = vmax.bf16 %v3162_v0, %v297_v26  ;;  %v3165_v26 = vld [vmem:[%s3337_s12 + $0x594] sm:$0xf] }
 0x168   : > { %v2680_v51 = vsel %vm3758_vm3, %v2344_v29, %v2679_v39  ;;  %v1555_v25 = vpop.permute.xlu0 %1554  ;;  %v4759_v39 = vmax.bf16 %v3163_v9, %v298_v12  ;;  %v299_v29 = vld [vmem:[%s3337_s12 + $0x558] sm:$0x3] }
 0x169   : > { %2681 = vst [vmem:[%s3701_s17 + $0x1bc] sm:$0x3] %v2680_v51  ;;  %v2345_v18 = vmax.bf16 %v1555_v25, %v6241_v54  ;;  %v1557_v62 = vpop.permute.xlu1 %1556  ;;  %6243 = vst [vmem:[#allocation14_spill] sm:$0xff] %v4753_v21  ;;  %v3164_v25 = vld [vmem:[%s3337_s12 + $0x574] sm:$0x3] }
 0x16a   : > { %1670 = vrot.lane.b32.xlu0 %v4734_v53, %s3312_s13  ;;  %v2346_v38 = vmax.bf16 %v1557_v62, %v6242_v59  ;;  %6244 = vst [vmem:[#allocation3_spill] sm:$0xff] %v4759_v39  ;;  %v300_v54 = vld [vmem:[%s3337_s12 + $0x578] sm:$0xf]  ;;  %v4771_v9 = vmax.bf16 %v3164_v25, %v299_v29  ;;  %v301_v59 = vld [vmem:[%s3337_s12 + $0x57c] sm:$0xf] }
 0x16b   : > { %2682 = vst.msk [vmem:[%s3701_s17 + $0x1c0] sm:$0xf] %vm2534_vm0, %v2345_v18  ;;  %1672 = vrot.lane.b32.xlu1 %v4740_v58, %s3312_s13  ;;  %v4777_v62 = vmax.bf16 %v3165_v26, %v300_v54  ;;  %v3167_v29 = vld [vmem:[%s3337_s12 + $0x59c] sm:$0xf]  ;;  %v6248_v54 = vld [vmem:[#allocation6_spill] sm:$0xff] }
 0x16c   : > { %2683 = vst.msk [vmem:[%s3701_s17 + $0x1c4] sm:$0xf] %vm2534_vm0, %v2346_v38  ;;  %v1559_v51 = vpop.permute.xlu0 %1558  ;;  %6245 = vst [vmem:[#allocation4_spill] sm:$0xff] %v4771_v9  ;;  %v6247_v25 = vld [vmem:[#allocation5_spill] sm:$0xff]  ;;  %v305_v58 = vld [vmem:[%s3337_s12 + $0x58c] sm:$0xf] }
 0x16d   : > { %v2347_v0 = vmax.bf16 %v1559_v51, %v4214_v56  ;;  %v1561_v18 = vpop.permute.xlu1 %1560  ;;  %6246 = vst [vmem:[#allocation15_spill] sm:$0xff] %v4777_v62  ;;  %v3166_v56 = vld [vmem:[%s3337_s12 + $0x598] sm:$0xf] }
 0x16e   : > { %1674 = vrot.lane.b32.xlu0 %v4753_v21, %s3312_s13  ;;  %v2348_v12 = vmax.bf16 %v1561_v18, %v4220_v63  ;;  %v302_v63 = vld [vmem:[%s3337_s12 + $0x580] sm:$0xf]  ;;  %v4789_v18 = vmax.bf16 %v3166_v56, %v301_v59  ;;  %v304_v59 = vld [vmem:[%s3337_s12 + $0x588] sm:$0xf]  ;;  %v3169_v56 = vld [vmem:[%s3337_s12 + $0x5a4] sm:$0xf] }
 0x16f   : > { %2684 = vst.msk [vmem:[%s3701_s17 + $0x1c8] sm:$0xf] %vm2534_vm0, %v2347_v0  ;;  %1676 = vrot.lane.b32.xlu1 %v4759_v39, %s3312_s13  ;;  %v303_v39 = vld [vmem:[%s3337_s12 + $0x584] sm:$0xf]  ;;  %v3168_v21 = vld [vmem:[%s3337_s12 + $0x5a0] sm:$0xf] }
 0x170   : > { %2685 = vst.msk [vmem:[%s3701_s17 + $0x1cc] sm:$0xf] %vm2534_vm0, %v2348_v12  ;;  %v1563_v38 = vpop.permute.xlu0 %1562  ;;  %v4795_v12 = vmax.bf16 %v3167_v29, %v302_v63  ;;  %v6250_v63 = vld [vmem:[#allocation8_spill] sm:$0xff] }
 0x171   : > { %v2349_v51 = vmax.bf16 %v1563_v38, %v6247_v25  ;;  %v1565_v0 = vpop.permute.xlu1 %1564  ;;  %v2688_v38 = vld [vmem:[%s3701_s17 + $0x1d8] sm:$0x3] }
 0x172   : > { %1678 = vrot.lane.b32.xlu0 %v4771_v9, %s3312_s13  ;;  %v2350_v26 = vmax.bf16 %v1565_v0, %v6248_v54  ;;  %v4814_v9 = vmax.bf16 %v3169_v56, %v304_v59 }
 0x173   : > { %2686 = vst.msk [vmem:[%s3701_s17 + $0x1d0] sm:$0xf] %vm2534_vm0, %v2349_v51  ;;  %1680 = vrot.lane.b32.xlu1 %v4777_v62, %s3312_s13  ;;  %v6249_v51 = vld [vmem:[#allocation7_spill] sm:$0xff]  ;;  %v4808_v62 = vmax.bf16 %v3168_v21, %v303_v39  ;;  %v306_v39 = vld [vmem:[%s3337_s12 + $0x590] sm:$0x3] }
 0x174   : > { %2687 = vst.msk [vmem:[%s3701_s17 + $0x1d4] sm:$0xf] %vm2534_vm0, %v2350_v26  ;;  %v1567_v25 = vpop.permute.xlu0 %1566 }
 0x175   : > { %v2351_v0 = vmax.bf16 %v1567_v25, %v6249_v51  ;;  %v1569_v54 = vpop.permute.xlu1 %1568  ;;  %v3170_v25 = vld [vmem:[%s3337_s12 + $0x5a8] sm:$0xf]  ;;  %v3171_v51 = vld [vmem:[%s3337_s12 + $0x5ac] sm:$0x3] }
 0x176   : > { %1682 = vrot.lane.b32.xlu0 %v4789_v18, %s3312_s13  ;;  %v2352_v29 = vmax.bf16 %v1569_v54, %v6250_v63  ;;  %v4827_v56 = vmax.bf16 %v3170_v25, %v305_v58  ;;  %v4833_v54 = vmax.bf16 %v3171_v51, %v306_v39  ;;  %v307_v63 = vld [vmem:[%s3337_s12 + $0x5b0] sm:$0xf] }
 0x177   : > { %v2689_v26 = vsel %vm3758_vm3, %v2351_v0, %v2688_v38  ;;  %1684 = vrot.lane.b32.xlu1 %v4795_v12, %s3312_s13  ;;  %v3173_v58 = vld [vmem:[%s3337_s12 + $0x5d0] sm:$0xf] }
 0x178   : > { %2690 = vst [vmem:[%s3701_s17 + $0x1d8] sm:$0x3] %v2689_v26  ;;  %2691 = vst.msk [vmem:[%s3701_s17 + $0x1dc] sm:$0xf] %vm2534_vm0, %v2352_v29  ;;  %v1571_v21 = vpop.permute.xlu0 %1570 }
 0x179   : > { %v2353_v38 = vmax.bf16 %v1571_v21, %v4269_v55  ;;  %v1573_v0 = vpop.permute.xlu1 %1572  ;;  %v3172_v55 = vld [vmem:[%s3337_s12 + $0x5cc] sm:$0xf] }
 0x17a   : > { %1686 = vrot.lane.b32.xlu0 %v4808_v62, %s3312_s13  ;;  %v2354_v59 = vmax.bf16 %v1573_v0, %v4275_v43  ;;  %v308_v43 = vld [vmem:[%s3337_s12 + $0x5b4] sm:$0xf]  ;;  %v4845_v39 = vmax.bf16 %v3172_v55, %v307_v63 }
 0x17b   : > { %2692 = vst.msk [vmem:[%s3701_s17 + $0x1e0] sm:$0xf] %vm2534_vm0, %v2353_v38  ;;  %1688 = vrot.lane.b32.xlu1 %v4814_v9, %s3312_s13  ;;  %v4851_v51 = vmax.bf16 %v3173_v58, %v308_v43  ;;  %v309_v38 = vld [vmem:[%s3337_s12 + $0x5b8] sm:$0xf]  ;;  %v2697_v55 = vld [vmem:[%s3701_s17 + $0x1f4] sm:$0x3] }
 0x17c   : > { %2693 = vst.msk [vmem:[%s3701_s17 + $0x1e4] sm:$0xf] %vm2534_vm0, %v2354_v59  ;;  %v1575_v29 = vpop.permute.xlu0 %1574  ;;  %v310_v59 = vld [vmem:[%s3337_s12 + $0x5bc] sm:$0xf] }
 0x17d   : > { %v2355_v26 = vmax.bf16 %v1575_v29, %v4288_v2  ;;  %v1577_v25 = vpop.permute.xlu1 %1576  ;;  %v3174_v2 = vld [vmem:[%s3337_s12 + $0x5d4] sm:$0xf] }
 0x17e   : > { %1690 = vrot.lane.b32.xlu0 %v4827_v56, %s3312_s13  ;;  %v2356_v21 = vmax.bf16 %v1577_v25, %v4294_v45  ;;  %v3175_v45 = vld [vmem:[%s3337_s12 + $0x5d8] sm:$0xf]  ;;  %v4864_v58 = vmax.bf16 %v3174_v2, %v309_v38  ;;  %v311_v25 = vld [vmem:[%s3337_s12 + $0x5c0] sm:$0xf] }
 0x17f   : > { %2694 = vst.msk [vmem:[%s3701_s17 + $0x1e8] sm:$0xf] %vm2534_vm0, %v2355_v26  ;;  %1692 = vrot.lane.b32.xlu1 %v4833_v54, %s3312_s13  ;;  %v4870_v26 = vmax.bf16 %v3175_v45, %v310_v59  ;;  %v3177_v38 = vld [vmem:[%s3337_s12 + $0x5e0] sm:$0xf] }
 0x180   : > { %2695 = vst.msk [vmem:[%s3701_s17 + $0x1ec] sm:$0xf] %vm2534_vm0, %v2356_v21  ;;  %v1579_v0 = vpop.permute.xlu0 %1578 }
 0x181   : > { %v2357_v63 = vmax.bf16 %v1579_v0, %v4307_v4  ;;  %v1581_v29 = vpop.permute.xlu1 %1580  ;;  %v3176_v4 = vld [vmem:[%s3337_s12 + $0x5dc] sm:$0xf] }
 0x182   : > { %1694 = vrot.lane.b32.xlu0 %v4845_v39, %s3312_s13  ;;  %v2358_v43 = vmax.bf16 %v1581_v29, %v4313_v42  ;;  %v312_v42 = vld [vmem:[%s3337_s12 + $0x5c4] sm:$0xf]  ;;  %v4883_v45 = vmax.bf16 %v3176_v4, %v311_v25  ;;  %v313_v29 = vld [vmem:[%s3337_s12 + $0x5c8] sm:$0x3] }
 0x183   : > { %2696 = vst.msk [vmem:[%s3701_s17 + $0x1f0] sm:$0xf] %vm2534_vm0, %v2357_v63  ;;  %1696 = vrot.lane.b32.xlu1 %v4851_v51, %s3312_s13  ;;  %v3179_v25 = vld [vmem:[%s3337_s12 + $0x604] sm:$0xf] }
 0x184   : > { %v2698_v21 = vsel %vm3758_vm3, %v2358_v43, %v2697_v55  ;;  %v1583_v0 = vpop.permute.xlu0 %1582  ;;  %v4889_v55 = vmax.bf16 %v3177_v38, %v312_v42 }
 0x185   : > { %2699 = vst [vmem:[%s3701_s17 + $0x1f4] sm:$0x3] %v2698_v21  ;;  %v2359_v2 = vmax.bf16 %v1583_v0, %v4325_v50  ;;  %v1585_v63 = vpop.permute.xlu1 %1584  ;;  %v3178_v50 = vld [vmem:[%s3337_s12 + $0x5e4] sm:$0x3] }
 0x186   : > { %1698 = vrot.lane.b32.xlu0 %v4864_v58, %s3312_s13  ;;  %v2360_v59 = vmax.bf16 %v1585_v63, %v4331_v30  ;;  %v314_v30 = vld [vmem:[%s3337_s12 + $0x5e8] sm:$0xf]  ;;  %v4901_v42 = vmax.bf16 %v3178_v50, %v313_v29 }
 0x187   : > { %2700 = vst.msk [vmem:[%s3701_s17 + $0x1f8] sm:$0xf] %vm2534_vm0, %v2359_v2  ;;  %1700 = vrot.lane.b32.xlu1 %v4870_v26, %s3312_s13  ;;  %v4907_v38 = vmax.bf16 %v3179_v25, %v314_v30  ;;  %v315_v2 = vld [vmem:[%s3337_s12 + $0x5ec] sm:$0xf] }
 0x188   : > { %2701 = vst.msk [vmem:[%s3701_s17 + $0x1fc] sm:$0xf] %vm2534_vm0, %v2360_v59  ;;  %v1587_v43 = vpop.permute.xlu0 %1586  ;;  %v3181_v59 = vld [vmem:[%s3337_s12 + $0x60c] sm:$0xf] }
 0x189   : > { %v2361_v4 = vmax.bf16 %v1587_v43, %v4344_v24  ;;  %v1589_v21 = vpop.permute.xlu1 %1588  ;;  %v3180_v24 = vld [vmem:[%s3337_s12 + $0x608] sm:$0xf] }
 0x18a   : > { %1702 = vrot.lane.b32.xlu0 %v4883_v45, %s3312_s13  ;;  %v2362_v0 = vmax.bf16 %v1589_v21, %v4350_v5  ;;  %v316_v5 = vld [vmem:[%s3337_s12 + $0x5f0] sm:$0xf]  ;;  %v4919_v30 = vmax.bf16 %v3180_v24, %v315_v2  ;;  %v3183_v2 = vld [vmem:[%s3337_s12 + $0x614] sm:$0xf] }
 0x18b   : > { %2702 = vst.msk [vmem:[%s3701_s17 + $0x200] sm:$0xf] %vm2534_vm0, %v2361_v4  ;;  %1704 = vrot.lane.b32.xlu1 %v4889_v55, %s3312_s13  ;;  %v4925_v25 = vmax.bf16 %v3181_v59, %v316_v5  ;;  %v317_v4 = vld [vmem:[%s3337_s12 + $0x5f4] sm:$0xf]  ;;  %v3182_v21 = vld [vmem:[%s3337_s12 + $0x610] sm:$0xf] }
 0x18c   : > { %2703 = vst.msk [vmem:[%s3701_s17 + $0x204] sm:$0xf] %vm2534_vm0, %v2362_v0  ;;  %v1591_v63 = vpop.permute.xlu0 %1590  ;;  %v4938_v59 = vmax.bf16 %v3182_v21, %v317_v4  ;;  %v320_v4 = vld [vmem:[%s3337_s12 + $0x600] sm:$0x3]  ;;  %v3185_v21 = vld [vmem:[%s3337_s12 + $0x61c] sm:$0x3] }
 0x18d   : > { %v2363_v29 = vmax.bf16 %v1591_v63, %v4363_v32  ;;  %v1593_v50 = vpop.permute.xlu1 %1592  ;;  %v2706_v32 = vld [vmem:[%s3701_s17 + $0x210] sm:$0x3] }
 0x18e   : > { %1706 = vrot.lane.b32.xlu0 %v4901_v42, %s3312_s13  ;;  %v2364_v43 = vmax.bf16 %v1593_v50, %v4369_v6  ;;  %v318_v6 = vld [vmem:[%s3337_s12 + $0x5f8] sm:$0xf] }
 0x18f   : > { %2704 = vst.msk [vmem:[%s3701_s17 + $0x208] sm:$0xf] %vm2534_vm0, %v2363_v29  ;;  %1708 = vrot.lane.b32.xlu1 %v4907_v38, %s3312_s13  ;;  %v4944_v50 = vmax.bf16 %v3183_v2, %v318_v6 }
 0x190   : > { %2705 = vst.msk [vmem:[%s3701_s17 + $0x20c] sm:$0xf] %vm2534_vm0, %v2364_v43  ;;  %v1595_v0 = vpop.permute.xlu0 %1594  ;;  %v319_v43 = vld [vmem:[%s3337_s12 + $0x5fc] sm:$0xf] }
 0x191   : > { %v2365_v24 = vmax.bf16 %v1595_v0, %v4381_v11  ;;  %v1597_v63 = vpop.permute.xlu1 %1596  ;;  %v3184_v11 = vld [vmem:[%s3337_s12 + $0x618] sm:$0xf] }
 0x192   : > { %1710 = vrot.lane.b32.xlu0 %v4919_v30, %s3312_s13  ;;  %v2366_v5 = vmax.bf16 %v1597_v63, %v4387_v61  ;;  %v4957_v2 = vmax.bf16 %v3184_v11, %v319_v43  ;;  %v321_v63 = vld [vmem:[%s3337_s12 + $0x620] sm:$0xf] }
 0x193   : > { %v2707_v29 = vsel %vm3758_vm3, %v2365_v24, %v2706_v32  ;;  %1712 = vrot.lane.b32.xlu1 %v4925_v25, %s3312_s13  ;;  %v4963_v24 = vmax.bf16 %v3185_v21, %v320_v4 }
 0x194   : > { %2708 = vst [vmem:[%s3701_s17 + $0x210] sm:$0x3] %v2707_v29  ;;  %2709 = vst.msk [vmem:[%s3701_s17 + $0x214] sm:$0xf] %vm2534_vm0, %v2366_v5  ;;  %v1599_v61 = vpop.permute.xlu0 %1598  ;;  %v3187_v29 = vld [vmem:[%s3337_s12 + $0x640] sm:$0xf] }
 0x195   : > { %v2367_v32 = vmax.bf16 %v1599_v61, %v4399_v33  ;;  %v1601_v0 = vpop.permute.xlu1 %1600  ;;  %v3186_v33 = vld [vmem:[%s3337_s12 + $0x63c] sm:$0xf] }
 0x196   : > { %1714 = vrot.lane.b32.xlu0 %v4938_v59, %s3312_s13  ;;  %v2368_v6 = vmax.bf16 %v1601_v0, %v4405_v60  ;;  %v322_v60 = vld [vmem:[%s3337_s12 + $0x624] sm:$0xf]  ;;  %v4975_v4 = vmax.bf16 %v3186_v33, %v321_v63  ;;  %v2715_v33 = vld [vmem:[%s3701_s17 + $0x22c] sm:$0x3] }
 0x197   : > { %2710 = vst.msk [vmem:[%s3701_s17 + $0x218] sm:$0xf] %vm2534_vm0, %v2367_v32  ;;  %1716 = vrot.lane.b32.xlu1 %v4944_v50, %s3312_s13  ;;  %v4981_v21 = vmax.bf16 %v3187_v29, %v322_v60  ;;  %v323_v32 = vld [vmem:[%s3337_s12 + $0x628] sm:$0xf] }
 0x198   : > { %2711 = vst.msk [vmem:[%s3701_s17 + $0x21c] sm:$0xf] %vm2534_vm0, %v2368_v6  ;;  %v1603_v5 = vpop.permute.xlu0 %1602  ;;  %v324_v6 = vld [vmem:[%s3337_s12 + $0x62c] sm:$0xf] }
 0x199   : > { %v2369_v43 = vmax.bf16 %v1603_v5, %v4418_v57  ;;  %v1605_v11 = vpop.permute.xlu1 %1604  ;;  %v3188_v57 = vld [vmem:[%s3337_s12 + $0x644] sm:$0xf] }
 0x19a   : > { %1718 = vrot.lane.b32.xlu0 %v4957_v2, %s3312_s13  ;;  %v2370_v61 = vmax.bf16 %v1605_v11, %v4424_v16  ;;  %v3189_v16 = vld [vmem:[%s3337_s12 + $0x648] sm:$0xf]  ;;  %v4994_v29 = vmax.bf16 %v3188_v57, %v323_v32  ;;  %v325_v11 = vld [vmem:[%s3337_s12 + $0x630] sm:$0xf] }
 0x19b   : > { %2712 = vst.msk [vmem:[%s3701_s17 + $0x220] sm:$0xf] %vm2534_vm0, %v2369_v43  ;;  %1720 = vrot.lane.b32.xlu1 %v4963_v24, %s3312_s13  ;;  %v5000_v43 = vmax.bf16 %v3189_v16, %v324_v6  ;;  %v3191_v32 = vld [vmem:[%s3337_s12 + $0x650] sm:$0xf] }
 0x19c   : > { %2713 = vst.msk [vmem:[%s3701_s17 + $0x224] sm:$0xf] %vm2534_vm0, %v2370_v61  ;;  %v1607_v0 = vpop.permute.xlu0 %1606 }
 0x19d   : > { %v2371_v63 = vmax.bf16 %v1607_v0, %v4437_v15  ;;  %v1609_v5 = vpop.permute.xlu1 %1608  ;;  %v3190_v15 = vld [vmem:[%s3337_s12 + $0x64c] sm:$0xf] }
 0x19e   : > { %1722 = vrot.lane.b32.xlu0 %v4975_v4, %s3312_s13  ;;  %v2372_v60 = vmax.bf16 %v1609_v5, %v4443_v48  ;;  %v326_v48 = vld [vmem:[%s3337_s12 + $0x634] sm:$0xf]  ;;  %v5013_v16 = vmax.bf16 %v3190_v15, %v325_v11  ;;  %v327_v5 = vld [vmem:[%s3337_s12 + $0x638] sm:$0x3] }
 0x19f   : > { %2714 = vst.msk [vmem:[%s3701_s17 + $0x228] sm:$0xf] %vm2534_vm0, %v2371_v63  ;;  %1724 = vrot.lane.b32.xlu1 %v4981_v21, %s3312_s13  ;;  %v3193_v11 = vld [vmem:[%s3337_s12 + $0x674] sm:$0xf] }
 0x1a0   : > { %v2716_v61 = vsel %vm3758_vm3, %v2372_v60, %v2715_v33  ;;  %v1611_v0 = vpop.permute.xlu0 %1610  ;;  %v5019_v33 = vmax.bf16 %v3191_v32, %v326_v48 }
 0x1a1   : > { %2717 = vst [vmem:[%s3701_s17 + $0x22c] sm:$0x3] %v2716_v61  ;;  %v2373_v57 = vmax.bf16 %v1611_v0, %v4455_v10  ;;  %v1613_v63 = vpop.permute.xlu1 %1612  ;;  %v3192_v10 = vld [vmem:[%s3337_s12 + $0x654] sm:$0x3] }
 0x1a2   : > { %1726 = vrot.lane.b32.xlu0 %v4994_v29, %s3312_s13  ;;  %v2374_v6 = vmax.bf16 %v1613_v63, %v4461_v20  ;;  %v328_v20 = vld [vmem:[%s3337_s12 + $0x658] sm:$0xf]  ;;  %v5031_v48 = vmax.bf16 %v3192_v10, %v327_v5 }
 0x1a3   : > { %2718 = vst.msk [vmem:[%s3701_s17 + $0x230] sm:$0xf] %vm2534_vm0, %v2373_v57  ;;  %1728 = vrot.lane.b32.xlu1 %v5000_v43, %s3312_s13  ;;  %v5037_v32 = vmax.bf16 %v3193_v11, %v328_v20  ;;  %v329_v57 = vld [vmem:[%s3337_s12 + $0x65c] sm:$0xf] }
 0x1a4   : > { %2719 = vst.msk [vmem:[%s3701_s17 + $0x234] sm:$0xf] %vm2534_vm0, %v2374_v6  ;;  %v1615_v60 = vpop.permute.xlu0 %1614  ;;  %v3195_v6 = vld [vmem:[%s3337_s12 + $0x67c] sm:$0xf] }
 0x1a5   : > { %v2375_v15 = vmax.bf16 %v1615_v60, %v4474_v13  ;;  %v1617_v61 = vpop.permute.xlu1 %1616  ;;  %v3194_v13 = vld [vmem:[%s3337_s12 + $0x678] sm:$0xf] }
 0x1a6   : > { %1730 = vrot.lane.b32.xlu0 %v5013_v16, %s3312_s13  ;;  %v2376_v0 = vmax.bf16 %v1617_v61, %v4480_v31  ;;  %v330_v31 = vld [vmem:[%s3337_s12 + $0x660] sm:$0xf]  ;;  %v5049_v20 = vmax.bf16 %v3194_v13, %v329_v57  ;;  %v3197_v57 = vld [vmem:[%s3337_s12 + $0x684] sm:$0xf] }
 0x1a7   : > { %2720 = vst.msk [vmem:[%s3701_s17 + $0x238] sm:$0xf] %vm2534_vm0, %v2375_v15  ;;  %1732 = vrot.lane.b32.xlu1 %v5019_v33, %s3312_s13  ;;  %v5055_v11 = vmax.bf16 %v3195_v6, %v330_v31  ;;  %v331_v15 = vld [vmem:[%s3337_s12 + $0x664] sm:$0xf]  ;;  %v3196_v61 = vld [vmem:[%s3337_s12 + $0x680] sm:$0xf] }
 0x1a8   : > { %2721 = vst.msk [vmem:[%s3701_s17 + $0x23c] sm:$0xf] %vm2534_vm0, %v2376_v0  ;;  %v1619_v63 = vpop.permute.xlu0 %1618  ;;  %v5068_v6 = vmax.bf16 %v3196_v61, %v331_v15  ;;  %v334_v15 = vld [vmem:[%s3337_s12 + $0x670] sm:$0x3]  ;;  %v3199_v61 = vld [vmem:[%s3337_s12 + $0x68c] sm:$0x3] }
 0x1a9   : > { %v2377_v5 = vmax.bf16 %v1619_v63, %v4493_v46  ;;  %v1621_v10 = vpop.permute.xlu1 %1620  ;;  %v2724_v46 = vld [vmem:[%s3701_s17 + $0x248] sm:$0x3] }
 0x1aa   : > { %1734 = vrot.lane.b32.xlu0 %v5031_v48, %s3312_s13  ;;  %v2378_v60 = vmax.bf16 %v1621_v10, %v4499_v47  ;;  %v332_v47 = vld [vmem:[%s3337_s12 + $0x668] sm:$0xf] }
 0x1ab   : > { %2722 = vst.msk [vmem:[%s3701_s17 + $0x240] sm:$0xf] %vm2534_vm0, %v2377_v5  ;;  %1736 = vrot.lane.b32.xlu1 %v5037_v32, %s3312_s13  ;;  %v5074_v10 = vmax.bf16 %v3197_v57, %v332_v47 }
 0x1ac   : > { %2723 = vst.msk [vmem:[%s3701_s17 + $0x244] sm:$0xf] %vm2534_vm0, %v2378_v60  ;;  %v1623_v0 = vpop.permute.xlu0 %1622  ;;  %v333_v60 = vld [vmem:[%s3337_s12 + $0x66c] sm:$0xf] }
 0x1ad   : > { %v2379_v13 = vmax.bf16 %v1623_v0, %v4511_v52  ;;  %v1625_v63 = vpop.permute.xlu1 %1624  ;;  %v3198_v52 = vld [vmem:[%s3337_s12 + $0x688] sm:$0xf] }
 0x1ae   : > { %1738 = vrot.lane.b32.xlu0 %v5049_v20, %s3312_s13  ;;  %v2380_v31 = vmax.bf16 %v1625_v63, %v4517_v35  ;;  %v5087_v57 = vmax.bf16 %v3198_v52, %v333_v60  ;;  %v335_v63 = vld [vmem:[%s3337_s12 + $0x690] sm:$0xf] }
 0x1af   : > { %v2725_v5 = vsel %vm3758_vm3, %v2379_v13, %v2724_v46  ;;  %1740 = vrot.lane.b32.xlu1 %v5055_v11, %s3312_s13  ;;  %v5093_v13 = vmax.bf16 %v3199_v61, %v334_v15 }
 0x1b0   : > { %2726 = vst [vmem:[%s3701_s17 + $0x248] sm:$0x3] %v2725_v5  ;;  %2727 = vst.msk [vmem:[%s3701_s17 + $0x24c] sm:$0xf] %vm2534_vm0, %v2380_v31  ;;  %v1627_v35 = vpop.permute.xlu0 %1626  ;;  %v3201_v5 = vld [vmem:[%s3337_s12 + $0x6b0] sm:$0xf] }
 0x1b1   : > { %v2381_v46 = vmax.bf16 %v1627_v35, %v4529_v23  ;;  %v1629_v0 = vpop.permute.xlu1 %1628  ;;  %v3200_v23 = vld [vmem:[%s3337_s12 + $0x6ac] sm:$0xf] }
 0x1b2   : > { %1742 = vrot.lane.b32.xlu0 %v5068_v6, %s3312_s13  ;;  %v2382_v47 = vmax.bf16 %v1629_v0, %v4535_v41  ;;  %v336_v41 = vld [vmem:[%s3337_s12 + $0x694] sm:$0xf]  ;;  %v5105_v15 = vmax.bf16 %v3200_v23, %v335_v63  ;;  %v2733_v23 = vld [vmem:[%s3701_s17 + $0x264] sm:$0x3] }
 0x1b3   : > { %2728 = vst.msk [vmem:[%s3701_s17 + $0x250] sm:$0xf] %vm2534_vm0, %v2381_v46  ;;  %1744 = vrot.lane.b32.xlu1 %v5074_v10, %s3312_s13  ;;  %v5111_v61 = vmax.bf16 %v3201_v5, %v336_v41  ;;  %v337_v46 = vld [vmem:[%s3337_s12 + $0x698] sm:$0xf] }
 0x1b4   : > { %2729 = vst.msk [vmem:[%s3701_s17 + $0x254] sm:$0xf] %vm2534_vm0, %v2382_v47  ;;  %v1631_v31 = vpop.permute.xlu0 %1630  ;;  %v338_v47 = vld [vmem:[%s3337_s12 + $0x69c] sm:$0xf] }
 0x1b5   : > { %v2383_v60 = vmax.bf16 %v1631_v31, %v4548_v28  ;;  %v1633_v52 = vpop.permute.xlu1 %1632  ;;  %v3202_v28 = vld [vmem:[%s3337_s12 + $0x6b4] sm:$0xf] }
 0x1b6   : > { %1746 = vrot.lane.b32.xlu0 %v5087_v57, %s3312_s13  ;;  %v2384_v35 = vmax.bf16 %v1633_v52, %v4554_v40  ;;  %v3203_v40 = vld [vmem:[%s3337_s12 + $0x6b8] sm:$0xf]  ;;  %v5124_v5 = vmax.bf16 %v3202_v28, %v337_v46  ;;  %v339_v52 = vld [vmem:[%s3337_s12 + $0x6a0] sm:$0xf] }
 0x1b7   : > { %2730 = vst.msk [vmem:[%s3701_s17 + $0x258] sm:$0xf] %vm2534_vm0, %v2383_v60  ;;  %1748 = vrot.lane.b32.xlu1 %v5093_v13, %s3312_s13  ;;  %v5130_v60 = vmax.bf16 %v3203_v40, %v338_v47  ;;  %v3205_v46 = vld [vmem:[%s3337_s12 + $0x6c0] sm:$0xf] }
 0x1b8   : > { %2731 = vst.msk [vmem:[%s3701_s17 + $0x25c] sm:$0xf] %vm2534_vm0, %v2384_v35  ;;  %v1635_v0 = vpop.permute.xlu0 %1634 }
 0x1b9   : > { %v2385_v63 = vmax.bf16 %v1635_v0, %v4567_v49  ;;  %v1637_v31 = vpop.permute.xlu1 %1636  ;;  %v3204_v49 = vld [vmem:[%s3337_s12 + $0x6bc] sm:$0xf] }
 0x1ba   : > { %1750 = vrot.lane.b32.xlu0 %v5105_v15, %s3312_s13  ;;  %v2386_v41 = vmax.bf16 %v1637_v31, %v4573_v3  ;;  %v340_v3 = vld [vmem:[%s3337_s12 + $0x6a4] sm:$0xf]  ;;  %v5143_v40 = vmax.bf16 %v3204_v49, %v339_v52  ;;  %v341_v31 = vld [vmem:[%s3337_s12 + $0x6a8] sm:$0x3] }
 0x1bb   : > { %2732 = vst.msk [vmem:[%s3701_s17 + $0x260] sm:$0xf] %vm2534_vm0, %v2385_v63  ;;  %1752 = vrot.lane.b32.xlu1 %v5111_v61, %s3312_s13  ;;  %v3207_v52 = vld [vmem:[%s3337_s12 + $0x6e4] sm:$0xf] }
 0x1bc   : > { %v2734_v35 = vsel %vm3758_vm3, %v2386_v41, %v2733_v23  ;;  %v1639_v0 = vpop.permute.xlu0 %1638  ;;  %v5149_v23 = vmax.bf16 %v3205_v46, %v340_v3 }
 0x1bd   : > { %2735 = vst [vmem:[%s3701_s17 + $0x264] sm:$0x3] %v2734_v35  ;;  %v2387_v28 = vmax.bf16 %v1639_v0, %v4585_v34  ;;  %v1641_v63 = vpop.permute.xlu1 %1640  ;;  %v3206_v34 = vld [vmem:[%s3337_s12 + $0x6c4] sm:$0x3] }
 0x1be   : > { %1754 = vrot.lane.b32.xlu0 %v5124_v5, %s3312_s13  ;;  %v2388_v47 = vmax.bf16 %v1641_v63, %v4591_v14  ;;  %v342_v14 = vld [vmem:[%s3337_s12 + $0x6c8] sm:$0xf]  ;;  %v5161_v3 = vmax.bf16 %v3206_v34, %v341_v31 }
 0x1bf   : > { %2736 = vst.msk [vmem:[%s3701_s17 + $0x268] sm:$0xf] %vm2534_vm0, %v2387_v28  ;;  %1756 = vrot.lane.b32.xlu1 %v5130_v60, %s3312_s13  ;;  %v5167_v46 = vmax.bf16 %v3207_v52, %v342_v14  ;;  %v343_v28 = vld [vmem:[%s3337_s12 + $0x6cc] sm:$0xf] }
 0x1c0   : > { %2737 = vst.msk [vmem:[%s3701_s17 + $0x26c] sm:$0xf] %vm2534_vm0, %v2388_v47  ;;  %v1643_v41 = vpop.permute.xlu0 %1642  ;;  %v3209_v47 = vld [vmem:[%s3337_s12 + $0x6ec] sm:$0xf] }
 0x1c1   : > { %v2389_v49 = vmax.bf16 %v1643_v41, %v4604_v7  ;;  %v1645_v35 = vpop.permute.xlu1 %1644  ;;  %v3208_v7 = vld [vmem:[%s3337_s12 + $0x6e8] sm:$0xf] }
 0x1c2   : > { %1758 = vrot.lane.b32.xlu0 %v5143_v40, %s3312_s13  ;;  %v2390_v0 = vmax.bf16 %v1645_v35, %v4610_v22  ;;  %v344_v22 = vld [vmem:[%s3337_s12 + $0x6d0] sm:$0xf]  ;;  %v5179_v14 = vmax.bf16 %v3208_v7, %v343_v28  ;;  %v3211_v28 = vld [vmem:[%s3337_s12 + $0x6f4] sm:$0xf] }
 0x1c3   : > { %2738 = vst.msk [vmem:[%s3701_s17 + $0x270] sm:$0xf] %vm2534_vm0, %v2389_v49  ;;  %1760 = vrot.lane.b32.xlu1 %v5149_v23, %s3312_s13  ;;  %v5185_v52 = vmax.bf16 %v3209_v47, %v344_v22  ;;  %v345_v49 = vld [vmem:[%s3337_s12 + $0x6d4] sm:$0xf]  ;;  %v3210_v35 = vld [vmem:[%s3337_s12 + $0x6f0] sm:$0xf] }
 0x1c4   : > { %2739 = vst.msk [vmem:[%s3701_s17 + $0x274] sm:$0xf] %vm2534_vm0, %v2390_v0  ;;  %v1647_v63 = vpop.permute.xlu0 %1646  ;;  %v5198_v47 = vmax.bf16 %v3210_v35, %v345_v49  ;;  %v348_v49 = vld [vmem:[%s3337_s12 + $0x6e0] sm:$0x3]  ;;  %v3213_v35 = vld [vmem:[%s3337_s12 + $0x6fc] sm:$0x3] }
 0x1c5   : > { %v2391_v31 = vmax.bf16 %v1647_v63, %v4623_v36  ;;  %v1649_v34 = vpop.permute.xlu1 %1648  ;;  %v2742_v36 = vld [vmem:[%s3701_s17 + $0x280] sm:$0x3] }
 0x1c6   : > { %1762 = vrot.lane.b32.xlu0 %v5161_v3, %s3312_s13  ;;  %v2392_v41 = vmax.bf16 %v1649_v34, %v4629_v37  ;;  %v346_v37 = vld [vmem:[%s3337_s12 + $0x6d8] sm:$0xf] }
 0x1c7   : > { %2740 = vst.msk [vmem:[%s3701_s17 + $0x278] sm:$0xf] %vm2534_vm0, %v2391_v31  ;;  %1764 = vrot.lane.b32.xlu1 %v5167_v46, %s3312_s13  ;;  %v5204_v34 = vmax.bf16 %v3211_v28, %v346_v37 }
 0x1c8   : > { %2741 = vst.msk [vmem:[%s3701_s17 + $0x27c] sm:$0xf] %vm2534_vm0, %v2392_v41  ;;  %v1651_v0 = vpop.permute.xlu0 %1650  ;;  %v347_v41 = vld [vmem:[%s3337_s12 + $0x6dc] sm:$0xf] }
 0x1c9   : > { %v2393_v7 = vmax.bf16 %v1651_v0, %v4641_v44  ;;  %v1653_v63 = vpop.permute.xlu1 %1652  ;;  %v3212_v44 = vld [vmem:[%s3337_s12 + $0x6f8] sm:$0xf] }
 0x1ca   : > { %1766 = vrot.lane.b32.xlu0 %v5179_v14, %s3312_s13  ;;  %v2394_v22 = vmax.bf16 %v1653_v63, %v4647_v19  ;;  %v5217_v28 = vmax.bf16 %v3212_v44, %v347_v41  ;;  %v349_v63 = vld [vmem:[%s3337_s12 + $0x700] sm:$0xf] }
 0x1cb   : > { %v2743_v31 = vsel %vm3758_vm3, %v2393_v7, %v2742_v36  ;;  %1768 = vrot.lane.b32.xlu1 %v5185_v52, %s3312_s13  ;;  %v5223_v7 = vmax.bf16 %v3213_v35, %v348_v49 }
 0x1cc   : > { %2744 = vst [vmem:[%s3701_s17 + $0x280] sm:$0x3] %v2743_v31  ;;  %2745 = vst.msk [vmem:[%s3701_s17 + $0x284] sm:$0xf] %vm2534_vm0, %v2394_v22  ;;  %v1655_v19 = vpop.permute.xlu0 %1654  ;;  %v3215_v31 = vld [vmem:[%s3337_s12 + $0x720] sm:$0xf] }
 0x1cd   : > { %v2395_v36 = vmax.bf16 %v1655_v19, %v4659_v1  ;;  %v1657_v0 = vpop.permute.xlu1 %1656  ;;  %6251 = vst [vmem:[#allocation5_spill] sm:$0xff] %v5217_v28  ;;  %6252 = vst [vmem:[#allocation6_spill] sm:$0xff] %v5223_v7  ;;  %v3214_v1 = vld [vmem:[%s3337_s12 + $0x71c] sm:$0xf] }
 0x1ce   : > { %1770 = vrot.lane.b32.xlu0 %v5198_v47, %s3312_s13  ;;  %v2396_v37 = vmax.bf16 %v1657_v0, %v4665_v27  ;;  %v350_v27 = vld [vmem:[%s3337_s12 + $0x704] sm:$0xf]  ;;  %v6253_v19 = vld [vmem:[#allocation9_spill] sm:$0xff]  ;;  %v5235_v35 = vmax.bf16 %v3214_v1, %v349_v63  ;;  %v351_v0 = vld [vmem:[%s3337_s12 + $0x708] sm:$0xf] }
 0x1cf   : > { %2746 = vst.msk [vmem:[%s3701_s17 + $0x288] sm:$0xf] %vm2534_vm0, %v2395_v36  ;;  %1772 = vrot.lane.b32.xlu1 %v5204_v34, %s3312_s13  ;;  %v5241_v36 = vmax.bf16 %v3215_v31, %v350_v27  ;;  %v3217_v63 = vld [vmem:[%s3337_s12 + $0x728] sm:$0xf]  ;;  %v6256_v1 = vld [vmem:[#allocation10_spill] sm:$0xff] }
 0x1d0   : > { %2747 = vst.msk [vmem:[%s3701_s17 + $0x28c] sm:$0xf] %vm2534_vm0, %v2396_v37  ;;  %v1659_v22 = vpop.permute.xlu0 %1658  ;;  %6254 = vst [vmem:[#allocation7_spill] sm:$0xff] %v5235_v35  ;;  %v6257_v27 = vld [vmem:[#allocation11_spill] sm:$0xff] }
 0x1d1   : > { %v2397_v41 = vmax.bf16 %v1659_v22, %v4678_v8  ;;  %v1661_v44 = vpop.permute.xlu1 %1660  ;;  %6255 = vst [vmem:[#allocation8_spill] sm:$0xff] %v5241_v36  ;;  %v3216_v8 = vld [vmem:[%s3337_s12 + $0x724] sm:$0xf]  ;;  %v352_v22 = vld [vmem:[%s3337_s12 + $0x70c] sm:$0xf] }
 0x1d2   : > { %1774 = vrot.lane.b32.xlu0 %v5217_v28, %s3312_s13  ;;  %v2398_v49 = vmax.bf16 %v1661_v44, %v6253_v19  ;;  %v353_v28 = vld [vmem:[%s3337_s12 + $0x710] sm:$0xf] }
 0x1d3   : > { %2748 = vst.msk [vmem:[%s3701_s17 + $0x290] sm:$0xf] %vm2534_vm0, %v2397_v41  ;;  %1776 = vrot.lane.b32.xlu1 %v5223_v7, %s3312_s13  ;;  %v2751_v41 = vld [vmem:[%s3701_s17 + $0x29c] sm:$0x3]  ;;  %v5254_v7 = vmax.bf16 %v3216_v8, %v351_v0  ;;  %v354_v0 = vld [vmem:[%s3337_s12 + $0x714] sm:$0xf] }
 0x1d4   : > { %2749 = vst.msk [vmem:[%s3701_s17 + $0x294] sm:$0xf] %vm2534_vm0, %v2398_v49  ;;  %v1663_v37 = vpop.permute.xlu0 %1662  ;;  %v5260_v49 = vmax.bf16 %v3217_v63, %v352_v22  ;;  %v3219_v8 = vld [vmem:[%s3337_s12 + $0x730] sm:$0xf]  ;;  %v6261_v22 = vld [vmem:[#allocation13_spill] sm:$0xff] }
 0x1d5   : > { %v2399_v44 = vmax.bf16 %v1663_v37, %v6256_v1  ;;  %v1665_v19 = vpop.permute.xlu1 %1664  ;;  %6258 = vst [vmem:[#allocation9_spill] sm:$0xff] %v5254_v7  ;;  %v3218_v37 = vld [vmem:[%s3337_s12 + $0x72c] sm:$0xf] }
 0x1d6   : > { %1778 = vrot.lane.b32.xlu0 %v5235_v35, %s3312_s13  ;;  %v2400_v31 = vmax.bf16 %v1665_v19, %v6257_v27  ;;  %6259 = vst [vmem:[#allocation10_spill] sm:$0xff] %v5260_v49 }
 0x1d7   : > { %2750 = vst.msk [vmem:[%s3701_s17 + $0x298] sm:$0xf] %vm2534_vm0, %v2399_v44  ;;  %1780 = vrot.lane.b32.xlu1 %v5241_v36, %s3312_s13  ;;  %v6260_v44 = vld [vmem:[#allocation12_spill] sm:$0xff]  ;;  %v5273_v36 = vmax.bf16 %v3218_v37, %v353_v28 }
 0x1d8   : > { %v2752_v1 = vsel %vm3758_vm3, %v2400_v31, %v2751_v41  ;;  %v1667_v35 = vpop.permute.xlu0 %1666  ;;  %v5279_v41 = vmax.bf16 %v3219_v8, %v354_v0  ;;  %v355_v31 = vld [vmem:[%s3337_s12 + $0x718] sm:$0x3]  ;;  %v3221_v28 = vld [vmem:[%s3337_s12 + $0x754] sm:$0xf] }
 0x1d9   : > { %2753 = vst [vmem:[%s3701_s17 + $0x29c] sm:$0x3] %v2752_v1  ;;  %v2401_v19 = vmax.bf16 %v1667_v35, %v6260_v44  ;;  %v1669_v27 = vpop.permute.xlu1 %1668  ;;  %6262 = vst [vmem:[#allocation11_spill] sm:$0xff] %v5273_v36  ;;  %v3220_v35 = vld [vmem:[%s3337_s12 + $0x734] sm:$0x3] }
 0x1da   : > { %1782 = vrot.lane.b32.xlu0 %v5254_v7, %s3312_s13  ;;  %v2402_v63 = vmax.bf16 %v1669_v27, %v6261_v22  ;;  %6263 = vst [vmem:[#allocation12_spill] sm:$0xff] %v5279_v41  ;;  %v356_v44 = vld [vmem:[%s3337_s12 + $0x738] sm:$0xf]  ;;  %v6264_v27 = vld [vmem:[#allocation2_spill] sm:$0xff]  ;;  %v5291_v8 = vmax.bf16 %v3220_v35, %v355_v31  ;;  %v3223_v31 = vld [vmem:[%s3337_s12 + $0x75c] sm:$0xf] }
 0x1db   : > { %2754 = vst.msk [vmem:[%s3701_s17 + $0x2a0] sm:$0xf] %vm2534_vm0, %v2401_v19  ;;  %1784 = vrot.lane.b32.xlu1 %v5260_v49, %s3312_s13  ;;  %v5297_v22 = vmax.bf16 %v3221_v28, %v356_v44  ;;  %v6267_v35 = vld [vmem:[#allocation14_spill] sm:$0xff]  ;;  %v6268_v44 = vld [vmem:[#allocation3_spill] sm:$0xff] }
 0x1dc   : > { %2755 = vst.msk [vmem:[%s3701_s17 + $0x2a4] sm:$0xf] %vm2534_vm0, %v2402_v63  ;;  %v1671_v1 = vpop.permute.xlu0 %1670  ;;  %6265 = vst [vmem:[#allocation13_spill] sm:$0xff] %v5291_v8  ;;  %v357_v63 = vld [vmem:[%s3337_s12 + $0x73c] sm:$0xf] }
 0x1dd   : > { %v2403_v37 = vmax.bf16 %v1671_v1, %v4734_v53  ;;  %v1673_v19 = vpop.permute.xlu1 %1672  ;;  %6266 = vst [vmem:[#allocation2_spill] sm:$0xff] %v5297_v22  ;;  %v3222_v53 = vld [vmem:[%s3337_s12 + $0x758] sm:$0xf]  ;;  %v3224_v49 = vld [vmem:[%s3337_s12 + $0x760] sm:$0xf] }
 0x1de   : > { %1786 = vrot.lane.b32.xlu0 %v5273_v36, %s3312_s13  ;;  %v2404_v0 = vmax.bf16 %v1673_v19, %v6264_v27  ;;  %v358_v19 = vld [vmem:[%s3337_s12 + $0x740] sm:$0xf]  ;;  %v359_v36 = vld [vmem:[%s3337_s12 + $0x744] sm:$0xf]  ;;  %v361_v7 = vld [vmem:[%s3337_s12 + $0x74c] sm:$0xf] }
 0x1df   : > { %2756 = vst.msk [vmem:[%s3701_s17 + $0x2a8] sm:$0xf] %vm2534_vm0, %v2403_v37  ;;  %1788 = vrot.lane.b32.xlu1 %v5279_v41, %s3312_s13  ;;  %v5309_v41 = vmax.bf16 %v3222_v53, %v357_v63  ;;  %v360_v63 = vld [vmem:[%s3337_s12 + $0x748] sm:$0xf]  ;;  %v3225_v53 = vld [vmem:[%s3337_s12 + $0x764] sm:$0xf] }
 0x1e0   : > { %2757 = vst.msk [vmem:[%s3701_s17 + $0x2ac] sm:$0xf] %vm2534_vm0, %v2404_v0  ;;  %v1675_v1 = vpop.permute.xlu0 %1674  ;;  %v5315_v0 = vmax.bf16 %v3223_v31, %v358_v19  ;;  %v6270_v19 = vld [vmem:[#allocation15_spill] sm:$0xff] }
 0x1e1   : > { %v2405_v37 = vmax.bf16 %v1675_v1, %v6267_v35  ;;  %v1677_v27 = vpop.permute.xlu1 %1676  ;;  %v2760_v1 = vld [vmem:[%s3701_s17 + $0x2b8] sm:$0x3] }
 0x1e2   : > { %1790 = vrot.lane.b32.xlu0 %v5291_v8, %s3312_s13  ;;  %v2406_v28 = vmax.bf16 %v1677_v27, %v6268_v44  ;;  %v5334_v8 = vmax.bf16 %v3225_v53, %v360_v63 }
 0x1e3   : > { %2758 = vst.msk [vmem:[%s3701_s17 + $0x2b0] sm:$0xf] %vm2534_vm0, %v2405_v37  ;;  %1792 = vrot.lane.b32.xlu1 %v5297_v22, %s3312_s13  ;;  %v6269_v37 = vld [vmem:[#allocation4_spill] sm:$0xff]  ;;  %v5328_v22 = vmax.bf16 %v3224_v49, %v359_v36 }
 0x1e4   : > { %2759 = vst.msk [vmem:[%s3701_s17 + $0x2b4] sm:$0xf] %vm2534_vm0, %v2406_v28  ;;  %v1679_v35 = vpop.permute.xlu0 %1678  ;;  %v362_v49 = vld [vmem:[%s3337_s12 + $0x750] sm:$0x3] }
 0x1e5   : > { %v2407_v27 = vmax.bf16 %v1679_v35, %v6269_v37  ;;  %v1681_v44 = vpop.permute.xlu1 %1680  ;;  %v3226_v35 = vld [vmem:[%s3337_s12 + $0x768] sm:$0xf]  ;;  %v3227_v37 = vld [vmem:[%s3337_s12 + $0x76c] sm:$0x3] }
 0x1e6   : > { %1794 = vrot.lane.b32.xlu0 %v5309_v41, %s3312_s13  ;;  %v2408_v31 = vmax.bf16 %v1681_v44, %v6270_v19  ;;  %v5347_v53 = vmax.bf16 %v3226_v35, %v361_v7  ;;  %v5353_v44 = vmax.bf16 %v3227_v37, %v362_v49  ;;  %v363_v19 = vld [vmem:[%s3337_s12 + $0x770] sm:$0xf] }
 0x1e7   : > { %v2761_v28 = vsel %vm3758_vm3, %v2407_v27, %v2760_v1  ;;  %1796 = vrot.lane.b32.xlu1 %v5315_v0, %s3312_s13  ;;  %v3229_v7 = vld [vmem:[%s3337_s12 + $0x790] sm:$0xf] }
 0x1e8   : > { %2762 = vst [vmem:[%s3701_s17 + $0x2b8] sm:$0x3] %v2761_v28  ;;  %2763 = vst.msk [vmem:[%s3701_s17 + $0x2bc] sm:$0xf] %vm2534_vm0, %v2408_v31  ;;  %v1683_v36 = vpop.permute.xlu0 %1682 }
 0x1e9   : > { %v2409_v1 = vmax.bf16 %v1683_v36, %v4789_v18  ;;  %v1685_v27 = vpop.permute.xlu1 %1684  ;;  %v3228_v18 = vld [vmem:[%s3337_s12 + $0x78c] sm:$0xf] }
 0x1ea   : > { %1798 = vrot.lane.b32.xlu0 %v5328_v22, %s3312_s13  ;;  %v2410_v63 = vmax.bf16 %v1685_v27, %v4795_v12  ;;  %v364_v12 = vld [vmem:[%s3337_s12 + $0x774] sm:$0xf]  ;;  %v5365_v49 = vmax.bf16 %v3228_v18, %v363_v19 }
 0x1eb   : > { %2764 = vst.msk [vmem:[%s3701_s17 + $0x2c0] sm:$0xf] %vm2534_vm0, %v2409_v1  ;;  %1800 = vrot.lane.b32.xlu1 %v5334_v8, %s3312_s13  ;;  %v5371_v37 = vmax.bf16 %v3229_v7, %v364_v12  ;;  %v365_v1 = vld [vmem:[%s3337_s12 + $0x778] sm:$0xf]  ;;  %v2769_v18 = vld [vmem:[%s3701_s17 + $0x2d4] sm:$0x3] }
 0x1ec   : > { %2765 = vst.msk [vmem:[%s3701_s17 + $0x2c4] sm:$0xf] %vm2534_vm0, %v2410_v63  ;;  %v1687_v31 = vpop.permute.xlu0 %1686  ;;  %v366_v63 = vld [vmem:[%s3337_s12 + $0x77c] sm:$0xf] }
 0x1ed   : > { %v2411_v28 = vmax.bf16 %v1687_v31, %v4808_v62  ;;  %v1689_v35 = vpop.permute.xlu1 %1688  ;;  %v3230_v62 = vld [vmem:[%s3337_s12 + $0x794] sm:$0xf] }
 0x1ee   : > { %1802 = vrot.lane.b32.xlu0 %v5347_v53, %s3312_s13  ;;  %v2412_v36 = vmax.bf16 %v1689_v35, %v4814_v9  ;;  %v3231_v9 = vld [vmem:[%s3337_s12 + $0x798] sm:$0xf]  ;;  %v5384_v7 = vmax.bf16 %v3230_v62, %v365_v1  ;;  %v367_v35 = vld [vmem:[%s3337_s12 + $0x780] sm:$0xf] }
 0x1ef   : > { %2766 = vst.msk [vmem:[%s3701_s17 + $0x2c8] sm:$0xf] %vm2534_vm0, %v2411_v28  ;;  %1804 = vrot.lane.b32.xlu1 %v5353_v44, %s3312_s13  ;;  %v5390_v28 = vmax.bf16 %v3231_v9, %v366_v63  ;;  %v3233_v1 = vld [vmem:[%s3337_s12 + $0x7a0] sm:$0xf] }
 0x1f0   : > { %2767 = vst.msk [vmem:[%s3701_s17 + $0x2cc] sm:$0xf] %vm2534_vm0, %v2412_v36  ;;  %v1691_v27 = vpop.permute.xlu0 %1690 }
 0x1f1   : > { %v2413_v19 = vmax.bf16 %v1691_v27, %v4827_v56  ;;  %v1693_v31 = vpop.permute.xlu1 %1692  ;;  %v3232_v56 = vld [vmem:[%s3337_s12 + $0x79c] sm:$0xf] }
 0x1f2   : > { %1806 = vrot.lane.b32.xlu0 %v5365_v49, %s3312_s13  ;;  %v2414_v12 = vmax.bf16 %v1693_v31, %v4833_v54  ;;  %v368_v54 = vld [vmem:[%s3337_s12 + $0x784] sm:$0xf]  ;;  %v5403_v9 = vmax.bf16 %v3232_v56, %v367_v35  ;;  %v369_v31 = vld [vmem:[%s3337_s12 + $0x788] sm:$0x3] }
 0x1f3   : > { %2768 = vst.msk [vmem:[%s3701_s17 + $0x2d0] sm:$0xf] %vm2534_vm0, %v2413_v19  ;;  %1808 = vrot.lane.b32.xlu1 %v5371_v37, %s3312_s13  ;;  %v3235_v35 = vld [vmem:[%s3337_s12 + $0x7c4] sm:$0xf] }
 0x1f4   : > { %v2770_v36 = vsel %vm3758_vm3, %v2414_v12, %v2769_v18  ;;  %v1695_v27 = vpop.permute.xlu0 %1694  ;;  %v5409_v18 = vmax.bf16 %v3233_v1, %v368_v54 }
 0x1f5   : > { %2771 = vst [vmem:[%s3701_s17 + $0x2d4] sm:$0x3] %v2770_v36  ;;  %v2415_v62 = vmax.bf16 %v1695_v27, %v4845_v39  ;;  %v1697_v19 = vpop.permute.xlu1 %1696  ;;  %v3234_v39 = vld [vmem:[%s3337_s12 + $0x7a4] sm:$0x3] }
 0x1f6   : > { %1810 = vrot.lane.b32.xlu0 %v5384_v7, %s3312_s13  ;;  %v2416_v63 = vmax.bf16 %v1697_v19, %v4851_v51  ;;  %v370_v51 = vld [vmem:[%s3337_s12 + $0x7a8] sm:$0xf]  ;;  %v5421_v54 = vmax.bf16 %v3234_v39, %v369_v31 }
 0x1f7   : > { %2772 = vst.msk [vmem:[%s3701_s17 + $0x2d8] sm:$0xf] %vm2534_vm0, %v2415_v62  ;;  %1812 = vrot.lane.b32.xlu1 %v5390_v28, %s3312_s13  ;;  %v5427_v1 = vmax.bf16 %v3235_v35, %v370_v51  ;;  %v371_v62 = vld [vmem:[%s3337_s12 + $0x7ac] sm:$0xf] }
 0x1f8   : > { %2773 = vst.msk [vmem:[%s3701_s17 + $0x2dc] sm:$0xf] %vm2534_vm0, %v2416_v63  ;;  %v1699_v12 = vpop.permute.xlu0 %1698  ;;  %v3237_v63 = vld [vmem:[%s3337_s12 + $0x7cc] sm:$0xf] }
 0x1f9   : > { %v2417_v56 = vmax.bf16 %v1699_v12, %v4864_v58  ;;  %v1701_v36 = vpop.permute.xlu1 %1700  ;;  %v3236_v58 = vld [vmem:[%s3337_s12 + $0x7c8] sm:$0xf] }
 0x1fa   : > { %1814 = vrot.lane.b32.xlu0 %v5403_v9, %s3312_s13  ;;  %v2418_v27 = vmax.bf16 %v1701_v36, %v4870_v26  ;;  %v372_v26 = vld [vmem:[%s3337_s12 + $0x7b0] sm:$0xf]  ;;  %v5439_v51 = vmax.bf16 %v3236_v58, %v371_v62  ;;  %v3239_v62 = vld [vmem:[%s3337_s12 + $0x7d4] sm:$0xf] }
 0x1fb   : > { %2774 = vst.msk [vmem:[%s3701_s17 + $0x2e0] sm:$0xf] %vm2534_vm0, %v2417_v56  ;;  %1816 = vrot.lane.b32.xlu1 %v5409_v18, %s3312_s13  ;;  %v5445_v35 = vmax.bf16 %v3237_v63, %v372_v26  ;;  %v373_v56 = vld [vmem:[%s3337_s12 + $0x7b4] sm:$0xf]  ;;  %v3238_v36 = vld [vmem:[%s3337_s12 + $0x7d0] sm:$0xf] }
 0x1fc   : > { %2775 = vst.msk [vmem:[%s3701_s17 + $0x2e4] sm:$0xf] %vm2534_vm0, %v2418_v27  ;;  %v1703_v19 = vpop.permute.xlu0 %1702  ;;  %v5458_v63 = vmax.bf16 %v3238_v36, %v373_v56  ;;  %v376_v56 = vld [vmem:[%s3337_s12 + $0x7c0] sm:$0x3]  ;;  %v3241_v36 = vld [vmem:[%s3337_s12 + $0x7dc] sm:$0x3] }
 0x1fd   : > { %v2419_v31 = vmax.bf16 %v1703_v19, %v4883_v45  ;;  %v1705_v39 = vpop.permute.xlu1 %1704  ;;  %v2778_v45 = vld [vmem:[%s3701_s17 + $0x2f0] sm:$0x3] }
 0x1fe   : > { %1818 = vrot.lane.b32.xlu0 %v5421_v54, %s3312_s13  ;;  %v2420_v12 = vmax.bf16 %v1705_v39, %v4889_v55  ;;  %v374_v55 = vld [vmem:[%s3337_s12 + $0x7b8] sm:$0xf] }
 0x1ff   : > { %2776 = vst.msk [vmem:[%s3701_s17 + $0x2e8] sm:$0xf] %vm2534_vm0, %v2419_v31  ;;  %1820 = vrot.lane.b32.xlu1 %v5427_v1, %s3312_s13  ;;  %v5464_v39 = vmax.bf16 %v3239_v62, %v374_v55 }
 0x200   : > { %2777 = vst.msk [vmem:[%s3701_s17 + $0x2ec] sm:$0xf] %vm2534_vm0, %v2420_v12  ;;  %v1707_v27 = vpop.permute.xlu0 %1706  ;;  %v375_v12 = vld [vmem:[%s3337_s12 + $0x7bc] sm:$0xf] }
 0x201   : > { %v2421_v58 = vmax.bf16 %v1707_v27, %v4901_v42  ;;  %v1709_v19 = vpop.permute.xlu1 %1708  ;;  %v3240_v42 = vld [vmem:[%s3337_s12 + $0x7d8] sm:$0xf] }
 0x202   : > { %1822 = vrot.lane.b32.xlu0 %v5439_v51, %s3312_s13  ;;  %v2422_v26 = vmax.bf16 %v1709_v19, %v4907_v38  ;;  %v5477_v62 = vmax.bf16 %v3240_v42, %v375_v12  ;;  %v377_v19 = vld [vmem:[%s3337_s12 + $0x7e0] sm:$0xf] }
 0x203   : > { %v2779_v31 = vsel %vm3758_vm3, %v2421_v58, %v2778_v45  ;;  %1824 = vrot.lane.b32.xlu1 %v5445_v35, %s3312_s13  ;;  %v5483_v58 = vmax.bf16 %v3241_v36, %v376_v56 }
 0x204   : > { %2780 = vst [vmem:[%s3701_s17 + $0x2f0] sm:$0x3] %v2779_v31  ;;  %2781 = vst.msk [vmem:[%s3701_s17 + $0x2f4] sm:$0xf] %vm2534_vm0, %v2422_v26  ;;  %v1711_v38 = vpop.permute.xlu0 %1710  ;;  %v3243_v31 = vld [vmem:[%s3337_s12 + $0x800] sm:$0xf] }
 0x205   : > { %v2423_v45 = vmax.bf16 %v1711_v38, %v4919_v30  ;;  %v1713_v27 = vpop.permute.xlu1 %1712  ;;  %v3242_v30 = vld [vmem:[%s3337_s12 + $0x7fc] sm:$0xf] }
 0x206   : > { %1826 = vrot.lane.b32.xlu0 %v5458_v63, %s3312_s13  ;;  %v2424_v55 = vmax.bf16 %v1713_v27, %v4925_v25  ;;  %v378_v25 = vld [vmem:[%s3337_s12 + $0x7e4] sm:$0xf]  ;;  %v5495_v56 = vmax.bf16 %v3242_v30, %v377_v19  ;;  %v2787_v30 = vld [vmem:[%s3701_s17 + $0x30c] sm:$0x3] }
 0x207   : > { %2782 = vst.msk [vmem:[%s3701_s17 + $0x2f8] sm:$0xf] %vm2534_vm0, %v2423_v45  ;;  %1828 = vrot.lane.b32.xlu1 %v5464_v39, %s3312_s13  ;;  %v5501_v36 = vmax.bf16 %v3243_v31, %v378_v25  ;;  %v379_v45 = vld [vmem:[%s3337_s12 + $0x7e8] sm:$0xf] }
 0x208   : > { %2783 = vst.msk [vmem:[%s3701_s17 + $0x2fc] sm:$0xf] %vm2534_vm0, %v2424_v55  ;;  %v1715_v26 = vpop.permute.xlu0 %1714  ;;  %v380_v55 = vld [vmem:[%s3337_s12 + $0x7ec] sm:$0xf] }
 0x209   : > { %v2425_v12 = vmax.bf16 %v1715_v26, %v4938_v59  ;;  %v1717_v42 = vpop.permute.xlu1 %1716  ;;  %v3244_v59 = vld [vmem:[%s3337_s12 + $0x804] sm:$0xf] }
 0x20a   : > { %1830 = vrot.lane.b32.xlu0 %v5477_v62, %s3312_s13  ;;  %v2426_v38 = vmax.bf16 %v1717_v42, %v4944_v50  ;;  %v3245_v50 = vld [vmem:[%s3337_s12 + $0x808] sm:$0xf]  ;;  %v5514_v31 = vmax.bf16 %v3244_v59, %v379_v45  ;;  %v381_v42 = vld [vmem:[%s3337_s12 + $0x7f0] sm:$0xf] }
 0x20b   : > { %2784 = vst.msk [vmem:[%s3701_s17 + $0x300] sm:$0xf] %vm2534_vm0, %v2425_v12  ;;  %1832 = vrot.lane.b32.xlu1 %v5483_v58, %s3312_s13  ;;  %v5520_v12 = vmax.bf16 %v3245_v50, %v380_v55  ;;  %v3247_v45 = vld [vmem:[%s3337_s12 + $0x810] sm:$0xf] }
 0x20c   : > { %2785 = vst.msk [vmem:[%s3701_s17 + $0x304] sm:$0xf] %vm2534_vm0, %v2426_v38  ;;  %v1719_v27 = vpop.permute.xlu0 %1718 }
 0x20d   : > { %v2427_v19 = vmax.bf16 %v1719_v27, %v4957_v2  ;;  %v1721_v26 = vpop.permute.xlu1 %1720  ;;  %v3246_v2 = vld [vmem:[%s3337_s12 + $0x80c] sm:$0xf] }
 0x20e   : > { %1834 = vrot.lane.b32.xlu0 %v5495_v56, %s3312_s13  ;;  %v2428_v25 = vmax.bf16 %v1721_v26, %v4963_v24  ;;  %v382_v24 = vld [vmem:[%s3337_s12 + $0x7f4] sm:$0xf]  ;;  %v5533_v50 = vmax.bf16 %v3246_v2, %v381_v42  ;;  %v383_v26 = vld [vmem:[%s3337_s12 + $0x7f8] sm:$0x3] }
 0x20f   : > { %2786 = vst.msk [vmem:[%s3701_s17 + $0x308] sm:$0xf] %vm2534_vm0, %v2427_v19  ;;  %1836 = vrot.lane.b32.xlu1 %v5501_v36, %s3312_s13  ;;  %v3249_v42 = vld [vmem:[%s3337_s12 + $0x834] sm:$0xf] }
 0x210   : > { %v2788_v38 = vsel %vm3758_vm3, %v2428_v25, %v2787_v30  ;;  %v1723_v27 = vpop.permute.xlu0 %1722  ;;  %v5539_v30 = vmax.bf16 %v3247_v45, %v382_v24 }
 0x211   : > { %2789 = vst [vmem:[%s3701_s17 + $0x30c] sm:$0x3] %v2788_v38  ;;  %v2429_v59 = vmax.bf16 %v1723_v27, %v4975_v4  ;;  %v1725_v19 = vpop.permute.xlu1 %1724  ;;  %v3248_v4 = vld [vmem:[%s3337_s12 + $0x814] sm:$0x3] }
 0x212   : > { %1838 = vrot.lane.b32.xlu0 %v5514_v31, %s3312_s13  ;;  %v2430_v55 = vmax.bf16 %v1725_v19, %v4981_v21  ;;  %v384_v21 = vld [vmem:[%s3337_s12 + $0x818] sm:$0xf]  ;;  %v5551_v24 = vmax.bf16 %v3248_v4, %v383_v26 }
 0x213   : > { %2790 = vst.msk [vmem:[%s3701_s17 + $0x310] sm:$0xf] %vm2534_vm0, %v2429_v59  ;;  %1840 = vrot.lane.b32.xlu1 %v5520_v12, %s3312_s13  ;;  %v5557_v45 = vmax.bf16 %v3249_v42, %v384_v21  ;;  %v385_v59 = vld [vmem:[%s3337_s12 + $0x81c] sm:$0xf] }
 0x214   : > { %2791 = vst.msk [vmem:[%s3701_s17 + $0x314] sm:$0xf] %vm2534_vm0, %v2430_v55  ;;  %v1727_v25 = vpop.permute.xlu0 %1726  ;;  %v3251_v55 = vld [vmem:[%s3337_s12 + $0x83c] sm:$0xf] }
 0x215   : > { %v2431_v2 = vmax.bf16 %v1727_v25, %v4994_v29  ;;  %v1729_v38 = vpop.permute.xlu1 %1728  ;;  %v3250_v29 = vld [vmem:[%s3337_s12 + $0x838] sm:$0xf] }
 0x216   : > { %1842 = vrot.lane.b32.xlu0 %v5533_v50, %s3312_s13  ;;  %v2432_v27 = vmax.bf16 %v1729_v38, %v5000_v43  ;;  %v386_v43 = vld [vmem:[%s3337_s12 + $0x820] sm:$0xf]  ;;  %v5569_v21 = vmax.bf16 %v3250_v29, %v385_v59  ;;  %v3253_v59 = vld [vmem:[%s3337_s12 + $0x844] sm:$0xf] }
 0x217   : > { %2792 = vst.msk [vmem:[%s3701_s17 + $0x318] sm:$0xf] %vm2534_vm0, %v2431_v2  ;;  %1844 = vrot.lane.b32.xlu1 %v5539_v30, %s3312_s13  ;;  %v5575_v42 = vmax.bf16 %v3251_v55, %v386_v43  ;;  %v387_v2 = vld [vmem:[%s3337_s12 + $0x824] sm:$0xf]  ;;  %v3252_v38 = vld [vmem:[%s3337_s12 + $0x840] sm:$0xf] }
 0x218   : > { %2793 = vst.msk [vmem:[%s3701_s17 + $0x31c] sm:$0xf] %vm2534_vm0, %v2432_v27  ;;  %v1731_v19 = vpop.permute.xlu0 %1730  ;;  %v5588_v55 = vmax.bf16 %v3252_v38, %v387_v2  ;;  %v390_v2 = vld [vmem:[%s3337_s12 + $0x830] sm:$0x3]  ;;  %v3255_v38 = vld [vmem:[%s3337_s12 + $0x84c] sm:$0x3] }
 0x219   : > { %v2433_v26 = vmax.bf16 %v1731_v19, %v5013_v16  ;;  %v1733_v4 = vpop.permute.xlu1 %1732  ;;  %v2796_v16 = vld [vmem:[%s3701_s17 + $0x328] sm:$0x3] }
 0x21a   : > { %1846 = vrot.lane.b32.xlu0 %v5551_v24, %s3312_s13  ;;  %v2434_v25 = vmax.bf16 %v1733_v4, %v5019_v33  ;;  %v388_v33 = vld [vmem:[%s3337_s12 + $0x828] sm:$0xf] }
 0x21b   : > { %2794 = vst.msk [vmem:[%s3701_s17 + $0x320] sm:$0xf] %vm2534_vm0, %v2433_v26  ;;  %1848 = vrot.lane.b32.xlu1 %v5557_v45, %s3312_s13  ;;  %v5594_v4 = vmax.bf16 %v3253_v59, %v388_v33 }
 0x21c   : > { %2795 = vst.msk [vmem:[%s3701_s17 + $0x324] sm:$0xf] %vm2534_vm0, %v2434_v25  ;;  %v1735_v27 = vpop.permute.xlu0 %1734  ;;  %v389_v25 = vld [vmem:[%s3337_s12 + $0x82c] sm:$0xf] }
 0x21d   : > { %v2435_v29 = vmax.bf16 %v1735_v27, %v5031_v48  ;;  %v1737_v19 = vpop.permute.xlu1 %1736  ;;  %v3254_v48 = vld [vmem:[%s3337_s12 + $0x848] sm:$0xf] }
 0x21e   : > { %1850 = vrot.lane.b32.xlu0 %v5569_v21, %s3312_s13  ;;  %v2436_v43 = vmax.bf16 %v1737_v19, %v5037_v32  ;;  %v5607_v59 = vmax.bf16 %v3254_v48, %v389_v25  ;;  %v391_v19 = vld [vmem:[%s3337_s12 + $0x850] sm:$0xf] }
 0x21f   : > { %v2797_v26 = vsel %vm3758_vm3, %v2435_v29, %v2796_v16  ;;  %1852 = vrot.lane.b32.xlu1 %v5575_v42, %s3312_s13  ;;  %v5613_v29 = vmax.bf16 %v3255_v38, %v390_v2 }
 0x220   : > { %2798 = vst [vmem:[%s3701_s17 + $0x328] sm:$0x3] %v2797_v26  ;;  %2799 = vst.msk [vmem:[%s3701_s17 + $0x32c] sm:$0xf] %vm2534_vm0, %v2436_v43  ;;  %v1739_v32 = vpop.permute.xlu0 %1738  ;;  %v3257_v26 = vld [vmem:[%s3337_s12 + $0x870] sm:$0xf] }
 0x221   : > { %v2437_v16 = vmax.bf16 %v1739_v32, %v5049_v20  ;;  %v1741_v27 = vpop.permute.xlu1 %1740  ;;  %v3256_v20 = vld [vmem:[%s3337_s12 + $0x86c] sm:$0xf] }
 0x222   : > { %1854 = vrot.lane.b32.xlu0 %v5588_v55, %s3312_s13  ;;  %v2438_v33 = vmax.bf16 %v1741_v27, %v5055_v11  ;;  %v392_v11 = vld [vmem:[%s3337_s12 + $0x854] sm:$0xf]  ;;  %v5625_v2 = vmax.bf16 %v3256_v20, %v391_v19  ;;  %v2805_v20 = vld [vmem:[%s3701_s17 + $0x344] sm:$0x3] }
 0x223   : > { %2800 = vst.msk [vmem:[%s3701_s17 + $0x330] sm:$0xf] %vm2534_vm0, %v2437_v16  ;;  %1856 = vrot.lane.b32.xlu1 %v5594_v4, %s3312_s13  ;;  %v5631_v38 = vmax.bf16 %v3257_v26, %v392_v11  ;;  %v393_v16 = vld [vmem:[%s3337_s12 + $0x858] sm:$0xf] }
 0x224   : > { %2801 = vst.msk [vmem:[%s3701_s17 + $0x334] sm:$0xf] %vm2534_vm0, %v2438_v33  ;;  %v1743_v43 = vpop.permute.xlu0 %1742  ;;  %v394_v33 = vld [vmem:[%s3337_s12 + $0x85c] sm:$0xf] }
 0x225   : > { %v2439_v25 = vmax.bf16 %v1743_v43, %v5068_v6  ;;  %v1745_v48 = vpop.permute.xlu1 %1744  ;;  %v3258_v6 = vld [vmem:[%s3337_s12 + $0x874] sm:$0xf] }
 0x226   : > { %1858 = vrot.lane.b32.xlu0 %v5607_v59, %s3312_s13  ;;  %v2440_v32 = vmax.bf16 %v1745_v48, %v5074_v10  ;;  %v3259_v10 = vld [vmem:[%s3337_s12 + $0x878] sm:$0xf]  ;;  %v5644_v26 = vmax.bf16 %v3258_v6, %v393_v16  ;;  %v395_v48 = vld [vmem:[%s3337_s12 + $0x860] sm:$0xf]  ;;  %v3262_v16 = vld [vmem:[%s3337_s12 + $0x884] sm:$0x3] }
 0x227   : > { %2802 = vst.msk [vmem:[%s3701_s17 + $0x338] sm:$0xf] %vm2534_vm0, %v2439_v25  ;;  %1860 = vrot.lane.b32.xlu1 %v5613_v29, %s3312_s13  ;;  %v5650_v25 = vmax.bf16 %v3259_v10, %v394_v33 }
 0x228   : > { %2803 = vst.msk [vmem:[%s3701_s17 + $0x33c] sm:$0xf] %vm2534_vm0, %v2440_v32  ;;  %v1747_v27 = vpop.permute.xlu0 %1746 }
 0x229   : > { %v2441_v19 = vmax.bf16 %v1747_v27, %v5087_v57  ;;  %v1749_v43 = vpop.permute.xlu1 %1748  ;;  %v3260_v57 = vld [vmem:[%s3337_s12 + $0x87c] sm:$0xf] }
 0x22a   : > { %1862 = vrot.lane.b32.xlu0 %v5625_v2, %s3312_s13  ;;  %v2442_v11 = vmax.bf16 %v1749_v43, %v5093_v13  ;;  %v397_v13 = vld [vmem:[%s3337_s12 + $0x868] sm:$0x3]  ;;  %v5663_v10 = vmax.bf16 %v3260_v57, %v395_v48  ;;  %v404_v43 = vld [vmem:[%s3337_s12 + $0x8a0] sm:$0x3]  ;;  %v3276_v48 = vld [vmem:[%s3337_s12 + $0x8f4] sm:$0x3] }
 0x22b   : > { %2804 = vst.msk [vmem:[%s3701_s17 + $0x340] sm:$0xf] %vm2534_vm0, %v2441_v19  ;;  %1864 = vrot.lane.b32.xlu1 %v5631_v38, %s3312_s13 }
 0x22c   : > { %v2806_v32 = vsel %vm3758_vm3, %v2442_v11, %v2805_v20  ;;  %v1751_v27 = vpop.permute.xlu0 %1750  ;;  %v5669_v20 = vmax.bf16 %v3262_v16, %v397_v13 }
 0x22d   : > { %2807 = vst [vmem:[%s3701_s17 + $0x344] sm:$0x3] %v2806_v32  ;;  %v2443_v6 = vmax.bf16 %v1751_v27, %v5105_v15  ;;  %v1753_v19 = vpop.permute.xlu1 %1752  ;;  %v3269_v15 = vld [vmem:[%s3337_s12 + $0x8bc] sm:$0x3] }
 0x22e   : > { %1866 = vrot.lane.b32.xlu0 %v5644_v26, %s3312_s13  ;;  %v2444_v33 = vmax.bf16 %v1753_v19, %v5111_v61  ;;  %v411_v61 = vld [vmem:[%s3337_s12 + $0x8d8] sm:$0x3]  ;;  %v5681_v13 = vmax.bf16 %v3269_v15, %v404_v43 }
 0x22f   : > { %2808 = vst.msk [vmem:[%s3701_s17 + $0x348] sm:$0xf] %vm2534_vm0, %v2443_v6  ;;  %1868 = vrot.lane.b32.xlu1 %v5650_v25, %s3312_s13  ;;  %v5687_v16 = vmax.bf16 %v3276_v48, %v411_v61  ;;  %v418_v6 = vld [vmem:[%s3337_s12 + $0x910] sm:$0x3] }
 0x230   : > { %2809 = vst.msk [vmem:[%s3701_s17 + $0x34c] sm:$0xf] %vm2534_vm0, %v2444_v33  ;;  %v1755_v11 = vpop.permute.xlu0 %1754  ;;  %v3290_v33 = vld [vmem:[%s3337_s12 + $0x964] sm:$0x3] }
 0x231   : > { %v2445_v57 = vmax.bf16 %v1755_v11, %v5124_v5  ;;  %v1757_v32 = vpop.permute.xlu1 %1756  ;;  %v3283_v5 = vld [vmem:[%s3337_s12 + $0x92c] sm:$0x3] }
 0x232   : > { %1870 = vrot.lane.b32.xlu0 %v5663_v10, %s3312_s13  ;;  %v2446_v27 = vmax.bf16 %v1757_v32, %v5130_v60  ;;  %v425_v60 = vld [vmem:[%s3337_s12 + $0x948] sm:$0x3]  ;;  %v5699_v61 = vmax.bf16 %v3283_v5, %v418_v6  ;;  %v3261_v32 = vld [vmem:[%s3337_s12 + $0x880] sm:$0xf]  ;;  %v3263_v6 = vld [vmem:[%s3337_s12 + $0x8a4] sm:$0xf] }
 0x233   : > { %2810 = vst.msk [vmem:[%s3701_s17 + $0x350] sm:$0xf] %vm2534_vm0, %v2445_v57  ;;  %1874 = vrot.lane.b32.xlu1 %v5669_v20, %s3312_s13  ;;  %v5705_v48 = vmax.bf16 %v3290_v33, %v425_v60  ;;  %v396_v57 = vld [vmem:[%s3337_s12 + $0x864] sm:$0xf] }
 0x234   : > { %2811 = vst.msk [vmem:[%s3701_s17 + $0x354] sm:$0xf] %vm2534_vm0, %v2446_v27  ;;  %v1759_v19 = vpop.permute.xlu0 %1758  ;;  %v5718_v33 = vmax.bf16 %v3261_v32, %v396_v57  ;;  %v400_v57 = vld [vmem:[%s3337_s12 + $0x890] sm:$0xf]  ;;  %v3265_v32 = vld [vmem:[%s3337_s12 + $0x8ac] sm:$0xf] }
 0x235   : > { %v2447_v43 = vmax.bf16 %v1759_v19, %v5143_v40  ;;  %v1761_v15 = vpop.permute.xlu1 %1760  ;;  %v2814_v40 = vld [vmem:[%s3701_s17 + $0x360] sm:$0x3] }
 0x236   : > { %1888 = vrot.lane.b32.xlu0 %v5681_v13, %s3312_s13  ;;  %v2448_v11 = vmax.bf16 %v1761_v15, %v5149_v23  ;;  %v398_v23 = vld [vmem:[%s3337_s12 + $0x888] sm:$0xf] }
 0x237   : > { %2812 = vst.msk [vmem:[%s3701_s17 + $0x358] sm:$0xf] %vm2534_vm0, %v2447_v43  ;;  %1902 = vrot.lane.b32.xlu1 %v5687_v16, %s3312_s13  ;;  %v5724_v15 = vmax.bf16 %v3263_v6, %v398_v23 }
 0x238   : > { %2813 = vst.msk [vmem:[%s3701_s17 + $0x35c] sm:$0xf] %vm2534_vm0, %v2448_v11  ;;  %v1763_v27 = vpop.permute.xlu0 %1762  ;;  %v399_v11 = vld [vmem:[%s3337_s12 + $0x88c] sm:$0xf] }
 0x239   : > { %v2449_v5 = vmax.bf16 %v1763_v27, %v5161_v3  ;;  %v1765_v19 = vpop.permute.xlu1 %1764  ;;  %v3264_v3 = vld [vmem:[%s3337_s12 + $0x8a8] sm:$0xf] }
 0x23a   : > { %1916 = vrot.lane.b32.xlu0 %v5699_v61, %s3312_s13  ;;  %v2450_v60 = vmax.bf16 %v1765_v19, %v5167_v46  ;;  %v5737_v6 = vmax.bf16 %v3264_v3, %v399_v11  ;;  %v401_v19 = vld [vmem:[%s3337_s12 + $0x894] sm:$0xf] }
 0x23b   : > { %v2815_v43 = vsel %vm3758_vm3, %v2449_v5, %v2814_v40  ;;  %1930 = vrot.lane.b32.xlu1 %v5705_v48, %s3312_s13  ;;  %v5743_v5 = vmax.bf16 %v3265_v32, %v400_v57 }
 0x23c   : > { %2816 = vst [vmem:[%s3701_s17 + $0x360] sm:$0x3] %v2815_v43  ;;  %2817 = vst.msk [vmem:[%s3701_s17 + $0x364] sm:$0xf] %vm2534_vm0, %v2450_v60  ;;  %v1767_v46 = vpop.permute.xlu0 %1766  ;;  %v3267_v43 = vld [vmem:[%s3337_s12 + $0x8b4] sm:$0xf] }
 0x23d   : > { %v2451_v40 = vmax.bf16 %v1767_v46, %v5179_v14  ;;  %v1769_v27 = vpop.permute.xlu1 %1768  ;;  %6271 = vst [vmem:[#allocation14_spill] sm:$0xff] %v5737_v6  ;;  %6272 = vst [vmem:[#allocation3_spill] sm:$0xff] %v5743_v5  ;;  %v3266_v14 = vld [vmem:[%s3337_s12 + $0x8b0] sm:$0xf] }
 0x23e   : > { %1872 = vrot.lane.b32.xlu0 %v5718_v33, %s3312_s13  ;;  %v2452_v23 = vmax.bf16 %v1769_v27, %v5185_v52  ;;  %v402_v52 = vld [vmem:[%s3337_s12 + $0x898] sm:$0xf]  ;;  %v5755_v57 = vmax.bf16 %v3266_v14, %v401_v19 }
 0x23f   : > { %2818 = vst.msk [vmem:[%s3701_s17 + $0x368] sm:$0xf] %vm2534_vm0, %v2451_v40  ;;  %1876 = vrot.lane.b32.xlu1 %v5724_v15, %s3312_s13  ;;  %v5761_v32 = vmax.bf16 %v3267_v43, %v402_v52  ;;  %v403_v40 = vld [vmem:[%s3337_s12 + $0x89c] sm:$0xf]  ;;  %v6276_v52 = vld [vmem:[#allocation6_spill] sm:$0xff] }
 0x240   : > { %2819 = vst.msk [vmem:[%s3701_s17 + $0x36c] sm:$0xf] %vm2534_vm0, %v2452_v23  ;;  %v1771_v60 = vpop.permute.xlu0 %1770  ;;  %6273 = vst [vmem:[#allocation4_spill] sm:$0xff] %v5755_v57  ;;  %v405_v23 = vld [vmem:[%s3337_s12 + $0x8c0] sm:$0xf]  ;;  %v6275_v19 = vld [vmem:[#allocation5_spill] sm:$0xff] }
 0x241   : > { %v2453_v11 = vmax.bf16 %v1771_v60, %v5198_v47  ;;  %v1773_v3 = vpop.permute.xlu1 %1772  ;;  %6274 = vst [vmem:[#allocation15_spill] sm:$0xff] %v5761_v32  ;;  %v3268_v47 = vld [vmem:[%s3337_s12 + $0x8b8] sm:$0xf]  ;;  %v2823_v60 = vld [vmem:[%s3701_s17 + $0x37c] sm:$0x3] }
 0x242   : > { %1878 = vrot.lane.b32.xlu0 %v5737_v6, %s3312_s13  ;;  %v2454_v46 = vmax.bf16 %v1773_v3, %v5204_v34  ;;  %v3270_v34 = vld [vmem:[%s3337_s12 + $0x8dc] sm:$0xf]  ;;  %v5774_v3 = vmax.bf16 %v3268_v47, %v403_v40  ;;  %v407_v40 = vld [vmem:[%s3337_s12 + $0x8c8] sm:$0xf]  ;;  %v3272_v47 = vld [vmem:[%s3337_s12 + $0x8e4] sm:$0xf] }
 0x243   : > { %2820 = vst.msk [vmem:[%s3701_s17 + $0x370] sm:$0xf] %vm2534_vm0, %v2453_v11  ;;  %1880 = vrot.lane.b32.xlu1 %v5743_v5, %s3312_s13  ;;  %v406_v5 = vld [vmem:[%s3337_s12 + $0x8c4] sm:$0xf] }
 0x244   : > { %2821 = vst.msk [vmem:[%s3701_s17 + $0x374] sm:$0xf] %vm2534_vm0, %v2454_v46  ;;  %v1775_v27 = vpop.permute.xlu0 %1774  ;;  %6277 = vst [vmem:[#allocation5_spill] sm:$0xff] %v5774_v3  ;;  %v5780_v46 = vmax.bf16 %v3270_v34, %v405_v23  ;;  %v6280_v23 = vld [vmem:[#allocation8_spill] sm:$0xff]  ;;  %v415_v6 = vld [vmem:[%s3337_s12 + $0x904] sm:$0xf] }
 0x245   : > { %v2455_v14 = vmax.bf16 %v1775_v27, %v6275_v19  ;;  %v1777_v11 = vpop.permute.xlu1 %1776  ;;  %v3271_v27 = vld [vmem:[%s3337_s12 + $0x8e0] sm:$0xf] }
 0x246   : > { %1882 = vrot.lane.b32.xlu0 %v5755_v57, %s3312_s13  ;;  %v2456_v43 = vmax.bf16 %v1777_v11, %v6276_v52  ;;  %6278 = vst [vmem:[#allocation6_spill] sm:$0xff] %v5780_v46 }
 0x247   : > { %2822 = vst.msk [vmem:[%s3701_s17 + $0x378] sm:$0xf] %vm2534_vm0, %v2455_v14  ;;  %1884 = vrot.lane.b32.xlu1 %v5761_v32, %s3312_s13  ;;  %v6279_v14 = vld [vmem:[#allocation7_spill] sm:$0xff]  ;;  %v5793_v32 = vmax.bf16 %v3271_v27, %v406_v5  ;;  %v6283_v27 = vld [vmem:[#allocation9_spill] sm:$0xff] }
 0x248   : > { %v2824_v19 = vsel %vm3758_vm3, %v2456_v43, %v2823_v60  ;;  %v1779_v57 = vpop.permute.xlu0 %1778  ;;  %v5799_v60 = vmax.bf16 %v3272_v47, %v407_v40  ;;  %v408_v43 = vld [vmem:[%s3337_s12 + $0x8cc] sm:$0xf] }
 0x249   : > { %2825 = vst [vmem:[%s3701_s17 + $0x37c] sm:$0x3] %v2824_v19  ;;  %v2457_v11 = vmax.bf16 %v1779_v57, %v6279_v14  ;;  %v1781_v52 = vpop.permute.xlu1 %1780  ;;  %6281 = vst [vmem:[#allocation7_spill] sm:$0xff] %v5793_v32  ;;  %v3273_v57 = vld [vmem:[%s3337_s12 + $0x8e8] sm:$0xf] }
 0x24a   : > { %1886 = vrot.lane.b32.xlu0 %v5774_v3, %s3312_s13  ;;  %v2458_v34 = vmax.bf16 %v1781_v52, %v6280_v23  ;;  %6282 = vst [vmem:[#allocation8_spill] sm:$0xff] %v5799_v60  ;;  %v409_v14 = vld [vmem:[%s3337_s12 + $0x8d0] sm:$0xf]  ;;  %v3274_v5 = vld [vmem:[%s3337_s12 + $0x8ec] sm:$0xf]  ;;  %v6284_v23 = vld [vmem:[#allocation10_spill] sm:$0xff]  ;;  %v5811_v47 = vmax.bf16 %v3273_v57, %v408_v43 }
 0x24b   : > { %2826 = vst.msk [vmem:[%s3701_s17 + $0x380] sm:$0xf] %vm2534_vm0, %v2457_v11  ;;  %1890 = vrot.lane.b32.xlu1 %v5780_v46, %s3312_s13  ;;  %v410_v46 = vld [vmem:[%s3337_s12 + $0x8d4] sm:$0xf]  ;;  %v6287_v57 = vld [vmem:[#allocation11_spill] sm:$0xff] }
 0x24c   : > { %2827 = vst.msk [vmem:[%s3701_s17 + $0x384] sm:$0xf] %vm2534_vm0, %v2458_v34  ;;  %v1783_v19 = vpop.permute.xlu0 %1782  ;;  %6285 = vst [vmem:[#allocation9_spill] sm:$0xff] %v5811_v47  ;;  %v5817_v34 = vmax.bf16 %v3274_v5, %v409_v14  ;;  %v3277_v43 = vld [vmem:[%s3337_s12 + $0x914] sm:$0xf] }
 0x24d   : > { %v2459_v52 = vmax.bf16 %v1783_v19, %v6283_v27  ;;  %v1785_v11 = vpop.permute.xlu1 %1784  ;;  %v3275_v19 = vld [vmem:[%s3337_s12 + $0x8f0] sm:$0xf]  ;;  %v3278_v3 = vld [vmem:[%s3337_s12 + $0x918] sm:$0xf] }
 0x24e   : > { %1892 = vrot.lane.b32.xlu0 %v5793_v32, %s3312_s13  ;;  %v2460_v40 = vmax.bf16 %v1785_v11, %v6284_v23  ;;  %6286 = vst [vmem:[#allocation10_spill] sm:$0xff] %v5817_v34  ;;  %v412_v11 = vld [vmem:[%s3337_s12 + $0x8f8] sm:$0xf]  ;;  %v6288_v14 = vld [vmem:[#allocation12_spill] sm:$0xff]  ;;  %v413_v32 = vld [vmem:[%s3337_s12 + $0x8fc] sm:$0xf] }
 0x24f   : > { %2828 = vst.msk [vmem:[%s3701_s17 + $0x388] sm:$0xf] %vm2534_vm0, %v2459_v52  ;;  %1894 = vrot.lane.b32.xlu1 %v5799_v60, %s3312_s13  ;;  %v5829_v60 = vmax.bf16 %v3275_v19, %v410_v46  ;;  %v414_v46 = vld [vmem:[%s3337_s12 + $0x900] sm:$0xf]  ;;  %v3279_v19 = vld [vmem:[%s3337_s12 + $0x91c] sm:$0xf] }
 0x250   : > { %2829 = vst.msk [vmem:[%s3701_s17 + $0x38c] sm:$0xf] %vm2534_vm0, %v2460_v40  ;;  %v1787_v27 = vpop.permute.xlu0 %1786  ;;  %v5835_v40 = vmax.bf16 %v3277_v43, %v412_v11  ;;  %v6290_v11 = vld [vmem:[#allocation2_spill] sm:$0xff] }
 0x251   : > { %v2461_v52 = vmax.bf16 %v1787_v27, %v6287_v57  ;;  %v1789_v23 = vpop.permute.xlu1 %1788  ;;  %v2832_v27 = vld [vmem:[%s3701_s17 + $0x398] sm:$0x3] }
 0x252   : > { %1896 = vrot.lane.b32.xlu0 %v5811_v47, %s3312_s13  ;;  %v2462_v5 = vmax.bf16 %v1789_v23, %v6288_v14  ;;  %v5854_v47 = vmax.bf16 %v3279_v19, %v414_v46 }
 0x253   : > { %2830 = vst.msk [vmem:[%s3701_s17 + $0x390] sm:$0xf] %vm2534_vm0, %v2461_v52  ;;  %1898 = vrot.lane.b32.xlu1 %v5817_v34, %s3312_s13  ;;  %v6289_v52 = vld [vmem:[#allocation13_spill] sm:$0xff]  ;;  %v5848_v34 = vmax.bf16 %v3278_v3, %v413_v32  ;;  %v416_v3 = vld [vmem:[%s3337_s12 + $0x908] sm:$0xf] }
 0x254   : > { %2831 = vst.msk [vmem:[%s3701_s17 + $0x394] sm:$0xf] %vm2534_vm0, %v2462_v5  ;;  %v1791_v57 = vpop.permute.xlu0 %1790 }
 0x255   : > { %v2463_v23 = vmax.bf16 %v1791_v57, %v6289_v52  ;;  %v1793_v14 = vpop.permute.xlu1 %1792  ;;  %v3280_v57 = vld [vmem:[%s3337_s12 + $0x920] sm:$0xf]  ;;  %v3281_v52 = vld [vmem:[%s3337_s12 + $0x924] sm:$0xf] }
 0x256   : > { %1900 = vrot.lane.b32.xlu0 %v5829_v60, %s3312_s13  ;;  %v2464_v43 = vmax.bf16 %v1793_v14, %v6290_v11  ;;  %v5867_v19 = vmax.bf16 %v3280_v57, %v415_v6  ;;  %v5873_v14 = vmax.bf16 %v3281_v52, %v416_v3  ;;  %v417_v11 = vld [vmem:[%s3337_s12 + $0x90c] sm:$0xf] }
 0x257   : > { %v2833_v5 = vsel %vm3758_vm3, %v2463_v23, %v2832_v27  ;;  %1904 = vrot.lane.b32.xlu1 %v5835_v40, %s3312_s13  ;;  %v3284_v6 = vld [vmem:[%s3337_s12 + $0x94c] sm:$0xf] }
 0x258   : > { %2834 = vst [vmem:[%s3701_s17 + $0x398] sm:$0x3] %v2833_v5  ;;  %2835 = vst.msk [vmem:[%s3701_s17 + $0x39c] sm:$0xf] %vm2534_vm0, %v2464_v43  ;;  %v1795_v32 = vpop.permute.xlu0 %1794 }
 0x259   : > { %v2465_v27 = vmax.bf16 %v1795_v32, %v5309_v41  ;;  %v1797_v23 = vpop.permute.xlu1 %1796  ;;  %v3282_v41 = vld [vmem:[%s3337_s12 + $0x928] sm:$0xf] }
 0x25a   : > { %1906 = vrot.lane.b32.xlu0 %v5848_v34, %s3312_s13  ;;  %v2466_v46 = vmax.bf16 %v1797_v23, %v5315_v0  ;;  %v419_v0 = vld [vmem:[%s3337_s12 + $0x930] sm:$0xf]  ;;  %v5885_v3 = vmax.bf16 %v3282_v41, %v417_v11  ;;  %v2841_v41 = vld [vmem:[%s3701_s17 + $0x3b4] sm:$0x3] }
 0x25b   : > { %2836 = vst.msk [vmem:[%s3701_s17 + $0x3a0] sm:$0xf] %vm2534_vm0, %v2465_v27  ;;  %1908 = vrot.lane.b32.xlu1 %v5854_v47, %s3312_s13  ;;  %v5891_v52 = vmax.bf16 %v3284_v6, %v419_v0  ;;  %v420_v27 = vld [vmem:[%s3337_s12 + $0x934] sm:$0xf] }
 0x25c   : > { %2837 = vst.msk [vmem:[%s3701_s17 + $0x3a4] sm:$0xf] %vm2534_vm0, %v2466_v46  ;;  %v1799_v43 = vpop.permute.xlu0 %1798  ;;  %v421_v46 = vld [vmem:[%s3337_s12 + $0x938] sm:$0xf] }
 0x25d   : > { %v2467_v5 = vmax.bf16 %v1799_v43, %v5328_v22  ;;  %v1801_v57 = vpop.permute.xlu1 %1800  ;;  %v3285_v22 = vld [vmem:[%s3337_s12 + $0x950] sm:$0xf] }
 0x25e   : > { %1910 = vrot.lane.b32.xlu0 %v5867_v19, %s3312_s13  ;;  %v2468_v32 = vmax.bf16 %v1801_v57, %v5334_v8  ;;  %v3286_v8 = vld [vmem:[%s3337_s12 + $0x954] sm:$0xf]  ;;  %v5904_v6 = vmax.bf16 %v3285_v22, %v420_v27  ;;  %v422_v57 = vld [vmem:[%s3337_s12 + $0x93c] sm:$0xf] }
 0x25f   : > { %2838 = vst.msk [vmem:[%s3701_s17 + $0x3a8] sm:$0xf] %vm2534_vm0, %v2467_v5  ;;  %1912 = vrot.lane.b32.xlu1 %v5873_v14, %s3312_s13  ;;  %v5910_v5 = vmax.bf16 %v3286_v8, %v421_v46  ;;  %v3288_v27 = vld [vmem:[%s3337_s12 + $0x95c] sm:$0xf] }
 0x260   : > { %2839 = vst.msk [vmem:[%s3701_s17 + $0x3ac] sm:$0xf] %vm2534_vm0, %v2468_v32  ;;  %v1803_v23 = vpop.permute.xlu0 %1802 }
 0x261   : > { %v2469_v11 = vmax.bf16 %v1803_v23, %v5347_v53  ;;  %v1805_v43 = vpop.permute.xlu1 %1804  ;;  %v3287_v53 = vld [vmem:[%s3337_s12 + $0x958] sm:$0xf] }
 0x262   : > { %1914 = vrot.lane.b32.xlu0 %v5885_v3, %s3312_s13  ;;  %v2470_v0 = vmax.bf16 %v1805_v43, %v5353_v44  ;;  %v423_v44 = vld [vmem:[%s3337_s12 + $0x940] sm:$0xf]  ;;  %v5923_v8 = vmax.bf16 %v3287_v53, %v422_v57  ;;  %v424_v43 = vld [vmem:[%s3337_s12 + $0x944] sm:$0xf] }
 0x263   : > { %2840 = vst.msk [vmem:[%s3701_s17 + $0x3b0] sm:$0xf] %vm2534_vm0, %v2469_v11  ;;  %1918 = vrot.lane.b32.xlu1 %v5891_v52, %s3312_s13 }
 0x264   : > { %v2842_v32 = vsel %vm3758_vm3, %v2470_v0, %v2841_v41  ;;  %v1807_v23 = vpop.permute.xlu0 %1806  ;;  %v5929_v41 = vmax.bf16 %v3288_v27, %v423_v44  ;;  %v3289_v0 = vld [vmem:[%s3337_s12 + $0x960] sm:$0xf]  ;;  %v2850_v27 = vld [vmem:[%s3701_s17 + $0x3d0] sm:$0x3] }
 0x265   : > { %2843 = vst [vmem:[%s3701_s17 + $0x3b4] sm:$0x3] %v2842_v32  ;;  %v2471_v22 = vmax.bf16 %v1807_v23, %v5365_v49  ;;  %v1809_v11 = vpop.permute.xlu1 %1808  ;;  %v5939_v53 = vmax.bf16 %v3289_v0, %v424_v43 }
 0x266   : > { %1920 = vrot.lane.b32.xlu0 %v5904_v6, %s3312_s13  ;;  %v2472_v46 = vmax.bf16 %v1809_v11, %v5371_v37 }
 0x267   : > { %2844 = vst.msk [vmem:[%s3701_s17 + $0x3b8] sm:$0xf] %vm2534_vm0, %v2471_v22  ;;  %1922 = vrot.lane.b32.xlu1 %v5910_v5, %s3312_s13 }
 0x268   : > { %2845 = vst.msk [vmem:[%s3701_s17 + $0x3bc] sm:$0xf] %vm2534_vm0, %v2472_v46  ;;  %v1811_v49 = vpop.permute.xlu0 %1810 }
 0x269   : > { %v2473_v37 = vmax.bf16 %v1811_v49, %v5384_v7  ;;  %v1813_v32 = vpop.permute.xlu1 %1812 }
 0x26a   : > { %1924 = vrot.lane.b32.xlu0 %v5923_v8, %s3312_s13  ;;  %v2474_v57 = vmax.bf16 %v1813_v32, %v5390_v28 }
 0x26b   : > { %2846 = vst.msk [vmem:[%s3701_s17 + $0x3c0] sm:$0xf] %vm2534_vm0, %v2473_v37  ;;  %1926 = vrot.lane.b32.xlu1 %v5929_v41, %s3312_s13 }
 0x26c   : > { %2847 = vst.msk [vmem:[%s3701_s17 + $0x3c4] sm:$0xf] %vm2534_vm0, %v2474_v57  ;;  %v1815_v23 = vpop.permute.xlu0 %1814 }
 0x26d   : > { %v2475_v7 = vmax.bf16 %v1815_v23, %v5403_v9  ;;  %v1817_v44 = vpop.permute.xlu1 %1816  ;;  %v2859_v23 = vld [vmem:[%s3701_s17 + $0x3ec] sm:$0x3] }
 0x26e   : > { %1928 = vrot.lane.b32.xlu0 %v5939_v53, %s3312_s13  ;;  %v2476_v28 = vmax.bf16 %v1817_v44, %v5409_v18 }
 0x26f   : > { %2848 = vst.msk [vmem:[%s3701_s17 + $0x3c8] sm:$0xf] %vm2534_vm0, %v2475_v7 }
 0x270   : > { %2849 = vst.msk [vmem:[%s3701_s17 + $0x3cc] sm:$0xf] %vm2534_vm0, %v2476_v28  ;;  %v1819_v22 = vpop.permute.xlu0 %1818 }
 0x271   : > { %v2477_v11 = vmax.bf16 %v1819_v22, %v5421_v54  ;;  %v1821_v46 = vpop.permute.xlu1 %1820 }
 0x272   : > { %v2478_v9 = vmax.bf16 %v1821_v46, %v5427_v1 }
 0x273   : > { %v2851_v43 = vsel %vm3758_vm3, %v2477_v11, %v2850_v27 }
 0x274   : > { %2852 = vst [vmem:[%s3701_s17 + $0x3d0] sm:$0x3] %v2851_v43  ;;  %2853 = vst.msk [vmem:[%s3701_s17 + $0x3d4] sm:$0xf] %vm2534_vm0, %v2478_v9  ;;  %v1823_v18 = vpop.permute.xlu0 %1822 }
 0x275   : > { %v2479_v0 = vmax.bf16 %v1823_v18, %v5439_v51  ;;  %v1825_v49 = vpop.permute.xlu1 %1824 }
 0x276   : > { %v2480_v37 = vmax.bf16 %v1825_v49, %v5445_v35 }
 0x277   : > { %2854 = vst.msk [vmem:[%s3701_s17 + $0x3d8] sm:$0xf] %vm2534_vm0, %v2479_v0 }
 0x278   : > { %2855 = vst.msk [vmem:[%s3701_s17 + $0x3dc] sm:$0xf] %vm2534_vm0, %v2480_v37  ;;  %v1827_v54 = vpop.permute.xlu0 %1826 }
 0x279   : > { %v2481_v1 = vmax.bf16 %v1827_v54, %v5458_v63  ;;  %v1829_v32 = vpop.permute.xlu1 %1828 }
 0x27a   : > { %v2482_v57 = vmax.bf16 %v1829_v32, %v5464_v39 }
 0x27b   : > { %2856 = vst.msk [vmem:[%s3701_s17 + $0x3e0] sm:$0xf] %vm2534_vm0, %v2481_v1 }
 0x27c   : > { %2857 = vst.msk [vmem:[%s3701_s17 + $0x3e4] sm:$0xf] %vm2534_vm0, %v2482_v57  ;;  %v1831_v51 = vpop.permute.xlu0 %1830 }
 0x27d   : > { %v2483_v35 = vmax.bf16 %v1831_v51, %v5477_v62  ;;  %v1833_v7 = vpop.permute.xlu1 %1832  ;;  %v2877_v51 = vld [vmem:[%s3701_s17 + $0x424] sm:$0x3] }
 0x27e   : > { %v2484_v44 = vmax.bf16 %v1833_v7, %v5483_v58 }
 0x27f   : > { %2858 = vst.msk [vmem:[%s3701_s17 + $0x3e8] sm:$0xf] %vm2534_vm0, %v2483_v35 }
 0x280   : > { %v2860_v63 = vsel %vm3758_vm3, %v2484_v44, %v2859_v23  ;;  %v1835_v39 = vpop.permute.xlu0 %1834 }
 0x281   : > { %2861 = vst [vmem:[%s3701_s17 + $0x3ec] sm:$0x3] %v2860_v63  ;;  %v2485_v28 = vmax.bf16 %v1835_v39, %v5495_v56  ;;  %v1837_v27 = vpop.permute.xlu1 %1836 }
 0x282   : > { %v2486_v62 = vmax.bf16 %v1837_v27, %v5501_v36  ;;  %v2886_v27 = vld [vmem:[%s3701_s17 + $0x440] sm:$0x3] }
 0x283   : > { %2862 = vst.msk [vmem:[%s3701_s17 + $0x3f0] sm:$0xf] %vm2534_vm0, %v2485_v28 }
 0x284   : > { %2863 = vst.msk [vmem:[%s3701_s17 + $0x3f4] sm:$0xf] %vm2534_vm0, %v2486_v62  ;;  %v1839_v58 = vpop.permute.xlu0 %1838 }
 0x285   : > { %v2487_v22 = vmax.bf16 %v1839_v58, %v5514_v31  ;;  %v1841_v11 = vpop.permute.xlu1 %1840  ;;  %v2868_v31 = vld [vmem:[%s3701_s17 + $0x408] sm:$0x3] }
 0x286   : > { %v2488_v46 = vmax.bf16 %v1841_v11, %v5520_v12 }
 0x287   : > { %2864 = vst.msk [vmem:[%s3701_s17 + $0x3f8] sm:$0xf] %vm2534_vm0, %v2487_v22 }
 0x288   : > { %2865 = vst.msk [vmem:[%s3701_s17 + $0x3fc] sm:$0xf] %vm2534_vm0, %v2488_v46  ;;  %v1843_v56 = vpop.permute.xlu0 %1842  ;;  %v2904_v46 = vld [vmem:[%s3701_s17 + $0x478] sm:$0x3] }
 0x289   : > { %v2489_v9 = vmax.bf16 %v1843_v56, %v5533_v50  ;;  %v1845_v36 = vpop.permute.xlu1 %1844 }
 0x28a   : > { %v2490_v43 = vmax.bf16 %v1845_v36, %v5539_v30  ;;  %v2913_v36 = vld [vmem:[%s3701_s17 + $0x494] sm:$0x3] }
 0x28b   : > { %2866 = vst.msk [vmem:[%s3701_s17 + $0x400] sm:$0xf] %vm2534_vm0, %v2489_v9 }
 0x28c   : > { %2867 = vst.msk [vmem:[%s3701_s17 + $0x404] sm:$0xf] %vm2534_vm0, %v2490_v43  ;;  %v1847_v18 = vpop.permute.xlu0 %1846 }
 0x28d   : > { %v2491_v12 = vmax.bf16 %v1847_v18, %v5551_v24  ;;  %v1849_v0 = vpop.permute.xlu1 %1848 }
 0x28e   : > { %v2492_v49 = vmax.bf16 %v1849_v0, %v5557_v45 }
 0x28f   : > { %v2869_v50 = vsel %vm3758_vm3, %v2491_v12, %v2868_v31 }
 0x290   : > { %2870 = vst [vmem:[%s3701_s17 + $0x408] sm:$0x3] %v2869_v50  ;;  %2871 = vst.msk [vmem:[%s3701_s17 + $0x40c] sm:$0xf] %vm2534_vm0, %v2492_v49  ;;  %v1851_v30 = vpop.permute.xlu0 %1850 }
 0x291   : > { %v2493_v37 = vmax.bf16 %v1851_v30, %v5569_v21  ;;  %v1853_v54 = vpop.permute.xlu1 %1852 }
 0x292   : > { %v2494_v1 = vmax.bf16 %v1853_v54, %v5575_v42 }
 0x293   : > { %2872 = vst.msk [vmem:[%s3701_s17 + $0x410] sm:$0xf] %vm2534_vm0, %v2493_v37  ;;  %v6291_v37 = vld [vmem:[#allocation14_spill] sm:$0xff] }
 0x294   : > { %2873 = vst.msk [vmem:[%s3701_s17 + $0x414] sm:$0xf] %vm2534_vm0, %v2494_v1  ;;  %v1855_v24 = vpop.permute.xlu0 %1854  ;;  %v6292_v1 = vld [vmem:[#allocation3_spill] sm:$0xff] }
 0x295   : > { %v2495_v45 = vmax.bf16 %v1855_v24, %v5588_v55  ;;  %v1857_v32 = vpop.permute.xlu1 %1856 }
 0x296   : > { %v2496_v57 = vmax.bf16 %v1857_v32, %v5594_v4 }
 0x297   : > { %2874 = vst.msk [vmem:[%s3701_s17 + $0x418] sm:$0xf] %vm2534_vm0, %v2495_v45  ;;  %v6293_v45 = vld [vmem:[#allocation4_spill] sm:$0xff] }
 0x298   : > { %2875 = vst.msk [vmem:[%s3701_s17 + $0x41c] sm:$0xf] %vm2534_vm0, %v2496_v57  ;;  %v1859_v21 = vpop.permute.xlu0 %1858  ;;  %v6294_v57 = vld [vmem:[#allocation15_spill] sm:$0xff] }
 0x299   : > { %v2497_v42 = vmax.bf16 %v1859_v21, %v5607_v59  ;;  %v1861_v35 = vpop.permute.xlu1 %1860 }
 0x29a   : > { %v2498_v23 = vmax.bf16 %v1861_v35, %v5613_v29 }
 0x29b   : > { %2876 = vst.msk [vmem:[%s3701_s17 + $0x420] sm:$0xf] %vm2534_vm0, %v2497_v42 }
 0x29c   : > { %v2878_v55 = vsel %vm3758_vm3, %v2498_v23, %v2877_v51  ;;  %v1863_v4 = vpop.permute.xlu0 %1862  ;;  %v6295_v51 = vld [vmem:[#allocation5_spill] sm:$0xff] }
 0x29d   : > { %2879 = vst [vmem:[%s3701_s17 + $0x424] sm:$0x3] %v2878_v55  ;;  %v2499_v7 = vmax.bf16 %v1863_v4, %v5625_v2  ;;  %v1865_v44 = vpop.permute.xlu1 %1864  ;;  %v6296_v55 = vld [vmem:[#allocation6_spill] sm:$0xff] }
 0x29e   : > { %v2500_v59 = vmax.bf16 %v1865_v44, %v5631_v38  ;;  %v6297_v44 = vld [vmem:[#allocation7_spill] sm:$0xff] }
 0x29f   : > { %2880 = vst.msk [vmem:[%s3701_s17 + $0x428] sm:$0xf] %vm2534_vm0, %v2499_v7 }
 0x2a0   : > { %2881 = vst.msk [vmem:[%s3701_s17 + $0x42c] sm:$0xf] %vm2534_vm0, %v2500_v59  ;;  %v1867_v29 = vpop.permute.xlu0 %1866 }
 0x2a1   : > { %v2501_v63 = vmax.bf16 %v1867_v29, %v5644_v26  ;;  %v1869_v39 = vpop.permute.xlu1 %1868 }
 0x2a2   : > { %v2502_v28 = vmax.bf16 %v1869_v39, %v5650_v25  ;;  %v2895_v25 = vld [vmem:[%s3701_s17 + $0x45c] sm:$0x3] }
 0x2a3   : > { %2882 = vst.msk [vmem:[%s3701_s17 + $0x430] sm:$0xf] %vm2534_vm0, %v2501_v63  ;;  %v6298_v63 = vld [vmem:[#allocation8_spill] sm:$0xff] }
 0x2a4   : > { %2883 = vst.msk [vmem:[%s3701_s17 + $0x434] sm:$0xf] %vm2534_vm0, %v2502_v28  ;;  %v1871_v2 = vpop.permute.xlu0 %1870 }
 0x2a5   : > { %v2503_v38 = vmax.bf16 %v1871_v2, %v5663_v10  ;;  %v1875_v62 = vpop.permute.xlu1 %1874  ;;  %v6299_v2 = vld [vmem:[#allocation9_spill] sm:$0xff] }
 0x2a6   : > { %v2505_v58 = vmax.bf16 %v1875_v62, %v5669_v20  ;;  %v6300_v62 = vld [vmem:[#allocation10_spill] sm:$0xff] }
 0x2a7   : > { %2884 = vst.msk [vmem:[%s3701_s17 + $0x438] sm:$0xf] %vm2534_vm0, %v2503_v38 }
 0x2a8   : > { %v2887_v26 = vsel %vm3758_vm3, %v2505_v58, %v2886_v27  ;;  %v1889_v22 = vpop.permute.xlu0 %1888 }
 0x2a9   : > { %2888 = vst [vmem:[%s3701_s17 + $0x440] sm:$0x3] %v2887_v26  ;;  %v2512_v11 = vmax.bf16 %v1889_v22, %v5681_v13  ;;  %v1903_v10 = vpop.permute.xlu1 %1902  ;;  %v2922_v13 = vld [vmem:[%s3701_s17 + $0x4b0] sm:$0x3] }
 0x2aa   : > { %v2519_v56 = vmax.bf16 %v1903_v10, %v5687_v16 }
 0x2ab   : > { %v2896_v20 = vsel %vm3758_vm3, %v2512_v11, %v2895_v25 }
 0x2ac   : > { %2897 = vst [vmem:[%s3701_s17 + $0x45c] sm:$0x3] %v2896_v20  ;;  %v2905_v9 = vsel %vm3758_vm3, %v2519_v56, %v2904_v46  ;;  %v1917_v43 = vpop.permute.xlu0 %1916 }
 0x2ad   : > { %2906 = vst [vmem:[%s3701_s17 + $0x478] sm:$0x3] %v2905_v9  ;;  %v2526_v31 = vmax.bf16 %v1917_v43, %v5699_v61  ;;  %v1931_v18 = vpop.permute.xlu1 %1930 }
 0x2ae   : > { %v2533_v12 = vmax.bf16 %v1931_v18, %v5705_v48 }
 0x2af   : > { %v2914_v16 = vsel %vm3758_vm3, %v2526_v31, %v2913_v36 }
 0x2b0   : > { %2915 = vst [vmem:[%s3701_s17 + $0x494] sm:$0x3] %v2914_v16  ;;  %v2923_v0 = vsel %vm3758_vm3, %v2533_v12, %v2922_v13  ;;  %v1873_v49 = vpop.permute.xlu0 %1872 }
 0x2b1   : > { %2924 = vst [vmem:[%s3701_s17 + $0x4b0] sm:$0x3] %v2923_v0  ;;  %v2504_v50 = vmax.bf16 %v1873_v49, %v5718_v33  ;;  %v1877_v61 = vpop.permute.xlu1 %1876 }
 0x2b2   : > { %v2506_v30 = vmax.bf16 %v1877_v61, %v5724_v15 }
 0x2b3   : > { %2885 = vst.msk [vmem:[%s3701_s17 + $0x43c] sm:$0xf] %vm2534_vm0, %v2504_v50 }
 0x2b4   : > { %2889 = vst.msk [vmem:[%s3701_s17 + $0x444] sm:$0xf] %vm2534_vm0, %v2506_v30  ;;  %v1879_v48 = vpop.permute.xlu0 %1878 }
 0x2b5   : > { %v2507_v54 = vmax.bf16 %v1879_v48, %v6291_v37  ;;  %v1881_v17 = vpop.permute.xlu1 %1880 }
 0x2b6   : > { %v2508_v24 = vmax.bf16 %v1881_v17, %v6292_v1 }
 0x2b7   : > { %2890 = vst.msk [vmem:[%s3701_s17 + $0x448] sm:$0xf] %vm2534_vm0, %v2507_v54 }
 0x2b8   : > { %2891 = vst.msk [vmem:[%s3701_s17 + $0x44c] sm:$0xf] %vm2534_vm0, %v2508_v24  ;;  %v1883_v33 = vpop.permute.xlu0 %1882 }
 0x2b9   : > { %v2509_v15 = vmax.bf16 %v1883_v33, %v6293_v45  ;;  %v1885_v32 = vpop.permute.xlu1 %1884 }
 0x2ba   : > { %v2510_v21 = vmax.bf16 %v1885_v32, %v6294_v57 }
 0x2bb   : > { %2892 = vst.msk [vmem:[%s3701_s17 + $0x450] sm:$0xf] %vm2534_vm0, %v2509_v15 }
 0x2bc   : > { %2893 = vst.msk [vmem:[%s3701_s17 + $0x454] sm:$0xf] %vm2534_vm0, %v2510_v21  ;;  %v1887_v42 = vpop.permute.xlu0 %1886 }
 0x2bd   : > { %v2511_v35 = vmax.bf16 %v1887_v42, %v6295_v51  ;;  %v1891_v23 = vpop.permute.xlu1 %1890 }
 0x2be   : > { %v2513_v4 = vmax.bf16 %v1891_v23, %v6296_v55 }
 0x2bf   : > { %2894 = vst.msk [vmem:[%s3701_s17 + $0x458] sm:$0xf] %vm2534_vm0, %v2511_v35 }
 0x2c0   : > { %2898 = vst.msk [vmem:[%s3701_s17 + $0x460] sm:$0xf] %vm2534_vm0, %v2513_v4  ;;  %v1893_v7 = vpop.permute.xlu0 %1892 }
 0x2c1   : > { %v2514_v59 = vmax.bf16 %v1893_v7, %v6297_v44  ;;  %v1895_v29 = vpop.permute.xlu1 %1894 }
 0x2c2   : > { %v2515_v39 = vmax.bf16 %v1895_v29, %v6298_v63 }
 0x2c3   : > { %2899 = vst.msk [vmem:[%s3701_s17 + $0x464] sm:$0xf] %vm2534_vm0, %v2514_v59 }
 0x2c4   : > { %2900 = vst.msk [vmem:[%s3701_s17 + $0x468] sm:$0xf] %vm2534_vm0, %v2515_v39  ;;  %v1897_v28 = vpop.permute.xlu0 %1896 }
 0x2c5   : > { %v2516_v38 = vmax.bf16 %v1897_v28, %v6299_v2  ;;  %v1899_v27 = vpop.permute.xlu1 %1898 }
 0x2c6   : > { %v2517_v58 = vmax.bf16 %v1899_v27, %v6300_v62 }
 0x2c7   : > { %2901 = vst.msk [vmem:[%s3701_s17 + $0x46c] sm:$0xf] %vm2534_vm0, %v2516_v38 }
 0x2c8   : > { %2902 = vst.msk [vmem:[%s3701_s17 + $0x470] sm:$0xf] %vm2534_vm0, %v2517_v58  ;;  %v1901_v26 = vpop.permute.xlu0 %1900 }
 0x2c9   : > { %v2518_v25 = vmax.bf16 %v1901_v26, %v5829_v60  ;;  %v1905_v22 = vpop.permute.xlu1 %1904 }
 0x2ca   : > { %v2520_v11 = vmax.bf16 %v1905_v22, %v5835_v40 }
 0x2cb   : > { %2903 = vst.msk [vmem:[%s3701_s17 + $0x474] sm:$0xf] %vm2534_vm0, %v2518_v25 }
 0x2cc   : > { %2907 = vst.msk [vmem:[%s3701_s17 + $0x47c] sm:$0xf] %vm2534_vm0, %v2520_v11  ;;  %v1907_v46 = vpop.permute.xlu0 %1906 }
 0x2cd   : > { %v2521_v10 = vmax.bf16 %v1907_v46, %v5848_v34  ;;  %v1909_v56 = vpop.permute.xlu1 %1908 }
 0x2ce   : > { %v2522_v20 = vmax.bf16 %v1909_v56, %v5854_v47 }
 0x2cf   : > { %2908 = vst.msk [vmem:[%s3701_s17 + $0x480] sm:$0xf] %vm2534_vm0, %v2521_v10 }
 0x2d0   : > { %2909 = vst.msk [vmem:[%s3701_s17 + $0x484] sm:$0xf] %vm2534_vm0, %v2522_v20  ;;  %v1911_v60 = vpop.permute.xlu0 %1910 }
 0x2d1   : > { %v2523_v40 = vmax.bf16 %v1911_v60, %v5867_v19  ;;  %v1913_v9 = vpop.permute.xlu1 %1912 }
 0x2d2   : > { %v2524_v36 = vmax.bf16 %v1913_v9, %v5873_v14 }
 0x2d3   : > { %2910 = vst.msk [vmem:[%s3701_s17 + $0x488] sm:$0xf] %vm2534_vm0, %v2523_v40 }
 0x2d4   : > { %2911 = vst.msk [vmem:[%s3701_s17 + $0x48c] sm:$0xf] %vm2534_vm0, %v2524_v36  ;;  %v1915_v34 = vpop.permute.xlu0 %1914 }
 0x2d5   : > { %v2525_v47 = vmax.bf16 %v1915_v34, %v5885_v3  ;;  %v1919_v43 = vpop.permute.xlu1 %1918 }
 0x2d6   : > { %v2527_v31 = vmax.bf16 %v1919_v43, %v5891_v52 }
 0x2d7   : > { %2912 = vst.msk [vmem:[%s3701_s17 + $0x490] sm:$0xf] %vm2534_vm0, %v2525_v47 }
 0x2d8   : > { %2916 = vst.msk [vmem:[%s3701_s17 + $0x498] sm:$0xf] %vm2534_vm0, %v2527_v31  ;;  %v1921_v19 = vpop.permute.xlu0 %1920 }
 0x2d9   : > { %v2528_v14 = vmax.bf16 %v1921_v19, %v5904_v6  ;;  %v1923_v13 = vpop.permute.xlu1 %1922 }
 0x2da   : > { %v2529_v18 = vmax.bf16 %v1923_v13, %v5910_v5 }
 0x2db   : > { %2917 = vst.msk [vmem:[%s3701_s17 + $0x49c] sm:$0xf] %vm2534_vm0, %v2528_v14 }
 0x2dc   : > { %2918 = vst.msk [vmem:[%s3701_s17 + $0x4a0] sm:$0xf] %vm2534_vm0, %v2529_v18  ;;  %v1925_v3 = vpop.permute.xlu0 %1924 }
 0x2dd   : > { %v2530_v12 = vmax.bf16 %v1925_v3, %v5923_v8  ;;  %v1927_v16 = vpop.permute.xlu1 %1926 }
 0x2de   : > { %v2531_v52 = vmax.bf16 %v1927_v16, %v5929_v41 }
 0x2df   : > { %2919 = vst.msk [vmem:[%s3701_s17 + $0x4a4] sm:$0xf] %vm2534_vm0, %v2530_v12 }
 0x2e0   : > { %2920 = vst.msk [vmem:[%s3701_s17 + $0x4a8] sm:$0xf] %vm2534_vm0, %v2531_v52  ;;  %v1929_v0 = vpop.permute.xlu0 %1928 }
 0x2e1   : > { %v2532_v6 = vmax.bf16 %v1929_v0, %v5939_v53 }
 0x2e3   : > { %2921 = vst.msk [vmem:[%s3701_s17 + $0x4ac] sm:$0xf] %vm2534_vm0, %v2532_v6 }
 0x2e4 PF: > { %s11_s6 = sadd.s32 1, %s3310_s6  }
 0x2e5   : > { %p8_p4 = scmp.ge.s32.totalorder %s11_s6, 4  }
 0x2e7   :  { %10 = sbr.rel (!%p8_p4) target bundleno = 1 (0x1), region = 55 }

// kernel: autopilot_forward.9
= control target key start
LH: loop header
LB: loop body
LE: loop exit
PB: predicated region body
PF: predicated region fallthrough
CT: control target
= control target key end

     0   :  { %s4413_s12 = smov 0   ;;  %s5382_s0 = inlined_call_operand.vmem [shape: bf16[960,800], index: 0, kind: input, shape index: {}]   ;;  %s5383_s1 = inlined_call_operand.vmem [shape: bf16[800,64], index: 1, kind: input, shape index: {}]   ;;  %s5384_s2 = inlined_call_operand.vmem [shape: f32[1,64], index: 2, kind: input, shape index: {}]   ;;  %s5385_s3 = inlined_call_operand.vmem [shape: bf16[960,64], index: 3, kind: output, shape index: {}]  }
   0x1 LB: > { %s3475_s13 = sadd.s32 4294967295, %s4390_s12   ;;  %p3479_p0 = scmp.ge.s32.totalorder %s4390_s12, 1  ;;  %s4390_s12 = sphi %s4413_s12, %s13_s12  }
   0x2   : > { %p139_p1 = scmp.lt.s32.totalorder %s4390_s12, 3 }
   0x4   : > { %p140_p2 = pnand %p3479_p0, %p139_p1 }
   0x6   : > { %143 = sbr.rel (%p140_p2) target bundleno = 698 (0x2ba), region = 32 }
   0xb   : > { %v4033_v0 = vld [vmem:[%s5383_s1 + $0x38] sm:$0xff]   ;;  %v4392_v1 = vmov 0   ;;  %v4035_v3 = vld [vmem:[%s5383_s1 + $0x30] sm:$0xff]   ;;  %v4037_v5 = vld [vmem:[%s5383_s1 + $0x28] sm:$0xff]   ;;  %s164_s5 = smul.u32 60, %s3475_s13  ;;  %vm1875_vm0 = vcmask 261120  }
   0xc   : > { %1966 = vmatprep.subr.bf16.mxu0 %v4392_v1  ;;  %2239 = vmatprep.subr.bf16.mxu1 %v4392_v1  ;;  %v4034_v2 = vld [vmem:[%s5383_s1 + $0xb8] sm:$0xff]   ;;  %v4036_v4 = vld [vmem:[%s5383_s1 + $0xb0] sm:$0xff]   ;;  %v4038_v6 = vld [vmem:[%s5383_s1 + $0xa8] sm:$0xff]   ;;  %vm3358_vm1 = vcmask 519168  }
   0xd   : > { %1967 = vmatpush1.bf16.msra.mxu0 %v4033_v0  ;;  %2240 = vmatpush1.bf16.msra.mxu1 %v4034_v2  ;;  %v4039_v7 = vld [vmem:[%s5383_s1 + $0x20] sm:$0xff]   ;;  %v4041_v9 = vld [vmem:[%s5383_s1 + $0x18] sm:$0xff]   ;;  %v4043_v11 = vld [vmem:[%s5383_s1 + $0x10] sm:$0xff]   ;;  %p165_p3 = scmp.lt.s32.totalorder %s164_s5, 119 }
   0xe   : > { %1968 = vmatprep.subr.bf16.mxu0 %v4392_v1  ;;  %2241 = vmatprep.subr.bf16.mxu1 %v4392_v1  ;;  %v4040_v8 = vld [vmem:[%s5383_s1 + $0xa0] sm:$0xff]   ;;  %v4042_v10 = vld [vmem:[%s5383_s1 + $0x98] sm:$0xff]   ;;  %v4044_v12 = vld [vmem:[%s5383_s1 + $0x90] sm:$0xff]  }
   0xf   : > { %v4045_v13 = vld [vmem:[%s5383_s1 + $0x8] sm:$0xff]   ;;  %s5433_s5 = smov (!%p165_p3, %s164_s5), 119  ;;  %v4047_v15 = vld [vmem:[%s5383_s1] sm:$0xff]   ;;  %v4049_v17 = vld [vmem:[%s5383_s1 + $0x78] sm:$0xff]  }
  0x10   : > { %v4046_v14 = vld [vmem:[%s5383_s1 + $0x88] sm:$0xff]   ;;  %s4023_s19 = smul.u32 28, %s5433_s5  ;;  %v4048_v16 = vld [vmem:[%s5383_s1 + $0x80] sm:$0xff]   ;;  %v4050_v18 = vld [vmem:[%s5383_s1 + $0xf8] sm:$0xff]  }
  0x11   : > { %1969 = vmatpush1.bf16.msra.mxu0 %v4035_v3  ;;  %2242 = vmatpush1.bf16.msra.mxu1 %v4036_v4  ;;  %v4051_v20 = vld [vmem:[%s5383_s1 + $0x70] sm:$0xff]   ;;  %v4053_v23 = vld [vmem:[%s5383_s1 + $0x68] sm:$0xff]   ;;  %v4055_v25 = vld [vmem:[%s5383_s1 + $0x60] sm:$0xff]  }
  0x12   : > { %1970 = vmatprep.subr.bf16.mxu0 %v4392_v1  ;;  %2243 = vmatprep.subr.bf16.mxu1 %v4392_v1  ;;  %s4496_s26 = scalar_lea.vmem %s5382_s0, %s4023_s19  ;;  %v4052_v22 = vld [vmem:[%s5383_s1 + $0xf0] sm:$0xff]   ;;  %v4054_v24 = vld [vmem:[%s5383_s1 + $0xe8] sm:$0xff]   ;;  %v4056_v26 = vld [vmem:[%s5383_s1 + $0xe0] sm:$0xff]  }
  0x13   : > { %v4067_v19 = vld [vmem:[%s4496_s26 + $0x4] ss:$28 sps:$4 sm:$0xff]   ;;  %v4070_v21 = vld [vmem:[%s4496_s26 + $0xc] ss:$28 sps:$4 sm:$0xff]   ;;  %v4057_v27 = vld [vmem:[%s5383_s1 + $0x58] sm:$0xff]  }
  0x14   : > { %1998 = vmatprep.mubr.bf16.mxu0 %v4067_v19  ;;  %2271 = vmatprep.mubr.bf16.mxu1 %v4070_v21  ;;  %v4058_v28 = vld [vmem:[%s5383_s1 + $0xd8] sm:$0xff]   ;;  %v4059_v29 = vld [vmem:[%s5383_s1 + $0x50] sm:$0xff]   ;;  %v4061_v31 = vld [vmem:[%s5383_s1 + $0x48] sm:$0xff]  }
  0x15   : > { %1971 = vmatpush1.bf16.msra.mxu0 %v4037_v5  ;;  %2244 = vmatpush1.bf16.msra.mxu1 %v4038_v6  ;;  %v4060_v30 = vld [vmem:[%s5383_s1 + $0xd0] sm:$0xff]   ;;  %v4062_v32 = vld [vmem:[%s5383_s1 + $0xc8] sm:$0xff]   ;;  %v4063_v33 = vld [vmem:[%s5383_s1 + $0x40] sm:$0xff]  }
  0x16   : > { %1972 = vmatprep.subr.bf16.mxu0 %v4392_v1  ;;  %2245 = vmatprep.subr.bf16.mxu1 %v4392_v1  ;;  %v4064_v34 = vld [vmem:[%s5383_s1 + $0xc0] sm:$0xff]   ;;  %v4071_v37 = vld [vmem:[%s5383_s1 + $0x138] sm:$0xff]   ;;  %v4084_v40 = vld [vmem:[%s5383_s1 + $0x130] sm:$0xff]  }
  0x17   : > { %v4065_v35 = vld [vmem:[%s4496_s26] ss:$28 sps:$4 sm:$0xff]   ;;  %v4068_v36 = vld [vmem:[%s4496_s26 + $0x8] ss:$28 sps:$4 sm:$0xff]   ;;  %v4076_v41 = vld [vmem:[%s4496_s26 + $0x38] ss:$28 sps:$4 sm:$0xff]  }
  0x18   : > { %v4072_v38 = vld [vmem:[%s4496_s26 + $0x3c] ss:$28 sps:$4 sm:$0xff]   ;;  %v4074_v39 = vld [vmem:[%s4496_s26 + $0x44] ss:$28 sps:$4 sm:$0xff]   ;;  %v4078_v43 = vld [vmem:[%s4496_s26 + $0x74] ss:$28 sps:$4 sm:$0xff]  }
  0x19   : > { %1973 = vmatpush1.bf16.msra.mxu0 %v4039_v7  ;;  %2246 = vmatpush1.bf16.msra.mxu1 %v4040_v8  ;;  %v4077_v42 = vld [vmem:[%s4496_s26 + $0x40] ss:$28 sps:$4 sm:$0xff]   ;;  %v4095_v45 = vld [vmem:[%s5383_s1 + $0x128] sm:$0xff]   ;;  %v4083_v48 = vld [vmem:[%s4496_s26 + $0x78] ss:$28 sps:$4 sm:$0xff]  }
  0x1a   : > { %1974 = vmatprep.subr.bf16.mxu0 %v4392_v1  ;;  %2247 = vmatprep.subr.bf16.mxu1 %v4392_v1  ;;  %v4080_v44 = vld [vmem:[%s4496_s26 + $0x7c] ss:$28 sps:$4 sm:$0xff]   ;;  %v4104_v46 = vld [vmem:[%s5383_s1 + $0x120] sm:$0xff]   ;;  %v4082_v47 = vld [vmem:[%s4496_s26 + $0x70] ss:$28 sps:$4 sm:$0xff]  }
  0x1b   : > { %v4085_v49 = vld [vmem:[%s4496_s26 + $0xac] ss:$28 sps:$4 sm:$0xff]   ;;  %v4087_v50 = vld [vmem:[%s4496_s26 + $0xb4] ss:$28 sps:$4 sm:$0xff]   ;;  %v4117_v51 = vld [vmem:[%s5383_s1 + $0x118] sm:$0xff]  }
  0x1c   : > { %v4130_v52 = vld [vmem:[%s5383_s1 + $0x110] sm:$0xff]   ;;  %v4089_v53 = vld [vmem:[%s4496_s26 + $0xa8] ss:$28 sps:$4 sm:$0xff]   ;;  %v4096_v59 = vld [vmem:[%s4496_s26 + $0xe0] ss:$28 sps:$4 sm:$0xff]  }
  0x1d   : > { %1975 = vmatpush1.bf16.msra.mxu0 %v4041_v9  ;;  %2248 = vmatpush1.bf16.msra.mxu1 %v4042_v10  ;;  %v4090_v54 = vld [vmem:[%s4496_s26 + $0xb0] ss:$28 sps:$4 sm:$0xff]   ;;  %v4091_v55 = vld [vmem:[%s4496_s26 + $0xe4] ss:$28 sps:$4 sm:$0xff]   ;;  %v4098_v61 = vld [vmem:[%s4496_s26 + $0x11c] ss:$28 sps:$4 sm:$0xff]  }
  0x1e   : > { %1976 = vmatprep.subr.bf16.mxu0 %v4392_v1  ;;  %2249 = vmatprep.subr.bf16.mxu1 %v4392_v1  ;;  %v4093_v56 = vld [vmem:[%s4496_s26 + $0xec] ss:$28 sps:$4 sm:$0xff]   ;;  %v4156_v58 = vld [vmem:[%s5383_s1 + $0x100] sm:$0xff]   ;;  %v4169_v63 = vld [vmem:[%s5383_s1 + $0x178] sm:$0xff]  }
  0x1f   : > { %v4143_v57 = vld [vmem:[%s5383_s1 + $0x108] sm:$0xff]   ;;  %v4100_v62 = vld [vmem:[%s4496_s26 + $0x124] ss:$28 sps:$4 sm:$0xff]   ;;  %v4102_v0 = vld [vmem:[%s4496_s26 + $0x118] ss:$28 sps:$4 sm:$0xff]  }
  0x20   : > { %v4097_v60 = vld [vmem:[%s4496_s26 + $0xe8] ss:$28 sps:$4 sm:$0xff]   ;;  %v4182_v2 = vld [vmem:[%s5383_s1 + $0x170] sm:$0xff]   ;;  %v4103_v3 = vld [vmem:[%s4496_s26 + $0x120] ss:$28 sps:$4 sm:$0xff]  }
  0x21   : > { %1977 = vmatpush1.bf16.msra.mxu0 %v4043_v11  ;;  %2250 = vmatpush1.bf16.msra.mxu1 %v4044_v12  ;;  %v4105_v4 = vld [vmem:[%s4496_s26 + $0x154] ss:$28 sps:$4 sm:$0xff]   ;;  %v4107_v5 = vld [vmem:[%s4496_s26 + $0x15c] ss:$28 sps:$4 sm:$0xff]   ;;  %v4193_v6 = vld [vmem:[%s5383_s1 + $0x168] sm:$0xff]  }
  0x22   : > { %1978 = vmatprep.subr.bf16.mxu0 %v4392_v1  ;;  %2251 = vmatprep.subr.bf16.mxu1 %v4392_v1  ;;  %v4109_v7 = vld [vmem:[%s4496_s26 + $0x150] ss:$28 sps:$4 sm:$0xff]   ;;  %v4202_v8 = vld [vmem:[%s5383_s1 + $0x160] sm:$0xff]   ;;  %v4110_v9 = vld [vmem:[%s4496_s26 + $0x158] ss:$28 sps:$4 sm:$0xff]  }
  0x23   : > { %v4111_v10 = vld [vmem:[%s4496_s26 + $0x18c] ss:$28 sps:$4 sm:$0xff]   ;;  %v4113_v11 = vld [vmem:[%s4496_s26 + $0x194] ss:$28 sps:$4 sm:$0xff]   ;;  %v4215_v12 = vld [vmem:[%s5383_s1 + $0x158] sm:$0xff]  }
  0x24   : > { %v4124_v19 = vld [vmem:[%s4496_s26 + $0x1fc] ss:$28 sps:$4 sm:$0xff]  }
  0x25   : > { %1979 = vmatpush1.bf16.msra.mxu0 %v4045_v13  ;;  %2252 = vmatpush1.bf16.msra.mxu1 %v4046_v14  ;;  %v4115_v13 = vld [vmem:[%s4496_s26 + $0x188] ss:$28 sps:$4 sm:$0xff]   ;;  %v4116_v14 = vld [vmem:[%s4496_s26 + $0x190] ss:$28 sps:$4 sm:$0xff]   ;;  %v4128_v21 = vld [vmem:[%s4496_s26 + $0x1f8] ss:$28 sps:$4 sm:$0xff]  }
  0x26   : > { %1980 = vmatprep.subr.bf16.mxu0 %v4392_v1  ;;  %2253 = vmatprep.subr.bf16.mxu1 %v4392_v1 }
  0x29   : > { %1981 = vmatpush1.bf16.msra.mxu0 %v4047_v15  ;;  %2254 = vmatpush1.bf16.msra.mxu1 %v4048_v16  ;;  %v4118_v15 = vld [vmem:[%s4496_s26 + $0x1c4] ss:$28 sps:$4 sm:$0xff]   ;;  %v4120_v16 = vld [vmem:[%s4496_s26 + $0x1cc] ss:$28 sps:$4 sm:$0xff]  }
  0x2a   : > { %1982 = vmatprep.subr.bf16.mxu0 %v4392_v1  ;;  %2255 = vmatprep.subr.bf16.mxu1 %v4392_v1 }
  0x2d   : > { %1983 = vmatpush2.bf16.msra.mxu0 %v4049_v17  ;;  %2256 = vmatpush2.bf16.msra.mxu1 %v4050_v18  ;;  %v4122_v17 = vld [vmem:[%s4496_s26 + $0x1c0] ss:$28 sps:$4 sm:$0xff]   ;;  %v4123_v18 = vld [vmem:[%s4496_s26 + $0x1c8] ss:$28 sps:$4 sm:$0xff]  }
  0x2e   : > { %1984 = vmatprep.subr.bf16.mxu0 %v4392_v1  ;;  %2257 = vmatprep.subr.bf16.mxu1 %v4392_v1 }
  0x31   : > { %1985 = vmatpush2.bf16.msra.mxu0 %v4051_v20  ;;  %2258 = vmatpush2.bf16.msra.mxu1 %v4052_v22  ;;  %v4126_v20 = vld [vmem:[%s4496_s26 + $0x204] ss:$28 sps:$4 sm:$0xff]  }
  0x32   : > { %1986 = vmatprep.subr.bf16.mxu0 %v4392_v1  ;;  %2259 = vmatprep.subr.bf16.mxu1 %v4392_v1  ;;  %v4129_v22 = vld [vmem:[%s4496_s26 + $0x200] ss:$28 sps:$4 sm:$0xff]  }
  0x35   : > { %1987 = vmatpush2.bf16.msra.mxu0 %v4053_v23  ;;  %2260 = vmatpush2.bf16.msra.mxu1 %v4054_v24  ;;  %v4131_v23 = vld [vmem:[%s4496_s26 + $0x234] ss:$28 sps:$4 sm:$0xff]   ;;  %v4133_v24 = vld [vmem:[%s4496_s26 + $0x23c] ss:$28 sps:$4 sm:$0xff]  }
  0x36   : > { %1988 = vmatprep.subr.bf16.mxu0 %v4392_v1  ;;  %2261 = vmatprep.subr.bf16.mxu1 %v4392_v1 }
  0x39   : > { %1989 = vmatpush2.bf16.msra.mxu0 %v4055_v25  ;;  %2262 = vmatpush2.bf16.msra.mxu1 %v4056_v26  ;;  %v4228_v25 = vld [vmem:[%s5383_s1 + $0x150] sm:$0xff]  }
  0x3a   : > { %1990 = vmatprep.subr.bf16.mxu0 %v4392_v1  ;;  %2263 = vmatprep.subr.bf16.mxu1 %v4392_v1  ;;  %v4135_v26 = vld [vmem:[%s4496_s26 + $0x230] ss:$28 sps:$4 sm:$0xff]  }
  0x3d   : > { %1991 = vmatpush2.bf16.msra.mxu0 %v4057_v27  ;;  %2264 = vmatpush2.bf16.msra.mxu1 %v4058_v28  ;;  %v4136_v27 = vld [vmem:[%s4496_s26 + $0x238] ss:$28 sps:$4 sm:$0xff]   ;;  %v4137_v28 = vld [vmem:[%s4496_s26 + $0x26c] ss:$28 sps:$4 sm:$0xff]  }
  0x3e   : > { %1992 = vmatprep.subr.bf16.mxu0 %v4392_v1  ;;  %2265 = vmatprep.subr.bf16.mxu1 %v4392_v1 }
  0x41   : > { %1993 = vmatpush2.bf16.msra.mxu0 %v4059_v29  ;;  %2266 = vmatpush2.bf16.msra.mxu1 %v4060_v30  ;;  %v4139_v29 = vld [vmem:[%s4496_s26 + $0x274] ss:$28 sps:$4 sm:$0xff]   ;;  %v4141_v30 = vld [vmem:[%s4496_s26 + $0x268] ss:$28 sps:$4 sm:$0xff]  }
  0x42   : > { %1994 = vmatprep.subr.bf16.mxu0 %v4392_v1  ;;  %2267 = vmatprep.subr.bf16.mxu1 %v4392_v1 }
  0x45   : > { %1995 = vmatpush2.bf16.msra.mxu0 %v4061_v31  ;;  %2268 = vmatpush2.bf16.msra.mxu1 %v4062_v32  ;;  %v4142_v31 = vld [vmem:[%s4496_s26 + $0x270] ss:$28 sps:$4 sm:$0xff]   ;;  %v4144_v32 = vld [vmem:[%s4496_s26 + $0x2a4] ss:$28 sps:$4 sm:$0xff]  }
  0x46   : > { %1996 = vmatprep.subr.bf16.mxu0 %v4392_v1  ;;  %2269 = vmatprep.subr.bf16.mxu1 %v4392_v1 }
  0x49   : > { %1997 = vmatpush2.bf16.msra.mxu0 %v4063_v33  ;;  %2270 = vmatpush2.bf16.msra.mxu1 %v4064_v34  ;;  %v4241_v33 = vld [vmem:[%s5383_s1 + $0x148] sm:$0xff]  }
  0x4a   : > { %2512 = vmatprep.subr.bf16.mxu0 %v4392_v1  ;;  %3991 = vmatprep.subr.bf16.mxu1 %v4392_v1  ;;  %v4146_v34 = vld [vmem:[%s4496_s26 + $0x2ac] ss:$28 sps:$4 sm:$0xff]  }
  0x4c   : > { %1999 = vmatmul.mubr.bf16.vlgmr.msra.gmra.mxu0 %v4065_v35  ;;  %2272 = vmatmul.mubr.bf16.vlgmr.msra.gmra.mxu1 %v4068_v36  ;;  %v4148_v35 = vld [vmem:[%s4496_s26 + $0x2a0] ss:$28 sps:$4 sm:$0xff]   ;;  %v4149_v36 = vld [vmem:[%s4496_s26 + $0x2a8] ss:$28 sps:$4 sm:$0xff]  }
  0x4d   : > { %2513 = vmatpush1.bf16.msra.mxu0 %v4071_v37  ;;  %2006 = vmatprep.mubr.bf16.mxu0 %v4072_v38  ;;  %v4152_v38 = vld [vmem:[%s4496_s26 + $0x2e4] ss:$28 sps:$4 sm:$0xff]  }
  0x4e   : > { %2279 = vmatprep.mubr.bf16.mxu1 %v4074_v39  ;;  %4007 = vmatpush1.bf16.msra.mxu1 %v4071_v37  ;;  %v4150_v37 = vld [vmem:[%s4496_s26 + $0x2dc] ss:$28 sps:$4 sm:$0xff]  }
  0x4f   : > { %2514 = vmatprep.subr.bf16.mxu0 %v4392_v1  ;;  %3992 = vmatprep.subr.bf16.mxu1 %v4392_v1  ;;  %v4154_v39 = vld [vmem:[%s4496_s26 + $0x2d8] ss:$28 sps:$4 sm:$0xff]  }
  0x51   : > { %2515 = vmatpush1.bf16.msra.mxu0 %v4084_v40 }
  0x52   : > { %2516 = vmatprep.subr.bf16.mxu0 %v4392_v1  ;;  %4008 = vmatpush1.bf16.msra.mxu1 %v4084_v40  ;;  %v4155_v40 = vld [vmem:[%s4496_s26 + $0x2e0] ss:$28 sps:$4 sm:$0xff]  }
  0x53   : > { %3993 = vmatprep.subr.bf16.mxu1 %v4392_v1 }
  0x54   : > { %2007 = vmatmul.mubr.bf16.gmra.mxu0 %v4076_v41  ;;  %2280 = vmatmul.mubr.bf16.gmra.mxu1 %v4077_v42  ;;  %v4254_v41 = vld [vmem:[%s5383_s1 + $0x140] sm:$0xff]   ;;  %v4159_v42 = vld [vmem:[%s4496_s26 + $0x31c] ss:$28 sps:$4 sm:$0xff]  }
  0x55   : > { %2014 = vmatprep.mubr.bf16.mxu0 %v4078_v43  ;;  %2287 = vmatprep.mubr.bf16.mxu1 %v4080_v44  ;;  %v4161_v43 = vld [vmem:[%s4496_s26 + $0x310] ss:$28 sps:$4 sm:$0xff]   ;;  %v4162_v44 = vld [vmem:[%s4496_s26 + $0x318] ss:$28 sps:$4 sm:$0xff]  }
  0x56   : > { %2517 = vmatpush1.bf16.msra.mxu0 %v4095_v45  ;;  %4009 = vmatpush1.bf16.msra.mxu1 %v4095_v45  ;;  %v4163_v45 = vld [vmem:[%s4496_s26 + $0x34c] ss:$28 sps:$4 sm:$0xff]  }
  0x57   : > { %2518 = vmatprep.subr.bf16.mxu0 %v4392_v1  ;;  %3994 = vmatprep.subr.bf16.mxu1 %v4392_v1 }
  0x5a   : > { %2519 = vmatpush1.bf16.msra.mxu0 %v4104_v46  ;;  %4010 = vmatpush1.bf16.msra.mxu1 %v4104_v46  ;;  %v4165_v46 = vld [vmem:[%s4496_s26 + $0x354] ss:$28 sps:$4 sm:$0xff]  }
  0x5b   : > { %2520 = vmatprep.subr.bf16.mxu0 %v4392_v1  ;;  %3995 = vmatprep.subr.bf16.mxu1 %v4392_v1 }
  0x5c   : > { %2015 = vmatmul.mubr.bf16.gmra.mxu0 %v4082_v47  ;;  %2288 = vmatmul.mubr.bf16.gmra.mxu1 %v4083_v48  ;;  %v4167_v47 = vld [vmem:[%s4496_s26 + $0x348] ss:$28 sps:$4 sm:$0xff]   ;;  %v4168_v48 = vld [vmem:[%s4496_s26 + $0x350] ss:$28 sps:$4 sm:$0xff]  }
  0x5d   : > { %2022 = vmatprep.mubr.bf16.mxu0 %v4085_v49  ;;  %2295 = vmatprep.mubr.bf16.mxu1 %v4087_v50  ;;  %v4170_v49 = vld [vmem:[%s4496_s26 + $0x384] ss:$28 sps:$4 sm:$0xff]   ;;  %v4172_v50 = vld [vmem:[%s4496_s26 + $0x38c] ss:$28 sps:$4 sm:$0xff]  }
  0x5e   : > { %2521 = vmatpush1.bf16.msra.mxu0 %v4117_v51  ;;  %4011 = vmatpush1.bf16.msra.mxu1 %v4117_v51  ;;  %v4708_v51 = vld [vmem:[%s5383_s1 + $0x188] sm:$0xff]  }
  0x5f   : > { %2522 = vmatprep.subr.bf16.mxu0 %v4392_v1  ;;  %3996 = vmatprep.subr.bf16.mxu1 %v4392_v1 }
  0x62   : > { %2523 = vmatpush1.bf16.msra.mxu0 %v4130_v52  ;;  %4012 = vmatpush1.bf16.msra.mxu1 %v4130_v52  ;;  %v4174_v52 = vld [vmem:[%s4496_s26 + $0x380] ss:$28 sps:$4 sm:$0xff]  }
  0x63   : > { %2524 = vmatprep.subr.bf16.mxu0 %v4392_v1  ;;  %3997 = vmatprep.subr.bf16.mxu1 %v4392_v1 }
  0x64   : > { %2023 = vmatmul.mubr.bf16.gmra.mxu0 %v4089_v53  ;;  %2296 = vmatmul.mubr.bf16.gmra.mxu1 %v4090_v54  ;;  %v4175_v53 = vld [vmem:[%s4496_s26 + $0x388] ss:$28 sps:$4 sm:$0xff]   ;;  %v4176_v54 = vld [vmem:[%s4496_s26 + $0x3bc] ss:$28 sps:$4 sm:$0xff]  }
  0x65   : > { %2030 = vmatprep.mubr.bf16.mxu0 %v4091_v55  ;;  %2303 = vmatprep.mubr.bf16.mxu1 %v4093_v56  ;;  %v4178_v55 = vld [vmem:[%s4496_s26 + $0x3c4] ss:$28 sps:$4 sm:$0xff]   ;;  %v4180_v56 = vld [vmem:[%s4496_s26 + $0x3b8] ss:$28 sps:$4 sm:$0xff]  }
  0x66   : > { %2525 = vmatpush1.bf16.msra.mxu0 %v4143_v57  ;;  %4013 = vmatpush1.bf16.msra.mxu1 %v4143_v57  ;;  %v4181_v57 = vld [vmem:[%s4496_s26 + $0x3c0] ss:$28 sps:$4 sm:$0xff]  }
  0x67   : > { %2526 = vmatprep.subr.bf16.mxu0 %v4392_v1  ;;  %3998 = vmatprep.subr.bf16.mxu1 %v4392_v1 }
  0x6a   : > { %2527 = vmatpush1.bf16.msra.mxu0 %v4156_v58  ;;  %4014 = vmatpush1.bf16.msra.mxu1 %v4156_v58  ;;  %v4183_v58 = vld [vmem:[%s4496_s26 + $0x3f4] ss:$28 sps:$4 sm:$0xff]  }
  0x6b   : > { %2528 = vmatprep.subr.bf16.mxu0 %v4392_v1  ;;  %3999 = vmatprep.subr.bf16.mxu1 %v4392_v1 }
  0x6c   : > { %2031 = vmatmul.mubr.bf16.gmra.mxu0 %v4096_v59  ;;  %2304 = vmatmul.mubr.bf16.gmra.mxu1 %v4097_v60  ;;  %v4185_v59 = vld [vmem:[%s4496_s26 + $0x3fc] ss:$28 sps:$4 sm:$0xff]   ;;  %v4187_v60 = vld [vmem:[%s4496_s26 + $0x3f0] ss:$28 sps:$4 sm:$0xff]  }
  0x6d   : > { %2038 = vmatprep.mubr.bf16.mxu0 %v4098_v61  ;;  %2311 = vmatprep.mubr.bf16.mxu1 %v4100_v62  ;;  %v4188_v61 = vld [vmem:[%s4496_s26 + $0x3f8] ss:$28 sps:$4 sm:$0xff]   ;;  %v4189_v62 = vld [vmem:[%s4496_s26 + $0x42c] ss:$28 sps:$4 sm:$0xff]  }
  0x6e   : > { %2529 = vmatpush2.bf16.msra.mxu0 %v4169_v63  ;;  %4015 = vmatpush2.bf16.msra.mxu1 %v4169_v63  ;;  %v4191_v63 = vld [vmem:[%s4496_s26 + $0x434] ss:$28 sps:$4 sm:$0xff]  }
  0x6f   : > { %2530 = vmatprep.subr.bf16.mxu0 %v4392_v1  ;;  %4000 = vmatprep.subr.bf16.mxu1 %v4392_v1 }
  0x72   : > { %2531 = vmatpush2.bf16.msra.mxu0 %v4182_v2  ;;  %4016 = vmatpush2.bf16.msra.mxu1 %v4182_v2  ;;  %v4195_v2 = vld [vmem:[%s4496_s26 + $0x430] ss:$28 sps:$4 sm:$0xff]  }
  0x73   : > { %2532 = vmatprep.subr.bf16.mxu0 %v4392_v1  ;;  %4001 = vmatprep.subr.bf16.mxu1 %v4392_v1 }
  0x74   : > { %2039 = vmatmul.mubr.bf16.gmra.mxu0 %v4102_v0  ;;  %2312 = vmatmul.mubr.bf16.gmra.mxu1 %v4103_v3  ;;  %v4194_v0 = vld [vmem:[%s4496_s26 + $0x428] ss:$28 sps:$4 sm:$0xff]  }
  0x75   : > { %2046 = vmatprep.mubr.bf16.mxu0 %v4105_v4  ;;  %2319 = vmatprep.mubr.bf16.mxu1 %v4107_v5  ;;  %v4196_v3 = vld [vmem:[%s4496_s26 + $0x464] ss:$28 sps:$4 sm:$0xff]   ;;  %v4198_v4 = vld [vmem:[%s4496_s26 + $0x46c] ss:$28 sps:$4 sm:$0xff]  }
  0x76   : > { %2533 = vmatpush2.bf16.msra.mxu0 %v4193_v6  ;;  %4017 = vmatpush2.bf16.msra.mxu1 %v4193_v6  ;;  %v4200_v5 = vld [vmem:[%s4496_s26 + $0x460] ss:$28 sps:$4 sm:$0xff]   ;;  %v4201_v6 = vld [vmem:[%s4496_s26 + $0x468] ss:$28 sps:$4 sm:$0xff]  }
  0x77   : > { %2534 = vmatprep.subr.bf16.mxu0 %v4392_v1  ;;  %4002 = vmatprep.subr.bf16.mxu1 %v4392_v1 }
  0x7a   : > { %2535 = vmatpush2.bf16.msra.mxu0 %v4202_v8  ;;  %4018 = vmatpush2.bf16.msra.mxu1 %v4202_v8  ;;  %v4205_v8 = vld [vmem:[%s4496_s26 + $0x4a4] ss:$28 sps:$4 sm:$0xff]  }
  0x7b   : > { %2536 = vmatprep.subr.bf16.mxu0 %v4392_v1  ;;  %4003 = vmatprep.subr.bf16.mxu1 %v4392_v1 }
  0x7c   : > { %2047 = vmatmul.mubr.bf16.gmra.mxu0 %v4109_v7  ;;  %2320 = vmatmul.mubr.bf16.gmra.mxu1 %v4110_v9  ;;  %v4203_v7 = vld [vmem:[%s4496_s26 + $0x49c] ss:$28 sps:$4 sm:$0xff]  }
  0x7d   : > { %2054 = vmatprep.mubr.bf16.mxu0 %v4111_v10  ;;  %2327 = vmatprep.mubr.bf16.mxu1 %v4113_v11  ;;  %v4207_v9 = vld [vmem:[%s4496_s26 + $0x498] ss:$28 sps:$4 sm:$0xff]   ;;  %v4208_v10 = vld [vmem:[%s4496_s26 + $0x4a0] ss:$28 sps:$4 sm:$0xff]  }
  0x7e   : > { %2537 = vmatpush2.bf16.msra.mxu0 %v4215_v12  ;;  %4019 = vmatpush2.bf16.msra.mxu1 %v4215_v12  ;;  %v4209_v11 = vld [vmem:[%s4496_s26 + $0x4d4] ss:$28 sps:$4 sm:$0xff]   ;;  %v4211_v12 = vld [vmem:[%s4496_s26 + $0x4dc] ss:$28 sps:$4 sm:$0xff]  }
  0x7f   : > { %2538 = vmatprep.subr.bf16.mxu0 %v4392_v1  ;;  %4004 = vmatprep.subr.bf16.mxu1 %v4392_v1 }
  0x82   : > { %2539 = vmatpush2.bf16.msra.mxu0 %v4228_v25  ;;  %4020 = vmatpush2.bf16.msra.mxu1 %v4228_v25  ;;  %v4231_v25 = vld [vmem:[%s4496_s26 + $0x584] ss:$28 sps:$4 sm:$0xff]  }
  0x83   : > { %2540 = vmatprep.subr.bf16.mxu0 %v4392_v1  ;;  %4005 = vmatprep.subr.bf16.mxu1 %v4392_v1 }
  0x84   : > { %2055 = vmatmul.mubr.bf16.gmra.mxu0 %v4115_v13  ;;  %2328 = vmatmul.mubr.bf16.gmra.mxu1 %v4116_v14  ;;  %v4213_v13 = vld [vmem:[%s4496_s26 + $0x4d0] ss:$28 sps:$4 sm:$0xff]   ;;  %v4214_v14 = vld [vmem:[%s4496_s26 + $0x4d8] ss:$28 sps:$4 sm:$0xff]  }
  0x85   : > { %2062 = vmatprep.mubr.bf16.mxu0 %v4118_v15  ;;  %2335 = vmatprep.mubr.bf16.mxu1 %v4120_v16  ;;  %v4216_v15 = vld [vmem:[%s4496_s26 + $0x50c] ss:$28 sps:$4 sm:$0xff]   ;;  %v4218_v16 = vld [vmem:[%s4496_s26 + $0x514] ss:$28 sps:$4 sm:$0xff]  }
  0x86   : > { %2541 = vmatpush2.bf16.msra.mxu0 %v4241_v33  ;;  %4021 = vmatpush2.bf16.msra.mxu1 %v4241_v33  ;;  %v4233_v33 = vld [vmem:[%s4496_s26 + $0x578] ss:$28 sps:$4 sm:$0xff]  }
  0x87   : > { %2542 = vmatprep.subr.bf16.mxu0 %v4392_v1  ;;  %4006 = vmatprep.subr.bf16.mxu1 %v4392_v1  ;;  %v4157_v1 = vld [vmem:[%s4496_s26 + $0x314] ss:$28 sps:$4 sm:$0xff]  }
  0x8a   : > { %2543 = vmatpush2.bf16.msra.mxu0 %v4254_v41  ;;  %4022 = vmatpush2.bf16.msra.mxu1 %v4254_v41 }
  0x8b   : > { %3927 = vmatprep.subr.bf16.mxu1 %v4708_v51 }
  0x8c   : > { %2063 = vmatmul.mubr.bf16.gmra.mxu0 %v4122_v17  ;;  %2336 = vmatmul.mubr.bf16.gmra.mxu1 %v4123_v18  ;;  %v4220_v17 = vld [vmem:[%s4496_s26 + $0x508] ss:$28 sps:$4 sm:$0xff]   ;;  %v4221_v18 = vld [vmem:[%s4496_s26 + $0x510] ss:$28 sps:$4 sm:$0xff]  }
  0x8d   : > { %2070 = vmatprep.mubr.bf16.mxu0 %v4124_v19  ;;  %2343 = vmatprep.mubr.bf16.mxu1 %v4126_v20  ;;  %v4222_v19 = vld [vmem:[%s4496_s26 + $0x544] ss:$28 sps:$4 sm:$0xff]   ;;  %v4224_v20 = vld [vmem:[%s4496_s26 + $0x54c] ss:$28 sps:$4 sm:$0xff]  }
  0x94   : > { %2071 = vmatmul.mubr.bf16.gmra.mxu0 %v4128_v21  ;;  %2344 = vmatmul.mubr.bf16.gmra.mxu1 %v4129_v22  ;;  %v4226_v21 = vld [vmem:[%s4496_s26 + $0x540] ss:$28 sps:$4 sm:$0xff]   ;;  %v4227_v22 = vld [vmem:[%s4496_s26 + $0x548] ss:$28 sps:$4 sm:$0xff]  }
  0x95   : > { %2078 = vmatprep.mubr.bf16.mxu0 %v4131_v23  ;;  %2351 = vmatprep.mubr.bf16.mxu1 %v4133_v24  ;;  %v4229_v23 = vld [vmem:[%s4496_s26 + $0x57c] ss:$28 sps:$4 sm:$0xff]   ;;  %v4749_v24 = vld [vmem:[%s5384_s2] ss:$0 sm:$0xff] }
  0x9c   : > { %2079 = vmatmul.mubr.bf16.gmra.mxu0 %v4135_v26  ;;  %2352 = vmatmul.mubr.bf16.gmra.mxu1 %v4136_v27 }
  0x9d   : > { %2086 = vmatprep.mubr.bf16.mxu0 %v4137_v28  ;;  %2359 = vmatprep.mubr.bf16.mxu1 %v4139_v29 }
  0xa4   : > { %2087 = vmatmul.mubr.bf16.gmra.mxu0 %v4141_v30  ;;  %2360 = vmatmul.mubr.bf16.gmra.mxu1 %v4142_v31 }
  0xa5   : > { %2094 = vmatprep.mubr.bf16.mxu0 %v4144_v32  ;;  %2367 = vmatprep.mubr.bf16.mxu1 %v4146_v34 }
  0xac   : > { %2095 = vmatmul.mubr.bf16.gmra.mxu0 %v4148_v35  ;;  %2368 = vmatmul.mubr.bf16.gmra.mxu1 %v4149_v36  ;;  %v4234_v36 = vld [vmem:[%s4496_s26 + $0x580] ss:$28 sps:$4 sm:$0xff]  }
  0xad   : > { %2102 = vmatprep.mubr.bf16.mxu0 %v4150_v37  ;;  %2375 = vmatprep.mubr.bf16.mxu1 %v4152_v38  ;;  %v4235_v37 = vld [vmem:[%s4496_s26 + $0x5b4] ss:$28 sps:$4 sm:$0xff]  }
  0xb4   : > { %2103 = vmatmul.mubr.bf16.gmra.mxu0 %v4154_v39  ;;  %2376 = vmatmul.mubr.bf16.gmra.mxu1 %v4155_v40  ;;  %v4237_v39 = vld [vmem:[%s4496_s26 + $0x5bc] ss:$28 sps:$4 sm:$0xff]  }
  0xb5   : > { %2110 = vmatprep.mubr.bf16.mxu0 %v4157_v1  ;;  %2383 = vmatprep.mubr.bf16.mxu1 %v4159_v42 }
  0xbc   : > { %2111 = vmatmul.mubr.bf16.gmra.mxu0 %v4161_v43  ;;  %2384 = vmatmul.mubr.bf16.gmra.mxu1 %v4162_v44 }
  0xbd   : > { %2118 = vmatprep.mubr.bf16.mxu0 %v4163_v45  ;;  %2391 = vmatprep.mubr.bf16.mxu1 %v4165_v46 }
  0xc4   : > { %2119 = vmatmul.mubr.bf16.gmra.mxu0 %v4167_v47  ;;  %2392 = vmatmul.mubr.bf16.gmra.mxu1 %v4168_v48  ;;  %v4239_v48 = vld [vmem:[%s4496_s26 + $0x5b0] ss:$28 sps:$4 sm:$0xff]  }
  0xc5   : > { %2126 = vmatprep.mubr.bf16.mxu0 %v4170_v49  ;;  %2399 = vmatprep.mubr.bf16.mxu1 %v4172_v50 }
  0xcc   : > { %2127 = vmatmul.mubr.bf16.gmra.mxu0 %v4174_v52  ;;  %2400 = vmatmul.mubr.bf16.gmra.mxu1 %v4175_v53  ;;  %v4240_v52 = vld [vmem:[%s4496_s26 + $0x5b8] ss:$28 sps:$4 sm:$0xff]   ;;  %v4242_v53 = vld [vmem:[%s4496_s26 + $0x5ec] ss:$28 sps:$4 sm:$0xff]  }
  0xcd   : > { %2134 = vmatprep.mubr.bf16.mxu0 %v4176_v54  ;;  %2407 = vmatprep.mubr.bf16.mxu1 %v4178_v55  ;;  %v4244_v55 = vld [vmem:[%s4496_s26 + $0x5f4] ss:$28 sps:$4 sm:$0xff]  }
  0xd4   : > { %2135 = vmatmul.mubr.bf16.gmra.mxu0 %v4180_v56  ;;  %2408 = vmatmul.mubr.bf16.gmra.mxu1 %v4181_v57 }
  0xd5   : > { %2142 = vmatprep.mubr.bf16.mxu0 %v4183_v58  ;;  %2415 = vmatprep.mubr.bf16.mxu1 %v4185_v59 }
  0xdc   : > { %2143 = vmatmul.mubr.bf16.gmra.mxu0 %v4187_v60  ;;  %2416 = vmatmul.mubr.bf16.gmra.mxu1 %v4188_v61 }
  0xdd   : > { %2150 = vmatprep.mubr.bf16.mxu0 %v4189_v62  ;;  %2423 = vmatprep.mubr.bf16.mxu1 %v4191_v63 }
  0xe4   : > { %2151 = vmatmul.mubr.bf16.gmra.mxu0 %v4194_v0  ;;  %2424 = vmatmul.mubr.bf16.gmra.mxu1 %v4195_v2  ;;  %v4246_v2 = vld [vmem:[%s4496_s26 + $0x5e8] ss:$28 sps:$4 sm:$0xff]  }
  0xe5   : > { %2158 = vmatprep.mubr.bf16.mxu0 %v4196_v3  ;;  %2431 = vmatprep.mubr.bf16.mxu1 %v4198_v4 }
  0xec   : > { %2159 = vmatmul.mubr.bf16.gmra.mxu0 %v4200_v5  ;;  %2432 = vmatmul.mubr.bf16.gmra.mxu1 %v4201_v6  ;;  %v4247_v5 = vld [vmem:[%s4496_s26 + $0x5f0] ss:$28 sps:$4 sm:$0xff]   ;;  %v4250_v6 = vld [vmem:[%s4496_s26 + $0x624] ss:$28 sps:$4 sm:$0xff]  }
  0xed   : > { %2166 = vmatprep.mubr.bf16.mxu0 %v4203_v7  ;;  %2439 = vmatprep.mubr.bf16.mxu1 %v4205_v8  ;;  %v4253_v8 = vld [vmem:[%s4496_s26 + $0x62c] ss:$28 sps:$4 sm:$0xff]  }
  0xf4   : > { %2167 = vmatmul.mubr.bf16.gmra.mxu0 %v4207_v9  ;;  %2440 = vmatmul.mubr.bf16.gmra.mxu1 %v4208_v10 }
  0xf5   : > { %2174 = vmatprep.mubr.bf16.mxu0 %v4209_v11  ;;  %2447 = vmatprep.mubr.bf16.mxu1 %v4211_v12 }
  0xfc   : > { %2175 = vmatmul.mubr.bf16.gmra.mxu0 %v4213_v13  ;;  %2448 = vmatmul.mubr.bf16.gmra.mxu1 %v4214_v14 }
  0xfd   : > { %2182 = vmatprep.mubr.bf16.mxu0 %v4216_v15  ;;  %2455 = vmatprep.mubr.bf16.mxu1 %v4218_v16 }
 0x104   : > { %2183 = vmatmul.mubr.bf16.gmra.mxu0 %v4220_v17  ;;  %2456 = vmatmul.mubr.bf16.gmra.mxu1 %v4221_v18  ;;  %v4248_v18 = vld [vmem:[%s4496_s26 + $0x620] ss:$28 sps:$4 sm:$0xff]  }
 0x105   : > { %2190 = vmatprep.mubr.bf16.mxu0 %v4222_v19  ;;  %2463 = vmatprep.mubr.bf16.mxu1 %v4224_v20 }
 0x10c   : > { %v2000_v26 = vpop.f32.mrf.mxu0  ;;  %2191 = vmatmul.mubr.bf16.gmra.mxu0 %v4226_v21  ;;  %v2273_v28 = vpop.f32.mrf.mxu1  ;;  %2464 = vmatmul.mubr.bf16.gmra.mxu1 %v4227_v22  ;;  %v4251_v21 = vld [vmem:[%s4496_s26 + $0x628] ss:$28 sps:$4 sm:$0xff]   ;;  %v4257_v22 = vld [vmem:[%s4496_s26 + $0x65c] ss:$28 sps:$4 sm:$0xff]  }
 0x10d   : > { %v2001_v27 = vadd.f32 %v4749_v24, %v2000_v26  ;;  %2198 = vmatprep.mubr.bf16.mxu0 %v4229_v23  ;;  %2471 = vmatprep.mubr.bf16.mxu1 %v4231_v25  ;;  %v4260_v25 = vld [vmem:[%s4496_s26 + $0x664] ss:$28 sps:$4 sm:$0xff]  }
 0x10e   : > { %v2002_v29 = vpop.f32.mrf.mxu0  ;;  %v2275_v31 = vpop.f32.mrf.mxu1 }
 0x10f   : > { %v4753_v30 = vadd.f32 %v2273_v28, %v2001_v27 }
 0x110   : > { %v2003_v32 = vpop.f32.mrf.mxu0  ;;  %v2276_v35 = vpop.f32.mrf.mxu1 }
 0x111   : > { %v2004_v34 = vadd.f32 %v4749_v24, %v2003_v32 }
 0x112   : > { %v2005_v38 = vpop.f32.mrf.mxu0  ;;  %v2278_v1 = vpop.f32.mrf.mxu1 }
 0x113   : > { %v4760_v40 = vadd.f32 %v2276_v35, %v2004_v34  ;;  %v4263_v1 = vld [vmem:[%s4496_s26 + $0x14] ss:$28 sps:$4 sm:$0xff]  }
 0x114   : > { %v2008_v41 = vpop.f32.mrf.mxu0  ;;  %2199 = vmatmul.mubr.bf16.gmra.mxu0 %v4233_v33  ;;  %v2281_v43 = vpop.f32.mrf.mxu1  ;;  %2472 = vmatmul.mubr.bf16.gmra.mxu1 %v4234_v36  ;;  %v4255_v36 = vld [vmem:[%s4496_s26 + $0x658] ss:$28 sps:$4 sm:$0xff]  }
 0x115   : > { %v2009_v42 = vadd.f32 %v4749_v24, %v2008_v41  ;;  %2206 = vmatprep.mubr.bf16.mxu0 %v4235_v37  ;;  %2479 = vmatprep.mubr.bf16.mxu1 %v4237_v39  ;;  %v4258_v39 = vld [vmem:[%s4496_s26 + $0x660] ss:$28 sps:$4 sm:$0xff]  }
 0x116   : > { %v2010_v44 = vpop.f32.mrf.mxu0  ;;  %v2283_v46 = vpop.f32.mrf.mxu1 }
 0x117   : > { %v4763_v45 = vadd.f32 %v2281_v43, %v2009_v42  ;;  %v4266_v42 = vld [vmem:[%s4496_s26 + $0x51c] ss:$28 sps:$4 sm:$0xff]  }
 0x118   : > { %v2011_v47 = vpop.f32.mrf.mxu0  ;;  %v2284_v50 = vpop.f32.mrf.mxu1 }
 0x119   : > { %v2012_v49 = vadd.f32 %v4749_v24, %v2011_v47 }
 0x11a   : > { %v2013_v54 = vpop.f32.mrf.mxu0  ;;  %v2286_v57 = vpop.f32.mrf.mxu1 }
 0x11b   : > { %v4770_v56 = vadd.f32 %v2284_v50, %v2012_v49  ;;  %v4261_v54 = vld [vmem:[%s4496_s26 + $0x10] ss:$28 sps:$4 sm:$0xff]  }
 0x11c   : > { %v2016_v58 = vpop.f32.mrf.mxu0  ;;  %2207 = vmatmul.mubr.bf16.gmra.mxu0 %v4239_v48  ;;  %v2289_v60 = vpop.f32.mrf.mxu1  ;;  %2480 = vmatmul.mubr.bf16.gmra.mxu1 %v4240_v52 }
 0x11d   : > { %v2017_v59 = vadd.f32 %v4749_v24, %v2016_v58  ;;  %2214 = vmatprep.mubr.bf16.mxu0 %v4242_v53  ;;  %2487 = vmatprep.mubr.bf16.mxu1 %v4244_v55  ;;  %v4264_v58 = vld [vmem:[%s4496_s26 + $0x518] ss:$28 sps:$4 sm:$0xff]  }
 0x11e   : > { %v2018_v61 = vpop.f32.mrf.mxu0  ;;  %v2291_v63 = vpop.f32.mrf.mxu1 }
 0x11f   : > { %v4773_v62 = vadd.f32 %v2289_v60, %v2017_v59  ;;  %v4269_v59 = vld [vmem:[%s4496_s26 + $0x4c] ss:$28 sps:$4 sm:$0xff]   ;;  %v4272_v61 = vld [vmem:[%s4496_s26 + $0x554] ss:$28 sps:$4 sm:$0xff]  }
 0x120   : > { %v2019_v0 = vpop.f32.mrf.mxu0  ;;  %v2292_v4 = vpop.f32.mrf.mxu1 }
 0x121   : > { %v2020_v3 = vadd.f32 %v4749_v24, %v2019_v0 }
 0x122   : > { %v2021_v7 = vpop.f32.mrf.mxu0  ;;  %v2294_v10 = vpop.f32.mrf.mxu1 }
 0x123   : > { %v4780_v9 = vadd.f32 %v2292_v4, %v2020_v3 }
 0x124   : > { %v2024_v11 = vpop.f32.mrf.mxu0  ;;  %2215 = vmatmul.mubr.bf16.gmra.mxu0 %v4246_v2  ;;  %v2297_v13 = vpop.f32.mrf.mxu1  ;;  %2488 = vmatmul.mubr.bf16.gmra.mxu1 %v4247_v5  ;;  %v4292_v2 = vld [vmem:[%s5383_s1 + $0x180] sm:$0xff]  }
 0x125   : > { %v2025_v12 = vadd.f32 %v4749_v24, %v2024_v11  ;;  %2222 = vmatprep.mubr.bf16.mxu0 %v4250_v6  ;;  %2495 = vmatprep.mubr.bf16.mxu1 %v4253_v8  ;;  %v4267_v11 = vld [vmem:[%s4496_s26 + $0x48] ss:$28 sps:$4 sm:$0xff]  }
 0x126   : > { %v2026_v14 = vpop.f32.mrf.mxu0  ;;  %v2299_v16 = vpop.f32.mrf.mxu1 }
 0x127   : > { %v4783_v15 = vadd.f32 %v2297_v13, %v2025_v12  ;;  %v4270_v14 = vld [vmem:[%s4496_s26 + $0x550] ss:$28 sps:$4 sm:$0xff]   ;;  %v4276_v16 = vld [vmem:[%s4496_s26 + $0x84] ss:$28 sps:$4 sm:$0xff]  }
 0x128   : > { %v2027_v17 = vpop.f32.mrf.mxu0  ;;  %v2300_v20 = vpop.f32.mrf.mxu1 }
 0x129   : > { %v2028_v19 = vadd.f32 %v4749_v24, %v2027_v17 }
 0x12a   : > { %v2029_v23 = vpop.f32.mrf.mxu0  ;;  %v2302_v27 = vpop.f32.mrf.mxu1 }
 0x12b   : > { %v4790_v26 = vadd.f32 %v2300_v20, %v2028_v19 }
 0x12c   : > { %v2032_v28 = vpop.f32.mrf.mxu0  ;;  %2223 = vmatmul.mubr.bf16.gmra.mxu0 %v4248_v18  ;;  %v2305_v31 = vpop.f32.mrf.mxu1  ;;  %2496 = vmatmul.mubr.bf16.gmra.mxu1 %v4251_v21  ;;  %v4279_v18 = vld [vmem:[%s4496_s26 + $0x58c] ss:$28 sps:$4 sm:$0xff]  }
 0x12d   : > { %v2033_v29 = vadd.f32 %v4749_v24, %v2032_v28  ;;  %2230 = vmatprep.mubr.bf16.mxu0 %v4257_v22  ;;  %2503 = vmatprep.mubr.bf16.mxu1 %v4260_v25 }
 0x12e   : > { %v2034_v32 = vpop.f32.mrf.mxu0  ;;  %v2307_v34 = vpop.f32.mrf.mxu1 }
 0x12f   : > { %v4793_v33 = vadd.f32 %v2305_v31, %v2033_v29  ;;  %v4274_v29 = vld [vmem:[%s4496_s26 + $0x80] ss:$28 sps:$4 sm:$0xff]   ;;  %v4277_v34 = vld [vmem:[%s4496_s26 + $0x588] ss:$28 sps:$4 sm:$0xff]  }
 0x130   : > { %v2035_v35 = vpop.f32.mrf.mxu0  ;;  %v2308_v38 = vpop.f32.mrf.mxu1 }
 0x131   : > { %v2036_v37 = vadd.f32 %v4749_v24, %v2035_v35  ;;  %v4282_v35 = vld [vmem:[%s4496_s26 + $0xbc] ss:$28 sps:$4 sm:$0xff]  }
 0x132   : > { %v2037_v41 = vpop.f32.mrf.mxu0  ;;  %v2310_v44 = vpop.f32.mrf.mxu1 }
 0x133   : > { %v4800_v43 = vadd.f32 %v2308_v38, %v2036_v37  ;;  %v4285_v37 = vld [vmem:[%s4496_s26 + $0x5c4] ss:$28 sps:$4 sm:$0xff]  }
 0x134   : > { %v2040_v46 = vpop.f32.mrf.mxu0  ;;  %2231 = vmatmul.mubr.bf16.gmra.mxu0 %v4255_v36  ;;  %v2313_v48 = vpop.f32.mrf.mxu1  ;;  %2504 = vmatmul.mubr.bf16.gmra.mxu1 %v4258_v39 }
 0x135   : > { %v2041_v47 = vadd.f32 %v4749_v24, %v2040_v46  ;;  %2544 = vmatprep.mubr.bf16.mxu0 %v4263_v1  ;;  %2728 = vmatprep.mubr.bf16.mxu1 %v4266_v42 }
 0x136   : > { %v2042_v49 = vpop.f32.mrf.mxu0  ;;  %v2315_v52 = vpop.f32.mrf.mxu1 }
 0x137   : > { %v4803_v50 = vadd.f32 %v2313_v48, %v2041_v47  ;;  %v4280_v49 = vld [vmem:[%s4496_s26 + $0xb8] ss:$28 sps:$4 sm:$0xff]  }
 0x138   : > { %v2043_v53 = vpop.f32.mrf.mxu0  ;;  %v2316_v57 = vpop.f32.mrf.mxu1 }
 0x139   : > { %v2044_v55 = vadd.f32 %v4749_v24, %v2043_v53 }
 0x13a   : > { %v2045_v60 = vpop.f32.mrf.mxu0  ;;  %v2318_v0 = vpop.f32.mrf.mxu1 }
 0x13b   : > { %v4810_v63 = vadd.f32 %v2316_v57, %v2044_v55  ;;  %v4288_v55 = vld [vmem:[%s4496_s26 + $0xf4] ss:$28 sps:$4 sm:$0xff]  }
 0x13c   : > { %v2048_v3 = vpop.f32.mrf.mxu0  ;;  %2545 = vmatmul.mubr.bf16.vlgmr.msra.gmra.mxu0 %v4261_v54  ;;  %v2321_v5 = vpop.f32.mrf.mxu1  ;;  %2729 = vmatmul.mubr.bf16.vlgmr.msra.gmra.mxu1 %v4264_v58  ;;  %v4283_v54 = vld [vmem:[%s4496_s26 + $0x5c0] ss:$28 sps:$4 sm:$0xff]  }
 0x13d   : > { %v2049_v4 = vadd.f32 %v4749_v24, %v2048_v3  ;;  %2552 = vmatprep.mubr.bf16.mxu0 %v4269_v59  ;;  %2736 = vmatprep.mubr.bf16.mxu1 %v4272_v61  ;;  %v4291_v58 = vld [vmem:[%s4496_s26 + $0x5fc] ss:$28 sps:$4 sm:$0xff]  }
 0x13e   : > { %v2050_v6 = vpop.f32.mrf.mxu0  ;;  %3928 = vmatpush3.bf16.msra.mxu1 %v4708_v51  ;;  %v2323_v8 = vpop.f32.mrf.mxu1 }
 0x13f   : > { %v4817_v7 = vadd.f32 %v2321_v5, %v2049_v4  ;;  %3929 = vmatprep.subr.bf16.mxu1 %v4292_v2  ;;  %v4286_v8 = vld [vmem:[%s4496_s26 + $0xf0] ss:$28 sps:$4 sm:$0xff]  }
 0x140   : > { %v2051_v10 = vpop.f32.mrf.mxu0  ;;  %v2324_v13 = vpop.f32.mrf.mxu1 }
 0x141   : > { %v2052_v12 = vadd.f32 %v4749_v24, %v2051_v10 }
 0x142   : > { %v2053_v17 = vpop.f32.mrf.mxu0  ;;  %3930 = vmatpush3.bf16.msra.mxu1 %v4292_v2  ;;  %v2326_v20 = vpop.f32.mrf.mxu1 }
 0x143   : > { %v4824_v19 = vadd.f32 %v2324_v13, %v2052_v12  ;;  %v4289_v12 = vld [vmem:[%s4496_s26 + $0x5f8] ss:$28 sps:$4 sm:$0xff]   ;;  %v4295_v13 = vld [vmem:[%s4496_s26 + $0x12c] ss:$28 sps:$4 sm:$0xff]  }
 0x144   : > { %v2056_v51 = vpop.f32.mrf.mxu0  ;;  %2553 = vmatmul.mubr.bf16.gmra.mxu0 %v4267_v11  ;;  %v2329_v22 = vpop.f32.mrf.mxu1  ;;  %2737 = vmatmul.mubr.bf16.gmra.mxu1 %v4270_v14 }
 0x145   : > { %v2057_v21 = vadd.f32 %v4749_v24, %v2056_v51  ;;  %2560 = vmatprep.mubr.bf16.mxu0 %v4276_v16  ;;  %2744 = vmatprep.mubr.bf16.mxu1 %v4279_v18  ;;  %v4298_v16 = vld [vmem:[%s4496_s26 + $0x634] ss:$28 sps:$4 sm:$0xff]  }
 0x146   : > { %v2058_v23 = vpop.f32.mrf.mxu0  ;;  %v2331_v27 = vpop.f32.mrf.mxu1 }
 0x147   : > { %v4827_v25 = vadd.f32 %v2329_v22, %v2057_v21 }
 0x148   : > { %v2059_v28 = vpop.f32.mrf.mxu0  ;;  %v2332_v32 = vpop.f32.mrf.mxu1 }
 0x149   : > { %v2060_v31 = vadd.f32 %v4749_v24, %v2059_v28 }
 0x14a   : > { %v2061_v36 = vpop.f32.mrf.mxu0  ;;  %v2334_v39 = vpop.f32.mrf.mxu1 }
 0x14b   : > { %v4834_v38 = vadd.f32 %v2332_v32, %v2060_v31 }
 0x14c   : > { %v2064_v1 = vpop.f32.mrf.mxu0  ;;  %2561 = vmatmul.mubr.bf16.gmra.mxu0 %v4274_v29  ;;  %v2337_v42 = vpop.f32.mrf.mxu1  ;;  %2745 = vmatmul.mubr.bf16.gmra.mxu1 %v4277_v34  ;;  %v4293_v29 = vld [vmem:[%s4496_s26 + $0x128] ss:$28 sps:$4 sm:$0xff]   ;;  %v4296_v34 = vld [vmem:[%s4496_s26 + $0x630] ss:$28 sps:$4 sm:$0xff]  }
 0x14d   : > { %v2065_v41 = vadd.f32 %v4749_v24, %v2064_v1  ;;  %2568 = vmatprep.mubr.bf16.mxu0 %v4282_v35  ;;  %2752 = vmatprep.mubr.bf16.mxu1 %v4285_v37  ;;  %v4301_v35 = vld [vmem:[%s4496_s26 + $0x164] ss:$28 sps:$4 sm:$0xff]   ;;  %v4304_v37 = vld [vmem:[%s4496_s26 + $0x66c] ss:$28 sps:$4 sm:$0xff]  }
 0x14e   : > { %v2066_v44 = vpop.f32.mrf.mxu0  ;;  %v2339_v47 = vpop.f32.mrf.mxu1 }
 0x14f   : > { %v4837_v46 = vadd.f32 %v2337_v42, %v2065_v41 }
 0x150   : > { %v2067_v48 = vpop.f32.mrf.mxu0  ;;  %v2340_v53 = vpop.f32.mrf.mxu1 }
 0x151   : > { %v2068_v52 = vadd.f32 %v4749_v24, %v2067_v48 }
 0x152   : > { %v2069_v57 = vpop.f32.mrf.mxu0  ;;  %v2342_v60 = vpop.f32.mrf.mxu1 }
 0x153   : > { %v4844_v59 = vadd.f32 %v2340_v53, %v2068_v52  ;;  %v4299_v53 = vld [vmem:[%s4496_s26 + $0x160] ss:$28 sps:$4 sm:$0xff]   ;;  %v4302_v57 = vld [vmem:[%s4496_s26 + $0x668] ss:$28 sps:$4 sm:$0xff]  }
 0x154   : > { %v2072_v61 = vpop.f32.mrf.mxu0  ;;  %2569 = vmatmul.mubr.bf16.gmra.mxu0 %v4280_v49  ;;  %v2345_v2 = vpop.f32.mrf.mxu1  ;;  %2753 = vmatmul.mubr.bf16.gmra.mxu1 %v4283_v54 }
 0x155   : > { %v2073_v0 = vadd.f32 %v4749_v24, %v2072_v61  ;;  %2576 = vmatprep.mubr.bf16.mxu0 %v4288_v55  ;;  %2760 = vmatprep.mubr.bf16.mxu1 %v4291_v58  ;;  %v4307_v58 = vld [vmem:[%s4496_s26 + $0x19c] ss:$28 sps:$4 sm:$0xff]  }
 0x156   : > { %v2074_v3 = vpop.f32.mrf.mxu0  ;;  %v2347_v5 = vpop.f32.mrf.mxu1  ;;  %v4308_v61 = vld [vmem:[%s4496_s26 + $0x18] ss:$28 sps:$4 sm:$0xff]  }
 0x157   : > { %v4847_v4 = vadd.f32 %v2345_v2, %v2073_v0 }
 0x158   : > { %v2075_v6 = vpop.f32.mrf.mxu0  ;;  %v2348_v11 = vpop.f32.mrf.mxu1 }
 0x159   : > { %v2076_v10 = vadd.f32 %v4749_v24, %v2075_v6 }
 0x15a   : > { %v2077_v14 = vpop.f32.mrf.mxu0  ;;  %v2350_v18 = vpop.f32.mrf.mxu1 }
 0x15b   : > { %v4854_v17 = vadd.f32 %v2348_v11, %v2076_v10  ;;  %v4309_v18 = vld [vmem:[%s4496_s26 + $0x50] ss:$28 sps:$4 sm:$0xff]  }
 0x15c   : > { %v2080_v20 = vpop.f32.mrf.mxu0  ;;  %2577 = vmatmul.mubr.bf16.gmra.mxu0 %v4286_v8  ;;  %v2353_v21 = vpop.f32.mrf.mxu1  ;;  %2761 = vmatmul.mubr.bf16.gmra.mxu1 %v4289_v12 }
 0x15d   : > { %v2081_v51 = vadd.f32 %v4749_v24, %v2080_v20  ;;  %2584 = vmatprep.mubr.bf16.mxu0 %v4295_v13  ;;  %2768 = vmatprep.mubr.bf16.mxu1 %v4298_v16  ;;  %v4305_v13 = vld [vmem:[%s4496_s26 + $0x198] ss:$28 sps:$4 sm:$0xff]  }
 0x15e   : > { %v2082_v22 = vpop.f32.mrf.mxu0  ;;  %v2355_v27 = vpop.f32.mrf.mxu1  ;;  %v4312_v20 = vld [vmem:[%s4496_s26 + $0x1d4] ss:$28 sps:$4 sm:$0xff]  }
 0x15f   : > { %v4857_v23 = vadd.f32 %v2353_v21, %v2081_v51  ;;  %v4313_v21 = vld [vmem:[%s4496_s26 + $0x88] ss:$28 sps:$4 sm:$0xff]  }
 0x160   : > { %v2083_v28 = vpop.f32.mrf.mxu0  ;;  %v2356_v32 = vpop.f32.mrf.mxu1 }
 0x161   : > { %v2084_v31 = vadd.f32 %v4749_v24, %v2083_v28 }
 0x162   : > { %v2085_v36 = vpop.f32.mrf.mxu0  ;;  %v2358_v1 = vpop.f32.mrf.mxu1 }
 0x163   : > { %v4864_v39 = vadd.f32 %v2356_v32, %v2084_v31 }
 0x164   : > { %v2088_v41 = vpop.f32.mrf.mxu0  ;;  %2585 = vmatmul.mubr.bf16.gmra.mxu0 %v4293_v29  ;;  %v2361_v44 = vpop.f32.mrf.mxu1  ;;  %2769 = vmatmul.mubr.bf16.gmra.mxu1 %v4296_v34 }
 0x165   : > { %v2089_v42 = vadd.f32 %v4749_v24, %v2088_v41  ;;  %2592 = vmatprep.mubr.bf16.mxu0 %v4301_v35  ;;  %2776 = vmatprep.mubr.bf16.mxu1 %v4304_v37  ;;  %v4310_v37 = vld [vmem:[%s4496_s26 + $0x1d0] ss:$28 sps:$4 sm:$0xff]  }
 0x166   : > { %v2090_v47 = vpop.f32.mrf.mxu0  ;;  %v2363_v49 = vpop.f32.mrf.mxu1 }
 0x167   : > { %v4867_v48 = vadd.f32 %v2361_v44, %v2089_v42  ;;  %v4314_v42 = vld [vmem:[%s4496_s26 + $0xc0] ss:$28 sps:$4 sm:$0xff]   ;;  %v4317_v44 = vld [vmem:[%s4496_s26 + $0x20c] ss:$28 sps:$4 sm:$0xff]   ;;  %v4318_v49 = vld [vmem:[%s4496_s26 + $0xf8] ss:$28 sps:$4 sm:$0xff]  }
 0x168   : > { %v2091_v52 = vpop.f32.mrf.mxu0  ;;  %v2364_v55 = vpop.f32.mrf.mxu1 }
 0x169   : > { %v2092_v54 = vadd.f32 %v4749_v24, %v2091_v52 }
 0x16a   : > { %v2093_v60 = vpop.f32.mrf.mxu0  ;;  %v2366_v2 = vpop.f32.mrf.mxu1 }
 0x16b   : > { %v4874_v0 = vadd.f32 %v2364_v55, %v2092_v54 }
 0x16c   : > { %v2096_v3 = vpop.f32.mrf.mxu0  ;;  %2593 = vmatmul.mubr.bf16.gmra.mxu0 %v4299_v53  ;;  %v2369_v6 = vpop.f32.mrf.mxu1  ;;  %2777 = vmatmul.mubr.bf16.gmra.mxu1 %v4302_v57 }
 0x16d   : > { %v2097_v5 = vadd.f32 %v4749_v24, %v2096_v3  ;;  %2600 = vmatprep.mubr.bf16.mxu0 %v4307_v58  ;;  %3931 = vmatprep.mubr.msk.bf16.mxu1 %vm1875_vm0, %v4308_v61  ;;  %v4315_v3 = vld [vmem:[%s4496_s26 + $0x208] ss:$28 sps:$4 sm:$0xff]  }
 0x16e   : > { %v2098_v8 = vpop.f32.mrf.mxu0  ;;  %v2371_v11 = vpop.f32.mrf.mxu1 }
 0x16f   : > { %v4878_v10 = vadd.f32 %v2369_v6, %v2097_v5  ;;  %v4319_v8 = vld [vmem:[%s4496_s26 + $0x130] ss:$28 sps:$4 sm:$0xff]   ;;  %v4322_v11 = vld [vmem:[%s4496_s26 + $0x244] ss:$28 sps:$4 sm:$0xff]  }
 0x170   : > { %v2099_v12 = vpop.f32.mrf.mxu0  ;;  %v2372_v16 = vpop.f32.mrf.mxu1 }
 0x171   : > { %v2100_v14 = vadd.f32 %v4749_v24, %v2099_v12 }
 0x172   : > { %v2101_v51 = vpop.f32.mrf.mxu0  ;;  %v2374_v27 = vpop.f32.mrf.mxu1 }
 0x173   : > { %v4885_v22 = vadd.f32 %v2372_v16, %v2100_v14 }
 0x174   : > { %v2104_v28 = vpop.f32.mrf.mxu0  ;;  %2601 = vmatmul.mubr.bf16.gmra.mxu0 %v4305_v13  ;;  %v2377_v31 = vpop.f32.mrf.mxu1  ;;  %3932 = vmatmul.mubr.msk.bf16.vlgmr.msra.gmra.mxu1 %vm1875_vm0, %v4309_v18  ;;  %v4323_v13 = vld [vmem:[%s4496_s26 + $0x168] ss:$28 sps:$4 sm:$0xff]  }
 0x175   : > { %v2105_v29 = vadd.f32 %v4749_v24, %v2104_v28  ;;  %2608 = vmatprep.mubr.bf16.mxu0 %v4312_v20  ;;  %3935 = vmatprep.mubr.msk.bf16.mxu1 %vm1875_vm0, %v4313_v21 }
 0x176   : > { %v2106_v32 = vpop.f32.mrf.mxu0  ;;  %v2379_v35 = vpop.f32.mrf.mxu1 }
 0x177   : > { %v4890_v34 = vadd.f32 %v2377_v31, %v2105_v29  ;;  %v4320_v31 = vld [vmem:[%s4496_s26 + $0x240] ss:$28 sps:$4 sm:$0xff]  }
 0x178   : > { %v2107_v36 = vpop.f32.mrf.mxu0  ;;  %v2380_v41 = vpop.f32.mrf.mxu1 }
 0x179   : > { %v2108_v1 = vadd.f32 %v4749_v24, %v2107_v36  ;;  %v4324_v36 = vld [vmem:[%s4496_s26 + $0x1a0] ss:$28 sps:$4 sm:$0xff]  }
 0x17a   : > { %v2109_v47 = vpop.f32.mrf.mxu0  ;;  %v2382_v53 = vpop.f32.mrf.mxu1 }
 0x17b   : > { %v4897_v52 = vadd.f32 %v2380_v41, %v2108_v1  ;;  %v4328_v41 = vld [vmem:[%s4496_s26 + $0x1d8] ss:$28 sps:$4 sm:$0xff]  }
 0x17c   : > { %v2112_v54 = vpop.f32.mrf.mxu0  ;;  %2609 = vmatmul.mubr.bf16.gmra.mxu0 %v4310_v37  ;;  %v2385_v57 = vpop.f32.mrf.mxu1  ;;  %3936 = vmatmul.mubr.msk.bf16.gmra.mxu1 %vm1875_vm0, %v4314_v42  ;;  %v4327_v37 = vld [vmem:[%s4496_s26 + $0x27c] ss:$28 sps:$4 sm:$0xff]  }
 0x17d   : > { %v2113_v55 = vadd.f32 %v4749_v24, %v2112_v54  ;;  %2616 = vmatprep.mubr.bf16.mxu0 %v4317_v44  ;;  %3939 = vmatprep.mubr.msk.bf16.mxu1 %vm1875_vm0, %v4318_v49 }
 0x17e   : > { %v2114_v58 = vpop.f32.mrf.mxu0  ;;  %v2387_v61 = vpop.f32.mrf.mxu1 }
 0x17f   : > { %v4902_v60 = vadd.f32 %v2385_v57, %v2113_v55  ;;  %v4325_v61 = vld [vmem:[%s4496_s26 + $0x278] ss:$28 sps:$4 sm:$0xff]  }
 0x180   : > { %v2115_v2 = vpop.f32.mrf.mxu0  ;;  %v2388_v6 = vpop.f32.mrf.mxu1 }
 0x181   : > { %v2116_v5 = vadd.f32 %v4749_v24, %v2115_v2 }
 0x182   : > { %v2117_v12 = vpop.f32.mrf.mxu0  ;;  %v2390_v16 = vpop.f32.mrf.mxu1 }
 0x183   : > { %v4909_v14 = vadd.f32 %v2388_v6, %v2116_v5  ;;  %v4329_v5 = vld [vmem:[%s4496_s26 + $0x210] ss:$28 sps:$4 sm:$0xff]  }
 0x184   : > { %v2120_v18 = vpop.f32.mrf.mxu0  ;;  %2617 = vmatmul.mubr.bf16.gmra.mxu0 %v4315_v3  ;;  %v2393_v51 = vpop.f32.mrf.mxu1  ;;  %3940 = vmatmul.mubr.msk.bf16.gmra.mxu1 %vm1875_vm0, %v4319_v8  ;;  %v4332_v6 = vld [vmem:[%s4496_s26 + $0x2b4] ss:$28 sps:$4 sm:$0xff]  }
 0x185   : > { %v2121_v20 = vadd.f32 %v4749_v24, %v2120_v18  ;;  %2624 = vmatprep.mubr.bf16.mxu0 %v4322_v11  ;;  %3943 = vmatprep.mubr.msk.bf16.mxu1 %vm1875_vm0, %v4323_v13  ;;  %v4333_v11 = vld [vmem:[%s4496_s26 + $0x248] ss:$28 sps:$4 sm:$0xff]  }
 0x186   : > { %v2122_v21 = vpop.f32.mrf.mxu0  ;;  %v2395_v28 = vpop.f32.mrf.mxu1 }
 0x187   : > { %v4914_v27 = vadd.f32 %v2393_v51, %v2121_v20 }
 0x188   : > { %v2123_v29 = vpop.f32.mrf.mxu0  ;;  %v2396_v35 = vpop.f32.mrf.mxu1 }
 0x189   : > { %v2124_v32 = vadd.f32 %v4749_v24, %v2123_v29 }
 0x18a   : > { %v2125_v1 = vpop.f32.mrf.mxu0  ;;  %v2398_v44 = vpop.f32.mrf.mxu1 }
 0x18b   : > { %v4921_v42 = vadd.f32 %v2396_v35, %v2124_v32 }
 0x18c   : > { %v2128_v47 = vpop.f32.mrf.mxu0  ;;  %2625 = vmatmul.mubr.bf16.gmra.mxu0 %v4320_v31  ;;  %v2401_v53 = vpop.f32.mrf.mxu1  ;;  %3944 = vmatmul.mubr.msk.bf16.gmra.mxu1 %vm1875_vm0, %v4324_v36  ;;  %v4330_v31 = vld [vmem:[%s4496_s26 + $0x2b0] ss:$28 sps:$4 sm:$0xff]   ;;  %v4334_v36 = vld [vmem:[%s4496_s26 + $0x280] ss:$28 sps:$4 sm:$0xff]  }
 0x18d   : > { %v2129_v49 = vadd.f32 %v4749_v24, %v2128_v47  ;;  %2632 = vmatprep.mubr.bf16.mxu0 %v4327_v37  ;;  %3947 = vmatprep.mubr.msk.bf16.mxu1 %vm1875_vm0, %v4328_v41  ;;  %v4337_v37 = vld [vmem:[%s4496_s26 + $0x2ec] ss:$28 sps:$4 sm:$0xff]   ;;  %v4338_v41 = vld [vmem:[%s4496_s26 + $0x2b8] ss:$28 sps:$4 sm:$0xff]  }
 0x18e   : > { %v2130_v54 = vpop.f32.mrf.mxu0  ;;  %v2403_v57 = vpop.f32.mrf.mxu1 }
 0x18f   : > { %v4926_v55 = vadd.f32 %v2401_v53, %v2129_v49 }
 0x190   : > { %v2131_v58 = vpop.f32.mrf.mxu0  ;;  %v2404_v3 = vpop.f32.mrf.mxu1 }
 0x191   : > { %v2132_v2 = vadd.f32 %v4749_v24, %v2131_v58 }
 0x192   : > { %v2133_v8 = vpop.f32.mrf.mxu0  ;;  %v2406_v13 = vpop.f32.mrf.mxu1 }
 0x193   : > { %v4933_v12 = vadd.f32 %v2404_v3, %v2132_v2  ;;  %v4335_v3 = vld [vmem:[%s4496_s26 + $0x2e8] ss:$28 sps:$4 sm:$0xff]   ;;  %v4339_v8 = vld [vmem:[%s4496_s26 + $0x2f0] ss:$28 sps:$4 sm:$0xff]  }
 0x194   : > { %v2136_v16 = vpop.f32.mrf.mxu0  ;;  %2633 = vmatmul.mubr.bf16.gmra.mxu0 %v4325_v61  ;;  %v2409_v20 = vpop.f32.mrf.mxu1  ;;  %3948 = vmatmul.mubr.msk.bf16.gmra.mxu1 %vm1875_vm0, %v4329_v5 }
 0x195   : > { %v2137_v18 = vadd.f32 %v4749_v24, %v2136_v16  ;;  %2640 = vmatprep.mubr.bf16.mxu0 %v4332_v6  ;;  %3951 = vmatprep.mubr.msk.bf16.mxu1 %vm1875_vm0, %v4333_v11  ;;  %v4342_v11 = vld [vmem:[%s4496_s26 + $0x324] ss:$28 sps:$4 sm:$0xff]  }
 0x196   : > { %v2138_v51 = vpop.f32.mrf.mxu0  ;;  %v2411_v28 = vpop.f32.mrf.mxu1  ;;  %v4343_v16 = vld [vmem:[%s4496_s26 + $0x328] ss:$28 sps:$4 sm:$0xff]  }
 0x197   : > { %v4938_v21 = vadd.f32 %v2409_v20, %v2137_v18 }
 0x198   : > { %v2139_v29 = vpop.f32.mrf.mxu0  ;;  %v2412_v35 = vpop.f32.mrf.mxu1 }
 0x199   : > { %5386 = vst [vmem:[#allocation2_spill] sm:$0xff] %v4938_v21  ;;  %v2140_v32 = vadd.f32 %v4749_v24, %v2139_v29 }
 0x19a   : > { %v2141_v1 = vpop.f32.mrf.mxu0  ;;  %v2414_v47 = vpop.f32.mrf.mxu1 }
 0x19b   : > { %v4945_v44 = vadd.f32 %v2412_v35, %v2140_v32  ;;  %v4344_v47 = vld [vmem:[%s4496_s26 + $0x360] ss:$28 sps:$4 sm:$0xff]  }
 0x19c   : > { %v2144_v49 = vpop.f32.mrf.mxu0  ;;  %2641 = vmatmul.mubr.bf16.gmra.mxu0 %v4330_v31  ;;  %v2417_v54 = vpop.f32.mrf.mxu1  ;;  %3952 = vmatmul.mubr.msk.bf16.gmra.mxu1 %vm1875_vm0, %v4334_v36 }
 0x19d   : > { %5387 = vst [vmem:[#allocation3_spill] sm:$0xff] %v4945_v44  ;;  %v2145_v53 = vadd.f32 %v4749_v24, %v2144_v49  ;;  %2648 = vmatprep.mubr.bf16.mxu0 %v4337_v37  ;;  %3955 = vmatprep.mubr.msk.bf16.mxu1 %vm1875_vm0, %v4338_v41  ;;  %v4340_v37 = vld [vmem:[%s4496_s26 + $0x320] ss:$28 sps:$4 sm:$0xff]  }
 0x19e   : > { %v2146_v57 = vpop.f32.mrf.mxu0  ;;  %v2419_v61 = vpop.f32.mrf.mxu1  ;;  %v4347_v49 = vld [vmem:[%s4496_s26 + $0x35c] ss:$28 sps:$4 sm:$0xff]  }
 0x19f   : > { %v4950_v58 = vadd.f32 %v2417_v54, %v2145_v53  ;;  %v4348_v54 = vld [vmem:[%s4496_s26 + $0x398] ss:$28 sps:$4 sm:$0xff]  }
 0x1a0   : > { %v2147_v2 = vpop.f32.mrf.mxu0  ;;  %v2420_v6 = vpop.f32.mrf.mxu1 }
 0x1a1   : > { %5388 = vst [vmem:[#allocation4_spill] sm:$0xff] %v4950_v58  ;;  %v2148_v5 = vadd.f32 %v4749_v24, %v2147_v2 }
 0x1a2   : > { %v2149_v13 = vpop.f32.mrf.mxu0  ;;  %v2422_v20 = vpop.f32.mrf.mxu1 }
 0x1a3   : > { %v4957_v18 = vadd.f32 %v2420_v6, %v2148_v5 }
 0x1a4   : > { %v2152_v51 = vpop.f32.mrf.mxu0  ;;  %2649 = vmatmul.mubr.bf16.gmra.mxu0 %v4335_v3  ;;  %v2425_v29 = vpop.f32.mrf.mxu1  ;;  %3956 = vmatmul.mubr.msk.bf16.gmra.mxu1 %vm1875_vm0, %v4339_v8 }
 0x1a5   : > { %5389 = vst [vmem:[#allocation5_spill] sm:$0xff] %v4957_v18  ;;  %v2153_v28 = vadd.f32 %v4749_v24, %v2152_v51  ;;  %2656 = vmatprep.mubr.bf16.mxu0 %v4342_v11  ;;  %3959 = vmatprep.mubr.msk.bf16.mxu1 %vm1875_vm0, %v4343_v16  ;;  %v4345_v16 = vld [vmem:[%s4496_s26 + $0x358] ss:$28 sps:$4 sm:$0xff]  }
 0x1a6   : > { %v2154_v31 = vpop.f32.mrf.mxu0  ;;  %v2427_v35 = vpop.f32.mrf.mxu1 }
 0x1a7   : > { %v4962_v32 = vadd.f32 %v2425_v29, %v2153_v28  ;;  %v4349_v28 = vld [vmem:[%s4496_s26 + $0x3d0] ss:$28 sps:$4 sm:$0xff]   ;;  %v4353_v35 = vld [vmem:[%s4496_s26 + $0x408] ss:$28 sps:$4 sm:$0xff]  }
 0x1a8   : > { %v2155_v36 = vpop.f32.mrf.mxu0  ;;  %v2428_v41 = vpop.f32.mrf.mxu1  ;;  %v4352_v29 = vld [vmem:[%s4496_s26 + $0x394] ss:$28 sps:$4 sm:$0xff]  }
 0x1a9   : > { %5390 = vst [vmem:[#allocation6_spill] sm:$0xff] %v4962_v32  ;;  %v2156_v1 = vadd.f32 %v4749_v24, %v2155_v36 }
 0x1aa   : > { %v2157_v53 = vpop.f32.mrf.mxu0  ;;  %v2430_v61 = vpop.f32.mrf.mxu1 }
 0x1ab   : > { %v4969_v57 = vadd.f32 %v2428_v41, %v2156_v1 }
 0x1ac   : > { %v2160_v2 = vpop.f32.mrf.mxu0  ;;  %2657 = vmatmul.mubr.bf16.gmra.mxu0 %v4340_v37  ;;  %v2433_v5 = vpop.f32.mrf.mxu1  ;;  %3960 = vmatmul.mubr.msk.bf16.gmra.mxu1 %vm1875_vm0, %v4344_v47 }
 0x1ad   : > { %5391 = vst [vmem:[#allocation7_spill] sm:$0xff] %v4969_v57  ;;  %v2161_v3 = vadd.f32 %v4749_v24, %v2160_v2  ;;  %2664 = vmatprep.mubr.bf16.mxu0 %v4347_v49  ;;  %3963 = vmatprep.mubr.msk.bf16.mxu1 %vm1875_vm0, %v4348_v54  ;;  %v4350_v2 = vld [vmem:[%s4496_s26 + $0x390] ss:$28 sps:$4 sm:$0xff]  }
 0x1ae   : > { %v2162_v6 = vpop.f32.mrf.mxu0  ;;  %v2435_v11 = vpop.f32.mrf.mxu1 }
 0x1af   : > { %v4974_v8 = vadd.f32 %v2433_v5, %v2161_v3  ;;  %v4354_v6 = vld [vmem:[%s4496_s26 + $0x440] ss:$28 sps:$4 sm:$0xff]   ;;  %v4357_v11 = vld [vmem:[%s4496_s26 + $0x3cc] ss:$28 sps:$4 sm:$0xff]  }
 0x1b0   : > { %v2163_v13 = vpop.f32.mrf.mxu0  ;;  %v2436_v51 = vpop.f32.mrf.mxu1 }
 0x1b1   : > { %5392 = vst [vmem:[#allocation8_spill] sm:$0xff] %v4974_v8  ;;  %v2164_v20 = vadd.f32 %v4749_v24, %v2163_v13 }
 0x1b2   : > { %v2165_v31 = vpop.f32.mrf.mxu0  ;;  %v2438_v37 = vpop.f32.mrf.mxu1 }
 0x1b3   : > { %v4981_v36 = vadd.f32 %v2436_v51, %v2164_v20 }
 0x1b4   : > { %v2168_v1 = vpop.f32.mrf.mxu0  ;;  %2665 = vmatmul.mubr.bf16.gmra.mxu0 %v4345_v16  ;;  %v2441_v47 = vpop.f32.mrf.mxu1  ;;  %3964 = vmatmul.mubr.msk.bf16.gmra.mxu1 %vm1875_vm0, %v4349_v28  ;;  %v4358_v16 = vld [vmem:[%s4496_s26 + $0x478] ss:$28 sps:$4 sm:$0xff]  }
 0x1b5   : > { %5393 = vst [vmem:[#allocation9_spill] sm:$0xff] %v4981_v36  ;;  %v2169_v41 = vadd.f32 %v4749_v24, %v2168_v1  ;;  %2672 = vmatprep.mubr.bf16.mxu0 %v4352_v29  ;;  %3967 = vmatprep.mubr.msk.bf16.mxu1 %vm1875_vm0, %v4353_v35 }
 0x1b6   : > { %v2170_v49 = vpop.f32.mrf.mxu0  ;;  %v2443_v54 = vpop.f32.mrf.mxu1 }
 0x1b7   : > { %v4986_v53 = vadd.f32 %v2441_v47, %v2169_v41  ;;  %v4355_v47 = vld [vmem:[%s4496_s26 + $0x3c8] ss:$28 sps:$4 sm:$0xff]  }
 0x1b8   : > { %v2171_v61 = vpop.f32.mrf.mxu0  ;;  %v2444_v5 = vpop.f32.mrf.mxu1 }
 0x1b9   : > { %5394 = vst [vmem:[#allocation10_spill] sm:$0xff] %v4986_v53  ;;  %v2172_v3 = vadd.f32 %v4749_v24, %v2171_v61  ;;  %v4359_v61 = vld [vmem:[%s4496_s26 + $0x4b0] ss:$28 sps:$4 sm:$0xff]  }
 0x1ba   : > { %v2173_v13 = vpop.f32.mrf.mxu0  ;;  %v2446_v51 = vpop.f32.mrf.mxu1  ;;  %v4379_v53 = vld [vmem:[%s4496_s26 + $0x670] ss:$28 sps:$4 sm:$0xff]  }
 0x1bb   : > { %v4993_v20 = vadd.f32 %v2444_v5, %v2172_v3  ;;  %v4363_v5 = vld [vmem:[%s4496_s26 + $0x4e8] ss:$28 sps:$4 sm:$0xff]  }
 0x1bc   : > { %v2176_v28 = vpop.f32.mrf.mxu0  ;;  %2673 = vmatmul.mubr.bf16.gmra.mxu0 %v4350_v2  ;;  %v2449_v31 = vpop.f32.mrf.mxu1  ;;  %3968 = vmatmul.mubr.msk.bf16.gmra.mxu1 %vm1875_vm0, %v4354_v6  ;;  %v4362_v2 = vld [vmem:[%s4496_s26 + $0x404] ss:$28 sps:$4 sm:$0xff]  }
 0x1bd   : > { %5395 = vst [vmem:[#allocation11_spill] sm:$0xff] %v4993_v20  ;;  %v2177_v29 = vadd.f32 %v4749_v24, %v2176_v28  ;;  %2680 = vmatprep.mubr.bf16.mxu0 %v4357_v11  ;;  %3971 = vmatprep.mubr.msk.bf16.mxu1 %vm1875_vm0, %v4358_v16 }
 0x1be   : > { %v2178_v35 = vpop.f32.mrf.mxu0  ;;  %v2451_v1 = vpop.f32.mrf.mxu1 }
 0x1bf   : > { %v4998_v37 = vadd.f32 %v2449_v31, %v2177_v29  ;;  %v4360_v1 = vld [vmem:[%s4496_s26 + $0x400] ss:$28 sps:$4 sm:$0xff]  }
 0x1c0   : > { %v2179_v41 = vpop.f32.mrf.mxu0  ;;  %v2452_v54 = vpop.f32.mrf.mxu1 }
 0x1c1   : > { %5396 = vst [vmem:[#allocation12_spill] sm:$0xff] %v4998_v37  ;;  %v2180_v49 = vadd.f32 %v4749_v24, %v2179_v41 }
 0x1c2   : > { %v2181_v3 = vpop.f32.mrf.mxu0  ;;  %v2454_v6 = vpop.f32.mrf.mxu1 }
 0x1c3   : > { %v5005_v13 = vadd.f32 %v2452_v54, %v2180_v49  ;;  %v4364_v54 = vld [vmem:[%s4496_s26 + $0x520] ss:$28 sps:$4 sm:$0xff]   ;;  %v4368_v6 = vld [vmem:[%s4496_s26 + $0x558] ss:$28 sps:$4 sm:$0xff]  }
 0x1c4   : > { %v2184_v11 = vpop.f32.mrf.mxu0  ;;  %2681 = vmatmul.mubr.bf16.gmra.mxu0 %v4355_v47  ;;  %v2457_v51 = vpop.f32.mrf.mxu1  ;;  %3972 = vmatmul.mubr.msk.bf16.gmra.mxu1 %vm1875_vm0, %v4359_v61  ;;  %v4367_v47 = vld [vmem:[%s4496_s26 + $0x43c] ss:$28 sps:$4 sm:$0xff]  }
 0x1c5   : > { %5397 = vst [vmem:[#allocation13_spill] sm:$0xff] %v5005_v13  ;;  %v2185_v16 = vadd.f32 %v4749_v24, %v2184_v11  ;;  %2688 = vmatprep.mubr.bf16.mxu0 %v4362_v2  ;;  %3975 = vmatprep.mubr.msk.bf16.mxu1 %vm1875_vm0, %v4363_v5 }
 0x1c6   : > { %v2186_v28 = vpop.f32.mrf.mxu0  ;;  %v2459_v31 = vpop.f32.mrf.mxu1 }
 0x1c7   : > { %v5010_v29 = vadd.f32 %v2457_v51, %v2185_v16 }
 0x1c8   : > { %v2187_v35 = vpop.f32.mrf.mxu0  ;;  %v2460_v49 = vpop.f32.mrf.mxu1 }
 0x1c9   : > { %v2188_v41 = vadd.f32 %v4749_v24, %v2187_v35 }
 0x1ca   : > { %v2189_v3 = vpop.f32.mrf.mxu0  ;;  %v2462_v61 = vpop.f32.mrf.mxu1 }
 0x1cb   : > { %v5017_v11 = vadd.f32 %v2460_v49, %v2188_v41  ;;  %v4365_v41 = vld [vmem:[%s4496_s26 + $0x438] ss:$28 sps:$4 sm:$0xff]   ;;  %v4369_v61 = vld [vmem:[%s4496_s26 + $0x590] ss:$28 sps:$4 sm:$0xff]  }
 0x1cc   : > { %v2192_v2 = vpop.f32.mrf.mxu0  ;;  %2689 = vmatmul.mubr.bf16.gmra.mxu0 %v4360_v1  ;;  %v2465_v16 = vpop.f32.mrf.mxu1  ;;  %3976 = vmatmul.mubr.msk.bf16.gmra.mxu1 %vm1875_vm0, %v4364_v54  ;;  %v4372_v1 = vld [vmem:[%s4496_s26 + $0x474] ss:$28 sps:$4 sm:$0xff]  }
 0x1cd   : > { %v2193_v5 = vadd.f32 %v4749_v24, %v2192_v2  ;;  %2696 = vmatprep.mubr.bf16.mxu0 %v4367_v47  ;;  %3979 = vmatprep.mubr.msk.bf16.mxu1 %vm1875_vm0, %v4368_v6  ;;  %v4373_v2 = vld [vmem:[%s4496_s26 + $0x5c8] ss:$28 sps:$4 sm:$0xff]  }
 0x1ce   : > { %v2194_v51 = vpop.f32.mrf.mxu0  ;;  %v2467_v31 = vpop.f32.mrf.mxu1 }
 0x1cf   : > { %v5022_v28 = vadd.f32 %v2465_v16, %v2193_v5 }
 0x1d0   : > { %v2195_v35 = vpop.f32.mrf.mxu0  ;;  %v2468_v3 = vpop.f32.mrf.mxu1 }
 0x1d1   : > { %v2196_v49 = vadd.f32 %v4749_v24, %v2195_v35  ;;  %v4370_v35 = vld [vmem:[%s4496_s26 + $0x470] ss:$28 sps:$4 sm:$0xff]  }
 0x1d2   : > { %v2197_v13 = vpop.f32.mrf.mxu0  ;;  %v2470_v54 = vpop.f32.mrf.mxu1 }
 0x1d3   : > { %v5029_v37 = vadd.f32 %v2468_v3, %v2196_v49  ;;  %v5040_v49 = vld [vmem:[%s5384_s2] ss:$0 sm:$0xff]  ;;  %v4377_v54 = vld [vmem:[%s4496_s26 + $0x4ac] ss:$28 sps:$4 sm:$0xff]  }
 0x1d4   : > { %v2200_v47 = vpop.f32.mrf.mxu0  ;;  %2697 = vmatmul.mubr.bf16.gmra.mxu0 %v4365_v41  ;;  %v2473_v5 = vpop.f32.mrf.mxu1  ;;  %3980 = vmatmul.mubr.msk.bf16.gmra.mxu1 %vm1875_vm0, %v4369_v61  ;;  %v4374_v3 = vld [vmem:[%s4496_s26 + $0x600] ss:$28 sps:$4 sm:$0xff]  }
 0x1d5   : > { %v2201_v6 = vadd.f32 %v4749_v24, %v2200_v47  ;;  %2704 = vmatprep.mubr.bf16.mxu0 %v4372_v1  ;;  %3983 = vmatprep.mubr.msk.bf16.mxu1 %vm1875_vm0, %v4373_v2  ;;  %v4378_v1 = vld [vmem:[%s4496_s26 + $0x638] ss:$28 sps:$4 sm:$0xff]  }
 0x1d6   : > { %v2202_v16 = vpop.f32.mrf.mxu0  ;;  %v2475_v13 = vpop.f32.mrf.mxu1 }
 0x1d7   : > { %v5034_v51 = vadd.f32 %v2473_v5, %v2201_v6 }
 0x1d8   : > { %v2203_v31 = vpop.f32.mrf.mxu0  ;;  %v2476_v41 = vpop.f32.mrf.mxu1 }
 0x1d9   : > { %v2204_v24 = vadd.f32 %v5040_v49, %v2203_v31 }
 0x1da   : > { %v2205_v61 = vpop.f32.mrf.mxu0  ;;  %v2478_v2 = vpop.f32.mrf.mxu1 }
 0x1db   : > { %v5046_v47 = vadd.f32 %v2476_v41, %v2204_v24  ;;  %v4375_v24 = vld [vmem:[%s4496_s26 + $0x4a8] ss:$28 sps:$4 sm:$0xff]  }
 0x1dc   : > { %v2208_v6 = vpop.f32.mrf.mxu0  ;;  %2705 = vmatmul.mubr.bf16.gmra.mxu0 %v4370_v35  ;;  %v2481_v16 = vpop.f32.mrf.mxu1  ;;  %3984 = vmatmul.mubr.msk.bf16.gmra.mxu1 %vm1875_vm0, %v4374_v3  ;;  %v4382_v35 = vld [vmem:[%s4496_s26 + $0x4e4] ss:$28 sps:$4 sm:$0xff]  }
 0x1dd   : > { %v2209_v5 = vadd.f32 %v5040_v49, %v2208_v6  ;;  %2712 = vmatprep.mubr.bf16.mxu0 %v4377_v54  ;;  %3987 = vmatprep.mubr.msk.bf16.mxu1 %vm1875_vm0, %v4378_v1 }
 0x1de   : > { %v2210_v13 = vpop.f32.mrf.mxu0  ;;  %v2483_v61 = vpop.f32.mrf.mxu1 }
 0x1df   : > { %v5051_v31 = vadd.f32 %v2481_v16, %v2209_v5  ;;  %v4380_v61 = vld [vmem:[%s4496_s26 + $0x4e0] ss:$28 sps:$4 sm:$0xff]   ;;  %s3481_s26 = sshll.u32 %s5433_s5, 2 }
 0x1e0   : > { %v2211_v20 = vpop.f32.mrf.mxu0  ;;  %v2484_v2 = vpop.f32.mrf.mxu1  ;;  %s5158_s27 = scalar_lea.vmem %s5385_s3, %s3481_s26 }
 0x1e1   : > { %v2212_v41 = vadd.f32 %v5040_v49, %v2211_v20 }
 0x1e2   : > { %v2213_v36 = vpop.f32.mrf.mxu0  ;;  %v2486_v8 = vpop.f32.mrf.mxu1 }
 0x1e3   : > { %v5057_v6 = vadd.f32 %v2484_v2, %v2212_v41 }
 0x1e4   : > { %v2216_v3 = vpop.f32.mrf.mxu0  ;;  %2713 = vmatmul.mubr.bf16.gmra.mxu0 %v4375_v24  ;;  %v2489_v1 = vpop.f32.mrf.mxu1  ;;  %3988 = vmatmul.mubr.msk.bf16.gmra.mxu1 %vm1875_vm0, %v4379_v53 }
 0x1e5   : > { %v2217_v54 = vadd.f32 %v5040_v49, %v2216_v3  ;;  %2720 = vmatprep.mubr.bf16.mxu0 %v4382_v35 }
 0x1e6   : > { %v2218_v5 = vpop.f32.mrf.mxu0  ;;  %v2491_v20 = vpop.f32.mrf.mxu1 }
 0x1e7   : > { %v5061_v16 = vadd.f32 %v2489_v1, %v2217_v54 }
 0x1e8   : > { %v2219_v13 = vpop.f32.mrf.mxu0  ;;  %v2492_v36 = vpop.f32.mrf.mxu1 }
 0x1e9   : > { %v2220_v57 = vadd.f32 %v5040_v49, %v2219_v13 }
 0x1ea   : > { %v2221_v41 = vpop.f32.mrf.mxu0  ;;  %v2494_v8 = vpop.f32.mrf.mxu1 }
 0x1eb   : > { %v5065_v2 = vadd.f32 %v2492_v36, %v2220_v57 }
 0x1ec   : > { %v2224_v24 = vpop.f32.mrf.mxu0  ;;  %2721 = vmatmul.mubr.bf16.gmra.mxu0 %v4380_v61  ;;  %v2497_v32 = vpop.f32.mrf.mxu1 }
 0x1ed   : > { %v2225_v3 = vadd.f32 %v5040_v49, %v2224_v24 }
 0x1ee   : > { %v2226_v53 = vpop.f32.mrf.mxu0  ;;  %v2499_v54 = vpop.f32.mrf.mxu1 }
 0x1ef   : > { %v5068_v35 = vadd.f32 %v2497_v32, %v2225_v3 }
 0x1f0   : > { %v2227_v1 = vpop.f32.mrf.mxu0  ;;  %v2500_v20 = vpop.f32.mrf.mxu1 }
 0x1f1   : > { %v2228_v5 = vadd.f32 %v5040_v49, %v2227_v1 }
 0x1f2   : > { %v2229_v18 = vpop.f32.mrf.mxu0  ;;  %v2502_v41 = vpop.f32.mrf.mxu1 }
 0x1f3   : > { %v5071_v13 = vadd.f32 %v2500_v20, %v2228_v5 }
 0x1f4   : > { %v2232_v57 = vpop.f32.mrf.mxu0  ;;  %v2505_v8 = vpop.f32.mrf.mxu1 }
 0x1f5   : > { %v2233_v36 = vadd.f32 %v5040_v49, %v2232_v57 }
 0x1f6   : > { %v2234_v61 = vpop.f32.mrf.mxu0  ;;  %v2507_v24 = vpop.f32.mrf.mxu1 }
 0x1f7   : > { %v5074_v58 = vadd.f32 %v2505_v8, %v2233_v36 }
 0x1f8   : > { %v2235_v53 = vpop.f32.mrf.mxu0  ;;  %v2508_v3 = vpop.f32.mrf.mxu1 }
 0x1f9   : > { %v2236_v32 = vadd.f32 %v5040_v49, %v2235_v53 }
 0x1fa   : > { %v2237_v54 = vpop.f32.mrf.mxu0  ;;  %v2510_v1 = vpop.f32.mrf.mxu1 }
 0x1fb   : > { %v5077_v44 = vadd.f32 %v2508_v3, %v2236_v32 }
 0x1fc   : > { %v5079_v18 = vpop.f32.mrf.mxu0  ;;  %v2730_v5 = vpop.f32.mrf.mxu1 }
 0x1fd   : > { %v5082_v20 = vadd.f32 %v2730_v5, %v5010_v29 }
 0x1fe   : > { %v2548_v41 = vpop.f32.mrf.mxu0  ;;  %v2732_v57 = vpop.f32.mrf.mxu1 }
 0x1ff   : > { %5398 = vst [vmem:[#allocation14_spill] sm:$0xff] %v5082_v20 }
 0x200   : > { %v5084_v61 = vpop.f32.mrf.mxu0  ;;  %v2733_v36 = vpop.f32.mrf.mxu1 }
 0x201   : > { %v5087_v8 = vadd.f32 %v2733_v36, %v5017_v11 }
 0x202   : > { %v2551_v49 = vpop.f32.mrf.mxu0  ;;  %v2735_v24 = vpop.f32.mrf.mxu1 }
 0x203   : > { %5399 = vst [vmem:[#allocation15_spill] sm:$0xff] %v5087_v8 }
 0x204   : > { %v2554_v53 = vpop.f32.mrf.mxu0  ;;  %v2738_v32 = vpop.f32.mrf.mxu1 }
 0x205   : > { %v5090_v3 = vadd.f32 %v2738_v32, %v5022_v28 }
 0x206   : > { %v2556_v54 = vpop.f32.mrf.mxu0  ;;  %v2740_v1 = vpop.f32.mrf.mxu1 }
 0x207   : > { %5400 = vst [vmem:[#allocation16_spill] sm:$0xff] %v5090_v3 }
 0x208   : > { %v5092_v21 = vpop.f32.mrf.mxu0  ;;  %v2741_v29 = vpop.f32.mrf.mxu1 }
 0x209   : > { %v5095_v5 = vadd.f32 %v2741_v29, %v5029_v37 }
 0x20a   : > { %v2559_v41 = vpop.f32.mrf.mxu0  ;;  %v2743_v57 = vpop.f32.mrf.mxu1 }
 0x20b   : > { %5401 = vst [vmem:[#allocation17_spill] sm:$0xff] %v5095_v5 }
 0x20c   : > { %v5097_v20 = vpop.f32.mrf.mxu0  ;;  %v2746_v11 = vpop.f32.mrf.mxu1 }
 0x20d   : > { %v5100_v36 = vadd.f32 %v2746_v11, %v5034_v51 }
 0x20e   : > { %v2564_v49 = vpop.f32.mrf.mxu0  ;;  %v2748_v24 = vpop.f32.mrf.mxu1 }
 0x20f   : > { %5402 = vst [vmem:[#allocation18_spill] sm:$0xff] %v5100_v36 }
 0x210   : > { %v5102_v28 = vpop.f32.mrf.mxu0  ;;  %v2749_v32 = vpop.f32.mrf.mxu1 }
 0x211   : > { %v5105_v54 = vadd.f32 %v2749_v32, %v5046_v47 }
 0x212   : > { %v2567_v1 = vpop.f32.mrf.mxu0  ;;  %v2751_v3 = vpop.f32.mrf.mxu1 }
 0x214   : > { %v2570_v37 = vpop.f32.mrf.mxu0  ;;  %v2754_v29 = vpop.f32.mrf.mxu1 }
 0x215   : > { %v5108_v41 = vadd.f32 %v2754_v29, %v5051_v31 }
 0x216   : > { %v2572_v57 = vpop.f32.mrf.mxu0  ;;  %v2756_v5 = vpop.f32.mrf.mxu1 }
 0x217   : > { %5403 = vst [vmem:[#allocation19_spill] sm:$0xff] %v5108_v41 }
 0x218   : > { %v5110_v8 = vpop.f32.mrf.mxu0  ;;  %v2757_v51 = vpop.f32.mrf.mxu1 }
 0x219   : > { %v5113_v11 = vadd.f32 %v2757_v51, %v5057_v6 }
 0x21a   : > { %v2575_v49 = vpop.f32.mrf.mxu0  ;;  %v2759_v24 = vpop.f32.mrf.mxu1 }
 0x21b   : > { %5404 = vst [vmem:[#allocation20_spill] sm:$0xff] %v5113_v11 }
 0x21c   : > { %v5115_v36 = vpop.f32.mrf.mxu0  ;;  %v2762_v47 = vpop.f32.mrf.mxu1 }
 0x21d   : > { %v5118_v3 = vadd.f32 %v2762_v47, %v5061_v16 }
 0x21e   : > { %v2580_v32 = vpop.f32.mrf.mxu0  ;;  %v2764_v1 = vpop.f32.mrf.mxu1 }
 0x220   : > { %v5120_v31 = vpop.f32.mrf.mxu0  ;;  %v2765_v29 = vpop.f32.mrf.mxu1 }
 0x221   : > { %v5123_v5 = vadd.f32 %v2765_v29, %v5065_v2 }
 0x222   : > { %v2583_v57 = vpop.f32.mrf.mxu0  ;;  %v2767_v41 = vpop.f32.mrf.mxu1 }
 0x223   : > { %5405 = vst [vmem:[#allocation21_spill] sm:$0xff] %v5123_v5 }
 0x224   : > { %v5125_v6 = vpop.f32.mrf.mxu0  ;;  %v2770_v51 = vpop.f32.mrf.mxu1 }
 0x225   : > { %v5128_v49 = vadd.f32 %v2770_v51, %v5068_v35 }
 0x226   : > { %v2588_v24 = vpop.f32.mrf.mxu0  ;;  %v2772_v11 = vpop.f32.mrf.mxu1 }
 0x227   : > { %5406 = vst [vmem:[#allocation22_spill] sm:$0xff] %v5128_v49 }
 0x228   : > { %v5130_v16 = vpop.f32.mrf.mxu0  ;;  %v2773_v47 = vpop.f32.mrf.mxu1 }
 0x229   : > { %v5133_v32 = vadd.f32 %v2773_v47, %v5071_v13  ;;  %v2555_v47 = vadd.f32 %v2554_v53, %v4763_v45  ;;  %v2550_v45 = vadd.f32 %v5084_v61, %v4760_v40  ;;  %v2563_v40 = vadd.f32 %v5097_v20, %v4773_v62 }
 0x22a   : > { %v2591_v1 = vpop.f32.mrf.mxu0  ;;  %v2775_v2 = vpop.f32.mrf.mxu1  ;;  %v2566_v62 = vadd.f32 %v5102_v28, %v4780_v9  ;;  %v2579_v9 = vadd.f32 %v5115_v36, %v4793_v33  ;;  %v2582_v33 = vadd.f32 %v5120_v31, %v4800_v43 }
 0x22b   : > { %5407 = vst [vmem:[#allocation23_spill] sm:$0xff] %v5133_v32  ;;  %v2547_v32 = vadd.f32 %v5079_v18, %v4753_v30 }
 0x22c   : > { %v5135_v29 = vpop.f32.mrf.mxu0  ;;  %v2778_v41 = vpop.f32.mrf.mxu1 }
 0x22d   : > { %v5138_v57 = vadd.f32 %v2778_v41, %v5074_v58  ;;  %v2595_v43 = vadd.f32 %v5135_v29, %v4817_v7 }
 0x22e   : > { %v2596_v5 = vpop.f32.mrf.mxu0  ;;  %v2780_v35 = vpop.f32.mrf.mxu1 }
 0x22f   : > { %5408 = vst [vmem:[#allocation24_spill] sm:$0xff] %v5138_v57  ;;  %v2558_v35 = vadd.f32 %v5092_v21, %v4770_v56 }
 0x230   : > { %v5140_v51 = vpop.f32.mrf.mxu0  ;;  %v2781_v11 = vpop.f32.mrf.mxu1 }
 0x231   : > { %v5143_v24 = vadd.f32 %v2781_v11, %v5077_v44  ;;  %v2598_v7 = vadd.f32 %v5140_v51, %v4824_v19 }
 0x232   : > { %v2599_v49 = vpop.f32.mrf.mxu0  ;;  %v2783_v13 = vpop.f32.mrf.mxu1 }
 0x234   : > { %v5146_v1 = vpop.f32.mrf.mxu0  ;;  %v3933_v2 = vpop.f32.mrf.mxu1 }
 0x235   : > { %v2828_v58 = vadd.f32 %v3933_v2, %v2555_v47 }
 0x236   : > { %v2604_v5 = vpop.f32.mrf.mxu0  ;;  %v2819_v41 = vpop.f32.mrf.mxu1 }
 0x237   : > { %v3060_v57 = vmax.f32 %v2828_v58, 0.0  ;;  %v2820_v44 = vadd.f32 %v2819_v41, %v2547_v32  ;;  %v2571_v32 = vadd.f32 %v2570_v37, %v4783_v15  ;;  %v2574_v15 = vadd.f32 %v5110_v8, %v4790_v26 }
 0x238   : > { %v5153_v11 = vpop.f32.mrf.mxu0  ;;  %v3934_v30 = vpop.f32.mrf.mxu1  ;;  %v2587_v26 = vadd.f32 %v5125_v6, %v4803_v50  ;;  %v2590_v50 = vadd.f32 %v5130_v16, %v4810_v63  ;;  %v2603_v63 = vadd.f32 %v5146_v1, %v4827_v25 }
 0x239   : > { %v3837_v18 = vpack.c.bf16 %v3060_v57, %v3060_v57  ;;  %v3058_v53 = vmax.f32 %v2820_v44, 0.0  ;;  %v2831_v49 = vadd.f32 %v3934_v30, %v2558_v35  ;;  %v2606_v25 = vadd.f32 %v5153_v11, %v4834_v38 }
 0x23a   : > { %v2607_v56 = vpop.f32.mrf.mxu0  ;;  %v2822_v21 = vpop.f32.mrf.mxu1 }
 0x23b   : > { %3361 = vst.msk [vmem:[%s5158_s27 + $0x8] sm:$0xf] %vm3358_vm1, %v3837_v18  ;;  %v3835_v13 = vpack.c.bf16 %v3058_v53, %v3058_v53  ;;  %v3061_v47 = vmax.f32 %v2831_v49, 0.0  ;;  %v2823_v2 = vadd.f32 %v2822_v21, %v2550_v45 }
 0x23c   : > { %v5165_v58 = vpop.f32.mrf.mxu0  ;;  %v3937_v5 = vpop.f32.mrf.mxu1 }
 0x23d   : > { %3359 = vst.msk [vmem:[%s5158_s27] sm:$0xf] %vm3358_vm1, %v3835_v13  ;;  %v3838_v61 = vpack.c.bf16 %v3061_v47, %v3061_v47  ;;  %v3059_v57 = vmax.f32 %v2823_v2, 0.0  ;;  %v2844_v41 = vadd.f32 %v3937_v5, %v2571_v32  ;;  %v2611_v19 = vadd.f32 %v5165_v58, %v4837_v46 }
 0x23e   : > { %v2612_v35 = vpop.f32.mrf.mxu0  ;;  %v2835_v44 = vpop.f32.mrf.mxu1 }
 0x23f   : > { %3362 = vst.msk [vmem:[%s5158_s27 + $0xc] sm:$0xf] %vm3358_vm1, %v3838_v61  ;;  %v3836_v37 = vpack.c.bf16 %v3059_v57, %v3059_v57  ;;  %v3064_v30 = vmax.f32 %v2844_v41, 0.0  ;;  %v2836_v45 = vadd.f32 %v2835_v44, %v2563_v40 }
 0x240   : > { %v5175_v18 = vpop.f32.mrf.mxu0  ;;  %v3938_v53 = vpop.f32.mrf.mxu1 }
 0x241   : > { %3360 = vst.msk [vmem:[%s5158_s27 + $0x4] sm:$0xf] %vm3358_vm1, %v3836_v37  ;;  %v3841_v20 = vpack.c.bf16 %v3064_v30, %v3064_v30  ;;  %v3062_v49 = vmax.f32 %v2836_v45, 0.0  ;;  %v2847_v56 = vadd.f32 %v3938_v53, %v2574_v15  ;;  %v2614_v46 = vadd.f32 %v5175_v18, %v4844_v59 }
 0x242   : > { %v2615_v21 = vpop.f32.mrf.mxu0  ;;  %v2838_v32 = vpop.f32.mrf.mxu1 }
 0x243   : > { %3365 = vst.msk [vmem:[%s5158_s27 + $0x18] sm:$0xf] %vm3358_vm1, %v3841_v20  ;;  %v3839_v8 = vpack.c.bf16 %v3062_v49, %v3062_v49  ;;  %v3065_v13 = vmax.f32 %v2847_v56, 0.0  ;;  %v2839_v47 = vadd.f32 %v2838_v32, %v2566_v62 }
 0x244   : > { %v2618_v2 = vpop.f32.mrf.mxu0  ;;  %v3941_v5 = vpop.f32.mrf.mxu1 }
 0x245   : > { %3363 = vst.msk [vmem:[%s5158_s27 + $0x10] sm:$0xf] %vm3358_vm1, %v3839_v8  ;;  %v3842_v28 = vpack.c.bf16 %v3065_v13, %v3065_v13  ;;  %v3063_v40 = vmax.f32 %v2839_v47, 0.0  ;;  %v2860_v61 = vadd.f32 %v3941_v5, %v2587_v26  ;;  %v2619_v38 = vadd.f32 %v2618_v2, %v4847_v4 }
 0x246   : > { %v2620_v57 = vpop.f32.mrf.mxu0  ;;  %v2851_v41 = vpop.f32.mrf.mxu1 }
 0x247   : > { %3366 = vst.msk [vmem:[%s5158_s27 + $0x1c] sm:$0xf] %vm3358_vm1, %v3842_v28  ;;  %v3840_v6 = vpack.c.bf16 %v3063_v40, %v3063_v40  ;;  %v3068_v35 = vmax.f32 %v2860_v61, 0.0  ;;  %v2852_v44 = vadd.f32 %v2851_v41, %v2579_v9 }
 0x248   : > { %v2621_v15 = vpop.f32.mrf.mxu0  ;;  %v3942_v37 = vpop.f32.mrf.mxu1 }
 0x249   : > { %3364 = vst.msk [vmem:[%s5158_s27 + $0x14] sm:$0xf] %vm3358_vm1, %v3840_v6  ;;  %v3845_v36 = vpack.c.bf16 %v3068_v35, %v3068_v35  ;;  %v3066_v30 = vmax.f32 %v2852_v44, 0.0  ;;  %v2863_v45 = vadd.f32 %v3942_v37, %v2590_v50  ;;  %v2622_v4 = vadd.f32 %v2621_v15, %v4854_v17 }
 0x24a   : > { %v2623_v53 = vpop.f32.mrf.mxu0  ;;  %v2854_v62 = vpop.f32.mrf.mxu1 }
 0x24b   : > { %3369 = vst.msk [vmem:[%s5158_s27 + $0x28] sm:$0xf] %vm3358_vm1, %v3845_v36  ;;  %v3843_v16 = vpack.c.bf16 %v3066_v30, %v3066_v30  ;;  %v3069_v20 = vmax.f32 %v2863_v45, 0.0  ;;  %v2855_v49 = vadd.f32 %v2854_v62, %v2582_v33 }
 0x24c   : > { %v2626_v56 = vpop.f32.mrf.mxu0  ;;  %v3945_v21 = vpop.f32.mrf.mxu1 }
 0x24d   : > { %3367 = vst.msk [vmem:[%s5158_s27 + $0x20] sm:$0xf] %vm3358_vm1, %v3843_v16  ;;  %v3846_v31 = vpack.c.bf16 %v3069_v20, %v3069_v20  ;;  %v3067_v32 = vmax.f32 %v2855_v49, 0.0  ;;  %v2876_v26 = vadd.f32 %v3945_v21, %v2603_v63  ;;  %v2627_v59 = vadd.f32 %v2626_v56, %v4857_v23 }
 0x24e   : > { %v2628_v8 = vpop.f32.mrf.mxu0  ;;  %v2867_v13 = vpop.f32.mrf.mxu1 }
 0x24f   : > { %3370 = vst.msk [vmem:[%s5158_s27 + $0x2c] sm:$0xf] %vm3358_vm1, %v3846_v31  ;;  %v3844_v1 = vpack.c.bf16 %v3067_v32, %v3067_v32  ;;  %v3072_v47 = vmax.f32 %v2876_v26, 0.0  ;;  %v2868_v5 = vadd.f32 %v2867_v13, %v2595_v43 }
 0x250   : > { %v2629_v9 = vpop.f32.mrf.mxu0  ;;  %v3946_v28 = vpop.f32.mrf.mxu1 }
 0x251   : > { %3368 = vst.msk [vmem:[%s5158_s27 + $0x24] sm:$0xf] %vm3358_vm1, %v3844_v1  ;;  %v3849_v29 = vpack.c.bf16 %v3072_v47, %v3072_v47  ;;  %v3070_v40 = vmax.f32 %v2868_v5, 0.0  ;;  %v2879_v61 = vadd.f32 %v3946_v28, %v2606_v25  ;;  %v2630_v23 = vadd.f32 %v2629_v9, %v4864_v39 }
 0x252   : > { %v2631_v57 = vpop.f32.mrf.mxu0  ;;  %v2870_v41 = vpop.f32.mrf.mxu1 }
 0x253   : > { %3373 = vst.msk [vmem:[%s5158_s27 + $0x38] sm:$0xf] %vm3358_vm1, %v3849_v29  ;;  %v3847_v11 = vpack.c.bf16 %v3070_v40, %v3070_v40  ;;  %v3073_v50 = vmax.f32 %v2879_v61, 0.0  ;;  %v2871_v6 = vadd.f32 %v2870_v41, %v2598_v7 }
 0x254   : > { %v2634_v35 = vpop.f32.mrf.mxu0  ;;  %v3949_v44 = vpop.f32.mrf.mxu1 }
 0x255   : > { %3371 = vst.msk [vmem:[%s5158_s27 + $0x30] sm:$0xf] %vm3358_vm1, %v3847_v11  ;;  %v3850_v51 = vpack.c.bf16 %v3073_v50, %v3073_v50  ;;  %v3071_v37 = vmax.f32 %v2871_v6, 0.0  ;;  %v2892_v33 = vadd.f32 %v3949_v44, %v2619_v38  ;;  %v2635_v17 = vadd.f32 %v2634_v35, %v4867_v48 }
 0x256   : > { %v2636_v36 = vpop.f32.mrf.mxu0  ;;  %v2883_v30 = vpop.f32.mrf.mxu1 }
 0x257   : > { %3374 = vst.msk [vmem:[%s5158_s27 + $0x3c] sm:$0xf] %vm3358_vm1, %v3850_v51  ;;  %v3848_v2 = vpack.c.bf16 %v3071_v37, %v3071_v37  ;;  %v3076_v45 = vmax.f32 %v2892_v33, 0.0  ;;  %v2884_v53 = vadd.f32 %v2883_v30, %v2611_v19 }
 0x258   : > { %v2637_v62 = vpop.f32.mrf.mxu0  ;;  %v3950_v63 = vpop.f32.mrf.mxu1 }
 0x259   : > { %3372 = vst.msk [vmem:[%s5158_s27 + $0x34] sm:$0xf] %vm3358_vm1, %v3848_v2  ;;  %v3853_v58 = vpack.c.bf16 %v3076_v45, %v3076_v45  ;;  %v3074_v16 = vmax.f32 %v2884_v53, 0.0  ;;  %v2895_v20 = vadd.f32 %v3950_v63, %v2622_v4  ;;  %v2638_v48 = vadd.f32 %v2637_v62, %v4874_v0 }
 0x25a   : > { %v2639_v49 = vpop.f32.mrf.mxu0  ;;  %v2886_v21 = vpop.f32.mrf.mxu1 }
 0x25b   : > { %3377 = vst.msk [vmem:[%s5158_s27 + $0x48] sm:$0xf] %vm3358_vm1, %v3853_v58  ;;  %v3851_v15 = vpack.c.bf16 %v3074_v16, %v3074_v16  ;;  %v3077_v43 = vmax.f32 %v2895_v20, 0.0  ;;  %v2887_v31 = vadd.f32 %v2886_v21, %v2614_v46 }
 0x25c   : > { %v2642_v32 = vpop.f32.mrf.mxu0  ;;  %v3953_v26 = vpop.f32.mrf.mxu1 }
 0x25d   : > { %3375 = vst.msk [vmem:[%s5158_s27 + $0x40] sm:$0xf] %vm3358_vm1, %v3851_v15  ;;  %v3854_v18 = vpack.c.bf16 %v3077_v43, %v3077_v43  ;;  %v3075_v8 = vmax.f32 %v2887_v31, 0.0  ;;  %v2908_v13 = vadd.f32 %v3953_v26, %v2635_v17  ;;  %v2643_v39 = vadd.f32 %v2642_v32, %v4878_v10 }
 0x25e   : > { %v2644_v25 = vpop.f32.mrf.mxu0  ;;  %v2899_v1 = vpop.f32.mrf.mxu1 }
 0x25f   : > { %3378 = vst.msk [vmem:[%s5158_s27 + $0x4c] sm:$0xf] %vm3358_vm1, %v3854_v18  ;;  %v3852_v47 = vpack.c.bf16 %v3075_v8, %v3075_v8  ;;  %v3080_v5 = vmax.f32 %v2908_v13, 0.0  ;;  %v2900_v28 = vadd.f32 %v2899_v1, %v2627_v59 }
 0x260   : > { %v2645_v7 = vpop.f32.mrf.mxu0  ;;  %v3954_v29 = vpop.f32.mrf.mxu1 }
 0x261   : > { %3376 = vst.msk [vmem:[%s5158_s27 + $0x44] sm:$0xf] %vm3358_vm1, %v3852_v47  ;;  %v3857_v56 = vpack.c.bf16 %v3080_v5, %v3080_v5  ;;  %v3078_v40 = vmax.f32 %v2900_v28, 0.0  ;;  %v2911_v61 = vadd.f32 %v3954_v29, %v2638_v48  ;;  %v2646_v10 = vadd.f32 %v2645_v7, %v4885_v22 }
 0x262   : > { %v2647_v57 = vpop.f32.mrf.mxu0  ;;  %v2902_v41 = vpop.f32.mrf.mxu1 }
 0x263   : > { %3381 = vst.msk [vmem:[%s5158_s27 + $0x58] sm:$0xf] %vm3358_vm1, %v3857_v56  ;;  %v3855_v0 = vpack.c.bf16 %v3078_v40, %v3078_v40  ;;  %v3081_v38 = vmax.f32 %v2911_v61, 0.0  ;;  %v2903_v11 = vadd.f32 %v2902_v41, %v2630_v23 }
 0x264   : > { %v2650_v50 = vpop.f32.mrf.mxu0  ;;  %v3957_v35 = vpop.f32.mrf.mxu1 }
 0x265   : > { %v2651_v6 = vadd.f32 %v2650_v50, %v4890_v34  ;;  %3379 = vst.msk [vmem:[%s5158_s27 + $0x50] sm:$0xf] %vm3358_vm1, %v3855_v0  ;;  %v3858_v9 = vpack.c.bf16 %v3081_v38, %v3081_v38  ;;  %v3079_v44 = vmax.f32 %v2903_v11, 0.0 }
 0x266   : > { %v2652_v19 = vpop.f32.mrf.mxu0  ;;  %v2915_v37 = vpop.f32.mrf.mxu1 }
 0x267   : > { %v2924_v51 = vadd.f32 %v3957_v35, %v2651_v6  ;;  %3382 = vst.msk [vmem:[%s5158_s27 + $0x5c] sm:$0xf] %vm3358_vm1, %v3858_v9  ;;  %v3856_v33 = vpack.c.bf16 %v3079_v44, %v3079_v44  ;;  %v2916_v36 = vadd.f32 %v2915_v37, %v2643_v39 }
 0x268   : > { %v2653_v30 = vpop.f32.mrf.mxu0  ;;  %v3958_v2 = vpop.f32.mrf.mxu1 }
 0x269   : > { %v3084_v4 = vmax.f32 %v2924_v51, 0.0  ;;  %v2654_v34 = vadd.f32 %v2653_v30, %v4897_v52  ;;  %3380 = vst.msk [vmem:[%s5158_s27 + $0x54] sm:$0xf] %vm3358_vm1, %v3856_v33  ;;  %v3082_v45 = vmax.f32 %v2916_v36, 0.0 }
 0x26a   : > { %v2655_v53 = vpop.f32.mrf.mxu0  ;;  %v2918_v46 = vpop.f32.mrf.mxu1 }
 0x26b   : > { %v3861_v62 = vpack.c.bf16 %v3084_v4, %v3084_v4  ;;  %v2927_v63 = vadd.f32 %v3958_v2, %v2654_v34  ;;  %v3859_v58 = vpack.c.bf16 %v3082_v45, %v3082_v45  ;;  %v2919_v16 = vadd.f32 %v2918_v46, %v2646_v10  ;;  %v5409_v10 = vld [vmem:[#allocation2_spill] sm:$0xff] }
 0x26c   : > { %v2658_v20 = vpop.f32.mrf.mxu0  ;;  %v3961_v21 = vpop.f32.mrf.mxu1 }
 0x26d   : > { %3385 = vst.msk [vmem:[%s5158_s27 + $0x68] sm:$0xf] %vm3358_vm1, %v3861_v62  ;;  %v3085_v49 = vmax.f32 %v2927_v63, 0.0  ;;  %v2659_v52 = vadd.f32 %v2658_v20, %v4902_v60  ;;  %3383 = vst.msk [vmem:[%s5158_s27 + $0x60] sm:$0xf] %vm3358_vm1, %v3859_v58  ;;  %v3083_v22 = vmax.f32 %v2919_v16, 0.0 }
 0x26e   : > { %v2660_v17 = vpop.f32.mrf.mxu0  ;;  %v2931_v43 = vpop.f32.mrf.mxu1  ;;  %v5410_v20 = vld [vmem:[#allocation3_spill] sm:$0xff] }
 0x26f   : > { %v3862_v15 = vpack.c.bf16 %v3085_v49, %v3085_v49  ;;  %v3860_v31 = vpack.c.bf16 %v3083_v22, %v3083_v22  ;;  %v2932_v32 = vadd.f32 %v2931_v43, %v2659_v52 }
 0x270   : > { %v2661_v26 = vpop.f32.mrf.mxu0  ;;  %v3962_v18 = vpop.f32.mrf.mxu1 }
 0x271   : > { %3386 = vst.msk [vmem:[%s5158_s27 + $0x6c] sm:$0xf] %vm3358_vm1, %v3862_v15  ;;  %v2662_v59 = vadd.f32 %v2661_v26, %v4909_v14  ;;  %3384 = vst.msk [vmem:[%s5158_s27 + $0x64] sm:$0xf] %vm3358_vm1, %v3860_v31  ;;  %v3086_v8 = vmax.f32 %v2932_v32, 0.0  ;;  %v5411_v32 = vld [vmem:[#allocation4_spill] sm:$0xff] }
 0x272   : > { %v2663_v60 = vpop.f32.mrf.mxu0  ;;  %v2934_v13 = vpop.f32.mrf.mxu1 }
 0x273   : > { %v3863_v25 = vpack.c.bf16 %v3086_v8, %v3086_v8  ;;  %v2935_v1 = vadd.f32 %v2934_v13, %v2662_v59 }
 0x274   : > { %v2666_v48 = vpop.f32.mrf.mxu0  ;;  %v3965_v5 = vpop.f32.mrf.mxu1 }
 0x275   : > { %v2667_v47 = vadd.f32 %v2666_v48, %v4914_v27  ;;  %3387 = vst.msk [vmem:[%s5158_s27 + $0x70] sm:$0xf] %vm3358_vm1, %v3863_v25  ;;  %v3087_v28 = vmax.f32 %v2935_v1, 0.0 }
 0x276   : > { %v2668_v7 = vpop.f32.mrf.mxu0  ;;  %v2947_v14 = vpop.f32.mrf.mxu1 }
 0x277   : > { %v2940_v29 = vadd.f32 %v3961_v21, %v2667_v47  ;;  %v3864_v23 = vpack.c.bf16 %v3087_v28, %v3087_v28  ;;  %v5413_v28 = vld [vmem:[#allocation5_spill] sm:$0xff] }
 0x278   : > { %v2669_v56 = vpop.f32.mrf.mxu0  ;;  %v3966_v57 = vpop.f32.mrf.mxu1 }
 0x279   : > { %v3088_v40 = vmax.f32 %v2940_v29, 0.0  ;;  %v2670_v61 = vadd.f32 %v2669_v56, %v4921_v42  ;;  %3388 = vst.msk [vmem:[%s5158_s27 + $0x74] sm:$0xf] %vm3358_vm1, %v3864_v23  ;;  %v5414_v23 = vld [vmem:[#allocation15_spill] sm:$0xff] }
 0x27a   : > { %v2671_v41 = vpop.f32.mrf.mxu0  ;;  %v2950_v38 = vpop.f32.mrf.mxu1 }
 0x27b   : > { %v3865_v0 = vpack.c.bf16 %v3088_v40, %v3088_v40  ;;  %v2943_v27 = vadd.f32 %v3962_v18, %v2670_v61  ;;  %v5412_v18 = vld [vmem:[#allocation14_spill] sm:$0xff] }
 0x27c   : > { %v2674_v11 = vpop.f32.mrf.mxu0  ;;  %v5270_v35 = vpop.f32.mrf.mxu1 }
 0x27d   : > { %3389 = vst.msk [vmem:[%s5158_s27 + $0x78] sm:$0xf] %vm3358_vm1, %v3865_v0  ;;  %v3089_v50 = vmax.f32 %v2943_v27, 0.0  ;;  %v2675_v6 = vadd.f32 %v2674_v11, %v4926_v55  ;;  %v5415_v11 = vld [vmem:[#allocation6_spill] sm:$0xff] }
 0x27e   : > { %v2676_v39 = vpop.f32.mrf.mxu0  ;;  %v2963_v44 = vpop.f32.mrf.mxu1 }
 0x27f   : > { %v3866_v9 = vpack.c.bf16 %v3089_v50, %v3089_v50  ;;  %v2948_v42 = vadd.f32 %v2947_v14, %v2675_v6 }
 0x280   : > { %v2677_v19 = vpop.f32.mrf.mxu0  ;;  %v5275_v33 = vpop.f32.mrf.mxu1 }
 0x281   : > { %3390 = vst.msk [vmem:[%s5158_s27 + $0x7c] sm:$0xf] %vm3358_vm1, %v3866_v9  ;;  %v3090_v51 = vmax.f32 %v2948_v42, 0.0  ;;  %v2678_v37 = vadd.f32 %v2677_v19, %v4933_v12  ;;  %v5416_v9 = vld [vmem:[#allocation18_spill] sm:$0xff] }
 0x282   : > { %v2679_v36 = vpop.f32.mrf.mxu0  ;;  %v2966_v55 = vpop.f32.mrf.mxu1 }
 0x283   : > { %v3867_v30 = vpack.c.bf16 %v3090_v51, %v3090_v51  ;;  %v2951_v4 = vadd.f32 %v2950_v38, %v2678_v37 }
 0x284   : > { %v2682_v34 = vpop.f32.mrf.mxu0  ;;  %v5280_v53 = vpop.f32.mrf.mxu1 }
 0x285   : > { %3391 = vst.msk [vmem:[%s5158_s27 + $0x80] sm:$0xf] %vm3358_vm1, %v3867_v30  ;;  %v3091_v2 = vmax.f32 %v2951_v4, 0.0  ;;  %v2683_v45 = vadd.f32 %v2682_v34, %v5409_v10  ;;  %v5417_v30 = vld [vmem:[#allocation16_spill] sm:$0xff] }
 0x286   : > { %v2684_v62 = vpop.f32.mrf.mxu0  ;;  %v5282_v12 = vpop.f32.mrf.mxu1 }
 0x287   : > { %v3868_v63 = vpack.c.bf16 %v3091_v2, %v3091_v2  ;;  %v2956_v46 = vadd.f32 %v3965_v5, %v2683_v45  ;;  %v5418_v2 = vld [vmem:[#allocation7_spill] sm:$0xff] }
 0x288   : > { %v2685_v58 = vpop.f32.mrf.mxu0  ;;  %v5287_v52 = vpop.f32.mrf.mxu1 }
 0x289   : > { %3392 = vst.msk [vmem:[%s5158_s27 + $0x84] sm:$0xf] %vm3358_vm1, %v3868_v63  ;;  %v3092_v16 = vmax.f32 %v2956_v46, 0.0  ;;  %v2686_v49 = vadd.f32 %v2685_v58, %v5410_v20 }
 0x28a   : > { %v2687_v21 = vpop.f32.mrf.mxu0  ;;  %v5289_v15 = vpop.f32.mrf.mxu1 }
 0x28b   : > { %v3869_v22 = vpack.c.bf16 %v3092_v16, %v3092_v16  ;;  %v2959_v17 = vadd.f32 %v3966_v57, %v2686_v49 }
 0x28c   : > { %v2690_v43 = vpop.f32.mrf.mxu0  ;;  %v3977_v59 = vpop.f32.mrf.mxu1 }
 0x28d   : > { %3393 = vst.msk [vmem:[%s5158_s27 + $0x88] sm:$0xf] %vm3358_vm1, %v3869_v22  ;;  %v3093_v31 = vmax.f32 %v2959_v17, 0.0  ;;  %v2691_v26 = vadd.f32 %v2690_v43, %v5411_v32  ;;  %v3004_v8 = vadd.f32 %v3977_v59, %v5412_v18  ;;  %v5419_v22 = vld [vmem:[#allocation17_spill] sm:$0xff]  ;;  %v5420_v32 = vld [vmem:[#allocation8_spill] sm:$0xff] }
 0x28e   : > { %v2692_v60 = vpop.f32.mrf.mxu0  ;;  %v5295_v1 = vpop.f32.mrf.mxu1 }
 0x28f   : > { %v3870_v13 = vpack.c.bf16 %v3093_v31, %v3093_v31  ;;  %v2964_v25 = vadd.f32 %v2963_v44, %v2691_v26  ;;  %v3104_v48 = vmax.f32 %v3004_v8, 0.0 }
 0x290   : > { %v2693_v47 = vpop.f32.mrf.mxu0  ;;  %v3978_v29 = vpop.f32.mrf.mxu1 }
 0x291   : > { %3394 = vst.msk [vmem:[%s5158_s27 + $0x8c] sm:$0xf] %vm3358_vm1, %v3870_v13  ;;  %v3094_v5 = vmax.f32 %v2964_v25, 0.0  ;;  %v2694_v7 = vadd.f32 %v2693_v47, %v5413_v28  ;;  %v3881_v14 = vpack.c.bf16 %v3104_v48, %v3104_v48  ;;  %v3007_v56 = vadd.f32 %v3978_v29, %v5414_v23 }
 0x292   : > { %v2695_v40 = vpop.f32.mrf.mxu0  ;;  %v5301_v41 = vpop.f32.mrf.mxu1 }
 0x293   : > { %v3871_v61 = vpack.c.bf16 %v3094_v5, %v3094_v5  ;;  %v2967_v57 = vadd.f32 %v2966_v55, %v2694_v7  ;;  %3405 = vst.msk [vmem:[%s5158_s27 + $0xb8] sm:$0xf] %vm3358_vm1, %v3881_v14  ;;  %v3105_v0 = vmax.f32 %v3007_v56, 0.0  ;;  %v5421_v5 = vld [vmem:[#allocation19_spill] sm:$0xff]  ;;  %v5422_v14 = vld [vmem:[#allocation9_spill] sm:$0xff] }
 0x294   : > { %v2698_v27 = vpop.f32.mrf.mxu0  ;;  %v3981_v6 = vpop.f32.mrf.mxu1  ;;  %v5423_v40 = vld [vmem:[#allocation21_spill] sm:$0xff] }
 0x295   : > { %3395 = vst.msk [vmem:[%s5158_s27 + $0x90] sm:$0xf] %vm3358_vm1, %v3871_v61  ;;  %v3095_v38 = vmax.f32 %v2967_v57, 0.0  ;;  %v2699_v50 = vadd.f32 %v2698_v27, %v5415_v11  ;;  %v3882_v39 = vpack.c.bf16 %v3105_v0, %v3105_v0  ;;  %v3020_v42 = vadd.f32 %v3981_v6, %v5416_v9  ;;  %v5424_v6 = vld [vmem:[#allocation20_spill] sm:$0xff] }
 0x296   : > { %v2700_v44 = vpop.f32.mrf.mxu0  ;;  %v3011_v37 = vpop.f32.mrf.mxu1 }
 0x297   : > { %v3872_v19 = vpack.c.bf16 %v3095_v38, %v3095_v38  ;;  %v2972_v51 = vadd.f32 %v5270_v35, %v2699_v50  ;;  %3406 = vst.msk [vmem:[%s5158_s27 + $0xbc] sm:$0xf] %vm3358_vm1, %v3882_v39  ;;  %v3108_v36 = vmax.f32 %v3020_v42, 0.0  ;;  %v3012_v4 = vadd.f32 %v3011_v37, %v5417_v30  ;;  %v5425_v44 = vld [vmem:[#allocation10_spill] sm:$0xff] }
 0x298   : > { %v2701_v55 = vpop.f32.mrf.mxu0  ;;  %v3982_v45 = vpop.f32.mrf.mxu1 }
 0x299   : > { %3396 = vst.msk [vmem:[%s5158_s27 + $0x94] sm:$0xf] %vm3358_vm1, %v3872_v19  ;;  %v3096_v34 = vmax.f32 %v2972_v51, 0.0  ;;  %v2702_v10 = vadd.f32 %v2701_v55, %v5418_v2  ;;  %v3885_v62 = vpack.c.bf16 %v3108_v36, %v3108_v36  ;;  %v3106_v63 = vmax.f32 %v3012_v4, 0.0  ;;  %v5426_v36 = vld [vmem:[#allocation24_spill] sm:$0xff] }
 0x29a   : > { %v3023_v35 = vadd.f32 %v3982_v45, %v5105_v54  ;;  %v2703_v46 = vpop.f32.mrf.mxu0  ;;  %v3014_v20 = vpop.f32.mrf.mxu1 }
 0x29b   : > { %v3873_v58 = vpack.c.bf16 %v3096_v34, %v3096_v34  ;;  %v2975_v16 = vadd.f32 %v5275_v33, %v2702_v10  ;;  %3409 = vst.msk [vmem:[%s5158_s27 + $0xc8] sm:$0xf] %vm3358_vm1, %v3885_v62  ;;  %v3883_v49 = vpack.c.bf16 %v3106_v63, %v3106_v63  ;;  %v3015_v17 = vadd.f32 %v3014_v20, %v5419_v22  ;;  %v5427_v62 = vld [vmem:[#allocation22_spill] sm:$0xff] }
 0x29c   : > { %v3109_v21 = vmax.f32 %v3023_v35, 0.0  ;;  %v2706_v43 = vpop.f32.mrf.mxu0  ;;  %v3985_v54 = vpop.f32.mrf.mxu1 }
 0x29d   : > { %3397 = vst.msk [vmem:[%s5158_s27 + $0x98] sm:$0xf] %vm3358_vm1, %v3873_v58  ;;  %v3097_v31 = vmax.f32 %v2975_v16, 0.0  ;;  %v2707_v26 = vadd.f32 %v2706_v43, %v5420_v32  ;;  %3407 = vst.msk [vmem:[%s5158_s27 + $0xc0] sm:$0xf] %vm3358_vm1, %v3883_v49  ;;  %v3107_v33 = vmax.f32 %v3015_v17, 0.0  ;;  %v3036_v18 = vadd.f32 %v3985_v54, %v5118_v3 }
 0x29e   : > { %v3886_v59 = vpack.c.bf16 %v3109_v21, %v3109_v21  ;;  %v2708_v8 = vpop.f32.mrf.mxu0  ;;  %v3027_v25 = vpop.f32.mrf.mxu1  ;;  %v5428_v58 = vld [vmem:[#allocation11_spill] sm:$0xff] }
 0x29f   : > { %v3874_v60 = vpack.c.bf16 %v3097_v31, %v3097_v31  ;;  %v2980_v13 = vadd.f32 %v5282_v12, %v2707_v26  ;;  %v3884_v48 = vpack.c.bf16 %v3107_v33, %v3107_v33  ;;  %v3112_v47 = vmax.f32 %v3036_v18, 0.0  ;;  %v5429_v54 = vld [vmem:[#allocation23_spill] sm:$0xff]  ;;  %v5430_v8 = vld [vmem:[#allocation12_spill] sm:$0xff] }
 0x2a0   : > { %3410 = vst.msk [vmem:[%s5158_s27 + $0xcc] sm:$0xf] %vm3358_vm1, %v3886_v59  ;;  %v3028_v28 = vadd.f32 %v3027_v25, %v5421_v5  ;;  %v2709_v7 = vpop.f32.mrf.mxu0  ;;  %v3986_v3 = vpop.f32.mrf.mxu1 }
 0x2a1   : > { %3398 = vst.msk [vmem:[%s5158_s27 + $0x9c] sm:$0xf] %vm3358_vm1, %v3874_v60  ;;  %v3098_v29 = vmax.f32 %v2980_v13, 0.0  ;;  %v2710_v23 = vadd.f32 %v2709_v7, %v5422_v14  ;;  %3408 = vst.msk [vmem:[%s5158_s27 + $0xc4] sm:$0xf] %vm3358_vm1, %v3884_v48  ;;  %v3889_v56 = vpack.c.bf16 %v3112_v47, %v3112_v47  ;;  %v3039_v61 = vadd.f32 %v3986_v3, %v5423_v40  ;;  %v5431_v7 = vld [vmem:[#allocation13_spill] sm:$0xff] }
 0x2a2   : > { %v3110_v12 = vmax.f32 %v3028_v28, 0.0  ;;  %v2711_v57 = vpop.f32.mrf.mxu0  ;;  %v3030_v38 = vpop.f32.mrf.mxu1 }
 0x2a3   : > { %v3875_v0 = vpack.c.bf16 %v3098_v29, %v3098_v29  ;;  %v2983_v27 = vadd.f32 %v5289_v15, %v2710_v23  ;;  %3413 = vst.msk [vmem:[%s5158_s27 + $0xd8] sm:$0xf] %vm3358_vm1, %v3889_v56  ;;  %v3113_v50 = vmax.f32 %v3039_v61, 0.0  ;;  %v3031_v39 = vadd.f32 %v3030_v38, %v5424_v6 }
 0x2a4   : > { %v3887_v11 = vpack.c.bf16 %v3110_v12, %v3110_v12  ;;  %v2714_v9 = vpop.f32.mrf.mxu0  ;;  %v3989_v51 = vpop.f32.mrf.mxu1 }
 0x2a5   : > { %3399 = vst.msk [vmem:[%s5158_s27 + $0xa0] sm:$0xf] %vm3358_vm1, %v3875_v0  ;;  %v3099_v42 = vmax.f32 %v2983_v27, 0.0  ;;  %v2715_v19 = vadd.f32 %v2714_v9, %v5425_v44  ;;  %v3890_v37 = vpack.c.bf16 %v3113_v50, %v3113_v50  ;;  %v3111_v15 = vmax.f32 %v3031_v39, 0.0 }
 0x2a6   : > { %3411 = vst.msk [vmem:[%s5158_s27 + $0xd0] sm:$0xf] %vm3358_vm1, %v3887_v11  ;;  %v3052_v30 = vadd.f32 %v3989_v51, %v5426_v36  ;;  %v2716_v4 = vpop.f32.mrf.mxu0  ;;  %v3043_v2 = vpop.f32.mrf.mxu1 }
 0x2a7   : > { %v3876_v55 = vpack.c.bf16 %v3099_v42, %v3099_v42  ;;  %v2988_v34 = vadd.f32 %v5280_v53, %v2715_v19  ;;  %3414 = vst.msk [vmem:[%s5158_s27 + $0xdc] sm:$0xf] %vm3358_vm1, %v3890_v37  ;;  %v3888_v10 = vpack.c.bf16 %v3111_v15, %v3111_v15  ;;  %v3044_v63 = vadd.f32 %v3043_v2, %v5427_v62 }
 0x2a8   : > { %v3116_v45 = vmax.f32 %v3052_v30, 0.0  ;;  %v2717_v35 = vpop.f32.mrf.mxu0  ;;  %v3990_v20 = vpop.f32.mrf.mxu1 }
 0x2a9   : > { %3400 = vst.msk [vmem:[%s5158_s27 + $0xa4] sm:$0xf] %vm3358_vm1, %v3876_v55  ;;  %v3100_v46 = vmax.f32 %v2988_v34, 0.0  ;;  %v2718_v16 = vadd.f32 %v2717_v35, %v5428_v58  ;;  %3412 = vst.msk [vmem:[%s5158_s27 + $0xd4] sm:$0xf] %vm3358_vm1, %v3888_v10  ;;  %v3114_v49 = vmax.f32 %v3044_v63, 0.0  ;;  %v3055_v21 = vadd.f32 %v3990_v20, %v5143_v24 }
 0x2aa   : > { %v3893_v53 = vpack.c.bf16 %v3116_v45, %v3116_v45  ;;  %v2719_v22 = vpop.f32.mrf.mxu0  ;;  %v3046_v31 = vpop.f32.mrf.mxu1 }
 0x2ab   : > { %v3877_v17 = vpack.c.bf16 %v3100_v46, %v3100_v46  ;;  %v2991_v43 = vadd.f32 %v5287_v52, %v2718_v16  ;;  %v3891_v32 = vpack.c.bf16 %v3114_v49, %v3114_v49  ;;  %v3117_v26 = vmax.f32 %v3055_v21, 0.0 }
 0x2ac   : > { %3417 = vst.msk [vmem:[%s5158_s27 + $0xe8] sm:$0xf] %vm3358_vm1, %v3893_v53  ;;  %v3047_v59 = vadd.f32 %v3046_v31, %v5429_v54  ;;  %v2722_v33 = vpop.f32.mrf.mxu0 }
 0x2ad   : > { %3401 = vst.msk [vmem:[%s5158_s27 + $0xa8] sm:$0xf] %vm3358_vm1, %v3877_v17  ;;  %v3101_v18 = vmax.f32 %v2991_v43, 0.0  ;;  %v2723_v24 = vadd.f32 %v2722_v33, %v5430_v8  ;;  %3415 = vst.msk [vmem:[%s5158_s27 + $0xe0] sm:$0xf] %vm3358_vm1, %v3891_v32  ;;  %v3894_v52 = vpack.c.bf16 %v3117_v26, %v3117_v26 }
 0x2ae   : > { %v3115_v60 = vmax.f32 %v3047_v59, 0.0  ;;  %v2724_v13 = vpop.f32.mrf.mxu0 }
 0x2af   : > { %v3878_v25 = vpack.c.bf16 %v3101_v18, %v3101_v18  ;;  %v2996_v48 = vadd.f32 %v5295_v1, %v2723_v24  ;;  %3418 = vst.msk [vmem:[%s5158_s27 + $0xec] sm:$0xf] %vm3358_vm1, %v3894_v52 }
 0x2b0   : > { %v3892_v47 = vpack.c.bf16 %v3115_v60, %v3115_v60  ;;  %v2725_v5 = vpop.f32.mrf.mxu0 }
 0x2b1   : > { %3402 = vst.msk [vmem:[%s5158_s27 + $0xac] sm:$0xf] %vm3358_vm1, %v3878_v25  ;;  %v3102_v28 = vmax.f32 %v2996_v48, 0.0  ;;  %v2726_v29 = vadd.f32 %v2725_v5, %v5431_v7 }
 0x2b2   : > { %3416 = vst.msk [vmem:[%s5158_s27 + $0xe4] sm:$0xf] %vm3358_vm1, %v3892_v47  ;;  %v2727_v14 = vpop.f32.mrf.mxu0 }
 0x2b3   : > { %v3879_v23 = vpack.c.bf16 %v3102_v28, %v3102_v28  ;;  %v2999_v3 = vadd.f32 %v5301_v41, %v2726_v29 }
 0x2b5   : > { %3403 = vst.msk [vmem:[%s5158_s27 + $0xb0] sm:$0xf] %vm3358_vm1, %v3879_v23  ;;  %v3103_v56 = vmax.f32 %v2999_v3, 0.0 }
 0x2b7   : > { %v3880_v12 = vpack.c.bf16 %v3103_v56, %v3103_v56 }
 0x2b9   : > { %3404 = vst.msk [vmem:[%s5158_s27 + $0xb4] sm:$0xf] %vm3358_vm1, %v3880_v12 }
 0x2ba PF: > { %s13_s12 = sadd.s32 1, %s4390_s12  }
 0x2bb   : > { %p10_p4 = scmp.ge.s32.totalorder %s13_s12, 4  }
 0x2bd   :  { %12 = sbr.rel (!%p10_p4) target bundleno = 1 (0x1), region = 62 }

// kernel: autopilot_forward.10
= control target key start
LH: loop header
LB: loop body
LE: loop exit
PB: predicated region body
PF: predicated region fallthrough
CT: control target
= control target key end

     0   :  { %s427_s6 = smov 0   ;;  %s632_s0 = inlined_call_operand.vmem [shape: bf16[20,2,12,128], index: 0, kind: input, shape index: {}]   ;;  %s633_s1 = inlined_call_operand.vmem [shape: bf16[20,12,64], index: 1, kind: output, shape index: {}]  }
   0x1 LB: > { %s366_s7 = sadd.s32 4294967295, %s414_s6   ;;  %p370_p0 = scmp.ge.s32.totalorder %s414_s6, 1  ;;  %s414_s6 = sphi %s427_s6, %s11_s6  }
   0x2   : > { %p89_p1 = scmp.lt.s32.totalorder %s414_s6, 3 }
   0x4   : > { %p90_p2 = pnand %p370_p0, %p89_p1 }
   0x5   : > { %s111_s8 = smul.u32 (!%p90_p2), 10, %s366_s7  ;;  %s416_s13 = smov (!%p90_p2), 64  }
   0x6   : > { %93 = sbr.rel (%p90_p2) target bundleno = 172 (0xac), region = 24 }
   0x7   : > { %p112_p3 = scmp.lt.s32.totalorder (!%p90_p2), %s111_s8, 19 }
   0xb   : > { %s635_s8 = smov (!%p112_p3, %s111_s8), 19  ;;  %vm286_vm0 = vcmask 519168   ;;  %vm288_vm1 = vcmask 517120  }
   0xc   : > { %s397_s9 = sshll.u32 %s635_s8, 4  ;;  %s398_s14 = sshll.u32 %s635_s8, 3 }
   0xd   : > { %s441_s12 = scalar_lea.vmem %s632_s0, %s397_s9  ;;  %s567_s17 = scalar_lea.vmem %s633_s1, %s398_s14 }
   0xe   : > { %v127_v0 = vld [vmem:[%s441_s12 + $0x10] sm:$0xf]  ;;  %v377_v1 = vld [vmem:[%s441_s12 + $0x18] sm:$0xf]  ;;  %v125_v2 = vld [vmem:[%s441_s12] sm:$0xf] }
   0xf   : > { %v446_v3 = vmax.bf16 %v377_v1, %v127_v0  ;;  %v375_v4 = vld [vmem:[%s441_s12 + $0x8] sm:$0xf]  ;;  %v128_v5 = vld [vmem:[%s441_s12 + $0x14] sm:$0x3]  ;;  %v378_v6 = vld [vmem:[%s441_s12 + $0x1c] sm:$0x3] }
  0x10   : > { %v451_v7 = vmax.bf16 %v375_v4, %v125_v2  ;;  %v126_v8 = vld [vmem:[%s441_s12 + $0x4] sm:$0x3]  ;;  %v376_v9 = vld [vmem:[%s441_s12 + $0xc] sm:$0x3]  ;;  %v457_v10 = vmax.bf16 %v378_v6, %v128_v5  ;;  %v129_v14 = vld [vmem:[%s441_s12 + $0x20] sm:$0xf] }
  0x11   : > { %210 = vrot.lane.b32.xlu1 %v446_v3, %s416_s13  ;;  %v461_v11 = vmax.bf16 %v376_v9, %v126_v8  ;;  %v130_v12 = vld [vmem:[%s441_s12 + $0x24] sm:$0x3]  ;;  %v380_v13 = vld [vmem:[%s441_s12 + $0x2c] sm:$0x3]  ;;  %v379_v15 = vld [vmem:[%s441_s12 + $0x28] sm:$0xf] }
  0x12   : > { %206 = vrot.lane.b32.xlu0 %v451_v7, %s416_s13  ;;  %v469_v16 = vmax.bf16 %v380_v13, %v130_v12  ;;  %v473_v17 = vmax.bf16 %v379_v15, %v129_v14  ;;  %v132_v18 = vld [vmem:[%s441_s12 + $0x34] sm:$0x3]  ;;  %v382_v19 = vld [vmem:[%s441_s12 + $0x3c] sm:$0x3]  ;;  %v131_v20 = vld [vmem:[%s441_s12 + $0x30] sm:$0xf] }
  0x13   : > { %v381_v21 = vld [vmem:[%s441_s12 + $0x38] sm:$0xf]  ;;  %v481_v22 = vmax.bf16 %v382_v19, %v132_v18  ;;  %v134_v24 = vld [vmem:[%s441_s12 + $0x44] sm:$0x3]  ;;  %v384_v25 = vld [vmem:[%s441_s12 + $0x4c] sm:$0x3] }
  0x14   : > { %v485_v23 = vmax.bf16 %v381_v21, %v131_v20  ;;  %v133_v26 = vld [vmem:[%s441_s12 + $0x40] sm:$0xf]  ;;  %v383_v27 = vld [vmem:[%s441_s12 + $0x48] sm:$0xf]  ;;  %v493_v28 = vmax.bf16 %v384_v25, %v134_v24  ;;  %v136_v30 = vld [vmem:[%s441_s12 + $0x54] sm:$0x3] }
  0x15   : > { %212 = vrot.lane.b32.xlu1 %v457_v10, %s416_s13  ;;  %v497_v29 = vmax.bf16 %v383_v27, %v133_v26  ;;  %v386_v31 = vld [vmem:[%s441_s12 + $0x5c] sm:$0x3]  ;;  %v135_v32 = vld [vmem:[%s441_s12 + $0x50] sm:$0xf]  ;;  %v385_v33 = vld [vmem:[%s441_s12 + $0x58] sm:$0xf] }
  0x16   : > { %208 = vrot.lane.b32.xlu0 %v461_v11, %s416_s13  ;;  %v505_v34 = vmax.bf16 %v386_v31, %v136_v30  ;;  %v509_v35 = vmax.bf16 %v385_v33, %v135_v32  ;;  %v138_v36 = vld [vmem:[%s441_s12 + $0x64] sm:$0x3]  ;;  %v388_v37 = vld [vmem:[%s441_s12 + $0x6c] sm:$0x3]  ;;  %v137_v38 = vld [vmem:[%s441_s12 + $0x60] sm:$0xf] }
  0x17   : > { %v387_v39 = vld [vmem:[%s441_s12 + $0x68] sm:$0xf]  ;;  %v517_v40 = vmax.bf16 %v388_v37, %v138_v36  ;;  %v140_v42 = vld [vmem:[%s441_s12 + $0x74] sm:$0x3]  ;;  %v390_v43 = vld [vmem:[%s441_s12 + $0x7c] sm:$0x3] }
  0x18   : > { %v521_v41 = vmax.bf16 %v387_v39, %v137_v38  ;;  %v139_v44 = vld [vmem:[%s441_s12 + $0x70] sm:$0xf]  ;;  %v389_v45 = vld [vmem:[%s441_s12 + $0x78] sm:$0xf]  ;;  %v529_v46 = vmax.bf16 %v390_v43, %v140_v42  ;;  %v142_v48 = vld [vmem:[%s441_s12 + $0x84] sm:$0x3] }
  0x19   : > { %216 = vrot.lane.b32.xlu1 %v469_v16, %s416_s13  ;;  %v533_v47 = vmax.bf16 %v389_v45, %v139_v44  ;;  %v392_v49 = vld [vmem:[%s441_s12 + $0x8c] sm:$0x3]  ;;  %v141_v50 = vld [vmem:[%s441_s12 + $0x80] sm:$0xf]  ;;  %v391_v51 = vld [vmem:[%s441_s12 + $0x88] sm:$0xf] }
  0x1a   : > { %214 = vrot.lane.b32.xlu0 %v473_v17, %s416_s13  ;;  %v541_v52 = vmax.bf16 %v392_v49, %v142_v48  ;;  %v545_v53 = vmax.bf16 %v391_v51, %v141_v50  ;;  %v144_v54 = vld [vmem:[%s441_s12 + $0x94] sm:$0x3]  ;;  %v394_v55 = vld [vmem:[%s441_s12 + $0x9c] sm:$0x3]  ;;  %v143_v56 = vld [vmem:[%s441_s12 + $0x90] sm:$0xf] }
  0x1b   : > { %v393_v57 = vld [vmem:[%s441_s12 + $0x98] sm:$0xf]  ;;  %v553_v58 = vmax.bf16 %v394_v55, %v144_v54 }
  0x1c   : > { %v557_v59 = vmax.bf16 %v393_v57, %v143_v56 }
  0x1d   : > { %220 = vrot.lane.b32.xlu1 %v481_v22, %s416_s13 }
  0x1e   : > { %218 = vrot.lane.b32.xlu0 %v485_v23, %s416_s13 }
  0x21   : > { %224 = vrot.lane.b32.xlu1 %v493_v28, %s416_s13 }
  0x22   : > { %222 = vrot.lane.b32.xlu0 %v497_v29, %s416_s13 }
  0x25   : > { %228 = vrot.lane.b32.xlu1 %v505_v34, %s416_s13 }
  0x26   : > { %226 = vrot.lane.b32.xlu0 %v509_v35, %s416_s13 }
  0x29   : > { %232 = vrot.lane.b32.xlu1 %v517_v40, %s416_s13 }
  0x2a   : > { %230 = vrot.lane.b32.xlu0 %v521_v41, %s416_s13 }
  0x2d   : > { %236 = vrot.lane.b32.xlu1 %v529_v46, %s416_s13 }
  0x2e   : > { %234 = vrot.lane.b32.xlu0 %v533_v47, %s416_s13 }
  0x31   : > { %240 = vrot.lane.b32.xlu1 %v541_v52, %s416_s13 }
  0x32   : > { %238 = vrot.lane.b32.xlu0 %v545_v53, %s416_s13 }
  0x35   : > { %244 = vrot.lane.b32.xlu1 %v553_v58, %s416_s13 }
  0x36   : > { %242 = vrot.lane.b32.xlu0 %v557_v59, %s416_s13 }
  0x83   : > { %v211_v60 = vpop.permute.xlu1 %210 }
  0x84   : > { %v268_v61 = vmax.bf16 %v211_v60, %v446_v3  ;;  %v207_v62 = vpop.permute.xlu0 %206 }
  0x85   : > { %v266_v63 = vmax.bf16 %v207_v62, %v451_v7 }
  0x86   : > { %290 = vst.msk [vmem:[%s567_s17 + $0x8] sm:$0xf] %vm286_vm0, %v268_v61 }
  0x87   : > { %287 = vst.msk [vmem:[%s567_s17] sm:$0xf] %vm286_vm0, %v266_v63  ;;  %v213_v0 = vpop.permute.xlu1 %212 }
  0x88   : > { %v269_v1 = vmax.bf16 %v213_v0, %v457_v10  ;;  %v209_v2 = vpop.permute.xlu0 %208 }
  0x89   : > { %v267_v4 = vmax.bf16 %v209_v2, %v461_v11 }
  0x8a   : > { %291 = vst.msk [vmem:[%s567_s17 + $0xc] sm:$0x3] %vm288_vm1, %v269_v1 }
  0x8b   : > { %289 = vst.msk [vmem:[%s567_s17 + $0x4] sm:$0x3] %vm288_vm1, %v267_v4  ;;  %v217_v3 = vpop.permute.xlu1 %216 }
  0x8c   : > { %v271_v5 = vmax.bf16 %v217_v3, %v469_v16  ;;  %v215_v6 = vpop.permute.xlu0 %214 }
  0x8d   : > { %v270_v7 = vmax.bf16 %v215_v6, %v473_v17 }
  0x8e   : > { %293 = vst.msk [vmem:[%s567_s17 + $0x14] sm:$0x3] %vm288_vm1, %v271_v5 }
  0x8f   : > { %292 = vst.msk [vmem:[%s567_s17 + $0x10] sm:$0xf] %vm286_vm0, %v270_v7  ;;  %v221_v8 = vpop.permute.xlu1 %220 }
  0x90   : > { %v273_v9 = vmax.bf16 %v221_v8, %v481_v22  ;;  %v219_v10 = vpop.permute.xlu0 %218 }
  0x91   : > { %v272_v11 = vmax.bf16 %v219_v10, %v485_v23 }
  0x92   : > { %295 = vst.msk [vmem:[%s567_s17 + $0x1c] sm:$0x3] %vm288_vm1, %v273_v9 }
  0x93   : > { %294 = vst.msk [vmem:[%s567_s17 + $0x18] sm:$0xf] %vm286_vm0, %v272_v11  ;;  %v225_v12 = vpop.permute.xlu1 %224 }
  0x94   : > { %v275_v13 = vmax.bf16 %v225_v12, %v493_v28  ;;  %v223_v14 = vpop.permute.xlu0 %222 }
  0x95   : > { %v274_v15 = vmax.bf16 %v223_v14, %v497_v29 }
  0x96   : > { %297 = vst.msk [vmem:[%s567_s17 + $0x24] sm:$0x3] %vm288_vm1, %v275_v13 }
  0x97   : > { %296 = vst.msk [vmem:[%s567_s17 + $0x20] sm:$0xf] %vm286_vm0, %v274_v15  ;;  %v229_v16 = vpop.permute.xlu1 %228 }
  0x98   : > { %v277_v17 = vmax.bf16 %v229_v16, %v505_v34  ;;  %v227_v18 = vpop.permute.xlu0 %226 }
  0x99   : > { %v276_v19 = vmax.bf16 %v227_v18, %v509_v35 }
  0x9a   : > { %299 = vst.msk [vmem:[%s567_s17 + $0x2c] sm:$0x3] %vm288_vm1, %v277_v17 }
  0x9b   : > { %298 = vst.msk [vmem:[%s567_s17 + $0x28] sm:$0xf] %vm286_vm0, %v276_v19  ;;  %v233_v20 = vpop.permute.xlu1 %232 }
  0x9c   : > { %v279_v21 = vmax.bf16 %v233_v20, %v517_v40  ;;  %v231_v22 = vpop.permute.xlu0 %230 }
  0x9d   : > { %v278_v23 = vmax.bf16 %v231_v22, %v521_v41 }
  0x9e   : > { %301 = vst.msk [vmem:[%s567_s17 + $0x34] sm:$0x3] %vm288_vm1, %v279_v21 }
  0x9f   : > { %300 = vst.msk [vmem:[%s567_s17 + $0x30] sm:$0xf] %vm286_vm0, %v278_v23  ;;  %v237_v24 = vpop.permute.xlu1 %236 }
  0xa0   : > { %v281_v25 = vmax.bf16 %v237_v24, %v529_v46  ;;  %v235_v26 = vpop.permute.xlu0 %234 }
  0xa1   : > { %v280_v27 = vmax.bf16 %v235_v26, %v533_v47 }
  0xa2   : > { %303 = vst.msk [vmem:[%s567_s17 + $0x3c] sm:$0x3] %vm288_vm1, %v281_v25 }
  0xa3   : > { %302 = vst.msk [vmem:[%s567_s17 + $0x38] sm:$0xf] %vm286_vm0, %v280_v27  ;;  %v241_v28 = vpop.permute.xlu1 %240 }
  0xa4   : > { %v283_v29 = vmax.bf16 %v241_v28, %v541_v52  ;;  %v239_v30 = vpop.permute.xlu0 %238 }
  0xa5   : > { %v282_v31 = vmax.bf16 %v239_v30, %v545_v53 }
  0xa6   : > { %305 = vst.msk [vmem:[%s567_s17 + $0x44] sm:$0x3] %vm288_vm1, %v283_v29 }
  0xa7   : > { %304 = vst.msk [vmem:[%s567_s17 + $0x40] sm:$0xf] %vm286_vm0, %v282_v31  ;;  %v245_v32 = vpop.permute.xlu1 %244 }
  0xa8   : > { %v285_v33 = vmax.bf16 %v245_v32, %v553_v58  ;;  %v243_v34 = vpop.permute.xlu0 %242 }
  0xa9   : > { %v284_v35 = vmax.bf16 %v243_v34, %v557_v59 }
  0xaa   : > { %307 = vst.msk [vmem:[%s567_s17 + $0x4c] sm:$0x3] %vm288_vm1, %v285_v33 }
  0xab   : > { %306 = vst.msk [vmem:[%s567_s17 + $0x48] sm:$0xf] %vm286_vm0, %v284_v35 }
  0xac PF: > { %s11_s6 = sadd.s32 1, %s414_s6  }
  0xad   : > { %p8_p4 = scmp.ge.s32.totalorder %s11_s6, 4  }
  0xaf   :  { %10 = sbr.rel (!%p8_p4) target bundleno = 1 (0x1), region = 55 }

// kernel: autopilot_forward.11
= control target key start
LH: loop header
LB: loop body
LE: loop exit
PB: predicated region body
PF: predicated region fallthrough
CT: control target
= control target key end

     0   :  { %s1353_s12 = smov 0   ;;  %s1576_s0 = inlined_call_operand.vmem [shape: bf16[160,576], index: 0, kind: input, shape index: {}]   ;;  %s1577_s1 = inlined_call_operand.vmem [shape: bf16[576,128], index: 1, kind: input, shape index: {}]   ;;  %s1578_s2 = inlined_call_operand.vmem [shape: f32[1,128], index: 2, kind: input, shape index: {}]   ;;  %s1579_s3 = inlined_call_operand.vmem [shape: bf16[160,128], index: 3, kind: output, shape index: {}]  }
   0x1 LB: > { %s979_s13 = sadd.s32 4294967295, %s1329_s12   ;;  %p983_p0 = scmp.ge.s32.totalorder %s1329_s12, 1  ;;  %s1329_s12 = sphi %s1353_s12, %s13_s12  }
   0x2   : > { %p139_p1 = scmp.lt.s32.totalorder %s1329_s12, 3 }
   0x4   : > { %p140_p2 = pnand %p983_p0, %p139_p1 }
   0x5   : > { %s164_s17 = smul.u32 (!%p140_p2), 10, %s979_s13 }
   0x6   : > { %143 = sbr.rel (%p140_p2) target bundleno = 305 (0x131), region = 32 }
   0x7   : > { %p165_p3 = scmp.lt.s32.totalorder (!%p140_p2), %s164_s17, 19 }
   0xb   : > { %v1252_v0 = vld [vmem:[%s1577_s1 + $0x78] sm:$0xff]   ;;  %v1256_v4 = vld [vmem:[%s1577_s1 + $0x70] sm:$0xff]   ;;  %v1260_v8 = vld [vmem:[%s1577_s1 + $0x68] sm:$0xff]   ;;  %s1581_s17 = smov (!%p165_p3, %s164_s17), 19  ;;  %v1331_v34 = vmov 0.0   ;;  %vm1332_vm0 = vmmov 0  }
   0xc   : > { %v1253_v1 = vld [vmem:[%s1577_s1 + $0xf8] sm:$0xff]   ;;  %1104 = vmatprep.subr.bf16.mxu0 %v1252_v0  ;;  %v1257_v5 = vld [vmem:[%s1577_s1 + $0xf0] sm:$0xff]   ;;  %v1261_v9 = vld [vmem:[%s1577_s1 + $0xe8] sm:$0xff]   ;;  %s1241_s16 = smul.u32 20, %s1581_s17  ;;  %vm628_vm1 = vcmask 523264   ;;  %s985_s18 = sshll.u32 %s1581_s17, 2 }
   0xd   : > { %v1254_v2 = vld [vmem:[%s1577_s1 + $0x38] sm:$0xff]   ;;  %1150 = vmatprep.subr.bf16.mxu1 %v1253_v1  ;;  %v1258_v6 = vld [vmem:[%s1577_s1 + $0x30] sm:$0xff]   ;;  %v1262_v10 = vld [vmem:[%s1577_s1 + $0x28] sm:$0xff]   ;;  %s1556_s20 = scalar_lea.vmem %s1579_s3, %s985_s18 }
   0xe   : > { %v1255_v3 = vld [vmem:[%s1577_s1 + $0xb8] sm:$0xff]   ;;  %1105 = vmatpush3.bf16.msra.mxu0 %v1254_v2  ;;  %v1259_v7 = vld [vmem:[%s1577_s1 + $0xb0] sm:$0xff]   ;;  %v1263_v11 = vld [vmem:[%s1577_s1 + $0xa8] sm:$0xff]   ;;  %s1459_s27 = scalar_lea.vmem %s1576_s0, %s1241_s16 }
   0xf   : > { %1151 = vmatpush3.bf16.msra.mxu1 %v1255_v3  ;;  %1106 = vmatprep.subr.bf16.mxu0 %v1256_v4  ;;  %v1264_v12 = vld [vmem:[%s1577_s1 + $0x60] sm:$0xff]   ;;  %v1268_v16 = vld [vmem:[%s1577_s1 + $0x58] sm:$0xff]   ;;  %v1272_v20 = vld [vmem:[%s1577_s1 + $0x50] sm:$0xff]  }
  0x10   : > { %1152 = vmatprep.subr.bf16.mxu1 %v1257_v5  ;;  %v1265_v13 = vld [vmem:[%s1577_s1 + $0xe0] sm:$0xff]   ;;  %v1269_v17 = vld [vmem:[%s1577_s1 + $0xd8] sm:$0xff]   ;;  %v1273_v21 = vld [vmem:[%s1577_s1 + $0xd0] sm:$0xff]  }
  0x11   : > { %v1266_v14 = vld [vmem:[%s1577_s1 + $0x20] sm:$0xff]   ;;  %v1270_v18 = vld [vmem:[%s1577_s1 + $0x18] sm:$0xff]   ;;  %v1274_v22 = vld [vmem:[%s1577_s1 + $0x10] sm:$0xff]  }
  0x12   : > { %1107 = vmatpush3.bf16.msra.mxu0 %v1258_v6  ;;  %v1267_v15 = vld [vmem:[%s1577_s1 + $0xa0] sm:$0xff]   ;;  %v1271_v19 = vld [vmem:[%s1577_s1 + $0x98] sm:$0xff]   ;;  %v1275_v23 = vld [vmem:[%s1577_s1 + $0x90] sm:$0xff]  }
  0x13   : > { %1153 = vmatpush3.bf16.msra.mxu1 %v1259_v7  ;;  %1108 = vmatprep.subr.bf16.mxu0 %v1260_v8  ;;  %v1276_v24 = vld [vmem:[%s1577_s1 + $0x48] sm:$0xff]   ;;  %v1280_v28 = vld [vmem:[%s1577_s1 + $0x40] sm:$0xff]   ;;  %v1290_v37 = vld [vmem:[%s1577_s1 + $0x118] sm:$0xff]  }
  0x14   : > { %1154 = vmatprep.subr.bf16.mxu1 %v1261_v9  ;;  %v1277_v25 = vld [vmem:[%s1577_s1 + $0xc8] sm:$0xff]   ;;  %v1281_v29 = vld [vmem:[%s1577_s1 + $0xc0] sm:$0xff]   ;;  %v1297_v40 = vld [vmem:[%s1577_s1 + $0x110] sm:$0xff]  }
  0x15   : > { %v1278_v26 = vld [vmem:[%s1577_s1 + $0x8] sm:$0xff]   ;;  %v1282_v30 = vld [vmem:[%s1577_s1] sm:$0xff]   ;;  %v1300_v44 = vld [vmem:[%s1459_s27 + $0x5c] ss:$20 sps:$4 sm:$0xff]  }
  0x16   : > { %1109 = vmatpush3.bf16.msra.mxu0 %v1262_v10  ;;  %v1279_v27 = vld [vmem:[%s1577_s1 + $0x88] sm:$0xff]   ;;  %v1283_v31 = vld [vmem:[%s1577_s1 + $0x80] sm:$0xff]   ;;  %v1305_v49 = vld [vmem:[%s1459_s27 + $0x7c] ss:$20 sps:$4 sm:$0xff]  }
  0x17   : > { %1155 = vmatpush3.bf16.msra.mxu1 %v1263_v11  ;;  %1110 = vmatprep.subr.bf16.mxu0 %v1264_v12  ;;  %v1284_v32 = vld [vmem:[%s1459_s27] ss:$20 sps:$4 sm:$0xff]   ;;  %v1286_v33 = vld [vmem:[%s1459_s27 + $0x4] ss:$20 sps:$4 sm:$0xff]   ;;  %v1287_v35 = vld [vmem:[%s1459_s27 + $0x8] ss:$20 sps:$4 sm:$0xff]  }
  0x18   : > { %1156 = vmatprep.subr.bf16.mxu1 %v1265_v13  ;;  %v1289_v36 = vld [vmem:[%s1459_s27 + $0xc] ss:$20 sps:$4 sm:$0xff]   ;;  %676 = vmatprep.mubr.bf16.mxu0 %v1286_v33  ;;  %v1293_v39 = vld [vmem:[%s1459_s27 + $0x34] ss:$20 sps:$4 sm:$0xff]   ;;  %v1296_v42 = vld [vmem:[%s1459_s27 + $0x30] ss:$20 sps:$4 sm:$0xff]  }
  0x19   : > { %749 = vmatprep.mubr.bf16.mxu1 %v1289_v36  ;;  %v1291_v38 = vld [vmem:[%s1459_s27 + $0x2c] ss:$20 sps:$4 sm:$0xff]   ;;  %v1295_v41 = vld [vmem:[%s1459_s27 + $0x28] ss:$20 sps:$4 sm:$0xff]   ;;  %v1302_v46 = vld [vmem:[%s1459_s27 + $0x50] ss:$20 sps:$4 sm:$0xff]  }
  0x1a   : > { %1111 = vmatpush3.bf16.msra.mxu0 %v1266_v14  ;;  %v1298_v43 = vld [vmem:[%s1459_s27 + $0x54] ss:$20 sps:$4 sm:$0xff]   ;;  %v1303_v47 = vld [vmem:[%s1459_s27 + $0x58] ss:$20 sps:$4 sm:$0xff]   ;;  %v1315_v48 = vld [vmem:[%s1577_s1 + $0x100] sm:$0xff]  }
  0x1b   : > { %1157 = vmatpush3.bf16.msra.mxu1 %v1267_v15  ;;  %1112 = vmatprep.subr.bf16.mxu0 %v1268_v16  ;;  %v1304_v45 = vld [vmem:[%s1577_s1 + $0x108] sm:$0xff]   ;;  %v1307_v50 = vld [vmem:[%s1459_s27 + $0x84] ss:$20 sps:$4 sm:$0xff]   ;;  %v1310_v52 = vld [vmem:[%s1459_s27 + $0x80] ss:$20 sps:$4 sm:$0xff]  }
  0x1c   : > { %1158 = vmatprep.subr.bf16.mxu1 %v1269_v17  ;;  %v1309_v51 = vld [vmem:[%s1459_s27 + $0x78] ss:$20 sps:$4 sm:$0xff]   ;;  %v1316_v55 = vld [vmem:[%s1459_s27 + $0xa0] ss:$20 sps:$4 sm:$0xff]   ;;  %v1317_v56 = vld [vmem:[%s1459_s27 + $0xa8] ss:$20 sps:$4 sm:$0xff]  }
  0x1d   : > { %v1311_v53 = vld [vmem:[%s1459_s27 + $0xa4] ss:$20 sps:$4 sm:$0xff]   ;;  %v1313_v54 = vld [vmem:[%s1459_s27 + $0xac] ss:$20 sps:$4 sm:$0xff]   ;;  %v1319_v58 = vld [vmem:[%s1459_s27 + $0x88] ss:$20 sps:$4 sm:$0xff]  }
  0x1e   : > { %1113 = vmatpush3.bf16.msra.mxu0 %v1270_v18  ;;  %v1318_v57 = vld [vmem:[%s1459_s27 + $0x10] ss:$20 sps:$4 sm:$0xff]   ;;  %v1320_v59 = vld [vmem:[%s1459_s27 + $0x38] ss:$20 sps:$4 sm:$0xff]   ;;  %v1322_v61 = vld [vmem:[%s1459_s27 + $0x60] ss:$20 sps:$4 sm:$0xff]  }
  0x1f   : > { %1159 = vmatpush3.bf16.msra.mxu1 %v1271_v19  ;;  %1114 = vmatprep.subr.bf16.mxu0 %v1272_v20  ;;  %v1321_v60 = vld [vmem:[%s1459_s27 + $0xb0] ss:$20 sps:$4 sm:$0xff]   ;;  %v1540_v33 = vld [vmem:[%s1578_s2] ss:$0 sm:$0xff] }
  0x20   : > { %1160 = vmatprep.subr.bf16.mxu1 %v1273_v21 }
  0x22   : > { %1115 = vmatpush3.bf16.msra.mxu0 %v1274_v22 }
  0x23   : > { %1161 = vmatpush3.bf16.msra.mxu1 %v1275_v23  ;;  %1116 = vmatprep.subr.bf16.mxu0 %v1276_v24 }
  0x24   : > { %1162 = vmatprep.subr.bf16.mxu1 %v1277_v25 }
  0x26   : > { %1117 = vmatpush3.bf16.msra.mxu0 %v1278_v26 }
  0x27   : > { %1163 = vmatpush3.bf16.msra.mxu1 %v1279_v27  ;;  %1118 = vmatprep.subr.bf16.mxu0 %v1280_v28 }
  0x28   : > { %1164 = vmatprep.subr.bf16.mxu1 %v1281_v29 }
  0x2a   : > { %1119 = vmatpush3.bf16.msra.mxu0 %v1282_v30 }
  0x2b   : > { %1165 = vmatpush3.bf16.msra.mxu1 %v1283_v31  ;;  %1205 = vmatprep.subr.bf16.mxu0 %v1331_v34 }
  0x2c   : > { %1233 = vmatprep.subr.bf16.mxu1 %v1331_v34 }
  0x2d   : > { %677 = vmatmul.mubr.bf16.vlgmr.msra.gmra.mxu0 %v1284_v32 }
  0x2e   : > { %750 = vmatmul.mubr.bf16.vlgmr.msra.gmra.mxu1 %v1287_v35  ;;  %1206 = vmatpush3.bf16.msra.mxu0 %v1290_v37 }
  0x2f   : > { %684 = vmatprep.mubr.bf16.mxu0 %v1291_v38  ;;  %1237 = vmatpush3.bf16.msra.mxu1 %v1290_v37 }
  0x30   : > { %757 = vmatprep.mubr.bf16.mxu1 %v1293_v39  ;;  %1207 = vmatprep.subr.bf16.mxu0 %v1331_v34 }
  0x31   : > { %1234 = vmatprep.subr.bf16.mxu1 %v1331_v34 }
  0x32   : > { %1208 = vmatpush3.bf16.msra.mxu0 %v1297_v40 }
  0x33   : > { %1238 = vmatpush3.bf16.msra.mxu1 %v1297_v40  ;;  %1209 = vmatprep.subr.bf16.mxu0 %v1331_v34 }
  0x34   : > { %1235 = vmatprep.subr.bf16.mxu1 %v1331_v34 }
  0x35   : > { %685 = vmatmul.mubr.bf16.gmra.mxu0 %v1295_v41 }
  0x36   : > { %758 = vmatmul.mubr.bf16.gmra.mxu1 %v1296_v42  ;;  %692 = vmatprep.mubr.bf16.mxu0 %v1298_v43 }
  0x37   : > { %765 = vmatprep.mubr.bf16.mxu1 %v1300_v44  ;;  %1210 = vmatpush3.bf16.msra.mxu0 %v1304_v45 }
  0x38   : > { %1239 = vmatpush3.bf16.msra.mxu1 %v1304_v45  ;;  %1211 = vmatprep.subr.bf16.mxu0 %v1331_v34 }
  0x39   : > { %1236 = vmatprep.subr.bf16.mxu1 %v1331_v34 }
  0x3b   : > { %1212 = vmatpush3.bf16.msra.mxu0 %v1315_v48 }
  0x3c   : > { %1240 = vmatpush3.bf16.msra.mxu1 %v1315_v48 }
  0x3d   : > { %693 = vmatmul.mubr.bf16.gmra.mxu0 %v1302_v46 }
  0x3e   : > { %766 = vmatmul.mubr.bf16.gmra.mxu1 %v1303_v47  ;;  %700 = vmatprep.mubr.bf16.mxu0 %v1305_v49 }
  0x3f   : > { %773 = vmatprep.mubr.bf16.mxu1 %v1307_v50 }
  0x45   : > { %701 = vmatmul.mubr.bf16.gmra.mxu0 %v1309_v51 }
  0x46   : > { %774 = vmatmul.mubr.bf16.gmra.mxu1 %v1310_v52  ;;  %708 = vmatprep.mubr.bf16.mxu0 %v1311_v53 }
  0x47   : > { %781 = vmatprep.mubr.bf16.mxu1 %v1313_v54 }
  0x4d   : > { %709 = vmatmul.mubr.bf16.gmra.mxu0 %v1316_v55 }
  0x4e   : > { %782 = vmatmul.mubr.bf16.gmra.mxu1 %v1317_v56  ;;  %1213 = vmatprep.mubr.msk.bf16.mxu0 %vm1332_vm0, %v1331_v34 }
  0x4f   : > { %1225 = vmatprep.mubr.msk.bf16.mxu1 %vm1332_vm0, %v1331_v34 }
  0x55   : > { %1214 = vmatmul.mubr.msk.bf16.vlgmr.msra.gmra.mxu0 %vm628_vm1, %v1318_v57 }
  0x56   : > { %1226 = vmatmul.mubr.msk.bf16.vlgmr.msra.gmra.mxu1 %vm628_vm1, %v1319_v58  ;;  %1217 = vmatprep.mubr.msk.bf16.mxu0 %vm1332_vm0, %v1331_v34 }
  0x57   : > { %1229 = vmatprep.mubr.msk.bf16.mxu1 %vm1332_vm0, %v1331_v34 }
  0x5d   : > { %1218 = vmatmul.mubr.msk.bf16.gmra.mxu0 %vm628_vm1, %v1320_v59 }
  0x5e   : > { %1230 = vmatmul.mubr.msk.bf16.gmra.mxu1 %vm628_vm1, %v1321_v60  ;;  %1221 = vmatprep.mubr.msk.bf16.mxu0 %vm1332_vm0, %v1331_v34 }
  0x65   : > { %1222 = vmatmul.mubr.msk.bf16.gmra.mxu0 %vm628_vm1, %v1322_v61 }
  0xed   : > { %v1120_v62 = vpop.f32.mrf.mxu0 }
  0xee   : > { %v1166_v63 = vpop.f32.mrf.mxu1 }
  0xef   : > { %v1121_v0 = vpop.f32.mrf.mxu0 }
  0xf0   : > { %v1167_v1 = vpop.f32.mrf.mxu1  ;;  %v1122_v31 = vadd.f32 %v1121_v0, %v1120_v62 }
  0xf1   : > { %v1123_v2 = vpop.f32.mrf.mxu0  ;;  %v1168_v41 = vadd.f32 %v1167_v1, %v1166_v63 }
  0xf2   : > { %v1169_v3 = vpop.f32.mrf.mxu1  ;;  %v679_v40 = vadd.f32 %v1122_v31, %v1540_v33 }
  0xf3   : > { %v1124_v4 = vpop.f32.mrf.mxu0 }
  0xf4   : > { %v1170_v5 = vpop.f32.mrf.mxu1  ;;  %v1125_v36 = vadd.f32 %v1124_v4, %v1123_v2  ;;  %v752_v53 = vadd.f32 %v1168_v41, %v679_v40 }
  0xf5   : > { %v1126_v6 = vpop.f32.mrf.mxu0  ;;  %v1171_v47 = vadd.f32 %v1170_v5, %v1169_v3 }
  0xf6   : > { %v1172_v7 = vpop.f32.mrf.mxu1  ;;  %v682_v46 = vadd.f32 %v1125_v36, %v1540_v33 }
  0xf7   : > { %v1127_v8 = vpop.f32.mrf.mxu0 }
  0xf8   : > { %v1173_v9 = vpop.f32.mrf.mxu1  ;;  %v1128_v52 = vadd.f32 %v1127_v8, %v1126_v6  ;;  %v755_v61 = vadd.f32 %v1171_v47, %v682_v46 }
  0xf9   : > { %v1129_v10 = vpop.f32.mrf.mxu0  ;;  %v1174_v3 = vadd.f32 %v1173_v9, %v1172_v7 }
  0xfa   : > { %v1517_v11 = vpop.f32.mrf.mxu1  ;;  %v687_v2 = vadd.f32 %v1128_v52, %v1540_v33 }
  0xfb   : > { %v1130_v12 = vpop.f32.mrf.mxu0 }
  0xfc   : > { %v1519_v13 = vpop.f32.mrf.mxu1  ;;  %v1131_v58 = vadd.f32 %v1130_v12, %v1129_v10 }
  0xfd   : > { %v1521_v14 = vpop.f32.mrf.mxu0  ;;  %v1177_v12 = vadd.f32 %v1519_v13, %v1517_v11  ;;  %v760_v13 = vadd.f32 %v1174_v3, %v687_v2 }
  0xfe   : > { %v1523_v15 = vpop.f32.mrf.mxu1  ;;  %v690_v10 = vadd.f32 %v1131_v58, %v1540_v33 }
  0xff   : > { %v1525_v16 = vpop.f32.mrf.mxu0 }
 0x100   : > { %v1527_v17 = vpop.f32.mrf.mxu1 }
 0x101   : > { %v1529_v18 = vpop.f32.mrf.mxu0 }
 0x102   : > { %v1531_v19 = vpop.f32.mrf.mxu1 }
 0x103   : > { %v1533_v20 = vpop.f32.mrf.mxu0 }
 0x104   : > { %v1535_v21 = vpop.f32.mrf.mxu1  ;;  %v1137_v36 = vadd.f32 %v1533_v20, %v1529_v18 }
 0x105   : > { %v1138_v22 = vpop.f32.mrf.mxu0  ;;  %v1183_v20 = vadd.f32 %v1535_v21, %v1531_v19 }
 0x106   : > { %v1184_v23 = vpop.f32.mrf.mxu1  ;;  %v698_v18 = vadd.f32 %v1137_v36, %v1540_v33 }
 0x107   : > { %v1139_v24 = vpop.f32.mrf.mxu0 }
 0x108   : > { %v1185_v25 = vpop.f32.mrf.mxu1  ;;  %v1140_v34 = vadd.f32 %v1139_v24, %v1138_v22 }
 0x109   : > { %v1141_v26 = vpop.f32.mrf.mxu0  ;;  %v1186_v44 = vadd.f32 %v1185_v25, %v1184_v23 }
 0x10a   : > { %v1187_v27 = vpop.f32.mrf.mxu1  ;;  %v703_v43 = vadd.f32 %v1140_v34, %v1540_v33 }
 0x10b   : > { %v1142_v28 = vpop.f32.mrf.mxu0 }
 0x10c   : > { %v1188_v29 = vpop.f32.mrf.mxu1  ;;  %v1143_v38 = vadd.f32 %v1142_v28, %v1141_v26  ;;  %v776_v56 = vadd.f32 %v1186_v44, %v703_v43 }
 0x10d   : > { %v1144_v30 = vpop.f32.mrf.mxu0  ;;  %v1189_v50 = vadd.f32 %v1188_v29, %v1187_v27 }
 0x10e   : > { %v1190_v32 = vpop.f32.mrf.mxu1  ;;  %v706_v49 = vadd.f32 %v1143_v38, %v1540_v33 }
 0x10f   : > { %v1145_v35 = vpop.f32.mrf.mxu0 }
 0x110   : > { %v1191_v37 = vpop.f32.mrf.mxu1  ;;  %v1146_v55 = vadd.f32 %v1145_v35, %v1144_v30  ;;  %v779_v1 = vadd.f32 %v1189_v50, %v706_v49  ;;  %v1134_v30 = vadd.f32 %v1525_v16, %v1521_v14  ;;  %v1180_v14 = vadd.f32 %v1527_v17, %v1523_v15 }
 0x111   : > { %v1147_v39 = vpop.f32.mrf.mxu0  ;;  %v1192_v8 = vadd.f32 %v1191_v37, %v1190_v32 }
 0x112   : > { %v1193_v42 = vpop.f32.mrf.mxu1  ;;  %v711_v6 = vadd.f32 %v1146_v55, %v1540_v33  ;;  %v695_v43 = vadd.f32 %v1134_v30, %v1540_v33 }
 0x113   : > { %v1148_v45 = vpop.f32.mrf.mxu0 }
 0x114   : > { %v1194_v48 = vpop.f32.mrf.mxu1  ;;  %v1149_v62 = vadd.f32 %v1148_v45, %v1147_v39  ;;  %v784_v34 = vadd.f32 %v1192_v8, %v711_v6  ;;  %v763_v39 = vadd.f32 %v1177_v12, %v690_v10  ;;  %v768_v15 = vadd.f32 %v1180_v14, %v695_v43 }
 0x115   : > { %v824_v51 = vpop.f32.mrf.mxu0  ;;  %v1195_v28 = vadd.f32 %v1194_v48, %v1193_v42 }
 0x116   : > { %v848_v54 = vpop.f32.mrf.mxu1  ;;  %v825_v59 = vadd.f32 %v824_v51, %v752_v53  ;;  %v714_v27 = vadd.f32 %v1149_v62, %v1540_v33 }
 0x117   : > { %v1215_v57 = vpop.f32.mrf.mxu0  ;;  %v849_v63 = vadd.f32 %v848_v54, %v776_v56  ;;  %v771_v56 = vadd.f32 %v1183_v20, %v698_v18 }
 0x118   : > { %v1227_v60 = vpop.f32.mrf.mxu1  ;;  %v863_v24 = vmax.f32 %v825_v59, 0.0  ;;  %v787_v42 = vadd.f32 %v1195_v28, %v714_v27 }
 0x119   : > { %v827_v0 = vpop.f32.mrf.mxu0  ;;  %v869_v7 = vmax.f32 %v849_v63, 0.0 }
 0x11a   : > { %v828_v4 = vadd.f32 %v827_v0, %v755_v61  ;;  %v851_v5 = vpop.f32.mrf.mxu1 }
 0x11b   : > { %v852_v22 = vadd.f32 %v851_v5, %v779_v1  ;;  %v1216_v23 = vpop.f32.mrf.mxu0 }
 0x11c   : > { %v864_v25 = vmax.f32 %v828_v4, 0.0  ;;  %v1228_v26 = vpop.f32.mrf.mxu1 }
 0x11d   : > { %v870_v9 = vmax.f32 %v852_v22, 0.0  ;;  %v832_v29 = vpop.f32.mrf.mxu0 }
 0x11e   : > { %v1078_v11 = vpack.c.bf16 %v864_v25, %v863_v24  ;;  %v856_v31 = vpop.f32.mrf.mxu1  ;;  %v833_v37 = vadd.f32 %v832_v29, %v760_v13 }
 0x11f   : > { %v1093_v32 = vpack.c.bf16 %v870_v9, %v869_v7  ;;  %v1219_v35 = vpop.f32.mrf.mxu0  ;;  %v857_v40 = vadd.f32 %v856_v31, %v784_v34 }
 0x120   : > { %1079 = vst [vmem:[%s1556_s20] sm:$0xff] %v1078_v11   ;;  %v1231_v38 = vpop.f32.mrf.mxu1  ;;  %v865_v47 = vmax.f32 %v833_v37, 0.0 }
 0x121   : > { %1102 = vst [vmem:[%s1556_s20 + $0x18] sm:$0xff] %v1093_v32   ;;  %v835_v41 = vpop.f32.mrf.mxu0  ;;  %v871_v50 = vmax.f32 %v857_v40, 0.0 }
 0x122   : > { %v836_v16 = vadd.f32 %v835_v41, %v763_v39  ;;  %v859_v44 = vpop.f32.mrf.mxu1 }
 0x123   : > { %v860_v45 = vadd.f32 %v859_v44, %v787_v42  ;;  %v1220_v46 = vpop.f32.mrf.mxu0 }
 0x124   : > { %v866_v48 = vmax.f32 %v836_v16, 0.0  ;;  %v1232_v49 = vpop.f32.mrf.mxu1 }
 0x125   : > { %v872_v51 = vmax.f32 %v860_v45, 0.0  ;;  %v840_v52 = vpop.f32.mrf.mxu0 }
 0x126   : > { %v1083_v53 = vpack.c.bf16 %v866_v48, %v865_v47  ;;  %v841_v55 = vadd.f32 %v840_v52, %v768_v15 }
 0x127   : > { %v1098_v17 = vpack.c.bf16 %v872_v51, %v871_v50  ;;  %v1223_v54 = vpop.f32.mrf.mxu0 }
 0x128   : > { %1100 = vst [vmem:[%s1556_s20 + $0x8] sm:$0xff] %v1083_v53   ;;  %v867_v59 = vmax.f32 %v841_v55, 0.0 }
 0x129   : > { %1103 = vst [vmem:[%s1556_s20 + $0x20] sm:$0xff] %v1098_v17   ;;  %v843_v57 = vpop.f32.mrf.mxu0 }
 0x12a   : > { %v844_v33 = vadd.f32 %v843_v57, %v771_v56 }
 0x12b   : > { %v1224_v58 = vpop.f32.mrf.mxu0 }
 0x12c   : > { %v868_v19 = vmax.f32 %v844_v33, 0.0 }
 0x12e   : > { %v1088_v21 = vpack.c.bf16 %v868_v19, %v867_v59 }
 0x130   : > { %1101 = vst [vmem:[%s1556_s20 + $0x10] sm:$0xff] %v1088_v21  }
 0x131 PF: > { %s13_s12 = sadd.s32 1, %s1329_s12  }
 0x132   : > { %p10_p4 = scmp.ge.s32.totalorder %s13_s12, 4  }
 0x134   :  { %12 = sbr.rel (!%p10_p4) target bundleno = 1 (0x1), region = 62 }

// kernel: autopilot_forward.12
= control target key start
LH: loop header
LB: loop body
LE: loop exit
PB: predicated region body
PF: predicated region fallthrough
CT: control target
= control target key end

     0   :  { %s1787_s12 = smov 0   ;;  %s2083_s0 = inlined_call_operand.vmem [shape: bf16[96,1152], index: 0, kind: input, shape index: {}]   ;;  %s2084_s1 = inlined_call_operand.vmem [shape: bf16[1152,128], index: 1, kind: input, shape index: {}]   ;;  %s2085_s2 = inlined_call_operand.vmem [shape: f32[1,128], index: 2, kind: input, shape index: {}]   ;;  %s2086_s3 = inlined_call_operand.vmem [shape: bf16[96,128], index: 3, kind: output, shape index: {}]  }
   0x1 LB: > { %s1306_s13 = sadd.s32 4294967295, %s1763_s12   ;;  %p1310_p0 = scmp.ge.s32.totalorder %s1763_s12, 1  ;;  %s1763_s12 = sphi %s1787_s12, %s13_s12  }
   0x2   : > { %p139_p1 = scmp.lt.s32.totalorder %s1763_s12, 3 }
   0x4   : > { %p140_p2 = pnand %p1310_p0, %p139_p1 }
   0x5   : > { %s164_s17 = smul.u32 (!%p140_p2), 6, %s1306_s13 }
   0x6   : > { %143 = sbr.rel (%p140_p2) target bundleno = 322 (0x142), region = 32 }
   0x7   : > { %p165_p3 = scmp.lt.s32.totalorder (!%p140_p2), %s164_s17, 11 }
   0xb   : > { %v1646_v0 = vld [vmem:[%s2084_s1 + $0x78] sm:$0xff]   ;;  %v1650_v4 = vld [vmem:[%s2084_s1 + $0x70] sm:$0xff]   ;;  %v1654_v8 = vld [vmem:[%s2084_s1 + $0x68] sm:$0xff]   ;;  %s2088_s17 = smov (!%p165_p3, %s164_s17), 11  ;;  %vm1766_vm0 = vmmov 0  }
   0xc   : > { %v1647_v1 = vld [vmem:[%s2084_s1 + $0xf8] sm:$0xff]   ;;  %1444 = vmatprep.subr.bf16.mxu0 %v1646_v0  ;;  %v1651_v5 = vld [vmem:[%s2084_s1 + $0xf0] sm:$0xff]   ;;  %v1655_v9 = vld [vmem:[%s2084_s1 + $0xe8] sm:$0xff]   ;;  %s1635_s16 = smul.u32 36, %s2088_s17 }
   0xd   : > { %v1648_v2 = vld [vmem:[%s2084_s1 + $0x38] sm:$0xff]   ;;  %1478 = vmatprep.subr.bf16.mxu1 %v1647_v1  ;;  %v1652_v6 = vld [vmem:[%s2084_s1 + $0x30] sm:$0xff]   ;;  %v1656_v10 = vld [vmem:[%s2084_s1 + $0x28] sm:$0xff]  }
   0xe   : > { %v1649_v3 = vld [vmem:[%s2084_s1 + $0xb8] sm:$0xff]   ;;  %1445 = vmatpush3.bf16.msra.mxu0 %v1648_v2  ;;  %v1653_v7 = vld [vmem:[%s2084_s1 + $0xb0] sm:$0xff]   ;;  %v1657_v11 = vld [vmem:[%s2084_s1 + $0xa8] sm:$0xff]   ;;  %s1893_s27 = scalar_lea.vmem %s2083_s0, %s1635_s16  ;;  %s1312_s16 = sshll.u32 %s2088_s17, 2 }
   0xf   : > { %1479 = vmatpush3.bf16.msra.mxu1 %v1649_v3  ;;  %1446 = vmatprep.subr.bf16.mxu0 %v1650_v4  ;;  %v1658_v12 = vld [vmem:[%s2084_s1 + $0x60] sm:$0xff]   ;;  %v1662_v16 = vld [vmem:[%s2084_s1 + $0x58] sm:$0xff]   ;;  %v1666_v20 = vld [vmem:[%s2084_s1 + $0x50] sm:$0xff]   ;;  %s175_s20 = scalar_lea.vmem %s2086_s3, %s1312_s16 }
  0x10   : > { %1480 = vmatprep.subr.bf16.mxu1 %v1651_v5  ;;  %v1659_v13 = vld [vmem:[%s2084_s1 + $0xe0] sm:$0xff]   ;;  %v1663_v17 = vld [vmem:[%s2084_s1 + $0xd8] sm:$0xff]   ;;  %v1667_v21 = vld [vmem:[%s2084_s1 + $0xd0] sm:$0xff]  }
  0x11   : > { %v1660_v14 = vld [vmem:[%s2084_s1 + $0x20] sm:$0xff]   ;;  %v1664_v18 = vld [vmem:[%s2084_s1 + $0x18] sm:$0xff]   ;;  %v1668_v22 = vld [vmem:[%s2084_s1 + $0x10] sm:$0xff]  }
  0x12   : > { %1447 = vmatpush3.bf16.msra.mxu0 %v1652_v6  ;;  %v1661_v15 = vld [vmem:[%s2084_s1 + $0xa0] sm:$0xff]   ;;  %v1665_v19 = vld [vmem:[%s2084_s1 + $0x98] sm:$0xff]   ;;  %v1669_v23 = vld [vmem:[%s2084_s1 + $0x90] sm:$0xff]  }
  0x13   : > { %1481 = vmatpush3.bf16.msra.mxu1 %v1653_v7  ;;  %1448 = vmatprep.subr.bf16.mxu0 %v1654_v8  ;;  %v1670_v24 = vld [vmem:[%s2084_s1 + $0x48] sm:$0xff]   ;;  %v1674_v28 = vld [vmem:[%s2084_s1 + $0x40] sm:$0xff]   ;;  %v1684_v36 = vld [vmem:[%s2084_s1 + $0x178] sm:$0xff]  }
  0x14   : > { %1482 = vmatprep.subr.bf16.mxu1 %v1655_v9  ;;  %v1671_v25 = vld [vmem:[%s2084_s1 + $0xc8] sm:$0xff]   ;;  %v1675_v29 = vld [vmem:[%s2084_s1 + $0xc0] sm:$0xff]   ;;  %v1685_v37 = vld [vmem:[%s2084_s1 + $0x1f8] sm:$0xff]  }
  0x15   : > { %v1672_v26 = vld [vmem:[%s2084_s1 + $0x8] sm:$0xff]   ;;  %v1676_v30 = vld [vmem:[%s2084_s1] sm:$0xff]   ;;  %v1686_v38 = vld [vmem:[%s2084_s1 + $0x138] sm:$0xff]  }
  0x16   : > { %1449 = vmatpush3.bf16.msra.mxu0 %v1656_v10  ;;  %v1673_v27 = vld [vmem:[%s2084_s1 + $0x88] sm:$0xff]   ;;  %v1677_v31 = vld [vmem:[%s2084_s1 + $0x80] sm:$0xff]   ;;  %v1687_v39 = vld [vmem:[%s2084_s1 + $0x1b8] sm:$0xff]  }
  0x17   : > { %1483 = vmatpush3.bf16.msra.mxu1 %v1657_v11  ;;  %1450 = vmatprep.subr.bf16.mxu0 %v1658_v12  ;;  %v1678_v32 = vld [vmem:[%s1893_s27] ss:$36 sps:$4 sm:$0xff]   ;;  %v1681_v34 = vld [vmem:[%s1893_s27 + $0x8] ss:$36 sps:$4 sm:$0xff]   ;;  %v1688_v40 = vld [vmem:[%s2084_s1 + $0x170] sm:$0xff]  }
  0x18   : > { %1484 = vmatprep.subr.bf16.mxu1 %v1659_v13  ;;  %v1680_v33 = vld [vmem:[%s1893_s27 + $0x4] ss:$36 sps:$4 sm:$0xff]   ;;  %v1683_v35 = vld [vmem:[%s1893_s27 + $0xc] ss:$36 sps:$4 sm:$0xff]   ;;  %v1699_v50 = vld [vmem:[%s1893_s27 + $0x54] ss:$36 sps:$4 sm:$0xff]  }
  0x19   : > { %961 = vmatprep.mubr.bf16.mxu0 %v1680_v33  ;;  %1018 = vmatprep.mubr.bf16.mxu1 %v1683_v35  ;;  %v1689_v41 = vld [vmem:[%s2084_s1 + $0x1f0] sm:$0xff]   ;;  %v1694_v45 = vld [vmem:[%s2084_s1 + $0x168] sm:$0xff]   ;;  %v1702_v52 = vld [vmem:[%s2084_s1 + $0x160] sm:$0xff]  }
  0x1a   : > { %1451 = vmatpush3.bf16.msra.mxu0 %v1660_v14  ;;  %v1690_v42 = vld [vmem:[%s2084_s1 + $0x130] sm:$0xff]   ;;  %v1695_v46 = vld [vmem:[%s2084_s1 + $0x1e8] sm:$0xff]   ;;  %v1703_v53 = vld [vmem:[%s2084_s1 + $0x1e0] sm:$0xff]   ;;  %v1765_v14 = vmov 0.0  }
  0x1b   : > { %1485 = vmatpush3.bf16.msra.mxu1 %v1661_v15  ;;  %1452 = vmatprep.subr.bf16.mxu0 %v1662_v16  ;;  %v1691_v43 = vld [vmem:[%s2084_s1 + $0x1b0] sm:$0xff]   ;;  %v1696_v47 = vld [vmem:[%s1893_s27 + $0x48] ss:$36 sps:$4 sm:$0xff]   ;;  %v1704_v54 = vld [vmem:[%s2084_s1 + $0x120] sm:$0xff]  }
  0x1c   : > { %1486 = vmatprep.subr.bf16.mxu1 %v1663_v17  ;;  %v1692_v44 = vld [vmem:[%s1893_s27 + $0x4c] ss:$36 sps:$4 sm:$0xff]   ;;  %v1705_v55 = vld [vmem:[%s2084_s1 + $0x1a0] sm:$0xff]   ;;  %v1706_v56 = vld [vmem:[%s1893_s27 + $0x94] ss:$36 sps:$4 sm:$0xff]  }
  0x1d   : > { %v1697_v48 = vld [vmem:[%s2084_s1 + $0x128] sm:$0xff]   ;;  %v1701_v51 = vld [vmem:[%s1893_s27 + $0x50] ss:$36 sps:$4 sm:$0xff]   ;;  %v1708_v57 = vld [vmem:[%s2084_s1 + $0x158] sm:$0xff]  }
  0x1e   : > { %1453 = vmatpush3.bf16.msra.mxu0 %v1664_v18  ;;  %v1698_v49 = vld [vmem:[%s2084_s1 + $0x1a8] sm:$0xff]   ;;  %v1709_v58 = vld [vmem:[%s2084_s1 + $0x1d8] sm:$0xff]   ;;  %v1710_v59 = vld [vmem:[%s1893_s27 + $0x90] ss:$36 sps:$4 sm:$0xff]  }
  0x1f   : > { %1487 = vmatpush3.bf16.msra.mxu1 %v1665_v19  ;;  %1454 = vmatprep.subr.bf16.mxu0 %v1666_v20  ;;  %v1711_v60 = vld [vmem:[%s2084_s1 + $0x118] sm:$0xff]   ;;  %v1716_v0 = vld [vmem:[%s2084_s1 + $0x150] sm:$0xff]   ;;  %v1720_v4 = vld [vmem:[%s2084_s1 + $0x148] sm:$0xff]  }
  0x20   : > { %1488 = vmatprep.subr.bf16.mxu1 %v1667_v21  ;;  %v1712_v61 = vld [vmem:[%s2084_s1 + $0x198] sm:$0xff]   ;;  %v1717_v1 = vld [vmem:[%s2084_s1 + $0x1d0] sm:$0xff]   ;;  %v1721_v5 = vld [vmem:[%s2084_s1 + $0x1c8] sm:$0xff]  }
  0x21   : > { %v1713_v62 = vld [vmem:[%s1893_s27 + $0x9c] ss:$36 sps:$4 sm:$0xff]   ;;  %v1718_v2 = vld [vmem:[%s2084_s1 + $0x110] sm:$0xff]   ;;  %v1722_v6 = vld [vmem:[%s2084_s1 + $0x108] sm:$0xff]  }
  0x22   : > { %1455 = vmatpush3.bf16.msra.mxu0 %v1668_v22  ;;  %v1715_v63 = vld [vmem:[%s1893_s27 + $0x98] ss:$36 sps:$4 sm:$0xff]   ;;  %v1719_v3 = vld [vmem:[%s2084_s1 + $0x190] sm:$0xff]   ;;  %v1723_v7 = vld [vmem:[%s2084_s1 + $0x188] sm:$0xff]  }
  0x23   : > { %1489 = vmatpush3.bf16.msra.mxu1 %v1669_v23  ;;  %1456 = vmatprep.subr.bf16.mxu0 %v1670_v24  ;;  %v1724_v8 = vld [vmem:[%s2084_s1 + $0x140] sm:$0xff]   ;;  %v1728_v12 = vld [vmem:[%s1893_s27 + $0x10] ss:$36 sps:$4 sm:$0xff]   ;;  %v1731_v15 = vld [vmem:[%s1893_s27 + $0x18] ss:$36 sps:$4 sm:$0xff]  }
  0x24   : > { %1490 = vmatprep.subr.bf16.mxu1 %v1671_v25  ;;  %v1725_v9 = vld [vmem:[%s2084_s1 + $0x1c0] sm:$0xff]   ;;  %v1730_v13 = vld [vmem:[%s1893_s27 + $0x14] ss:$36 sps:$4 sm:$0xff]   ;;  %v1741_v22 = vld [vmem:[%s2084_s1 + $0x228] sm:$0xff]  }
  0x25   : > { %v1726_v10 = vld [vmem:[%s2084_s1 + $0x100] sm:$0xff]   ;;  %v1734_v17 = vld [vmem:[%s2084_s1 + $0x238] sm:$0xff]   ;;  %v1735_v18 = vld [vmem:[%s2084_s1 + $0x230] sm:$0xff]  }
  0x26   : > { %1457 = vmatpush3.bf16.msra.mxu0 %v1672_v26  ;;  %v1727_v11 = vld [vmem:[%s2084_s1 + $0x180] sm:$0xff]   ;;  %v1738_v21 = vld [vmem:[%s1893_s27 + $0x58] ss:$36 sps:$4 sm:$0xff]   ;;  %v1747_v25 = vld [vmem:[%s1893_s27 + $0xac] ss:$36 sps:$4 sm:$0xff]  }
  0x27   : > { %1491 = vmatpush3.bf16.msra.mxu1 %v1673_v27  ;;  %1458 = vmatprep.subr.bf16.mxu0 %v1674_v28  ;;  %v1733_v16 = vld [vmem:[%s1893_s27 + $0x1c] ss:$36 sps:$4 sm:$0xff]   ;;  %v1739_v20 = vld [vmem:[%s1893_s27 + $0x64] ss:$36 sps:$4 sm:$0xff]   ;;  %v1756_v35 = vld [vmem:[%s1893_s27 + $0xb0] ss:$36 sps:$4 sm:$0xff]  }
  0x28   : > { %1492 = vmatprep.subr.bf16.mxu1 %v1675_v29  ;;  %v1736_v19 = vld [vmem:[%s1893_s27 + $0x5c] ss:$36 sps:$4 sm:$0xff]   ;;  %v1744_v24 = vld [vmem:[%s1893_s27 + $0xa4] ss:$36 sps:$4 sm:$0xff]  }
  0x29   : > { %v1742_v23 = vld [vmem:[%s1893_s27 + $0x60] ss:$36 sps:$4 sm:$0xff]   ;;  %v1749_v28 = vld [vmem:[%s2084_s1 + $0x218] sm:$0xff]   ;;  %v1750_v29 = vld [vmem:[%s1893_s27 + $0xa8] ss:$36 sps:$4 sm:$0xff]  }
  0x2a   : > { %1459 = vmatpush3.bf16.msra.mxu0 %v1676_v30  ;;  %v1743_v26 = vld [vmem:[%s2084_s1 + $0x220] sm:$0xff]   ;;  %v1751_v30 = vld [vmem:[%s2084_s1 + $0x210] sm:$0xff]  }
  0x2b   : > { %1493 = vmatpush3.bf16.msra.mxu1 %v1677_v31  ;;  %1512 = vmatprep.subr.bf16.mxu0 %v1684_v36  ;;  %v1746_v27 = vld [vmem:[%s1893_s27 + $0xa0] ss:$36 sps:$4 sm:$0xff]   ;;  %v1752_v31 = vld [vmem:[%s2084_s1 + $0x208] sm:$0xff]  }
  0x2c   : > { %1546 = vmatprep.subr.bf16.mxu1 %v1685_v37  ;;  %v1754_v33 = vld [vmem:[%s1893_s27 + $0x20] ss:$36 sps:$4 sm:$0xff]  }
  0x2d   : > { %962 = vmatmul.mubr.bf16.vlgmr.msra.gmra.mxu0 %v1678_v32  ;;  %v1753_v32 = vld [vmem:[%s2084_s1 + $0x200] sm:$0xff]  }
  0x2e   : > { %1019 = vmatmul.mubr.bf16.vlgmr.msra.gmra.mxu1 %v1681_v34  ;;  %1513 = vmatpush3.bf16.msra.mxu0 %v1686_v38  ;;  %v1755_v34 = vld [vmem:[%s1893_s27 + $0x68] ss:$36 sps:$4 sm:$0xff]  }
  0x2f   : > { %1547 = vmatpush3.bf16.msra.mxu1 %v1687_v39  ;;  %1514 = vmatprep.subr.bf16.mxu0 %v1688_v40 }
  0x30   : > { %1548 = vmatprep.subr.bf16.mxu1 %v1689_v41  ;;  %969 = vmatprep.mubr.bf16.mxu0 %v1692_v44 }
  0x31   : > { %1026 = vmatprep.mubr.bf16.mxu1 %v1699_v50 }
  0x32   : > { %1515 = vmatpush3.bf16.msra.mxu0 %v1690_v42 }
  0x33   : > { %1549 = vmatpush3.bf16.msra.mxu1 %v1691_v43  ;;  %1516 = vmatprep.subr.bf16.mxu0 %v1694_v45 }
  0x34   : > { %1550 = vmatprep.subr.bf16.mxu1 %v1695_v46 }
  0x35   : > { %970 = vmatmul.mubr.bf16.gmra.mxu0 %v1696_v47 }
  0x36   : > { %1517 = vmatpush3.bf16.msra.mxu0 %v1697_v48  ;;  %1027 = vmatmul.mubr.bf16.gmra.mxu1 %v1701_v51 }
  0x37   : > { %1551 = vmatpush3.bf16.msra.mxu1 %v1698_v49  ;;  %1518 = vmatprep.subr.bf16.mxu0 %v1702_v52 }
  0x38   : > { %1552 = vmatprep.subr.bf16.mxu1 %v1703_v53  ;;  %977 = vmatprep.mubr.bf16.mxu0 %v1706_v56 }
  0x39   : > { %1034 = vmatprep.mubr.bf16.mxu1 %v1713_v62 }
  0x3a   : > { %1519 = vmatpush3.bf16.msra.mxu0 %v1704_v54 }
  0x3b   : > { %1553 = vmatpush3.bf16.msra.mxu1 %v1705_v55  ;;  %1520 = vmatprep.subr.bf16.mxu0 %v1708_v57 }
  0x3c   : > { %1554 = vmatprep.subr.bf16.mxu1 %v1709_v58 }
  0x3d   : > { %978 = vmatmul.mubr.bf16.gmra.mxu0 %v1710_v59 }
  0x3e   : > { %1521 = vmatpush3.bf16.msra.mxu0 %v1711_v60  ;;  %1035 = vmatmul.mubr.bf16.gmra.mxu1 %v1715_v63 }
  0x3f   : > { %1555 = vmatpush3.bf16.msra.mxu1 %v1712_v61  ;;  %1522 = vmatprep.subr.bf16.mxu0 %v1716_v0 }
  0x40   : > { %1556 = vmatprep.subr.bf16.mxu1 %v1717_v1  ;;  %1075 = vmatprep.mubr.bf16.mxu0 %v1730_v13 }
  0x41   : > { %1132 = vmatprep.mubr.bf16.mxu1 %v1733_v16 }
  0x42   : > { %1523 = vmatpush3.bf16.msra.mxu0 %v1718_v2 }
  0x43   : > { %1557 = vmatpush3.bf16.msra.mxu1 %v1719_v3  ;;  %1524 = vmatprep.subr.bf16.mxu0 %v1720_v4 }
  0x44   : > { %1558 = vmatprep.subr.bf16.mxu1 %v1721_v5 }
  0x46   : > { %1525 = vmatpush3.bf16.msra.mxu0 %v1722_v6 }
  0x47   : > { %1559 = vmatpush3.bf16.msra.mxu1 %v1723_v7  ;;  %1526 = vmatprep.subr.bf16.mxu0 %v1724_v8 }
  0x48   : > { %1560 = vmatprep.subr.bf16.mxu1 %v1725_v9 }
  0x4a   : > { %1527 = vmatpush3.bf16.msra.mxu0 %v1726_v10 }
  0x4b   : > { %1561 = vmatpush3.bf16.msra.mxu1 %v1727_v11  ;;  %1591 = vmatprep.subr.bf16.mxu0 %v1765_v14 }
  0x4c   : > { %1619 = vmatprep.subr.bf16.mxu1 %v1765_v14 }
  0x4d   : > { %1076 = vmatmul.mubr.bf16.vlgmr.msra.gmra.mxu0 %v1728_v12 }
  0x4e   : > { %1133 = vmatmul.mubr.bf16.vlgmr.msra.gmra.mxu1 %v1731_v15  ;;  %1592 = vmatpush3.bf16.msra.mxu0 %v1734_v17  ;;  %v1313_v15 = vld [vmem:[%s2085_s2] ss:$0 sm:$0xff] }
  0x4f   : > { %1627 = vmatpush3.bf16.msra.mxu1 %v1734_v17  ;;  %1593 = vmatprep.subr.bf16.mxu0 %v1765_v14 }
  0x50   : > { %1620 = vmatprep.subr.bf16.mxu1 %v1765_v14  ;;  %1083 = vmatprep.mubr.bf16.mxu0 %v1736_v19 }
  0x51   : > { %1140 = vmatprep.mubr.bf16.mxu1 %v1739_v20 }
  0x52   : > { %1594 = vmatpush3.bf16.msra.mxu0 %v1735_v18 }
  0x53   : > { %1628 = vmatpush3.bf16.msra.mxu1 %v1735_v18  ;;  %1595 = vmatprep.subr.bf16.mxu0 %v1765_v14 }
  0x54   : > { %1621 = vmatprep.subr.bf16.mxu1 %v1765_v14 }
  0x55   : > { %1084 = vmatmul.mubr.bf16.gmra.mxu0 %v1738_v21 }
  0x56   : > { %1596 = vmatpush3.bf16.msra.mxu0 %v1741_v22  ;;  %1141 = vmatmul.mubr.bf16.gmra.mxu1 %v1742_v23 }
  0x57   : > { %1629 = vmatpush3.bf16.msra.mxu1 %v1741_v22  ;;  %1597 = vmatprep.subr.bf16.mxu0 %v1765_v14 }
  0x58   : > { %1622 = vmatprep.subr.bf16.mxu1 %v1765_v14  ;;  %1091 = vmatprep.mubr.bf16.mxu0 %v1744_v24 }
  0x59   : > { %1148 = vmatprep.mubr.bf16.mxu1 %v1747_v25 }
  0x5a   : > { %1598 = vmatpush3.bf16.msra.mxu0 %v1743_v26 }
  0x5b   : > { %1630 = vmatpush3.bf16.msra.mxu1 %v1743_v26  ;;  %1599 = vmatprep.subr.bf16.mxu0 %v1765_v14 }
  0x5c   : > { %1623 = vmatprep.subr.bf16.mxu1 %v1765_v14 }
  0x5d   : > { %1092 = vmatmul.mubr.bf16.gmra.mxu0 %v1746_v27 }
  0x5e   : > { %1600 = vmatpush3.bf16.msra.mxu0 %v1749_v28  ;;  %1149 = vmatmul.mubr.bf16.gmra.mxu1 %v1750_v29 }
  0x5f   : > { %1631 = vmatpush3.bf16.msra.mxu1 %v1749_v28  ;;  %1601 = vmatprep.subr.bf16.mxu0 %v1765_v14 }
  0x60   : > { %1624 = vmatprep.subr.bf16.mxu1 %v1765_v14  ;;  %1607 = vmatprep.mubr.msk.bf16.mxu0 %vm1766_vm0, %v1765_v14 }
  0x61   : > { %1611 = vmatprep.mubr.msk.bf16.mxu1 %vm1766_vm0, %v1765_v14 }
  0x62   : > { %1602 = vmatpush3.bf16.msra.mxu0 %v1751_v30 }
  0x63   : > { %1632 = vmatpush3.bf16.msra.mxu1 %v1751_v30  ;;  %1603 = vmatprep.subr.bf16.mxu0 %v1765_v14 }
  0x64   : > { %1625 = vmatprep.subr.bf16.mxu1 %v1765_v14 }
  0x66   : > { %1604 = vmatpush3.bf16.msra.mxu0 %v1752_v31 }
  0x67   : > { %1633 = vmatpush3.bf16.msra.mxu1 %v1752_v31  ;;  %1605 = vmatprep.subr.bf16.mxu0 %v1765_v14 }
  0x68   : > { %1626 = vmatprep.subr.bf16.mxu1 %v1765_v14 }
  0x6a   : > { %1606 = vmatpush3.bf16.msra.mxu0 %v1753_v32 }
  0x6b   : > { %1634 = vmatpush3.bf16.msra.mxu1 %v1753_v32 }
  0x6d   : > { %1608 = vmatmul.mubr.bf16.vlgmr.msra.gmra.mxu0 %v1754_v33 }
  0x6e   : > { %1612 = vmatmul.mubr.bf16.vlgmr.msra.gmra.mxu1 %v1755_v34 }
  0x6f   : > { %1615 = vmatprep.mubr.msk.bf16.mxu1 %vm1766_vm0, %v1765_v14 }
  0x76   : > { %1616 = vmatmul.mubr.bf16.gmra.mxu1 %v1756_v35 }
  0xed   : > { %v1460_v36 = vpop.f32.mrf.mxu0 }
  0xee   : > { %v1494_v37 = vpop.f32.mrf.mxu1 }
  0xef   : > { %v1461_v38 = vpop.f32.mrf.mxu0 }
  0xf0   : > { %v1495_v40 = vpop.f32.mrf.mxu1  ;;  %v1462_v13 = vadd.f32 %v1461_v38, %v1460_v36 }
  0xf1   : > { %v1463_v39 = vpop.f32.mrf.mxu0  ;;  %v1496_v24 = vadd.f32 %v1495_v40, %v1494_v37 }
  0xf2   : > { %v1497_v42 = vpop.f32.mrf.mxu1  ;;  %v964_v20 = vadd.f32 %v1462_v13, %v1313_v15 }
  0xf3   : > { %v1464_v41 = vpop.f32.mrf.mxu0 }
  0xf4   : > { %v1498_v44 = vpop.f32.mrf.mxu1  ;;  %v1465_v17 = vadd.f32 %v1464_v41, %v1463_v39  ;;  %v1021_v31 = vadd.f32 %v1496_v24, %v964_v20 }
  0xf5   : > { %v1466_v43 = vpop.f32.mrf.mxu0  ;;  %v1499_v32 = vadd.f32 %v1498_v44, %v1497_v42 }
  0xf6   : > { %v1500_v46 = vpop.f32.mrf.mxu1  ;;  %v967_v25 = vadd.f32 %v1465_v17, %v1313_v15 }
  0xf7   : > { %v1467_v45 = vpop.f32.mrf.mxu0 }
  0xf8   : > { %v1501_v47 = vpop.f32.mrf.mxu1  ;;  %v1468_v16 = vadd.f32 %v1467_v45, %v1466_v43  ;;  %v1024_v39 = vadd.f32 %v1499_v32, %v967_v25 }
  0xf9   : > { %v1469_v48 = vpop.f32.mrf.mxu0  ;;  %v1502_v23 = vadd.f32 %v1501_v47, %v1500_v46 }
  0xfa   : > { %v1503_v49 = vpop.f32.mrf.mxu1  ;;  %v972_v22 = vadd.f32 %v1468_v16, %v1313_v15 }
  0xfb   : > { %v1470_v50 = vpop.f32.mrf.mxu0 }
  0xfc   : > { %v1504_v51 = vpop.f32.mrf.mxu1  ;;  %v1471_v18 = vadd.f32 %v1470_v50, %v1469_v48  ;;  %v1029_v35 = vadd.f32 %v1502_v23, %v972_v22 }
  0xfd   : > { %v1472_v52 = vpop.f32.mrf.mxu0  ;;  %v1505_v28 = vadd.f32 %v1504_v51, %v1503_v49 }
  0xfe   : > { %v1506_v53 = vpop.f32.mrf.mxu1  ;;  %v975_v27 = vadd.f32 %v1471_v18, %v1313_v15 }
  0xff   : > { %v1473_v54 = vpop.f32.mrf.mxu0 }
 0x100   : > { %v1507_v55 = vpop.f32.mrf.mxu1  ;;  %v1474_v36 = vadd.f32 %v1473_v54, %v1472_v52  ;;  %v1032_v43 = vadd.f32 %v1505_v28, %v975_v27 }
 0x101   : > { %v1475_v56 = vpop.f32.mrf.mxu0  ;;  %v1508_v51 = vadd.f32 %v1507_v55, %v1506_v53 }
 0x102   : > { %v2070_v57 = vpop.f32.mrf.mxu1  ;;  %v980_v49 = vadd.f32 %v1474_v36, %v1313_v15 }
 0x103   : > { %v1476_v58 = vpop.f32.mrf.mxu0 }
 0x104   : > { %v1510_v59 = vpop.f32.mrf.mxu1  ;;  %v1477_v45 = vadd.f32 %v1476_v58, %v1475_v56 }
 0x106   : > { %v983_v54 = vadd.f32 %v1477_v45, %v1313_v15 }
 0x10d   : > { %v1528_v60 = vpop.f32.mrf.mxu0 }
 0x10e   : > { %v1562_v61 = vpop.f32.mrf.mxu1 }
 0x10f   : > { %v1529_v62 = vpop.f32.mrf.mxu0 }
 0x110   : > { %v1563_v63 = vpop.f32.mrf.mxu1  ;;  %v1530_v26 = vadd.f32 %v1529_v62, %v1528_v60 }
 0x111   : > { %v1531_v0 = vpop.f32.mrf.mxu0  ;;  %v1564_v40 = vadd.f32 %v1563_v63, %v1562_v61  ;;  %v1037_v63 = vadd.f32 %v1508_v51, %v980_v49 }
 0x112   : > { %v1565_v1 = vpop.f32.mrf.mxu1  ;;  %v1078_v41 = vadd.f32 %v1530_v26, %v1021_v31 }
 0x113   : > { %v1532_v2 = vpop.f32.mrf.mxu0 }
 0x114   : > { %v1566_v3 = vpop.f32.mrf.mxu1  ;;  %v1533_v33 = vadd.f32 %v1532_v2, %v1531_v0  ;;  %v1135_v0 = vadd.f32 %v1564_v40, %v1078_v41  ;;  %v1511_v2 = vadd.f32 %v1510_v59, %v2070_v57 }
 0x115   : > { %v1534_v4 = vpop.f32.mrf.mxu0  ;;  %v1567_v44 = vadd.f32 %v1566_v3, %v1565_v1 }
 0x116   : > { %v1568_v5 = vpop.f32.mrf.mxu1  ;;  %v1081_v47 = vadd.f32 %v1533_v33, %v1024_v39  ;;  %v1040_v3 = vadd.f32 %v1511_v2, %v983_v54 }
 0x117   : > { %v1535_v6 = vpop.f32.mrf.mxu0 }
 0x118   : > { %v1569_v7 = vpop.f32.mrf.mxu1  ;;  %v1536_v29 = vadd.f32 %v1535_v6, %v1534_v4  ;;  %v1138_v61 = vadd.f32 %v1567_v44, %v1081_v47 }
 0x119   : > { %v1537_v8 = vpop.f32.mrf.mxu0  ;;  %v1570_v46 = vadd.f32 %v1569_v7, %v1568_v5 }
 0x11a   : > { %v1571_v9 = vpop.f32.mrf.mxu1  ;;  %v1086_v48 = vadd.f32 %v1536_v29, %v1029_v35 }
 0x11b   : > { %v1538_v10 = vpop.f32.mrf.mxu0 }
 0x11c   : > { %v1572_v11 = vpop.f32.mrf.mxu1  ;;  %v1539_v38 = vadd.f32 %v1538_v10, %v1537_v8  ;;  %v1143_v56 = vadd.f32 %v1570_v46, %v1086_v48 }
 0x11d   : > { %v1540_v12 = vpop.f32.mrf.mxu0  ;;  %v1573_v62 = vadd.f32 %v1572_v11, %v1571_v9 }
 0x11e   : > { %v1574_v14 = vpop.f32.mrf.mxu1  ;;  %v1089_v60 = vadd.f32 %v1539_v38, %v1032_v43 }
 0x11f   : > { %v1541_v19 = vpop.f32.mrf.mxu0 }
 0x120   : > { %v1575_v21 = vpop.f32.mrf.mxu1  ;;  %v1542_v4 = vadd.f32 %v1541_v19, %v1540_v12  ;;  %v1146_v55 = vadd.f32 %v1573_v62, %v1089_v60 }
 0x121   : > { %v1543_v30 = vpop.f32.mrf.mxu0  ;;  %v1576_v11 = vadd.f32 %v1575_v21, %v1574_v14 }
 0x122   : > { %v1577_v34 = vpop.f32.mrf.mxu1  ;;  %v1094_v10 = vadd.f32 %v1542_v4, %v1037_v63 }
 0x123   : > { %v1544_v37 = vpop.f32.mrf.mxu0 }
 0x124   : > { %v1578_v50 = vpop.f32.mrf.mxu1  ;;  %v1545_v7 = vadd.f32 %v1544_v37, %v1543_v30  ;;  %v1151_v24 = vadd.f32 %v1576_v11, %v1094_v10 }
 0x125   : > { %v1579_v17 = vadd.f32 %v1578_v50, %v1577_v34 }
 0x126   : > { %v1097_v16 = vadd.f32 %v1545_v7, %v1040_v3 }
 0x128   : > { %v1154_v21 = vadd.f32 %v1579_v17, %v1097_v16 }
 0x12d   : > { %v1191_v42 = vpop.f32.mrf.mxu0 }
 0x12e   : > { %v1199_v52 = vpop.f32.mrf.mxu1  ;;  %v1192_v5 = vadd.f32 %v1191_v42, %v1135_v0 }
 0x12f   : > { %v1609_v58 = vpop.f32.mrf.mxu0  ;;  %v1200_v8 = vadd.f32 %v1199_v52, %v1143_v56 }
 0x130   : > { %v1613_v6 = vpop.f32.mrf.mxu1  ;;  %v1214_v57 = vmax.f32 %v1192_v5, 0.0 }
 0x131   : > { %v1194_v53 = vpop.f32.mrf.mxu0  ;;  %v1216_v18 = vmax.f32 %v1200_v8, 0.0 }
 0x132   : > { %v1195_v9 = vadd.f32 %v1194_v53, %v1138_v61  ;;  %v1202_v1 = vpop.f32.mrf.mxu1 }
 0x133   : > { %v1203_v13 = vadd.f32 %v1202_v1, %v1146_v55  ;;  %v1610_v15 = vpop.f32.mrf.mxu0 }
 0x134   : > { %v1215_v59 = vmax.f32 %v1195_v9, 0.0  ;;  %v1614_v12 = vpop.f32.mrf.mxu1 }
 0x135   : > { %v1217_v19 = vmax.f32 %v1203_v13, 0.0 }
 0x136   : > { %v1430_v20 = vpack.c.bf16 %v1215_v59, %v1214_v57  ;;  %v1207_v22 = vpop.f32.mrf.mxu1 }
 0x137   : > { %v1435_v23 = vpack.c.bf16 %v1217_v19, %v1216_v18  ;;  %v1208_v14 = vadd.f32 %v1207_v22, %v1151_v24 }
 0x138   : > { %1431 = vst [vmem:[%s175_s20] sm:$0xff] %v1430_v20   ;;  %v1617_v25 = vpop.f32.mrf.mxu1 }
 0x139   : > { %1442 = vst [vmem:[%s175_s20 + $0x8] sm:$0xff] %v1435_v23   ;;  %v1218_v29 = vmax.f32 %v1208_v14, 0.0 }
 0x13a   : > { %v1210_v26 = vpop.f32.mrf.mxu1 }
 0x13b   : > { %v1211_v27 = vadd.f32 %v1210_v26, %v1154_v21 }
 0x13c   : > { %v1618_v28 = vpop.f32.mrf.mxu1 }
 0x13d   : > { %v1219_v30 = vmax.f32 %v1211_v27, 0.0 }
 0x13f   : > { %v1440_v31 = vpack.c.bf16 %v1219_v30, %v1218_v29 }
 0x141   : > { %1443 = vst [vmem:[%s175_s20 + $0x10] sm:$0xff] %v1440_v31  }
 0x142 PF: > { %s13_s12 = sadd.s32 1, %s1763_s12  }
 0x143   : > { %p10_p4 = scmp.ge.s32.totalorder %s13_s12, 4  }
 0x145   :  { %12 = sbr.rel (!%p10_p4) target bundleno = 1 (0x1), region = 62 }

// kernel: autopilot_forward.13
= control target key start
LH: loop header
LB: loop body
LE: loop exit
PB: predicated region body
PF: predicated region fallthrough
CT: control target
= control target key end

     0   :  { %s2146_s24 = smov 0   ;;  %s2335_s0 = inlined_call_operand.vmem [shape: bf16[8,6144], index: 0, kind: input, shape index: {}]   ;;  %s2336_s1 = inlined_call_operand.vmem [shape: bf16[6144,128], index: 1, kind: input, shape index: {}]   ;;  %s2337_s2 = inlined_call_operand.vmem [shape: f32[1,128], index: 2, kind: input, shape index: {}]   ;;  %s2338_s3 = inlined_call_operand.vmem [shape: bf16[128,128], index: 3, kind: input, shape index: {}]   ;;  %s2339_s4 = inlined_call_operand.vmem [shape: f32[1,128], index: 4, kind: input, shape index: {}]   ;;  %s2340_s5 = inlined_call_operand.vmem [shape: bf16[128,128], index: 5, kind: input, shape index: {}]   ;;  %s2341_s6 = inlined_call_operand.vmem [shape: f32[1,128], index: 6, kind: input, shape index: {}]   ;;  %s2342_s7 = inlined_call_operand.vmem [shape: f32[8,128], index: 7, kind: output, shape index: {}]  }
   0x1 LB: > { %s2152_s25 = sadd.s32 4294967295, %s2101_s24   ;;  %p1636_p0 = scmp.ge.s32.totalorder %s2101_s24, 1  ;;  %s2101_s24 = sphi %s2146_s24, %s17_s24  }
   0x2   : > { %p244_p1 = scmp.lt.s32.totalorder %s2101_s24, 5 }
   0x4   : > { %p245_p2 = pnand %p1636_p0, %p244_p1 }
   0x5   : > { %s276_s26 = smul.u32 (!%p245_p2), 12, %s2152_s25  ;;  %p1639_p5 = scmp.ne.s32.totalorder (!%p245_p2), %s2152_s25, 0 }
   0x6   : > { %248 = sbr.rel (%p245_p2) target bundleno = 754 (0x2f2), region = 48 }
   0x7   : > { %s282_s27 = smul.u32 (!%p245_p2), 192, %s2152_s25  ;;  %p277_p3 = scmp.lt.s32.totalorder (!%p245_p2), %s276_s26, 47 }
   0x9   : > { %p283_p4 = scmp.lt.s32.totalorder (!%p245_p2), %s282_s27, 767 }
   0xb   : > { %s2344_s26 = smov (!%p277_p3, %s276_s26), 47  ;;  %s2346_s27 = smov (!%p283_p4, %s282_s27), 767 }
   0xc   : > { %s1637_s28 = sshll.u32 %s2344_s26, 2  ;;  %s1638_s9 = sshll.u32 %s2346_s27, 2 }
   0xd   : > { %s2161_s8 = scalar_lea.vmem %s2335_s0, %s1637_s28  ;;  %s2166_s12 = scalar_lea.vmem %s2336_s1, %s1638_s9 }
   0xe   : > { %292 = sbr.rel (%p1639_p5) target bundleno = 21 (0x15), region = 52 }
  0x13   : > { %v2103_v0 = vmov 0.0  }
  0x14   : > { %293 = vst [vmem:[#allocation2] sm:$0xff] %v2103_v0 }
  0x15 PF: > { %v1971_v1 = vld [vmem:[%s2166_s12 + $0x78] sm:$0xff]   ;;  %v1975_v5 = vld [vmem:[%s2166_s12 + $0x70] sm:$0xff]   ;;  %v1979_v9 = vld [vmem:[%s2166_s12 + $0x68] sm:$0xff]   ;;  %p1748_p6 = scmp.ne.s32.totalorder %s2152_s25, 3 }
  0x16   : > { %v1972_v2 = vld [vmem:[%s2166_s12 + $0xf8] sm:$0xff]   ;;  %1770 = vmatprep.subr.bf16.mxu0 %v1971_v1  ;;  %v1976_v6 = vld [vmem:[%s2166_s12 + $0xf0] sm:$0xff]   ;;  %v1980_v10 = vld [vmem:[%s2166_s12 + $0xe8] sm:$0xff]  }
  0x17   : > { %v1973_v3 = vld [vmem:[%s2166_s12 + $0x38] sm:$0xff]   ;;  %1792 = vmatprep.subr.bf16.mxu1 %v1972_v2  ;;  %v1977_v7 = vld [vmem:[%s2166_s12 + $0x30] sm:$0xff]   ;;  %v1981_v11 = vld [vmem:[%s2166_s12 + $0x28] sm:$0xff]  }
  0x18   : > { %v1974_v4 = vld [vmem:[%s2166_s12 + $0xb8] sm:$0xff]   ;;  %1771 = vmatpush3.bf16.msra.mxu0 %v1973_v3  ;;  %v1978_v8 = vld [vmem:[%s2166_s12 + $0xb0] sm:$0xff]   ;;  %v1982_v12 = vld [vmem:[%s2166_s12 + $0xa8] sm:$0xff]  }
  0x19   : > { %1793 = vmatpush3.bf16.msra.mxu1 %v1974_v4  ;;  %1772 = vmatprep.subr.bf16.mxu0 %v1975_v5  ;;  %v1983_v13 = vld [vmem:[%s2166_s12 + $0x60] sm:$0xff]   ;;  %v1987_v17 = vld [vmem:[%s2166_s12 + $0x58] sm:$0xff]   ;;  %v1991_v21 = vld [vmem:[%s2166_s12 + $0x50] sm:$0xff]  }
  0x1a   : > { %1794 = vmatprep.subr.bf16.mxu1 %v1976_v6  ;;  %v1984_v14 = vld [vmem:[%s2166_s12 + $0xe0] sm:$0xff]   ;;  %v1988_v18 = vld [vmem:[%s2166_s12 + $0xd8] sm:$0xff]   ;;  %v1992_v22 = vld [vmem:[%s2166_s12 + $0xd0] sm:$0xff]  }
  0x1b   : > { %v1985_v15 = vld [vmem:[%s2166_s12 + $0x20] sm:$0xff]   ;;  %v1989_v19 = vld [vmem:[%s2166_s12 + $0x18] sm:$0xff]   ;;  %v1993_v23 = vld [vmem:[%s2166_s12 + $0x10] sm:$0xff]  }
  0x1c   : > { %1773 = vmatpush3.bf16.msra.mxu0 %v1977_v7  ;;  %v1986_v16 = vld [vmem:[%s2166_s12 + $0xa0] sm:$0xff]   ;;  %v1990_v20 = vld [vmem:[%s2166_s12 + $0x98] sm:$0xff]   ;;  %v1994_v24 = vld [vmem:[%s2166_s12 + $0x90] sm:$0xff]  }
  0x1d   : > { %1795 = vmatpush3.bf16.msra.mxu1 %v1978_v8  ;;  %1774 = vmatprep.subr.bf16.mxu0 %v1979_v9  ;;  %v1995_v25 = vld [vmem:[%s2166_s12 + $0x48] sm:$0xff]   ;;  %v1999_v29 = vld [vmem:[%s2166_s12 + $0x40] sm:$0xff]   ;;  %v2007_v39 = vld [vmem:[%s2166_s12 + $0x178] sm:$0xff]  }
  0x1e   : > { %1796 = vmatprep.subr.bf16.mxu1 %v1980_v10  ;;  %v1996_v26 = vld [vmem:[%s2166_s12 + $0xc8] sm:$0xff]   ;;  %v2000_v30 = vld [vmem:[%s2166_s12 + $0xc0] sm:$0xff]   ;;  %v2008_v40 = vld [vmem:[%s2166_s12 + $0x1f8] sm:$0xff]  }
  0x1f   : > { %v1997_v27 = vld [vmem:[%s2166_s12 + $0x8] sm:$0xff]   ;;  %v2001_v31 = vld [vmem:[%s2166_s12] sm:$0xff]   ;;  %v2009_v41 = vld [vmem:[%s2166_s12 + $0x138] sm:$0xff]  }
  0x20   : > { %1775 = vmatpush3.bf16.msra.mxu0 %v1981_v11  ;;  %v1998_v28 = vld [vmem:[%s2166_s12 + $0x88] sm:$0xff]   ;;  %v2002_v32 = vld [vmem:[%s2166_s12 + $0x80] sm:$0xff]   ;;  %v2010_v42 = vld [vmem:[%s2166_s12 + $0x1b8] sm:$0xff]  }
  0x21   : > { %1797 = vmatpush3.bf16.msra.mxu1 %v1982_v12  ;;  %1776 = vmatprep.subr.bf16.mxu0 %v1983_v13  ;;  %v295_v33 = vld [vmem:[%s2161_s8] sm:$0xff]  ;;  %v296_v34 = vld [vmem:[%s2161_s8 + $0x8] sm:$0xff]  ;;  %v2011_v43 = vld [vmem:[%s2166_s12 + $0x170] sm:$0xff]  }
  0x22   : > { %1798 = vmatprep.subr.bf16.mxu1 %v1984_v14  ;;  %v1640_v35 = vcombine.low %v295_v33, %v295_v33  ;;  %v1641_v36 = vcombine.high %v295_v33, %v295_v33  ;;  %v1642_v37 = vcombine.low %v296_v34, %v296_v34  ;;  %v1643_v38 = vcombine.high %v296_v34, %v296_v34  ;;  %v2012_v44 = vld [vmem:[%s2166_s12 + $0x1f0] sm:$0xff]   ;;  %v2015_v47 = vld [vmem:[%s2166_s12 + $0x168] sm:$0xff]   ;;  %v2019_v51 = vld [vmem:[%s2166_s12 + $0x160] sm:$0xff]  }
  0x23   : > { %v2013_v45 = vld [vmem:[%s2166_s12 + $0x130] sm:$0xff]   ;;  %v2016_v48 = vld [vmem:[%s2166_s12 + $0x1e8] sm:$0xff]   ;;  %v2020_v52 = vld [vmem:[%s2166_s12 + $0x1e0] sm:$0xff]  }
  0x24   : > { %1777 = vmatpush3.bf16.msra.mxu0 %v1985_v15  ;;  %1143 = vmatprep.mubr.bf16.mxu0 %v1641_v36  ;;  %v2014_v46 = vld [vmem:[%s2166_s12 + $0x1b0] sm:$0xff]   ;;  %v2017_v49 = vld [vmem:[%s2166_s12 + $0x128] sm:$0xff]   ;;  %v2021_v53 = vld [vmem:[%s2166_s12 + $0x120] sm:$0xff]  }
  0x25   : > { %1799 = vmatpush3.bf16.msra.mxu1 %v1986_v16  ;;  %1778 = vmatprep.subr.bf16.mxu0 %v1987_v17  ;;  %v2018_v50 = vld [vmem:[%s2166_s12 + $0x1a8] sm:$0xff]   ;;  %v2022_v54 = vld [vmem:[%s2166_s12 + $0x1a0] sm:$0xff]   ;;  %v2023_v55 = vld [vmem:[%s2166_s12 + $0x158] sm:$0xff]  }
  0x26   : > { %1800 = vmatprep.subr.bf16.mxu1 %v1988_v18  ;;  %1183 = vmatprep.mubr.bf16.mxu1 %v1643_v38  ;;  %v2024_v56 = vld [vmem:[%s2166_s12 + $0x1d8] sm:$0xff]   ;;  %v2027_v59 = vld [vmem:[%s2166_s12 + $0x150] sm:$0xff]   ;;  %v2031_v63 = vld [vmem:[%s2166_s12 + $0x148] sm:$0xff]  }
  0x27   : > { %v2025_v57 = vld [vmem:[%s2166_s12 + $0x118] sm:$0xff]   ;;  %v2028_v60 = vld [vmem:[%s2166_s12 + $0x1d0] sm:$0xff]   ;;  %v2032_v0 = vld [vmem:[%s2166_s12 + $0x1c8] sm:$0xff]  }
  0x28   : > { %1779 = vmatpush3.bf16.msra.mxu0 %v1989_v19  ;;  %v2026_v58 = vld [vmem:[%s2166_s12 + $0x198] sm:$0xff]   ;;  %v2029_v61 = vld [vmem:[%s2166_s12 + $0x110] sm:$0xff]   ;;  %v2033_v1 = vld [vmem:[%s2166_s12 + $0x108] sm:$0xff]  }
  0x29   : > { %1801 = vmatpush3.bf16.msra.mxu1 %v1990_v20  ;;  %1780 = vmatprep.subr.bf16.mxu0 %v1991_v21  ;;  %v2030_v62 = vld [vmem:[%s2166_s12 + $0x190] sm:$0xff]   ;;  %v2034_v2 = vld [vmem:[%s2166_s12 + $0x188] sm:$0xff]   ;;  %v2035_v3 = vld [vmem:[%s2166_s12 + $0x140] sm:$0xff]  }
  0x2a   : > { %1802 = vmatprep.subr.bf16.mxu1 %v1992_v22  ;;  %v2036_v4 = vld [vmem:[%s2166_s12 + $0x1c0] sm:$0xff]   ;;  %v297_v7 = vld [vmem:[%s2161_s8 + $0x10] sm:$0xff]  ;;  %v298_v10 = vld [vmem:[%s2161_s8 + $0x18] sm:$0xff] }
  0x2b   : > { %v2037_v5 = vld [vmem:[%s2166_s12 + $0x100] sm:$0xff]   ;;  %v1644_v8 = vcombine.low %v297_v7, %v297_v7  ;;  %v1645_v9 = vcombine.high %v297_v7, %v297_v7  ;;  %v1646_v11 = vcombine.low %v298_v10, %v298_v10  ;;  %v1647_v12 = vcombine.high %v298_v10, %v298_v10  ;;  %v2043_v13 = vld [vmem:[%s2166_s12 + $0x278] sm:$0xff]   ;;  %v2047_v17 = vld [vmem:[%s2166_s12 + $0x270] sm:$0xff]  }
  0x2c   : > { %1781 = vmatpush3.bf16.msra.mxu0 %v1993_v23  ;;  %v2038_v6 = vld [vmem:[%s2166_s12 + $0x180] sm:$0xff]   ;;  %v2044_v14 = vld [vmem:[%s2166_s12 + $0x2f8] sm:$0xff]   ;;  %v2048_v18 = vld [vmem:[%s2166_s12 + $0x2f0] sm:$0xff]  }
  0x2d   : > { %1803 = vmatpush3.bf16.msra.mxu1 %v1994_v24  ;;  %1782 = vmatprep.subr.bf16.mxu0 %v1995_v25  ;;  %v2045_v15 = vld [vmem:[%s2166_s12 + $0x238] sm:$0xff]   ;;  %v2049_v19 = vld [vmem:[%s2166_s12 + $0x230] sm:$0xff]   ;;  %v2051_v21 = vld [vmem:[%s2166_s12 + $0x268] sm:$0xff]  }
  0x2e   : > { %1804 = vmatprep.subr.bf16.mxu1 %v1996_v26  ;;  %v2046_v16 = vld [vmem:[%s2166_s12 + $0x2b8] sm:$0xff]   ;;  %v2050_v20 = vld [vmem:[%s2166_s12 + $0x2b0] sm:$0xff]   ;;  %v2052_v22 = vld [vmem:[%s2166_s12 + $0x2e8] sm:$0xff]  }
  0x2f   : > { %v2053_v23 = vld [vmem:[%s2166_s12 + $0x228] sm:$0xff]   ;;  %v2055_v25 = vld [vmem:[%s2166_s12 + $0x260] sm:$0xff]   ;;  %v2063_v33 = vld [vmem:[%s2166_s12 + $0x250] sm:$0xff]  }
  0x30   : > { %1783 = vmatpush3.bf16.msra.mxu0 %v1997_v27  ;;  %v2054_v24 = vld [vmem:[%s2166_s12 + $0x2a8] sm:$0xff]   ;;  %v2056_v26 = vld [vmem:[%s2166_s12 + $0x2e0] sm:$0xff]   ;;  %v2064_v34 = vld [vmem:[%s2166_s12 + $0x2d0] sm:$0xff]  }
  0x31   : > { %1805 = vmatpush3.bf16.msra.mxu1 %v1998_v28  ;;  %1784 = vmatprep.subr.bf16.mxu0 %v1999_v29  ;;  %v2057_v27 = vld [vmem:[%s2166_s12 + $0x220] sm:$0xff]   ;;  %v2059_v29 = vld [vmem:[%s2166_s12 + $0x258] sm:$0xff]   ;;  %v2066_v36 = vld [vmem:[%s2166_s12 + $0x290] sm:$0xff]  }
  0x32   : > { %1806 = vmatprep.subr.bf16.mxu1 %v2000_v30  ;;  %v2058_v28 = vld [vmem:[%s2166_s12 + $0x2a0] sm:$0xff]   ;;  %v2060_v30 = vld [vmem:[%s2166_s12 + $0x2d8] sm:$0xff]   ;;  %v2068_v38 = vld [vmem:[%s2166_s12 + $0x2c8] sm:$0xff]  }
  0x34   : > { %1785 = vmatpush3.bf16.msra.mxu0 %v2001_v31  ;;  %v2061_v31 = vld [vmem:[%s2166_s12 + $0x218] sm:$0xff]  }
  0x35   : > { %1807 = vmatpush3.bf16.msra.mxu1 %v2002_v32  ;;  %1814 = vmatprep.subr.bf16.mxu0 %v2007_v39  ;;  %v2062_v32 = vld [vmem:[%s2166_s12 + $0x298] sm:$0xff]   ;;  %v2069_v39 = vld [vmem:[%s2166_s12 + $0x208] sm:$0xff]  }
  0x36   : > { %1836 = vmatprep.subr.bf16.mxu1 %v2008_v40  ;;  %v2070_v40 = vld [vmem:[%s2166_s12 + $0x288] sm:$0xff]  }
  0x37   : > { %1144 = vmatmul.mubr.bf16.vlgmr.msra.gmra.mxu0 %v1640_v35  ;;  %v2065_v35 = vld [vmem:[%s2166_s12 + $0x210] sm:$0xff]  }
  0x38   : > { %1184 = vmatmul.mubr.bf16.vlgmr.msra.gmra.mxu1 %v1642_v37  ;;  %1815 = vmatpush3.bf16.msra.mxu0 %v2009_v41  ;;  %v2067_v37 = vld [vmem:[%s2166_s12 + $0x248] sm:$0xff]   ;;  %v2071_v41 = vld [vmem:[%s2166_s12 + $0x240] sm:$0xff]  }
  0x39   : > { %1837 = vmatpush3.bf16.msra.mxu1 %v2010_v42  ;;  %1816 = vmatprep.subr.bf16.mxu0 %v2011_v43  ;;  %v2072_v42 = vld [vmem:[%s2166_s12 + $0x2c0] sm:$0xff]  }
  0x3a   : > { %1838 = vmatprep.subr.bf16.mxu1 %v2012_v44  ;;  %1223 = vmatprep.mubr.bf16.mxu0 %v1645_v9  ;;  %v2073_v43 = vld [vmem:[%s2166_s12 + $0x200] sm:$0xff]  }
  0x3b   : > { %1263 = vmatprep.mubr.bf16.mxu1 %v1647_v12  ;;  %v2074_v44 = vld [vmem:[%s2166_s12 + $0x280] sm:$0xff]  }
  0x3c   : > { %1817 = vmatpush3.bf16.msra.mxu0 %v2013_v45  ;;  %v299_v45 = vld [vmem:[%s2161_s8 + $0x20] sm:$0xff] }
  0x3d   : > { %1839 = vmatpush3.bf16.msra.mxu1 %v2014_v46  ;;  %1818 = vmatprep.subr.bf16.mxu0 %v2015_v47  ;;  %v300_v46 = vld [vmem:[%s2161_s8 + $0x28] sm:$0xff]  ;;  %v1648_v47 = vcombine.low %v299_v45, %v299_v45 }
  0x3e   : > { %1840 = vmatprep.subr.bf16.mxu1 %v2016_v48  ;;  %v1649_v48 = vcombine.high %v299_v45, %v299_v45 }
  0x40   : > { %1819 = vmatpush3.bf16.msra.mxu0 %v2017_v49  ;;  %v1650_v49 = vcombine.low %v300_v46, %v300_v46 }
  0x41   : > { %1841 = vmatpush3.bf16.msra.mxu1 %v2018_v50  ;;  %1820 = vmatprep.subr.bf16.mxu0 %v2019_v51  ;;  %v1651_v50 = vcombine.high %v300_v46, %v300_v46 }
  0x42   : > { %1842 = vmatprep.subr.bf16.mxu1 %v2020_v52 }
  0x44   : > { %1821 = vmatpush3.bf16.msra.mxu0 %v2021_v53 }
  0x45   : > { %1843 = vmatpush3.bf16.msra.mxu1 %v2022_v54  ;;  %1822 = vmatprep.subr.bf16.mxu0 %v2023_v55 }
  0x46   : > { %1844 = vmatprep.subr.bf16.mxu1 %v2024_v56 }
  0x48   : > { %1823 = vmatpush3.bf16.msra.mxu0 %v2025_v57 }
  0x49   : > { %1845 = vmatpush3.bf16.msra.mxu1 %v2026_v58  ;;  %1824 = vmatprep.subr.bf16.mxu0 %v2027_v59 }
  0x4a   : > { %1846 = vmatprep.subr.bf16.mxu1 %v2028_v60 }
  0x4c   : > { %1825 = vmatpush3.bf16.msra.mxu0 %v2029_v61 }
  0x4d   : > { %1847 = vmatpush3.bf16.msra.mxu1 %v2030_v62  ;;  %1826 = vmatprep.subr.bf16.mxu0 %v2031_v63 }
  0x4e   : > { %1848 = vmatprep.subr.bf16.mxu1 %v2032_v0 }
  0x50   : > { %1827 = vmatpush3.bf16.msra.mxu0 %v2033_v1 }
  0x51   : > { %1849 = vmatpush3.bf16.msra.mxu1 %v2034_v2  ;;  %1828 = vmatprep.subr.bf16.mxu0 %v2035_v3 }
  0x52   : > { %1850 = vmatprep.subr.bf16.mxu1 %v2036_v4 }
  0x54   : > { %1829 = vmatpush3.bf16.msra.mxu0 %v2037_v5 }
  0x55   : > { %1851 = vmatpush3.bf16.msra.mxu1 %v2038_v6  ;;  %1858 = vmatprep.subr.bf16.mxu0 %v2043_v13 }
  0x56   : > { %1880 = vmatprep.subr.bf16.mxu1 %v2044_v14 }
  0x57   : > { %1224 = vmatmul.mubr.bf16.vlgmr.msra.gmra.mxu0 %v1644_v8 }
  0x58   : > { %1264 = vmatmul.mubr.bf16.vlgmr.msra.gmra.mxu1 %v1646_v11  ;;  %1859 = vmatpush3.bf16.msra.mxu0 %v2045_v15 }
  0x59   : > { %1881 = vmatpush3.bf16.msra.mxu1 %v2046_v16  ;;  %1860 = vmatprep.subr.bf16.mxu0 %v2047_v17 }
  0x5a   : > { %1882 = vmatprep.subr.bf16.mxu1 %v2048_v18  ;;  %1303 = vmatprep.mubr.bf16.mxu0 %v1649_v48 }
  0x5b   : > { %1343 = vmatprep.mubr.bf16.mxu1 %v1651_v50 }
  0x5c   : > { %1861 = vmatpush3.bf16.msra.mxu0 %v2049_v19  ;;  %v294_v19 = vld [vmem:[#allocation2] sm:$0xff] }
  0x5d   : > { %1883 = vmatpush3.bf16.msra.mxu1 %v2050_v20  ;;  %1862 = vmatprep.subr.bf16.mxu0 %v2051_v21 }
  0x5e   : > { %1884 = vmatprep.subr.bf16.mxu1 %v2052_v22 }
  0x60   : > { %1863 = vmatpush3.bf16.msra.mxu0 %v2053_v23 }
  0x61   : > { %1885 = vmatpush3.bf16.msra.mxu1 %v2054_v24  ;;  %1864 = vmatprep.subr.bf16.mxu0 %v2055_v25 }
  0x62   : > { %1886 = vmatprep.subr.bf16.mxu1 %v2056_v26 }
  0x64   : > { %1865 = vmatpush3.bf16.msra.mxu0 %v2057_v27 }
  0x65   : > { %1887 = vmatpush3.bf16.msra.mxu1 %v2058_v28  ;;  %1866 = vmatprep.subr.bf16.mxu0 %v2059_v29 }
  0x66   : > { %1888 = vmatprep.subr.bf16.mxu1 %v2060_v30 }
  0x68   : > { %1867 = vmatpush3.bf16.msra.mxu0 %v2061_v31 }
  0x69   : > { %1889 = vmatpush3.bf16.msra.mxu1 %v2062_v32  ;;  %1868 = vmatprep.subr.bf16.mxu0 %v2063_v33 }
  0x6a   : > { %1890 = vmatprep.subr.bf16.mxu1 %v2064_v34 }
  0x6c   : > { %1869 = vmatpush3.bf16.msra.mxu0 %v2065_v35 }
  0x6d   : > { %1891 = vmatpush3.bf16.msra.mxu1 %v2066_v36  ;;  %1870 = vmatprep.subr.bf16.mxu0 %v2067_v37 }
  0x6e   : > { %1892 = vmatprep.subr.bf16.mxu1 %v2068_v38 }
  0x70   : > { %1871 = vmatpush3.bf16.msra.mxu0 %v2069_v39 }
  0x71   : > { %1893 = vmatpush3.bf16.msra.mxu1 %v2070_v40  ;;  %1872 = vmatprep.subr.bf16.mxu0 %v2071_v41 }
  0x72   : > { %1894 = vmatprep.subr.bf16.mxu1 %v2072_v42 }
  0x74   : > { %1873 = vmatpush3.bf16.msra.mxu0 %v2073_v43 }
  0x75   : > { %1895 = vmatpush3.bf16.msra.mxu1 %v2074_v44 }
  0x77   : > { %1304 = vmatmul.mubr.bf16.vlgmr.msra.gmra.mxu0 %v1648_v47 }
  0x78   : > { %1344 = vmatmul.mubr.bf16.vlgmr.msra.gmra.mxu1 %v1650_v49 }
  0xf7   : > { %v1786_v51 = vpop.f32.mrf.mxu0 }
  0xf8   : > { %v1808_v52 = vpop.f32.mrf.mxu1 }
  0xf9   : > { %v1787_v53 = vpop.f32.mrf.mxu0 }
  0xfa   : > { %v1809_v54 = vpop.f32.mrf.mxu1  ;;  %v1788_v3 = vadd.f32 %v1787_v53, %v1786_v51 }
  0xfb   : > { %v1789_v55 = vpop.f32.mrf.mxu0  ;;  %v1810_v4 = vadd.f32 %v1809_v54, %v1808_v52 }
  0xfc   : > { %v1811_v56 = vpop.f32.mrf.mxu1 }
  0xfd   : > { %v1790_v57 = vpop.f32.mrf.mxu0  ;;  %v1186_v6 = vadd.f32 %v1810_v4, %v1788_v3 }
  0xfe   : > { %v1812_v58 = vpop.f32.mrf.mxu1 }
 0x117   : > { %v1830_v59 = vpop.f32.mrf.mxu0 }
 0x118   : > { %v1852_v60 = vpop.f32.mrf.mxu1 }
 0x119   : > { %v1831_v61 = vpop.f32.mrf.mxu0 }
 0x11a   : > { %v1853_v62 = vpop.f32.mrf.mxu1  ;;  %v1832_v5 = vadd.f32 %v1831_v61, %v1830_v59 }
 0x11b   : > { %v1833_v63 = vpop.f32.mrf.mxu0  ;;  %v1854_v8 = vadd.f32 %v1853_v62, %v1852_v60 }
 0x11c   : > { %v1855_v0 = vpop.f32.mrf.mxu1  ;;  %v1226_v7 = vadd.f32 %v1832_v5, %v1186_v6 }
 0x11d   : > { %v1834_v1 = vpop.f32.mrf.mxu0 }
 0x11e   : > { %v1856_v2 = vpop.f32.mrf.mxu1  ;;  %v1266_v12 = vadd.f32 %v1854_v8, %v1226_v7 }
 0x137   : > { %v1874_v9 = vpop.f32.mrf.mxu0 }
 0x138   : > { %v1896_v10 = vpop.f32.mrf.mxu1 }
 0x139   : > { %v1875_v11 = vpop.f32.mrf.mxu0 }
 0x13a   : > { %v1876_v13 = vadd.f32 %v1875_v11, %v1874_v9  ;;  %v1897_v14 = vpop.f32.mrf.mxu1 }
 0x13b   : > { %v1877_v15 = vpop.f32.mrf.mxu0  ;;  %v1898_v17 = vadd.f32 %v1897_v14, %v1896_v10 }
 0x13c   : > { %v1306_v16 = vadd.f32 %v1876_v13, %v1266_v12  ;;  %v1899_v18 = vpop.f32.mrf.mxu1 }
 0x13d   : > { %v1878_v20 = vpop.f32.mrf.mxu0 }
 0x13e   : > { %v1346_v21 = vadd.f32 %v1898_v17, %v1306_v16  ;;  %v1900_v22 = vpop.f32.mrf.mxu1  ;;  %1356 = sbr.rel (%p1748_p6) target bundleno = 754 (0x2f2), region = 56 }
 0x140   : > { %v1351_v23 = vadd.f32 %v1346_v21, %v294_v19 }
 0x142   : > { %1352 = vst [vmem:[#allocation2] sm:$0xff] %v1351_v23 }
 0x143   : > { %v2079_v24 = vld [vmem:[%s2338_s3 + $0x38] sm:$0xff]   ;;  %v2104_v25 = vmov 0.0   ;;  %v2080_v26 = vld [vmem:[%s2338_s3 + $0x30] sm:$0xff]   ;;  %vm2105_vm0 = vmmov 0   ;;  %v2081_v27 = vld [vmem:[%s2338_s3 + $0x28] sm:$0xff]  }
 0x144   : > { %1920 = vmatprep.subr.bf16.mxu0 %v2104_v25  ;;  %1940 = vmatprep.subr.bf16.mxu1 %v2104_v25  ;;  %v2087_v28 = vld [vmem:[%s2340_s5 + $0x38] sm:$0xff]   ;;  %v2082_v29 = vld [vmem:[%s2338_s3 + $0x20] sm:$0xff]   ;;  %v2088_v30 = vld [vmem:[%s2340_s5 + $0x30] sm:$0xff]  }
 0x145   : > { %1921 = vmatpush3.bf16.msra.mxu0 %v2079_v24  ;;  %1936 = vmatprep.mubr.msk.bf16.mxu0 %vm2105_vm0, %v2104_v25  ;;  %v2083_v31 = vld [vmem:[%s2338_s3 + $0x18] sm:$0xff]   ;;  %v2089_v32 = vld [vmem:[%s2340_s5 + $0x28] sm:$0xff]   ;;  %v2084_v33 = vld [vmem:[%s2338_s3 + $0x10] sm:$0xff]  }
 0x146   : > { %1922 = vmatprep.subr.bf16.mxu0 %v2104_v25  ;;  %1956 = vmatprep.mubr.msk.bf16.mxu1 %vm2105_vm0, %v2104_v25  ;;  %v1749_v35 = vld [vmem:[%s2337_s2] ss:$0 sm:$0xff]  ;;  %v2085_v38 = vld [vmem:[%s2338_s3 + $0x8] sm:$0xff]   ;;  %v2091_v39 = vld [vmem:[%s2340_s5 + $0x18] sm:$0xff]  }
 0x147   : > { %1941 = vmatpush3.bf16.msra.mxu1 %v2087_v28  ;;  %v2090_v36 = vld [vmem:[%s2340_s5 + $0x20] sm:$0xff]   ;;  %v2092_v42 = vld [vmem:[%s2340_s5 + $0x10] sm:$0xff]   ;;  %v2093_v44 = vld [vmem:[%s2340_s5 + $0x8] sm:$0xff]  }
 0x148   : > { %1942 = vmatprep.subr.bf16.mxu1 %v2104_v25  ;;  %v2086_v41 = vld [vmem:[%s2338_s3] sm:$0xff]  }
 0x149   : > { %1923 = vmatpush3.bf16.msra.mxu0 %v2080_v26  ;;  %v1357_v34 = vld [vmem:[#allocation2] sm:$0xff] }
 0x14a   : > { %1924 = vmatprep.subr.bf16.mxu0 %v2104_v25  ;;  %v1365_v37 = vadd.f32 %v1749_v35, %v1357_v34  ;;  %v2094_v45 = vld [vmem:[%s2340_s5] sm:$0xff]  }
 0x14b   : > { %1943 = vmatpush3.bf16.msra.mxu1 %v2088_v30  ;;  %v1750_v46 = vld [vmem:[%s2339_s4] ss:$0 sm:$0xff] }
 0x14c   : > { %1944 = vmatprep.subr.bf16.mxu1 %v2104_v25  ;;  %v1366_v40 = vmax.f32 %v1365_v37, 0.0  ;;  %v1759_v54 = vld [vmem:[%s2341_s6] ss:$0 sm:$0xff] }
 0x14d   : > { %1925 = vmatpush3.bf16.msra.mxu0 %v2081_v27 }
 0x14e   : > { %1926 = vmatprep.subr.bf16.mxu0 %v2104_v25  ;;  %v1367_v43 = vpack.c.bf16 %v1366_v40, %v1366_v40 }
 0x14f   : > { %1945 = vmatpush3.bf16.msra.mxu1 %v2089_v32 }
 0x150   : > { %1946 = vmatprep.subr.bf16.mxu1 %v2104_v25 }
 0x151   : > { %1927 = vmatpush3.bf16.msra.mxu0 %v2082_v29 }
 0x152   : > { %1928 = vmatprep.subr.bf16.mxu0 %v2104_v25 }
 0x153   : > { %1947 = vmatpush3.bf16.msra.mxu1 %v2090_v36 }
 0x154   : > { %1948 = vmatprep.subr.bf16.mxu1 %v2104_v25 }
 0x155   : > { %1929 = vmatpush3.bf16.msra.mxu0 %v2083_v31 }
 0x156   : > { %1930 = vmatprep.subr.bf16.mxu0 %v2104_v25 }
 0x157   : > { %1949 = vmatpush3.bf16.msra.mxu1 %v2091_v39 }
 0x158   : > { %1950 = vmatprep.subr.bf16.mxu1 %v2104_v25 }
 0x159   : > { %1931 = vmatpush3.bf16.msra.mxu0 %v2084_v33 }
 0x15a   : > { %1932 = vmatprep.subr.bf16.mxu0 %v2104_v25 }
 0x15b   : > { %1951 = vmatpush3.bf16.msra.mxu1 %v2092_v42 }
 0x15c   : > { %1952 = vmatprep.subr.bf16.mxu1 %v2104_v25 }
 0x15d   : > { %1933 = vmatpush3.bf16.msra.mxu0 %v2085_v38 }
 0x15e   : > { %1934 = vmatprep.subr.bf16.mxu0 %v2104_v25 }
 0x15f   : > { %1953 = vmatpush3.bf16.msra.mxu1 %v2093_v44 }
 0x160   : > { %1954 = vmatprep.subr.bf16.mxu1 %v2104_v25 }
 0x161   : > { %1935 = vmatpush3.bf16.msra.mxu0 %v2086_v41 }
 0x163   : > { %1955 = vmatpush3.bf16.msra.mxu1 %v2094_v45 }
 0x164   : > { %1937 = vmatmul.mubr.bf16.vlgmr.msra.gmra.mxu0 %v1367_v43 }
 0x224   : > { %v1473_v47 = vpop.f32.mrf.mxu0 }
 0x225   : > { %v1474_v48 = vadd.f32 %v1750_v46, %v1473_v47 }
 0x226   : > { %v1938_v49 = vpop.f32.mrf.mxu0 }
 0x227   : > { %v1479_v50 = vmax.f32 %v1474_v48, 0.0 }
 0x228   : > { %v1476_v51 = vpop.f32.mrf.mxu0 }
 0x229   : > { %v1480_v52 = vpack.c.bf16 %v1479_v50, %v1479_v50 }
 0x22a   : > { %v1939_v53 = vpop.f32.mrf.mxu0 }
 0x22b   : > { %1957 = vmatmul.mubr.bf16.vlgmr.msra.gmra.mxu1 %v1480_v52 }
 0x2eb   : > { %v1586_v55 = vpop.f32.mrf.mxu1 }
 0x2ec   : > { %v1587_v56 = vadd.f32 %v1759_v54, %v1586_v55 }
 0x2ed   : > { %v1958_v57 = vpop.f32.mrf.mxu1 }
 0x2ee   : > { %1592 = vst [vmem:[%s2342_s7] sm:$0xff] %v1587_v56 }
 0x2ef   : > { %v1589_v58 = vpop.f32.mrf.mxu1 }
 0x2f1   : > { %v1959_v59 = vpop.f32.mrf.mxu1 }
 0x2f2 PF: > { %s17_s24 = sadd.s32 1, %s2101_s24  }
 0x2f3   : > { %p14_p7 = scmp.ge.s32.totalorder %s17_s24, 6  }
 0x2f5   :  { %16 = sbr.rel (!%p14_p7) target bundleno = 1 (0x1), region = 85 }

</bundles_post_ra>
